<compile_context>
chip_gen: v5e
topology: v5e:2x2
jax: 0.10.0
libtpu: 0.0.40
codegen_flags: <defaults>
</compile_context>

<pallas_src>
import functools
import math

import jax
import jax.numpy as jnp
from jax import lax
from jax.experimental import pallas as pl
from jax.experimental.pallas import tpu as pltpu


def _cea_kernel(x_ref, w1e_ref, b1e_ref, w2t_ref, bias_ref, mask_ref,
                out_ref, ypad_ref, *, H, W, K, pad, row_block):
    """Fused CEALayer forward for one image of the batch.

    x_ref    : (1, C, H*W)       NCHW-flattened input (spatial on lanes)
    w1e_ref  : (C, C)            group-expanded 1x1 weight (row c = w1[c // group])
    b1e_ref  : (C, 1)            group-expanded 1x1 bias
    w2t_ref  : (C, K*K)          per-output-channel 5x5 tap weights (col = kh*K + kw)
    bias_ref : (C, H*W)          b2 + conv2(constant halo ring), precomputed
    mask_ref : (>=K, H*W)        per-dw lane-validity masks (row = dw + K//2)
    out_ref  : (1, C, H*W)       NCHW-flattened output
    ypad_ref : (C, 2*pad + H*W)  zero-margined, lane-aligned staging scratch
    """
    C = out_ref.shape[1]
    HW = H * W
    R = K // 2

    # ---- conv1 (1x1) with group-expanded weights: one lane-dense MXU matmul.
    y = jnp.dot(w1e_ref[...], x_ref[0], preferred_element_type=jnp.float32)
    y = jnp.maximum(y + b1e_ref[...], 0.0)                   # (C, HW) group-broadcast

    # ---- Stage into the zero-margined scratch.  The interior sits at a
    #      128-aligned lane offset (unmasked full-tile stores); the zero margins
    #      absorb every out-of-image tap read so no halo ring is ever written.
    #      Margins are rewritten each step (cheap, full-tile) so the kernel stays
    #      correct when the parallel batch axis is split across v7x TensorCores.
    ypad_ref[:, :pad] = jnp.zeros((C, pad), jnp.float32)
    ypad_ref[:, pad + HW:] = jnp.zeros((C, pad), jnp.float32)
    ypad_ref[:, pad:pad + HW] = y

    # ---- conv2 (5x5, grouped) as 25 shifted-tap FMAs straight into an
    #      accumulator that is already in output (rows, HW) orientation.
    #      Row-tiled (16 output channels at a time) for vreg pressure.
    for r0 in range(0, C, row_block):
        r1 = min(r0 + row_block, C)
        acc = bias_ref[r0:r1, :]                              # halo + b2 pre-folded
        for dw in range(-R, R + 1):
            partial = jnp.zeros((r1 - r0, HW), jnp.float32)
            for dh in range(-R, R + 1):
                s = dh * W + dw                               # flat spatial shift
                t = (dh + R) * K + (dw + R)                   # tap index kh*K + kw
                wcol = w2t_ref[r0:r1, t:t + 1]                # (rows, 1)
                shifted = ypad_ref[r0:r1, pad + s:pad + s + HW]
                partial = partial + wcol * shifted
            if dw == 0:
                acc = acc + partial                           # dw=0 never wraps
            else:
                acc = acc + mask_ref[dw + R:dw + R + 1, :] * partial
        out_ref[0, r0:r1, :] = (1.0 / (1.0 + jnp.exp(-acc))).astype(out_ref.dtype)


def cealayer_prepare(w1, b1, w2, b2, H, W):
    """One-time parameter prep (hoist out of the per-call path).

    w1: (Cmid, C, 1, 1)  conv1 weight (PyTorch OIHW)
    b1: (Cmid,)
    w2: (C, 1, K, K)     grouped conv2 weight (OIHW, groups=Cmid)
    b2: (C,)
    """
    Cmid, C = w1.shape[0], w1.shape[1]
    K = w2.shape[-1]
    group = C // Cmid
    R = K // 2
    f32 = jnp.float32

    # Group-expanded conv1 params: row c uses mid channel c // group.
    gidx = jnp.arange(C) // group
    w1e = w1.reshape(Cmid, C).astype(f32)[gidx]               # (C, C)
    b1e = b1.astype(f32)[gidx].reshape(C, 1)                  # (C, 1)
    w2t = w2.reshape(C, K * K).astype(f32)                    # (C, K*K)

    # Fold the constant halo into a per-position bias:
    #   conv2 applied to the relu(b1) ring (from conv1's pad=1) is image
    #   independent, so compute it once with a tiny conv and add to b2.
    r = jnp.maximum(b1.astype(f32), 0.0)
    halo = jnp.broadcast_to(r[None, :, None, None], (1, Cmid, H + 2, W + 2))
    halo = halo.at[:, :, 1:H + 1, 1:W + 1].set(0.0)
    dn = ("NCHW", "OIHW", "NCHW")
    edge = lax.conv_general_dilated(halo, w2.astype(f32), (1, 1), ((1, 1), (1, 1)),
                                    dimension_numbers=dn, feature_group_count=Cmid)
    bias_total = edge.reshape(C, H * W) + b2.astype(f32).reshape(C, 1)   # (C, HW)

    # Per-dw lane masks: flat shift dh*W + dw wraps across image rows; lane q is
    # valid for column shift dw iff 0 <= (q mod W) + dw < W.
    q_w = jnp.arange(H * W) % W
    rows = [((q_w + dw >= 0) & (q_w + dw < W)).astype(f32) for dw in range(-R, R + 1)]
    mrows = max(8, -(-K // 8) * 8)
    masks = jnp.zeros((mrows, H * W), f32).at[:K, :].set(jnp.stack(rows))

    return w1e, b1e, w2t, bias_total, masks


def cealayer_apply(x_nchw, w1e, b1e, w2t, bias_total, masks):
    """Run the fused CEALayer kernel on prepared parameters."""
    N, C, H, W = x_nchw.shape
    HW = H * W
    K2 = w2t.shape[-1]
    K = int(math.isqrt(K2))
    R = K // 2
    # Zero margin: >= max flat shift (R*W + R), rounded up so the interior store
    # is lane-tile aligned.
    pad = -(-(R * W + R) // 128) * 128
    row_block = 16 if C % 16 == 0 else C
    mrows = masks.shape[0]

    x_flat = x_nchw.reshape(N, C, HW)          # free reshape of the NCHW layout

    kernel = functools.partial(_cea_kernel, H=H, W=W, K=K, pad=pad,
                               row_block=row_block)

    out_flat = pl.pallas_call(
        kernel,
        out_shape=jax.ShapeDtypeStruct((N, C, HW), x_nchw.dtype),
        grid=(N,),
        in_specs=[
            pl.BlockSpec((1, C, HW), lambda n: (n, 0, 0)),     # x, one image
            pl.BlockSpec((C, C), lambda n: (0, 0)),            # w1 expanded (resident)
            pl.BlockSpec((C, 1), lambda n: (0, 0)),            # b1 expanded
            pl.BlockSpec((C, K2), lambda n: (0, 0)),           # conv2 tap weights
            pl.BlockSpec((C, HW), lambda n: (0, 0)),           # folded bias (b2 + halo)
            pl.BlockSpec((mrows, HW), lambda n: (0, 0)),       # per-dw lane masks
        ],
        out_specs=pl.BlockSpec((1, C, HW), lambda n: (n, 0, 0)),
        scratch_shapes=[pltpu.VMEM((C, 2 * pad + HW), jnp.float32)],
        compiler_params=pltpu.CompilerParams(
            dimension_semantics=("parallel",)),
    )(x_flat, w1e, b1e, w2t, bias_total, masks)

    return out_flat.reshape(N, C, H, W)


def cealayer_pallas(x_nchw, w1, b1, w2, b2):
    """Convenience wrapper matching the PyTorch module interface."""
    _, _, H, W = x_nchw.shape
    params = cealayer_prepare(w1, b1, w2, b2, H, W)
    return cealayer_apply(x_nchw, *params)


def cealayer_reference(x_nchw, w1, b1, w2, b2):
    """Pure-JAX reference mirroring the PyTorch CEALayer forward."""
    Cmid = w1.shape[0]
    dn = ("NCHW", "OIHW", "NCHW")
    y = lax.conv_general_dilated(x_nchw, w1, (1, 1), ((1, 1), (1, 1)),
                                 dimension_numbers=dn)
    y = jnp.maximum(y + b1[None, :, None, None], 0.0)
    z = lax.conv_general_dilated(y, w2, (1, 1), ((1, 1), (1, 1)),
                                 dimension_numbers=dn,
                                 feature_group_count=Cmid)
    z = z + b2[None, :, None, None]
    return jax.nn.sigmoid(z)


if __name__ == "__main__":
    # Module defaults: n_feats=64, reduction=16 -> squeeze channels = 4.
    N, C, H, W = 2, 64, 16, 16
    reduction = 16
    Cmid = C // reduction
    K = 5

    key = jax.random.PRNGKey(0)
    kx, kw1, kb1, kw2, kb2 = jax.random.split(key, 5)
    x = jax.random.normal(kx, (N, C, H, W), jnp.float32)
    w1 = jax.random.normal(kw1, (Cmid, C, 1, 1), jnp.float32) * 0.2
    b1 = jax.random.normal(kb1, (Cmid,), jnp.float32) * 0.2
    w2 = jax.random.normal(kw2, (C, 1, K, K), jnp.float32) * 0.2
    b2 = jax.random.normal(kb2, (C,), jnp.float32) * 0.2

    # Hoist the one-time parameter prep out of the per-call path.
    params = cealayer_prepare(w1, b1, w2, b2, H, W)
    apply_fn = jax.jit(cealayer_apply)

    out = jax.block_until_ready(apply_fn(x, *params))

    ref = cealayer_reference(x, w1, b1, w2, b2)
    assert out.shape == (N, C, H, W)
    assert jnp.allclose(out, ref, atol=1e-4, rtol=1e-4), "mismatch vs reference"

    print("KERNEL_OK")
</pallas_src>

<mosaic_0001>
module attributes {stable_mosaic.version = 11 : i64} {
  func.func @_cea_kernel(%arg0: i32, %arg1: memref<1x64x256xf32, #tpu.memory_space<vmem>>, %arg2: memref<64x64xf32, #tpu.memory_space<vmem>>, %arg3: memref<64x1xf32, #tpu.memory_space<vmem>>, %arg4: memref<64x25xf32, #tpu.memory_space<vmem>>, %arg5: memref<64x256xf32, #tpu.memory_space<vmem>>, %arg6: memref<8x256xf32, #tpu.memory_space<vmem>>, %arg7: memref<1x64x256xf32, #tpu.memory_space<vmem>>, %arg8: memref<64x512xf32, #tpu.memory_space<vmem>>) attributes {dimension_semantics = [#tpu.dimension_semantics<parallel>], iteration_bounds = array<i64: 2>, scalar_prefetch = 0 : i64, scratch_operands = 1 : i64, tpu.core_type = #tpu.core_type<tc>, window_params = [{transform_indices = @transform_0, window_bounds = array<i64: 1, 64, 256>}, {pipeline_mode = #tpu.pipeline_mode<synchronous>, transform_indices = @transform_1, window_bounds = array<i64: 64, 64>}, {pipeline_mode = #tpu.pipeline_mode<synchronous>, transform_indices = @transform_2, window_bounds = array<i64: 64, 1>}, {pipeline_mode = #tpu.pipeline_mode<synchronous>, transform_indices = @transform_3, window_bounds = array<i64: 64, 25>}, {pipeline_mode = #tpu.pipeline_mode<synchronous>, transform_indices = @transform_4, window_bounds = array<i64: 64, 256>}, {pipeline_mode = #tpu.pipeline_mode<synchronous>, transform_indices = @transform_5, window_bounds = array<i64: 8, 256>}, {transform_indices = @transform_6, window_bounds = array<i64: 1, 64, 256>}]} {
    %c0 = arith.constant 0 : index
    %c0_0 = arith.constant 0 : index
    %0 = vector.load %arg2[%c0, %c0_0] : memref<64x64xf32, #tpu.memory_space<vmem>>, vector<64x64xf32>
    %c0_1 = arith.constant 0 : index
    %c0_2 = arith.constant 0 : index
    %c0_3 = arith.constant 0 : index
    %1 = vector.load %arg1[%c0_1, %c0_2, %c0_3] : memref<1x64x256xf32, #tpu.memory_space<vmem>>, vector<1x64x256xf32>
    %2 = vector.shape_cast %1 : vector<1x64x256xf32> to vector<64x256xf32>
    %cst = arith.constant dense<0.000000e+00> : vector<64x256xf32>
    %3 = tpu.matmul %0, %2, %cst {dimension_numbers = #tpu.dot_dimension_numbers<[1], [0], [0], [1], [0, 0, 1, 1], [], []>} : vector<64x64xf32>, vector<64x256xf32>, vector<64x256xf32> -> vector<64x256xf32>
    %c0_4 = arith.constant 0 : index
    %c0_5 = arith.constant 0 : index
    %4 = vector.load %arg3[%c0_4, %c0_5] : memref<64x1xf32, #tpu.memory_space<vmem>>, vector<64x1xf32>
    %5 = vector.broadcast %4 : vector<64x1xf32> to vector<64x256xf32>
    %6 = arith.addf %3, %5 : vector<64x256xf32>
    %cst_6 = arith.constant 0.000000e+00 : f32
    %7 = vector.broadcast %cst_6 : f32 to vector<64x256xf32>
    %8 = arith.maximumf %6, %7 : vector<64x256xf32>
    %cst_7 = arith.constant 0.000000e+00 : f32
    %9 = vector.broadcast %cst_7 : f32 to vector<64x128xf32>
    %c0_8 = arith.constant 0 : index
    %c0_9 = arith.constant 0 : index
    %10 = vector.load %arg8[%c0_8, %c0_9] : memref<64x512xf32, #tpu.memory_space<vmem>>, vector<64x128xf32>
    tpu.vector_store %arg8[%c0_8, %c0_9], %9 {strides = array<i32>} : memref<64x512xf32, #tpu.memory_space<vmem>>, vector<64x128xf32>,
    %cst_10 = arith.constant 0.000000e+00 : f32
    %11 = vector.broadcast %cst_10 : f32 to vector<64x128xf32>
    %c0_11 = arith.constant 0 : index
    %c384 = arith.constant 384 : index
    %12 = vector.load %arg8[%c0_11, %c384] : memref<64x512xf32, #tpu.memory_space<vmem>>, vector<64x128xf32>
    tpu.vector_store %arg8[%c0_11, %c384], %11 {strides = array<i32>} : memref<64x512xf32, #tpu.memory_space<vmem>>, vector<64x128xf32>,
    %c0_12 = arith.constant 0 : index
    %c128 = arith.constant 128 : index
    %13 = vector.load %arg8[%c0_12, %c128] : memref<64x512xf32, #tpu.memory_space<vmem>>, vector<64x256xf32>
    tpu.vector_store %arg8[%c0_12, %c128], %8 {strides = array<i32>} : memref<64x512xf32, #tpu.memory_space<vmem>>, vector<64x256xf32>,
    %c0_13 = arith.constant 0 : index
    %c0_14 = arith.constant 0 : index
    %14 = vector.load %arg5[%c0_13, %c0_14] : memref<64x256xf32, #tpu.memory_space<vmem>>, vector<16x256xf32>
    %cst_15 = arith.constant 0.000000e+00 : f32
    %15 = vector.broadcast %cst_15 : f32 to vector<16x256xf32>
    %c0_16 = arith.constant 0 : index
    %c0_17 = arith.constant 0 : index
    %16 = vector.load %arg4[%c0_16, %c0_17] : memref<64x25xf32, #tpu.memory_space<vmem>>, vector<16x1xf32>
    %c0_18 = arith.constant 0 : index
    %c94 = arith.constant 94 : index
    %17 = vector.load %arg8[%c0_18, %c94] : memref<64x512xf32, #tpu.memory_space<vmem>>, vector<16x256xf32>
    %18 = vector.broadcast %16 : vector<16x1xf32> to vector<16x256xf32>
    %19 = arith.mulf %18, %17 : vector<16x256xf32>
    %20 = arith.addf %15, %19 : vector<16x256xf32>
    %c0_19 = arith.constant 0 : index
    %c5 = arith.constant 5 : index
    %21 = vector.load %arg4[%c0_19, %c5] : memref<64x25xf32, #tpu.memory_space<vmem>>, vector<16x1xf32>
    %c0_20 = arith.constant 0 : index
    %c110 = arith.constant 110 : index
    %22 = vector.load %arg8[%c0_20, %c110] : memref<64x512xf32, #tpu.memory_space<vmem>>, vector<16x256xf32>
    %23 = vector.broadcast %21 : vector<16x1xf32> to vector<16x256xf32>
    %24 = arith.mulf %23, %22 : vector<16x256xf32>
    %25 = arith.addf %20, %24 : vector<16x256xf32>
    %c0_21 = arith.constant 0 : index
    %c10 = arith.constant 10 : index
    %26 = vector.load %arg4[%c0_21, %c10] : memref<64x25xf32, #tpu.memory_space<vmem>>, vector<16x1xf32>
    %c0_22 = arith.constant 0 : index
    %c126 = arith.constant 126 : index
    %27 = vector.load %arg8[%c0_22, %c126] : memref<64x512xf32, #tpu.memory_space<vmem>>, vector<16x256xf32>
    %28 = vector.broadcast %26 : vector<16x1xf32> to vector<16x256xf32>
    %29 = arith.mulf %28, %27 : vector<16x256xf32>
    %30 = arith.addf %25, %29 : vector<16x256xf32>
    %c0_23 = arith.constant 0 : index
    %c15 = arith.constant 15 : index
    %31 = vector.load %arg4[%c0_23, %c15] : memref<64x25xf32, #tpu.memory_space<vmem>>, vector<16x1xf32>
    %c0_24 = arith.constant 0 : index
    %c142 = arith.constant 142 : index
    %32 = vector.load %arg8[%c0_24, %c142] : memref<64x512xf32, #tpu.memory_space<vmem>>, vector<16x256xf32>
    %33 = vector.broadcast %31 : vector<16x1xf32> to vector<16x256xf32>
    %34 = arith.mulf %33, %32 : vector<16x256xf32>
    %35 = arith.addf %30, %34 : vector<16x256xf32>
    %c0_25 = arith.constant 0 : index
    %c20 = arith.constant 20 : index
    %36 = vector.load %arg4[%c0_25, %c20] : memref<64x25xf32, #tpu.memory_space<vmem>>, vector<16x1xf32>
    %c0_26 = arith.constant 0 : index
    %c158 = arith.constant 158 : index
    %37 = vector.load %arg8[%c0_26, %c158] : memref<64x512xf32, #tpu.memory_space<vmem>>, vector<16x256xf32>
    %38 = vector.broadcast %36 : vector<16x1xf32> to vector<16x256xf32>
    %39 = arith.mulf %38, %37 : vector<16x256xf32>
    %40 = arith.addf %35, %39 : vector<16x256xf32>
    %c0_27 = arith.constant 0 : index
    %c0_28 = arith.constant 0 : index
    %41 = vector.load %arg6[%c0_27, %c0_28] : memref<8x256xf32, #tpu.memory_space<vmem>>, vector<1x256xf32>
    %42 = vector.broadcast %41 : vector<1x256xf32> to vector<16x256xf32>
    %43 = arith.mulf %42, %40 : vector<16x256xf32>
    %44 = arith.addf %14, %43 : vector<16x256xf32>
    %cst_29 = arith.constant 0.000000e+00 : f32
    %45 = vector.broadcast %cst_29 : f32 to vector<16x256xf32>
    %c0_30 = arith.constant 0 : index
    %c1 = arith.constant 1 : index
    %46 = vector.load %arg4[%c0_30, %c1] : memref<64x25xf32, #tpu.memory_space<vmem>>, vector<16x1xf32>
    %c0_31 = arith.constant 0 : index
    %c95 = arith.constant 95 : index
    %47 = vector.load %arg8[%c0_31, %c95] : memref<64x512xf32, #tpu.memory_space<vmem>>, vector<16x256xf32>
    %48 = vector.broadcast %46 : vector<16x1xf32> to vector<16x256xf32>
    %49 = arith.mulf %48, %47 : vector<16x256xf32>
    %50 = arith.addf %45, %49 : vector<16x256xf32>
    %c0_32 = arith.constant 0 : index
    %c6 = arith.constant 6 : index
    %51 = vector.load %arg4[%c0_32, %c6] : memref<64x25xf32, #tpu.memory_space<vmem>>, vector<16x1xf32>
    %c0_33 = arith.constant 0 : index
    %c111 = arith.constant 111 : index
    %52 = vector.load %arg8[%c0_33, %c111] : memref<64x512xf32, #tpu.memory_space<vmem>>, vector<16x256xf32>
    %53 = vector.broadcast %51 : vector<16x1xf32> to vector<16x256xf32>
    %54 = arith.mulf %53, %52 : vector<16x256xf32>
    %55 = arith.addf %50, %54 : vector<16x256xf32>
    %c0_34 = arith.constant 0 : index
    %c11 = arith.constant 11 : index
    %56 = vector.load %arg4[%c0_34, %c11] : memref<64x25xf32, #tpu.memory_space<vmem>>, vector<16x1xf32>
    %c0_35 = arith.constant 0 : index
    %c127 = arith.constant 127 : index
    %57 = vector.load %arg8[%c0_35, %c127] : memref<64x512xf32, #tpu.memory_space<vmem>>, vector<16x256xf32>
    %58 = vector.broadcast %56 : vector<16x1xf32> to vector<16x256xf32>
    %59 = arith.mulf %58, %57 : vector<16x256xf32>
    %60 = arith.addf %55, %59 : vector<16x256xf32>
    %c0_36 = arith.constant 0 : index
    %c16 = arith.constant 16 : index
    %61 = vector.load %arg4[%c0_36, %c16] : memref<64x25xf32, #tpu.memory_space<vmem>>, vector<16x1xf32>
    %c0_37 = arith.constant 0 : index
    %c143 = arith.constant 143 : index
    %62 = vector.load %arg8[%c0_37, %c143] : memref<64x512xf32, #tpu.memory_space<vmem>>, vector<16x256xf32>
    %63 = vector.broadcast %61 : vector<16x1xf32> to vector<16x256xf32>
    %64 = arith.mulf %63, %62 : vector<16x256xf32>
    %65 = arith.addf %60, %64 : vector<16x256xf32>
    %c0_38 = arith.constant 0 : index
    %c21 = arith.constant 21 : index
    %66 = vector.load %arg4[%c0_38, %c21] : memref<64x25xf32, #tpu.memory_space<vmem>>, vector<16x1xf32>
    %c0_39 = arith.constant 0 : index
    %c159 = arith.constant 159 : index
    %67 = vector.load %arg8[%c0_39, %c159] : memref<64x512xf32, #tpu.memory_space<vmem>>, vector<16x256xf32>
    %68 = vector.broadcast %66 : vector<16x1xf32> to vector<16x256xf32>
    %69 = arith.mulf %68, %67 : vector<16x256xf32>
    %70 = arith.addf %65, %69 : vector<16x256xf32>
    %c1_40 = arith.constant 1 : index
    %c0_41 = arith.constant 0 : index
    %71 = vector.load %arg6[%c1_40, %c0_41] : memref<8x256xf32, #tpu.memory_space<vmem>>, vector<1x256xf32>
    %72 = vector.broadcast %71 : vector<1x256xf32> to vector<16x256xf32>
    %73 = arith.mulf %72, %70 : vector<16x256xf32>
    %74 = arith.addf %44, %73 : vector<16x256xf32>
    %cst_42 = arith.constant 0.000000e+00 : f32
    %75 = vector.broadcast %cst_42 : f32 to vector<16x256xf32>
    %c0_43 = arith.constant 0 : index
    %c2 = arith.constant 2 : index
    %76 = vector.load %arg4[%c0_43, %c2] : memref<64x25xf32, #tpu.memory_space<vmem>>, vector<16x1xf32>
    %c0_44 = arith.constant 0 : index
    %c96 = arith.constant 96 : index
    %77 = vector.load %arg8[%c0_44, %c96] : memref<64x512xf32, #tpu.memory_space<vmem>>, vector<16x256xf32>
    %78 = vector.broadcast %76 : vector<16x1xf32> to vector<16x256xf32>
    %79 = arith.mulf %78, %77 : vector<16x256xf32>
    %80 = arith.addf %75, %79 : vector<16x256xf32>
    %c0_45 = arith.constant 0 : index
    %c7 = arith.constant 7 : index
    %81 = vector.load %arg4[%c0_45, %c7] : memref<64x25xf32, #tpu.memory_space<vmem>>, vector<16x1xf32>
    %c0_46 = arith.constant 0 : index
    %c112 = arith.constant 112 : index
    %82 = vector.load %arg8[%c0_46, %c112] : memref<64x512xf32, #tpu.memory_space<vmem>>, vector<16x256xf32>
    %83 = vector.broadcast %81 : vector<16x1xf32> to vector<16x256xf32>
    %84 = arith.mulf %83, %82 : vector<16x256xf32>
    %85 = arith.addf %80, %84 : vector<16x256xf32>
    %c0_47 = arith.constant 0 : index
    %c12 = arith.constant 12 : index
    %86 = vector.load %arg4[%c0_47, %c12] : memref<64x25xf32, #tpu.memory_space<vmem>>, vector<16x1xf32>
    %c0_48 = arith.constant 0 : index
    %c128_49 = arith.constant 128 : index
    %87 = vector.load %arg8[%c0_48, %c128_49] : memref<64x512xf32, #tpu.memory_space<vmem>>, vector<16x256xf32>
    %88 = vector.broadcast %86 : vector<16x1xf32> to vector<16x256xf32>
    %89 = arith.mulf %88, %87 : vector<16x256xf32>
    %90 = arith.addf %85, %89 : vector<16x256xf32>
    %c0_50 = arith.constant 0 : index
    %c17 = arith.constant 17 : index
    %91 = vector.load %arg4[%c0_50, %c17] : memref<64x25xf32, #tpu.memory_space<vmem>>, vector<16x1xf32>
    %c0_51 = arith.constant 0 : index
    %c144 = arith.constant 144 : index
    %92 = vector.load %arg8[%c0_51, %c144] : memref<64x512xf32, #tpu.memory_space<vmem>>, vector<16x256xf32>
    %93 = vector.broadcast %91 : vector<16x1xf32> to vector<16x256xf32>
    %94 = arith.mulf %93, %92 : vector<16x256xf32>
    %95 = arith.addf %90, %94 : vector<16x256xf32>
    %c0_52 = arith.constant 0 : index
    %c22 = arith.constant 22 : index
    %96 = vector.load %arg4[%c0_52, %c22] : memref<64x25xf32, #tpu.memory_space<vmem>>, vector<16x1xf32>
    %c0_53 = arith.constant 0 : index
    %c160 = arith.constant 160 : index
    %97 = vector.load %arg8[%c0_53, %c160] : memref<64x512xf32, #tpu.memory_space<vmem>>, vector<16x256xf32>
    %98 = vector.broadcast %96 : vector<16x1xf32> to vector<16x256xf32>
    %99 = arith.mulf %98, %97 : vector<16x256xf32>
    %100 = arith.addf %95, %99 : vector<16x256xf32>
    %101 = arith.addf %74, %100 : vector<16x256xf32>
    %cst_54 = arith.constant 0.000000e+00 : f32
    %102 = vector.broadcast %cst_54 : f32 to vector<16x256xf32>
    %c0_55 = arith.constant 0 : index
    %c3 = arith.constant 3 : index
    %103 = vector.load %arg4[%c0_55, %c3] : memref<64x25xf32, #tpu.memory_space<vmem>>, vector<16x1xf32>
    %c0_56 = arith.constant 0 : index
    %c97 = arith.constant 97 : index
    %104 = vector.load %arg8[%c0_56, %c97] : memref<64x512xf32, #tpu.memory_space<vmem>>, vector<16x256xf32>
    %105 = vector.broadcast %103 : vector<16x1xf32> to vector<16x256xf32>
    %106 = arith.mulf %105, %104 : vector<16x256xf32>
    %107 = arith.addf %102, %106 : vector<16x256xf32>
    %c0_57 = arith.constant 0 : index
    %c8 = arith.constant 8 : index
    %108 = vector.load %arg4[%c0_57, %c8] : memref<64x25xf32, #tpu.memory_space<vmem>>, vector<16x1xf32>
    %c0_58 = arith.constant 0 : index
    %c113 = arith.constant 113 : index
    %109 = vector.load %arg8[%c0_58, %c113] : memref<64x512xf32, #tpu.memory_space<vmem>>, vector<16x256xf32>
    %110 = vector.broadcast %108 : vector<16x1xf32> to vector<16x256xf32>
    %111 = arith.mulf %110, %109 : vector<16x256xf32>
    %112 = arith.addf %107, %111 : vector<16x256xf32>
    %c0_59 = arith.constant 0 : index
    %c13 = arith.constant 13 : index
    %113 = vector.load %arg4[%c0_59, %c13] : memref<64x25xf32, #tpu.memory_space<vmem>>, vector<16x1xf32>
    %c0_60 = arith.constant 0 : index
    %c129 = arith.constant 129 : index
    %114 = vector.load %arg8[%c0_60, %c129] : memref<64x512xf32, #tpu.memory_space<vmem>>, vector<16x256xf32>
    %115 = vector.broadcast %113 : vector<16x1xf32> to vector<16x256xf32>
    %116 = arith.mulf %115, %114 : vector<16x256xf32>
    %117 = arith.addf %112, %116 : vector<16x256xf32>
    %c0_61 = arith.constant 0 : index
    %c18 = arith.constant 18 : index
    %118 = vector.load %arg4[%c0_61, %c18] : memref<64x25xf32, #tpu.memory_space<vmem>>, vector<16x1xf32>
    %c0_62 = arith.constant 0 : index
    %c145 = arith.constant 145 : index
    %119 = vector.load %arg8[%c0_62, %c145] : memref<64x512xf32, #tpu.memory_space<vmem>>, vector<16x256xf32>
    %120 = vector.broadcast %118 : vector<16x1xf32> to vector<16x256xf32>
    %121 = arith.mulf %120, %119 : vector<16x256xf32>
    %122 = arith.addf %117, %121 : vector<16x256xf32>
    %c0_63 = arith.constant 0 : index
    %c23 = arith.constant 23 : index
    %123 = vector.load %arg4[%c0_63, %c23] : memref<64x25xf32, #tpu.memory_space<vmem>>, vector<16x1xf32>
    %c0_64 = arith.constant 0 : index
    %c161 = arith.constant 161 : index
    %124 = vector.load %arg8[%c0_64, %c161] : memref<64x512xf32, #tpu.memory_space<vmem>>, vector<16x256xf32>
    %125 = vector.broadcast %123 : vector<16x1xf32> to vector<16x256xf32>
    %126 = arith.mulf %125, %124 : vector<16x256xf32>
    %127 = arith.addf %122, %126 : vector<16x256xf32>
    %c3_65 = arith.constant 3 : index
    %c0_66 = arith.constant 0 : index
    %128 = vector.load %arg6[%c3_65, %c0_66] : memref<8x256xf32, #tpu.memory_space<vmem>>, vector<1x256xf32>
    %129 = vector.broadcast %128 : vector<1x256xf32> to vector<16x256xf32>
    %130 = arith.mulf %129, %127 : vector<16x256xf32>
    %131 = arith.addf %101, %130 : vector<16x256xf32>
    %cst_67 = arith.constant 0.000000e+00 : f32
    %132 = vector.broadcast %cst_67 : f32 to vector<16x256xf32>
    %c0_68 = arith.constant 0 : index
    %c4 = arith.constant 4 : index
    %133 = vector.load %arg4[%c0_68, %c4] : memref<64x25xf32, #tpu.memory_space<vmem>>, vector<16x1xf32>
    %c0_69 = arith.constant 0 : index
    %c98 = arith.constant 98 : index
    %134 = vector.load %arg8[%c0_69, %c98] : memref<64x512xf32, #tpu.memory_space<vmem>>, vector<16x256xf32>
    %135 = vector.broadcast %133 : vector<16x1xf32> to vector<16x256xf32>
    %136 = arith.mulf %135, %134 : vector<16x256xf32>
    %137 = arith.addf %132, %136 : vector<16x256xf32>
    %c0_70 = arith.constant 0 : index
    %c9 = arith.constant 9 : index
    %138 = vector.load %arg4[%c0_70, %c9] : memref<64x25xf32, #tpu.memory_space<vmem>>, vector<16x1xf32>
    %c0_71 = arith.constant 0 : index
    %c114 = arith.constant 114 : index
    %139 = vector.load %arg8[%c0_71, %c114] : memref<64x512xf32, #tpu.memory_space<vmem>>, vector<16x256xf32>
    %140 = vector.broadcast %138 : vector<16x1xf32> to vector<16x256xf32>
    %141 = arith.mulf %140, %139 : vector<16x256xf32>
    %142 = arith.addf %137, %141 : vector<16x256xf32>
    %c0_72 = arith.constant 0 : index
    %c14 = arith.constant 14 : index
    %143 = vector.load %arg4[%c0_72, %c14] : memref<64x25xf32, #tpu.memory_space<vmem>>, vector<16x1xf32>
    %c0_73 = arith.constant 0 : index
    %c130 = arith.constant 130 : index
    %144 = vector.load %arg8[%c0_73, %c130] : memref<64x512xf32, #tpu.memory_space<vmem>>, vector<16x256xf32>
    %145 = vector.broadcast %143 : vector<16x1xf32> to vector<16x256xf32>
    %146 = arith.mulf %145, %144 : vector<16x256xf32>
    %147 = arith.addf %142, %146 : vector<16x256xf32>
    %c0_74 = arith.constant 0 : index
    %c19 = arith.constant 19 : index
    %148 = vector.load %arg4[%c0_74, %c19] : memref<64x25xf32, #tpu.memory_space<vmem>>, vector<16x1xf32>
    %c0_75 = arith.constant 0 : index
    %c146 = arith.constant 146 : index
    %149 = vector.load %arg8[%c0_75, %c146] : memref<64x512xf32, #tpu.memory_space<vmem>>, vector<16x256xf32>
    %150 = vector.broadcast %148 : vector<16x1xf32> to vector<16x256xf32>
    %151 = arith.mulf %150, %149 : vector<16x256xf32>
    %152 = arith.addf %147, %151 : vector<16x256xf32>
    %c0_76 = arith.constant 0 : index
    %c24 = arith.constant 24 : index
    %153 = vector.load %arg4[%c0_76, %c24] : memref<64x25xf32, #tpu.memory_space<vmem>>, vector<16x1xf32>
    %c0_77 = arith.constant 0 : index
    %c162 = arith.constant 162 : index
    %154 = vector.load %arg8[%c0_77, %c162] : memref<64x512xf32, #tpu.memory_space<vmem>>, vector<16x256xf32>
    %155 = vector.broadcast %153 : vector<16x1xf32> to vector<16x256xf32>
    %156 = arith.mulf %155, %154 : vector<16x256xf32>
    %157 = arith.addf %152, %156 : vector<16x256xf32>
    %c4_78 = arith.constant 4 : index
    %c0_79 = arith.constant 0 : index
    %158 = vector.load %arg6[%c4_78, %c0_79] : memref<8x256xf32, #tpu.memory_space<vmem>>, vector<1x256xf32>
    %159 = vector.broadcast %158 : vector<1x256xf32> to vector<16x256xf32>
    %160 = arith.mulf %159, %157 : vector<16x256xf32>
    %161 = arith.addf %131, %160 : vector<16x256xf32>
    %cst_80 = arith.constant 0.000000e+00 : f32
    %162 = vector.broadcast %cst_80 : f32 to vector<16x256xf32>
    %163 = arith.subf %162, %161 : vector<16x256xf32>
    %164 = math.exp %163 : vector<16x256xf32>
    %cst_81 = arith.constant 1.000000e+00 : f32
    %165 = vector.broadcast %cst_81 : f32 to vector<16x256xf32>
    %166 = arith.addf %165, %164 : vector<16x256xf32>
    %cst_82 = arith.constant 1.000000e+00 : f32
    %167 = vector.broadcast %cst_82 : f32 to vector<16x256xf32>
    %168 = arith.divf %167, %166 : vector<16x256xf32>
    %c0_83 = arith.constant 0 : index
    %c0_84 = arith.constant 0 : index
    %c0_85 = arith.constant 0 : index
    %169 = vector.load %arg7[%c0_83, %c0_84, %c0_85] : memref<1x64x256xf32, #tpu.memory_space<vmem>>, vector<1x16x256xf32>
    %170 = vector.shape_cast %169 : vector<1x16x256xf32> to vector<16x256xf32>
    %171 = vector.shape_cast %168 : vector<16x256xf32> to vector<1x16x256xf32>
    tpu.vector_store %arg7[%c0_83, %c0_84, %c0_85], %171 {strides = array<i32>} : memref<1x64x256xf32, #tpu.memory_space<vmem>>, vector<1x16x256xf32>,
    %c16_86 = arith.constant 16 : index
    %c0_87 = arith.constant 0 : index
    %172 = vector.load %arg5[%c16_86, %c0_87] : memref<64x256xf32, #tpu.memory_space<vmem>>, vector<16x256xf32>
    %cst_88 = arith.constant 0.000000e+00 : f32
    %173 = vector.broadcast %cst_88 : f32 to vector<16x256xf32>
    %c16_89 = arith.constant 16 : index
    %c0_90 = arith.constant 0 : index
    %174 = vector.load %arg4[%c16_89, %c0_90] : memref<64x25xf32, #tpu.memory_space<vmem>>, vector<16x1xf32>
    %c16_91 = arith.constant 16 : index
    %c94_92 = arith.constant 94 : index
    %175 = vector.load %arg8[%c16_91, %c94_92] : memref<64x512xf32, #tpu.memory_space<vmem>>, vector<16x256xf32>
    %176 = vector.broadcast %174 : vector<16x1xf32> to vector<16x256xf32>
    %177 = arith.mulf %176, %175 : vector<16x256xf32>
    %178 = arith.addf %173, %177 : vector<16x256xf32>
    %c16_93 = arith.constant 16 : index
    %c5_94 = arith.constant 5 : index
    %179 = vector.load %arg4[%c16_93, %c5_94] : memref<64x25xf32, #tpu.memory_space<vmem>>, vector<16x1xf32>
    %c16_95 = arith.constant 16 : index
    %c110_96 = arith.constant 110 : index
    %180 = vector.load %arg8[%c16_95, %c110_96] : memref<64x512xf32, #tpu.memory_space<vmem>>, vector<16x256xf32>
    %181 = vector.broadcast %179 : vector<16x1xf32> to vector<16x256xf32>
    %182 = arith.mulf %181, %180 : vector<16x256xf32>
    %183 = arith.addf %178, %182 : vector<16x256xf32>
    %c16_97 = arith.constant 16 : index
    %c10_98 = arith.constant 10 : index
    %184 = vector.load %arg4[%c16_97, %c10_98] : memref<64x25xf32, #tpu.memory_space<vmem>>, vector<16x1xf32>
    %c16_99 = arith.constant 16 : index
    %c126_100 = arith.constant 126 : index
    %185 = vector.load %arg8[%c16_99, %c126_100] : memref<64x512xf32, #tpu.memory_space<vmem>>, vector<16x256xf32>
    %186 = vector.broadcast %184 : vector<16x1xf32> to vector<16x256xf32>
    %187 = arith.mulf %186, %185 : vector<16x256xf32>
    %188 = arith.addf %183, %187 : vector<16x256xf32>
    %c16_101 = arith.constant 16 : index
    %c15_102 = arith.constant 15 : index
    %189 = vector.load %arg4[%c16_101, %c15_102] : memref<64x25xf32, #tpu.memory_space<vmem>>, vector<16x1xf32>
    %c16_103 = arith.constant 16 : index
    %c142_104 = arith.constant 142 : index
    %190 = vector.load %arg8[%c16_103, %c142_104] : memref<64x512xf32, #tpu.memory_space<vmem>>, vector<16x256xf32>
    %191 = vector.broadcast %189 : vector<16x1xf32> to vector<16x256xf32>
    %192 = arith.mulf %191, %190 : vector<16x256xf32>
    %193 = arith.addf %188, %192 : vector<16x256xf32>
    %c16_105 = arith.constant 16 : index
    %c20_106 = arith.constant 20 : index
    %194 = vector.load %arg4[%c16_105, %c20_106] : memref<64x25xf32, #tpu.memory_space<vmem>>, vector<16x1xf32>
    %c16_107 = arith.constant 16 : index
    %c158_108 = arith.constant 158 : index
    %195 = vector.load %arg8[%c16_107, %c158_108] : memref<64x512xf32, #tpu.memory_space<vmem>>, vector<16x256xf32>
    %196 = vector.broadcast %194 : vector<16x1xf32> to vector<16x256xf32>
    %197 = arith.mulf %196, %195 : vector<16x256xf32>
    %198 = arith.addf %193, %197 : vector<16x256xf32>
    %c0_109 = arith.constant 0 : index
    %c0_110 = arith.constant 0 : index
    %199 = vector.load %arg6[%c0_109, %c0_110] : memref<8x256xf32, #tpu.memory_space<vmem>>, vector<1x256xf32>
    %200 = vector.broadcast %199 : vector<1x256xf32> to vector<16x256xf32>
    %201 = arith.mulf %200, %198 : vector<16x256xf32>
    %202 = arith.addf %172, %201 : vector<16x256xf32>
    %cst_111 = arith.constant 0.000000e+00 : f32
    %203 = vector.broadcast %cst_111 : f32 to vector<16x256xf32>
    %c16_112 = arith.constant 16 : index
    %c1_113 = arith.constant 1 : index
    %204 = vector.load %arg4[%c16_112, %c1_113] : memref<64x25xf32, #tpu.memory_space<vmem>>, vector<16x1xf32>
    %c16_114 = arith.constant 16 : index
    %c95_115 = arith.constant 95 : index
    %205 = vector.load %arg8[%c16_114, %c95_115] : memref<64x512xf32, #tpu.memory_space<vmem>>, vector<16x256xf32>
    %206 = vector.broadcast %204 : vector<16x1xf32> to vector<16x256xf32>
    %207 = arith.mulf %206, %205 : vector<16x256xf32>
    %208 = arith.addf %203, %207 : vector<16x256xf32>
    %c16_116 = arith.constant 16 : index
    %c6_117 = arith.constant 6 : index
    %209 = vector.load %arg4[%c16_116, %c6_117] : memref<64x25xf32, #tpu.memory_space<vmem>>, vector<16x1xf32>
    %c16_118 = arith.constant 16 : index
    %c111_119 = arith.constant 111 : index
    %210 = vector.load %arg8[%c16_118, %c111_119] : memref<64x512xf32, #tpu.memory_space<vmem>>, vector<16x256xf32>
    %211 = vector.broadcast %209 : vector<16x1xf32> to vector<16x256xf32>
    %212 = arith.mulf %211, %210 : vector<16x256xf32>
    %213 = arith.addf %208, %212 : vector<16x256xf32>
    %c16_120 = arith.constant 16 : index
    %c11_121 = arith.constant 11 : index
    %214 = vector.load %arg4[%c16_120, %c11_121] : memref<64x25xf32, #tpu.memory_space<vmem>>, vector<16x1xf32>
    %c16_122 = arith.constant 16 : index
    %c127_123 = arith.constant 127 : index
    %215 = vector.load %arg8[%c16_122, %c127_123] : memref<64x512xf32, #tpu.memory_space<vmem>>, vector<16x256xf32>
    %216 = vector.broadcast %214 : vector<16x1xf32> to vector<16x256xf32>
    %217 = arith.mulf %216, %215 : vector<16x256xf32>
    %218 = arith.addf %213, %217 : vector<16x256xf32>
    %c16_124 = arith.constant 16 : index
    %c16_125 = arith.constant 16 : index
    %219 = vector.load %arg4[%c16_124, %c16_125] : memref<64x25xf32, #tpu.memory_space<vmem>>, vector<16x1xf32>
    %c16_126 = arith.constant 16 : index
    %c143_127 = arith.constant 143 : index
    %220 = vector.load %arg8[%c16_126, %c143_127] : memref<64x512xf32, #tpu.memory_space<vmem>>, vector<16x256xf32>
    %221 = vector.broadcast %219 : vector<16x1xf32> to vector<16x256xf32>
    %222 = arith.mulf %221, %220 : vector<16x256xf32>
    %223 = arith.addf %218, %222 : vector<16x256xf32>
    %c16_128 = arith.constant 16 : index
    %c21_129 = arith.constant 21 : index
    %224 = vector.load %arg4[%c16_128, %c21_129] : memref<64x25xf32, #tpu.memory_space<vmem>>, vector<16x1xf32>
    %c16_130 = arith.constant 16 : index
    %c159_131 = arith.constant 159 : index
    %225 = vector.load %arg8[%c16_130, %c159_131] : memref<64x512xf32, #tpu.memory_space<vmem>>, vector<16x256xf32>
    %226 = vector.broadcast %224 : vector<16x1xf32> to vector<16x256xf32>
    %227 = arith.mulf %226, %225 : vector<16x256xf32>
    %228 = arith.addf %223, %227 : vector<16x256xf32>
    %c1_132 = arith.constant 1 : index
    %c0_133 = arith.constant 0 : index
    %229 = vector.load %arg6[%c1_132, %c0_133] : memref<8x256xf32, #tpu.memory_space<vmem>>, vector<1x256xf32>
    %230 = vector.broadcast %229 : vector<1x256xf32> to vector<16x256xf32>
    %231 = arith.mulf %230, %228 : vector<16x256xf32>
    %232 = arith.addf %202, %231 : vector<16x256xf32>
    %cst_134 = arith.constant 0.000000e+00 : f32
    %233 = vector.broadcast %cst_134 : f32 to vector<16x256xf32>
    %c16_135 = arith.constant 16 : index
    %c2_136 = arith.constant 2 : index
    %234 = vector.load %arg4[%c16_135, %c2_136] : memref<64x25xf32, #tpu.memory_space<vmem>>, vector<16x1xf32>
    %c16_137 = arith.constant 16 : index
    %c96_138 = arith.constant 96 : index
    %235 = vector.load %arg8[%c16_137, %c96_138] : memref<64x512xf32, #tpu.memory_space<vmem>>, vector<16x256xf32>
    %236 = vector.broadcast %234 : vector<16x1xf32> to vector<16x256xf32>
    %237 = arith.mulf %236, %235 : vector<16x256xf32>
    %238 = arith.addf %233, %237 : vector<16x256xf32>
    %c16_139 = arith.constant 16 : index
    %c7_140 = arith.constant 7 : index
    %239 = vector.load %arg4[%c16_139, %c7_140] : memref<64x25xf32, #tpu.memory_space<vmem>>, vector<16x1xf32>
    %c16_141 = arith.constant 16 : index
    %c112_142 = arith.constant 112 : index
    %240 = vector.load %arg8[%c16_141, %c112_142] : memref<64x512xf32, #tpu.memory_space<vmem>>, vector<16x256xf32>
    %241 = vector.broadcast %239 : vector<16x1xf32> to vector<16x256xf32>
    %242 = arith.mulf %241, %240 : vector<16x256xf32>
    %243 = arith.addf %238, %242 : vector<16x256xf32>
    %c16_143 = arith.constant 16 : index
    %c12_144 = arith.constant 12 : index
    %244 = vector.load %arg4[%c16_143, %c12_144] : memref<64x25xf32, #tpu.memory_space<vmem>>, vector<16x1xf32>
    %c16_145 = arith.constant 16 : index
    %c128_146 = arith.constant 128 : index
    %245 = vector.load %arg8[%c16_145, %c128_146] : memref<64x512xf32, #tpu.memory_space<vmem>>, vector<16x256xf32>
    %246 = vector.broadcast %244 : vector<16x1xf32> to vector<16x256xf32>
    %247 = arith.mulf %246, %245 : vector<16x256xf32>
    %248 = arith.addf %243, %247 : vector<16x256xf32>
    %c16_147 = arith.constant 16 : index
    %c17_148 = arith.constant 17 : index
    %249 = vector.load %arg4[%c16_147, %c17_148] : memref<64x25xf32, #tpu.memory_space<vmem>>, vector<16x1xf32>
    %c16_149 = arith.constant 16 : index
    %c144_150 = arith.constant 144 : index
    %250 = vector.load %arg8[%c16_149, %c144_150] : memref<64x512xf32, #tpu.memory_space<vmem>>, vector<16x256xf32>
    %251 = vector.broadcast %249 : vector<16x1xf32> to vector<16x256xf32>
    %252 = arith.mulf %251, %250 : vector<16x256xf32>
    %253 = arith.addf %248, %252 : vector<16x256xf32>
    %c16_151 = arith.constant 16 : index
    %c22_152 = arith.constant 22 : index
    %254 = vector.load %arg4[%c16_151, %c22_152] : memref<64x25xf32, #tpu.memory_space<vmem>>, vector<16x1xf32>
    %c16_153 = arith.constant 16 : index
    %c160_154 = arith.constant 160 : index
    %255 = vector.load %arg8[%c16_153, %c160_154] : memref<64x512xf32, #tpu.memory_space<vmem>>, vector<16x256xf32>
    %256 = vector.broadcast %254 : vector<16x1xf32> to vector<16x256xf32>
    %257 = arith.mulf %256, %255 : vector<16x256xf32>
    %258 = arith.addf %253, %257 : vector<16x256xf32>
    %259 = arith.addf %232, %258 : vector<16x256xf32>
    %cst_155 = arith.constant 0.000000e+00 : f32
    %260 = vector.broadcast %cst_155 : f32 to vector<16x256xf32>
    %c16_156 = arith.constant 16 : index
    %c3_157 = arith.constant 3 : index
    %261 = vector.load %arg4[%c16_156, %c3_157] : memref<64x25xf32, #tpu.memory_space<vmem>>, vector<16x1xf32>
    %c16_158 = arith.constant 16 : index
    %c97_159 = arith.constant 97 : index
    %262 = vector.load %arg8[%c16_158, %c97_159] : memref<64x512xf32, #tpu.memory_space<vmem>>, vector<16x256xf32>
    %263 = vector.broadcast %261 : vector<16x1xf32> to vector<16x256xf32>
    %264 = arith.mulf %263, %262 : vector<16x256xf32>
    %265 = arith.addf %260, %264 : vector<16x256xf32>
    %c16_160 = arith.constant 16 : index
    %c8_161 = arith.constant 8 : index
    %266 = vector.load %arg4[%c16_160, %c8_161] : memref<64x25xf32, #tpu.memory_space<vmem>>, vector<16x1xf32>
    %c16_162 = arith.constant 16 : index
    %c113_163 = arith.constant 113 : index
    %267 = vector.load %arg8[%c16_162, %c113_163] : memref<64x512xf32, #tpu.memory_space<vmem>>, vector<16x256xf32>
    %268 = vector.broadcast %266 : vector<16x1xf32> to vector<16x256xf32>
    %269 = arith.mulf %268, %267 : vector<16x256xf32>
    %270 = arith.addf %265, %269 : vector<16x256xf32>
    %c16_164 = arith.constant 16 : index
    %c13_165 = arith.constant 13 : index
    %271 = vector.load %arg4[%c16_164, %c13_165] : memref<64x25xf32, #tpu.memory_space<vmem>>, vector<16x1xf32>
    %c16_166 = arith.constant 16 : index
    %c129_167 = arith.constant 129 : index
    %272 = vector.load %arg8[%c16_166, %c129_167] : memref<64x512xf32, #tpu.memory_space<vmem>>, vector<16x256xf32>
    %273 = vector.broadcast %271 : vector<16x1xf32> to vector<16x256xf32>
    %274 = arith.mulf %273, %272 : vector<16x256xf32>
    %275 = arith.addf %270, %274 : vector<16x256xf32>
    %c16_168 = arith.constant 16 : index
    %c18_169 = arith.constant 18 : index
    %276 = vector.load %arg4[%c16_168, %c18_169] : memref<64x25xf32, #tpu.memory_space<vmem>>, vector<16x1xf32>
    %c16_170 = arith.constant 16 : index
    %c145_171 = arith.constant 145 : index
    %277 = vector.load %arg8[%c16_170, %c145_171] : memref<64x512xf32, #tpu.memory_space<vmem>>, vector<16x256xf32>
    %278 = vector.broadcast %276 : vector<16x1xf32> to vector<16x256xf32>
    %279 = arith.mulf %278, %277 : vector<16x256xf32>
    %280 = arith.addf %275, %279 : vector<16x256xf32>
    %c16_172 = arith.constant 16 : index
    %c23_173 = arith.constant 23 : index
    %281 = vector.load %arg4[%c16_172, %c23_173] : memref<64x25xf32, #tpu.memory_space<vmem>>, vector<16x1xf32>
    %c16_174 = arith.constant 16 : index
    %c161_175 = arith.constant 161 : index
    %282 = vector.load %arg8[%c16_174, %c161_175] : memref<64x512xf32, #tpu.memory_space<vmem>>, vector<16x256xf32>
    %283 = vector.broadcast %281 : vector<16x1xf32> to vector<16x256xf32>
    %284 = arith.mulf %283, %282 : vector<16x256xf32>
    %285 = arith.addf %280, %284 : vector<16x256xf32>
    %c3_176 = arith.constant 3 : index
    %c0_177 = arith.constant 0 : index
    %286 = vector.load %arg6[%c3_176, %c0_177] : memref<8x256xf32, #tpu.memory_space<vmem>>, vector<1x256xf32>
    %287 = vector.broadcast %286 : vector<1x256xf32> to vector<16x256xf32>
    %288 = arith.mulf %287, %285 : vector<16x256xf32>
    %289 = arith.addf %259, %288 : vector<16x256xf32>
    %cst_178 = arith.constant 0.000000e+00 : f32
    %290 = vector.broadcast %cst_178 : f32 to vector<16x256xf32>
    %c16_179 = arith.constant 16 : index
    %c4_180 = arith.constant 4 : index
    %291 = vector.load %arg4[%c16_179, %c4_180] : memref<64x25xf32, #tpu.memory_space<vmem>>, vector<16x1xf32>
    %c16_181 = arith.constant 16 : index
    %c98_182 = arith.constant 98 : index
    %292 = vector.load %arg8[%c16_181, %c98_182] : memref<64x512xf32, #tpu.memory_space<vmem>>, vector<16x256xf32>
    %293 = vector.broadcast %291 : vector<16x1xf32> to vector<16x256xf32>
    %294 = arith.mulf %293, %292 : vector<16x256xf32>
    %295 = arith.addf %290, %294 : vector<16x256xf32>
    %c16_183 = arith.constant 16 : index
    %c9_184 = arith.constant 9 : index
    %296 = vector.load %arg4[%c16_183, %c9_184] : memref<64x25xf32, #tpu.memory_space<vmem>>, vector<16x1xf32>
    %c16_185 = arith.constant 16 : index
    %c114_186 = arith.constant 114 : index
    %297 = vector.load %arg8[%c16_185, %c114_186] : memref<64x512xf32, #tpu.memory_space<vmem>>, vector<16x256xf32>
    %298 = vector.broadcast %296 : vector<16x1xf32> to vector<16x256xf32>
    %299 = arith.mulf %298, %297 : vector<16x256xf32>
    %300 = arith.addf %295, %299 : vector<16x256xf32>
    %c16_187 = arith.constant 16 : index
    %c14_188 = arith.constant 14 : index
    %301 = vector.load %arg4[%c16_187, %c14_188] : memref<64x25xf32, #tpu.memory_space<vmem>>, vector<16x1xf32>
    %c16_189 = arith.constant 16 : index
    %c130_190 = arith.constant 130 : index
    %302 = vector.load %arg8[%c16_189, %c130_190] : memref<64x512xf32, #tpu.memory_space<vmem>>, vector<16x256xf32>
    %303 = vector.broadcast %301 : vector<16x1xf32> to vector<16x256xf32>
    %304 = arith.mulf %303, %302 : vector<16x256xf32>
    %305 = arith.addf %300, %304 : vector<16x256xf32>
    %c16_191 = arith.constant 16 : index
    %c19_192 = arith.constant 19 : index
    %306 = vector.load %arg4[%c16_191, %c19_192] : memref<64x25xf32, #tpu.memory_space<vmem>>, vector<16x1xf32>
    %c16_193 = arith.constant 16 : index
    %c146_194 = arith.constant 146 : index
    %307 = vector.load %arg8[%c16_193, %c146_194] : memref<64x512xf32, #tpu.memory_space<vmem>>, vector<16x256xf32>
    %308 = vector.broadcast %306 : vector<16x1xf32> to vector<16x256xf32>
    %309 = arith.mulf %308, %307 : vector<16x256xf32>
    %310 = arith.addf %305, %309 : vector<16x256xf32>
    %c16_195 = arith.constant 16 : index
    %c24_196 = arith.constant 24 : index
    %311 = vector.load %arg4[%c16_195, %c24_196] : memref<64x25xf32, #tpu.memory_space<vmem>>, vector<16x1xf32>
    %c16_197 = arith.constant 16 : index
    %c162_198 = arith.constant 162 : index
    %312 = vector.load %arg8[%c16_197, %c162_198] : memref<64x512xf32, #tpu.memory_space<vmem>>, vector<16x256xf32>
    %313 = vector.broadcast %311 : vector<16x1xf32> to vector<16x256xf32>
    %314 = arith.mulf %313, %312 : vector<16x256xf32>
    %315 = arith.addf %310, %314 : vector<16x256xf32>
    %c4_199 = arith.constant 4 : index
    %c0_200 = arith.constant 0 : index
    %316 = vector.load %arg6[%c4_199, %c0_200] : memref<8x256xf32, #tpu.memory_space<vmem>>, vector<1x256xf32>
    %317 = vector.broadcast %316 : vector<1x256xf32> to vector<16x256xf32>
    %318 = arith.mulf %317, %315 : vector<16x256xf32>
    %319 = arith.addf %289, %318 : vector<16x256xf32>
    %cst_201 = arith.constant 0.000000e+00 : f32
    %320 = vector.broadcast %cst_201 : f32 to vector<16x256xf32>
    %321 = arith.subf %320, %319 : vector<16x256xf32>
    %322 = math.exp %321 : vector<16x256xf32>
    %cst_202 = arith.constant 1.000000e+00 : f32
    %323 = vector.broadcast %cst_202 : f32 to vector<16x256xf32>
    %324 = arith.addf %323, %322 : vector<16x256xf32>
    %cst_203 = arith.constant 1.000000e+00 : f32
    %325 = vector.broadcast %cst_203 : f32 to vector<16x256xf32>
    %326 = arith.divf %325, %324 : vector<16x256xf32>
    %c0_204 = arith.constant 0 : index
    %c16_205 = arith.constant 16 : index
    %c0_206 = arith.constant 0 : index
    %327 = vector.load %arg7[%c0_204, %c16_205, %c0_206] : memref<1x64x256xf32, #tpu.memory_space<vmem>>, vector<1x16x256xf32>
    %328 = vector.shape_cast %327 : vector<1x16x256xf32> to vector<16x256xf32>
    %329 = vector.shape_cast %326 : vector<16x256xf32> to vector<1x16x256xf32>
    tpu.vector_store %arg7[%c0_204, %c16_205, %c0_206], %329 {strides = array<i32>} : memref<1x64x256xf32, #tpu.memory_space<vmem>>, vector<1x16x256xf32>,
    %c32 = arith.constant 32 : index
    %c0_207 = arith.constant 0 : index
    %330 = vector.load %arg5[%c32, %c0_207] : memref<64x256xf32, #tpu.memory_space<vmem>>, vector<16x256xf32>
    %cst_208 = arith.constant 0.000000e+00 : f32
    %331 = vector.broadcast %cst_208 : f32 to vector<16x256xf32>
    %c32_209 = arith.constant 32 : index
    %c0_210 = arith.constant 0 : index
    %332 = vector.load %arg4[%c32_209, %c0_210] : memref<64x25xf32, #tpu.memory_space<vmem>>, vector<16x1xf32>
    %c32_211 = arith.constant 32 : index
    %c94_212 = arith.constant 94 : index
    %333 = vector.load %arg8[%c32_211, %c94_212] : memref<64x512xf32, #tpu.memory_space<vmem>>, vector<16x256xf32>
    %334 = vector.broadcast %332 : vector<16x1xf32> to vector<16x256xf32>
    %335 = arith.mulf %334, %333 : vector<16x256xf32>
    %336 = arith.addf %331, %335 : vector<16x256xf32>
    %c32_213 = arith.constant 32 : index
    %c5_214 = arith.constant 5 : index
    %337 = vector.load %arg4[%c32_213, %c5_214] : memref<64x25xf32, #tpu.memory_space<vmem>>, vector<16x1xf32>
    %c32_215 = arith.constant 32 : index
    %c110_216 = arith.constant 110 : index
    %338 = vector.load %arg8[%c32_215, %c110_216] : memref<64x512xf32, #tpu.memory_space<vmem>>, vector<16x256xf32>
    %339 = vector.broadcast %337 : vector<16x1xf32> to vector<16x256xf32>
    %340 = arith.mulf %339, %338 : vector<16x256xf32>
    %341 = arith.addf %336, %340 : vector<16x256xf32>
    %c32_217 = arith.constant 32 : index
    %c10_218 = arith.constant 10 : index
    %342 = vector.load %arg4[%c32_217, %c10_218] : memref<64x25xf32, #tpu.memory_space<vmem>>, vector<16x1xf32>
    %c32_219 = arith.constant 32 : index
    %c126_220 = arith.constant 126 : index
    %343 = vector.load %arg8[%c32_219, %c126_220] : memref<64x512xf32, #tpu.memory_space<vmem>>, vector<16x256xf32>
    %344 = vector.broadcast %342 : vector<16x1xf32> to vector<16x256xf32>
    %345 = arith.mulf %344, %343 : vector<16x256xf32>
    %346 = arith.addf %341, %345 : vector<16x256xf32>
    %c32_221 = arith.constant 32 : index
    %c15_222 = arith.constant 15 : index
    %347 = vector.load %arg4[%c32_221, %c15_222] : memref<64x25xf32, #tpu.memory_space<vmem>>, vector<16x1xf32>
    %c32_223 = arith.constant 32 : index
    %c142_224 = arith.constant 142 : index
    %348 = vector.load %arg8[%c32_223, %c142_224] : memref<64x512xf32, #tpu.memory_space<vmem>>, vector<16x256xf32>
    %349 = vector.broadcast %347 : vector<16x1xf32> to vector<16x256xf32>
    %350 = arith.mulf %349, %348 : vector<16x256xf32>
    %351 = arith.addf %346, %350 : vector<16x256xf32>
    %c32_225 = arith.constant 32 : index
    %c20_226 = arith.constant 20 : index
    %352 = vector.load %arg4[%c32_225, %c20_226] : memref<64x25xf32, #tpu.memory_space<vmem>>, vector<16x1xf32>
    %c32_227 = arith.constant 32 : index
    %c158_228 = arith.constant 158 : index
    %353 = vector.load %arg8[%c32_227, %c158_228] : memref<64x512xf32, #tpu.memory_space<vmem>>, vector<16x256xf32>
    %354 = vector.broadcast %352 : vector<16x1xf32> to vector<16x256xf32>
    %355 = arith.mulf %354, %353 : vector<16x256xf32>
    %356 = arith.addf %351, %355 : vector<16x256xf32>
    %c0_229 = arith.constant 0 : index
    %c0_230 = arith.constant 0 : index
    %357 = vector.load %arg6[%c0_229, %c0_230] : memref<8x256xf32, #tpu.memory_space<vmem>>, vector<1x256xf32>
    %358 = vector.broadcast %357 : vector<1x256xf32> to vector<16x256xf32>
    %359 = arith.mulf %358, %356 : vector<16x256xf32>
    %360 = arith.addf %330, %359 : vector<16x256xf32>
    %cst_231 = arith.constant 0.000000e+00 : f32
    %361 = vector.broadcast %cst_231 : f32 to vector<16x256xf32>
    %c32_232 = arith.constant 32 : index
    %c1_233 = arith.constant 1 : index
    %362 = vector.load %arg4[%c32_232, %c1_233] : memref<64x25xf32, #tpu.memory_space<vmem>>, vector<16x1xf32>
    %c32_234 = arith.constant 32 : index
    %c95_235 = arith.constant 95 : index
    %363 = vector.load %arg8[%c32_234, %c95_235] : memref<64x512xf32, #tpu.memory_space<vmem>>, vector<16x256xf32>
    %364 = vector.broadcast %362 : vector<16x1xf32> to vector<16x256xf32>
    %365 = arith.mulf %364, %363 : vector<16x256xf32>
    %366 = arith.addf %361, %365 : vector<16x256xf32>
    %c32_236 = arith.constant 32 : index
    %c6_237 = arith.constant 6 : index
    %367 = vector.load %arg4[%c32_236, %c6_237] : memref<64x25xf32, #tpu.memory_space<vmem>>, vector<16x1xf32>
    %c32_238 = arith.constant 32 : index
    %c111_239 = arith.constant 111 : index
    %368 = vector.load %arg8[%c32_238, %c111_239] : memref<64x512xf32, #tpu.memory_space<vmem>>, vector<16x256xf32>
    %369 = vector.broadcast %367 : vector<16x1xf32> to vector<16x256xf32>
    %370 = arith.mulf %369, %368 : vector<16x256xf32>
    %371 = arith.addf %366, %370 : vector<16x256xf32>
    %c32_240 = arith.constant 32 : index
    %c11_241 = arith.constant 11 : index
    %372 = vector.load %arg4[%c32_240, %c11_241] : memref<64x25xf32, #tpu.memory_space<vmem>>, vector<16x1xf32>
    %c32_242 = arith.constant 32 : index
    %c127_243 = arith.constant 127 : index
    %373 = vector.load %arg8[%c32_242, %c127_243] : memref<64x512xf32, #tpu.memory_space<vmem>>, vector<16x256xf32>
    %374 = vector.broadcast %372 : vector<16x1xf32> to vector<16x256xf32>
    %375 = arith.mulf %374, %373 : vector<16x256xf32>
    %376 = arith.addf %371, %375 : vector<16x256xf32>
    %c32_244 = arith.constant 32 : index
    %c16_245 = arith.constant 16 : index
    %377 = vector.load %arg4[%c32_244, %c16_245] : memref<64x25xf32, #tpu.memory_space<vmem>>, vector<16x1xf32>
    %c32_246 = arith.constant 32 : index
    %c143_247 = arith.constant 143 : index
    %378 = vector.load %arg8[%c32_246, %c143_247] : memref<64x512xf32, #tpu.memory_space<vmem>>, vector<16x256xf32>
    %379 = vector.broadcast %377 : vector<16x1xf32> to vector<16x256xf32>
    %380 = arith.mulf %379, %378 : vector<16x256xf32>
    %381 = arith.addf %376, %380 : vector<16x256xf32>
    %c32_248 = arith.constant 32 : index
    %c21_249 = arith.constant 21 : index
    %382 = vector.load %arg4[%c32_248, %c21_249] : memref<64x25xf32, #tpu.memory_space<vmem>>, vector<16x1xf32>
    %c32_250 = arith.constant 32 : index
    %c159_251 = arith.constant 159 : index
    %383 = vector.load %arg8[%c32_250, %c159_251] : memref<64x512xf32, #tpu.memory_space<vmem>>, vector<16x256xf32>
    %384 = vector.broadcast %382 : vector<16x1xf32> to vector<16x256xf32>
    %385 = arith.mulf %384, %383 : vector<16x256xf32>
    %386 = arith.addf %381, %385 : vector<16x256xf32>
    %c1_252 = arith.constant 1 : index
    %c0_253 = arith.constant 0 : index
    %387 = vector.load %arg6[%c1_252, %c0_253] : memref<8x256xf32, #tpu.memory_space<vmem>>, vector<1x256xf32>
    %388 = vector.broadcast %387 : vector<1x256xf32> to vector<16x256xf32>
    %389 = arith.mulf %388, %386 : vector<16x256xf32>
    %390 = arith.addf %360, %389 : vector<16x256xf32>
    %cst_254 = arith.constant 0.000000e+00 : f32
    %391 = vector.broadcast %cst_254 : f32 to vector<16x256xf32>
    %c32_255 = arith.constant 32 : index
    %c2_256 = arith.constant 2 : index
    %392 = vector.load %arg4[%c32_255, %c2_256] : memref<64x25xf32, #tpu.memory_space<vmem>>, vector<16x1xf32>
    %c32_257 = arith.constant 32 : index
    %c96_258 = arith.constant 96 : index
    %393 = vector.load %arg8[%c32_257, %c96_258] : memref<64x512xf32, #tpu.memory_space<vmem>>, vector<16x256xf32>
    %394 = vector.broadcast %392 : vector<16x1xf32> to vector<16x256xf32>
    %395 = arith.mulf %394, %393 : vector<16x256xf32>
    %396 = arith.addf %391, %395 : vector<16x256xf32>
    %c32_259 = arith.constant 32 : index
    %c7_260 = arith.constant 7 : index
    %397 = vector.load %arg4[%c32_259, %c7_260] : memref<64x25xf32, #tpu.memory_space<vmem>>, vector<16x1xf32>
    %c32_261 = arith.constant 32 : index
    %c112_262 = arith.constant 112 : index
    %398 = vector.load %arg8[%c32_261, %c112_262] : memref<64x512xf32, #tpu.memory_space<vmem>>, vector<16x256xf32>
    %399 = vector.broadcast %397 : vector<16x1xf32> to vector<16x256xf32>
    %400 = arith.mulf %399, %398 : vector<16x256xf32>
    %401 = arith.addf %396, %400 : vector<16x256xf32>
    %c32_263 = arith.constant 32 : index
    %c12_264 = arith.constant 12 : index
    %402 = vector.load %arg4[%c32_263, %c12_264] : memref<64x25xf32, #tpu.memory_space<vmem>>, vector<16x1xf32>
    %c32_265 = arith.constant 32 : index
    %c128_266 = arith.constant 128 : index
    %403 = vector.load %arg8[%c32_265, %c128_266] : memref<64x512xf32, #tpu.memory_space<vmem>>, vector<16x256xf32>
    %404 = vector.broadcast %402 : vector<16x1xf32> to vector<16x256xf32>
    %405 = arith.mulf %404, %403 : vector<16x256xf32>
    %406 = arith.addf %401, %405 : vector<16x256xf32>
    %c32_267 = arith.constant 32 : index
    %c17_268 = arith.constant 17 : index
    %407 = vector.load %arg4[%c32_267, %c17_268] : memref<64x25xf32, #tpu.memory_space<vmem>>, vector<16x1xf32>
    %c32_269 = arith.constant 32 : index
    %c144_270 = arith.constant 144 : index
    %408 = vector.load %arg8[%c32_269, %c144_270] : memref<64x512xf32, #tpu.memory_space<vmem>>, vector<16x256xf32>
    %409 = vector.broadcast %407 : vector<16x1xf32> to vector<16x256xf32>
    %410 = arith.mulf %409, %408 : vector<16x256xf32>
    %411 = arith.addf %406, %410 : vector<16x256xf32>
    %c32_271 = arith.constant 32 : index
    %c22_272 = arith.constant 22 : index
    %412 = vector.load %arg4[%c32_271, %c22_272] : memref<64x25xf32, #tpu.memory_space<vmem>>, vector<16x1xf32>
    %c32_273 = arith.constant 32 : index
    %c160_274 = arith.constant 160 : index
    %413 = vector.load %arg8[%c32_273, %c160_274] : memref<64x512xf32, #tpu.memory_space<vmem>>, vector<16x256xf32>
    %414 = vector.broadcast %412 : vector<16x1xf32> to vector<16x256xf32>
    %415 = arith.mulf %414, %413 : vector<16x256xf32>
    %416 = arith.addf %411, %415 : vector<16x256xf32>
    %417 = arith.addf %390, %416 : vector<16x256xf32>
    %cst_275 = arith.constant 0.000000e+00 : f32
    %418 = vector.broadcast %cst_275 : f32 to vector<16x256xf32>
    %c32_276 = arith.constant 32 : index
    %c3_277 = arith.constant 3 : index
    %419 = vector.load %arg4[%c32_276, %c3_277] : memref<64x25xf32, #tpu.memory_space<vmem>>, vector<16x1xf32>
    %c32_278 = arith.constant 32 : index
    %c97_279 = arith.constant 97 : index
    %420 = vector.load %arg8[%c32_278, %c97_279] : memref<64x512xf32, #tpu.memory_space<vmem>>, vector<16x256xf32>
    %421 = vector.broadcast %419 : vector<16x1xf32> to vector<16x256xf32>
    %422 = arith.mulf %421, %420 : vector<16x256xf32>
    %423 = arith.addf %418, %422 : vector<16x256xf32>
    %c32_280 = arith.constant 32 : index
    %c8_281 = arith.constant 8 : index
    %424 = vector.load %arg4[%c32_280, %c8_281] : memref<64x25xf32, #tpu.memory_space<vmem>>, vector<16x1xf32>
    %c32_282 = arith.constant 32 : index
    %c113_283 = arith.constant 113 : index
    %425 = vector.load %arg8[%c32_282, %c113_283] : memref<64x512xf32, #tpu.memory_space<vmem>>, vector<16x256xf32>
    %426 = vector.broadcast %424 : vector<16x1xf32> to vector<16x256xf32>
    %427 = arith.mulf %426, %425 : vector<16x256xf32>
    %428 = arith.addf %423, %427 : vector<16x256xf32>
    %c32_284 = arith.constant 32 : index
    %c13_285 = arith.constant 13 : index
    %429 = vector.load %arg4[%c32_284, %c13_285] : memref<64x25xf32, #tpu.memory_space<vmem>>, vector<16x1xf32>
    %c32_286 = arith.constant 32 : index
    %c129_287 = arith.constant 129 : index
    %430 = vector.load %arg8[%c32_286, %c129_287] : memref<64x512xf32, #tpu.memory_space<vmem>>, vector<16x256xf32>
    %431 = vector.broadcast %429 : vector<16x1xf32> to vector<16x256xf32>
    %432 = arith.mulf %431, %430 : vector<16x256xf32>
    %433 = arith.addf %428, %432 : vector<16x256xf32>
    %c32_288 = arith.constant 32 : index
    %c18_289 = arith.constant 18 : index
    %434 = vector.load %arg4[%c32_288, %c18_289] : memref<64x25xf32, #tpu.memory_space<vmem>>, vector<16x1xf32>
    %c32_290 = arith.constant 32 : index
    %c145_291 = arith.constant 145 : index
    %435 = vector.load %arg8[%c32_290, %c145_291] : memref<64x512xf32, #tpu.memory_space<vmem>>, vector<16x256xf32>
    %436 = vector.broadcast %434 : vector<16x1xf32> to vector<16x256xf32>
    %437 = arith.mulf %436, %435 : vector<16x256xf32>
    %438 = arith.addf %433, %437 : vector<16x256xf32>
    %c32_292 = arith.constant 32 : index
    %c23_293 = arith.constant 23 : index
    %439 = vector.load %arg4[%c32_292, %c23_293] : memref<64x25xf32, #tpu.memory_space<vmem>>, vector<16x1xf32>
    %c32_294 = arith.constant 32 : index
    %c161_295 = arith.constant 161 : index
    %440 = vector.load %arg8[%c32_294, %c161_295] : memref<64x512xf32, #tpu.memory_space<vmem>>, vector<16x256xf32>
    %441 = vector.broadcast %439 : vector<16x1xf32> to vector<16x256xf32>
    %442 = arith.mulf %441, %440 : vector<16x256xf32>
    %443 = arith.addf %438, %442 : vector<16x256xf32>
    %c3_296 = arith.constant 3 : index
    %c0_297 = arith.constant 0 : index
    %444 = vector.load %arg6[%c3_296, %c0_297] : memref<8x256xf32, #tpu.memory_space<vmem>>, vector<1x256xf32>
    %445 = vector.broadcast %444 : vector<1x256xf32> to vector<16x256xf32>
    %446 = arith.mulf %445, %443 : vector<16x256xf32>
    %447 = arith.addf %417, %446 : vector<16x256xf32>
    %cst_298 = arith.constant 0.000000e+00 : f32
    %448 = vector.broadcast %cst_298 : f32 to vector<16x256xf32>
    %c32_299 = arith.constant 32 : index
    %c4_300 = arith.constant 4 : index
    %449 = vector.load %arg4[%c32_299, %c4_300] : memref<64x25xf32, #tpu.memory_space<vmem>>, vector<16x1xf32>
    %c32_301 = arith.constant 32 : index
    %c98_302 = arith.constant 98 : index
    %450 = vector.load %arg8[%c32_301, %c98_302] : memref<64x512xf32, #tpu.memory_space<vmem>>, vector<16x256xf32>
    %451 = vector.broadcast %449 : vector<16x1xf32> to vector<16x256xf32>
    %452 = arith.mulf %451, %450 : vector<16x256xf32>
    %453 = arith.addf %448, %452 : vector<16x256xf32>
    %c32_303 = arith.constant 32 : index
    %c9_304 = arith.constant 9 : index
    %454 = vector.load %arg4[%c32_303, %c9_304] : memref<64x25xf32, #tpu.memory_space<vmem>>, vector<16x1xf32>
    %c32_305 = arith.constant 32 : index
    %c114_306 = arith.constant 114 : index
    %455 = vector.load %arg8[%c32_305, %c114_306] : memref<64x512xf32, #tpu.memory_space<vmem>>, vector<16x256xf32>
    %456 = vector.broadcast %454 : vector<16x1xf32> to vector<16x256xf32>
    %457 = arith.mulf %456, %455 : vector<16x256xf32>
    %458 = arith.addf %453, %457 : vector<16x256xf32>
    %c32_307 = arith.constant 32 : index
    %c14_308 = arith.constant 14 : index
    %459 = vector.load %arg4[%c32_307, %c14_308] : memref<64x25xf32, #tpu.memory_space<vmem>>, vector<16x1xf32>
    %c32_309 = arith.constant 32 : index
    %c130_310 = arith.constant 130 : index
    %460 = vector.load %arg8[%c32_309, %c130_310] : memref<64x512xf32, #tpu.memory_space<vmem>>, vector<16x256xf32>
    %461 = vector.broadcast %459 : vector<16x1xf32> to vector<16x256xf32>
    %462 = arith.mulf %461, %460 : vector<16x256xf32>
    %463 = arith.addf %458, %462 : vector<16x256xf32>
    %c32_311 = arith.constant 32 : index
    %c19_312 = arith.constant 19 : index
    %464 = vector.load %arg4[%c32_311, %c19_312] : memref<64x25xf32, #tpu.memory_space<vmem>>, vector<16x1xf32>
    %c32_313 = arith.constant 32 : index
    %c146_314 = arith.constant 146 : index
    %465 = vector.load %arg8[%c32_313, %c146_314] : memref<64x512xf32, #tpu.memory_space<vmem>>, vector<16x256xf32>
    %466 = vector.broadcast %464 : vector<16x1xf32> to vector<16x256xf32>
    %467 = arith.mulf %466, %465 : vector<16x256xf32>
    %468 = arith.addf %463, %467 : vector<16x256xf32>
    %c32_315 = arith.constant 32 : index
    %c24_316 = arith.constant 24 : index
    %469 = vector.load %arg4[%c32_315, %c24_316] : memref<64x25xf32, #tpu.memory_space<vmem>>, vector<16x1xf32>
    %c32_317 = arith.constant 32 : index
    %c162_318 = arith.constant 162 : index
    %470 = vector.load %arg8[%c32_317, %c162_318] : memref<64x512xf32, #tpu.memory_space<vmem>>, vector<16x256xf32>
    %471 = vector.broadcast %469 : vector<16x1xf32> to vector<16x256xf32>
    %472 = arith.mulf %471, %470 : vector<16x256xf32>
    %473 = arith.addf %468, %472 : vector<16x256xf32>
    %c4_319 = arith.constant 4 : index
    %c0_320 = arith.constant 0 : index
    %474 = vector.load %arg6[%c4_319, %c0_320] : memref<8x256xf32, #tpu.memory_space<vmem>>, vector<1x256xf32>
    %475 = vector.broadcast %474 : vector<1x256xf32> to vector<16x256xf32>
    %476 = arith.mulf %475, %473 : vector<16x256xf32>
    %477 = arith.addf %447, %476 : vector<16x256xf32>
    %cst_321 = arith.constant 0.000000e+00 : f32
    %478 = vector.broadcast %cst_321 : f32 to vector<16x256xf32>
    %479 = arith.subf %478, %477 : vector<16x256xf32>
    %480 = math.exp %479 : vector<16x256xf32>
    %cst_322 = arith.constant 1.000000e+00 : f32
    %481 = vector.broadcast %cst_322 : f32 to vector<16x256xf32>
    %482 = arith.addf %481, %480 : vector<16x256xf32>
    %cst_323 = arith.constant 1.000000e+00 : f32
    %483 = vector.broadcast %cst_323 : f32 to vector<16x256xf32>
    %484 = arith.divf %483, %482 : vector<16x256xf32>
    %c0_324 = arith.constant 0 : index
    %c32_325 = arith.constant 32 : index
    %c0_326 = arith.constant 0 : index
    %485 = vector.load %arg7[%c0_324, %c32_325, %c0_326] : memref<1x64x256xf32, #tpu.memory_space<vmem>>, vector<1x16x256xf32>
    %486 = vector.shape_cast %485 : vector<1x16x256xf32> to vector<16x256xf32>
    %487 = vector.shape_cast %484 : vector<16x256xf32> to vector<1x16x256xf32>
    tpu.vector_store %arg7[%c0_324, %c32_325, %c0_326], %487 {strides = array<i32>} : memref<1x64x256xf32, #tpu.memory_space<vmem>>, vector<1x16x256xf32>,
    %c48 = arith.constant 48 : index
    %c0_327 = arith.constant 0 : index
    %488 = vector.load %arg5[%c48, %c0_327] : memref<64x256xf32, #tpu.memory_space<vmem>>, vector<16x256xf32>
    %cst_328 = arith.constant 0.000000e+00 : f32
    %489 = vector.broadcast %cst_328 : f32 to vector<16x256xf32>
    %c48_329 = arith.constant 48 : index
    %c0_330 = arith.constant 0 : index
    %490 = vector.load %arg4[%c48_329, %c0_330] : memref<64x25xf32, #tpu.memory_space<vmem>>, vector<16x1xf32>
    %c48_331 = arith.constant 48 : index
    %c94_332 = arith.constant 94 : index
    %491 = vector.load %arg8[%c48_331, %c94_332] : memref<64x512xf32, #tpu.memory_space<vmem>>, vector<16x256xf32>
    %492 = vector.broadcast %490 : vector<16x1xf32> to vector<16x256xf32>
    %493 = arith.mulf %492, %491 : vector<16x256xf32>
    %494 = arith.addf %489, %493 : vector<16x256xf32>
    %c48_333 = arith.constant 48 : index
    %c5_334 = arith.constant 5 : index
    %495 = vector.load %arg4[%c48_333, %c5_334] : memref<64x25xf32, #tpu.memory_space<vmem>>, vector<16x1xf32>
    %c48_335 = arith.constant 48 : index
    %c110_336 = arith.constant 110 : index
    %496 = vector.load %arg8[%c48_335, %c110_336] : memref<64x512xf32, #tpu.memory_space<vmem>>, vector<16x256xf32>
    %497 = vector.broadcast %495 : vector<16x1xf32> to vector<16x256xf32>
    %498 = arith.mulf %497, %496 : vector<16x256xf32>
    %499 = arith.addf %494, %498 : vector<16x256xf32>
    %c48_337 = arith.constant 48 : index
    %c10_338 = arith.constant 10 : index
    %500 = vector.load %arg4[%c48_337, %c10_338] : memref<64x25xf32, #tpu.memory_space<vmem>>, vector<16x1xf32>
    %c48_339 = arith.constant 48 : index
    %c126_340 = arith.constant 126 : index
    %501 = vector.load %arg8[%c48_339, %c126_340] : memref<64x512xf32, #tpu.memory_space<vmem>>, vector<16x256xf32>
    %502 = vector.broadcast %500 : vector<16x1xf32> to vector<16x256xf32>
    %503 = arith.mulf %502, %501 : vector<16x256xf32>
    %504 = arith.addf %499, %503 : vector<16x256xf32>
    %c48_341 = arith.constant 48 : index
    %c15_342 = arith.constant 15 : index
    %505 = vector.load %arg4[%c48_341, %c15_342] : memref<64x25xf32, #tpu.memory_space<vmem>>, vector<16x1xf32>
    %c48_343 = arith.constant 48 : index
    %c142_344 = arith.constant 142 : index
    %506 = vector.load %arg8[%c48_343, %c142_344] : memref<64x512xf32, #tpu.memory_space<vmem>>, vector<16x256xf32>
    %507 = vector.broadcast %505 : vector<16x1xf32> to vector<16x256xf32>
    %508 = arith.mulf %507, %506 : vector<16x256xf32>
    %509 = arith.addf %504, %508 : vector<16x256xf32>
    %c48_345 = arith.constant 48 : index
    %c20_346 = arith.constant 20 : index
    %510 = vector.load %arg4[%c48_345, %c20_346] : memref<64x25xf32, #tpu.memory_space<vmem>>, vector<16x1xf32>
    %c48_347 = arith.constant 48 : index
    %c158_348 = arith.constant 158 : index
    %511 = vector.load %arg8[%c48_347, %c158_348] : memref<64x512xf32, #tpu.memory_space<vmem>>, vector<16x256xf32>
    %512 = vector.broadcast %510 : vector<16x1xf32> to vector<16x256xf32>
    %513 = arith.mulf %512, %511 : vector<16x256xf32>
    %514 = arith.addf %509, %513 : vector<16x256xf32>
    %c0_349 = arith.constant 0 : index
    %c0_350 = arith.constant 0 : index
    %515 = vector.load %arg6[%c0_349, %c0_350] : memref<8x256xf32, #tpu.memory_space<vmem>>, vector<1x256xf32>
    %516 = vector.broadcast %515 : vector<1x256xf32> to vector<16x256xf32>
    %517 = arith.mulf %516, %514 : vector<16x256xf32>
    %518 = arith.addf %488, %517 : vector<16x256xf32>
    %cst_351 = arith.constant 0.000000e+00 : f32
    %519 = vector.broadcast %cst_351 : f32 to vector<16x256xf32>
    %c48_352 = arith.constant 48 : index
    %c1_353 = arith.constant 1 : index
    %520 = vector.load %arg4[%c48_352, %c1_353] : memref<64x25xf32, #tpu.memory_space<vmem>>, vector<16x1xf32>
    %c48_354 = arith.constant 48 : index
    %c95_355 = arith.constant 95 : index
    %521 = vector.load %arg8[%c48_354, %c95_355] : memref<64x512xf32, #tpu.memory_space<vmem>>, vector<16x256xf32>
    %522 = vector.broadcast %520 : vector<16x1xf32> to vector<16x256xf32>
    %523 = arith.mulf %522, %521 : vector<16x256xf32>
    %524 = arith.addf %519, %523 : vector<16x256xf32>
    %c48_356 = arith.constant 48 : index
    %c6_357 = arith.constant 6 : index
    %525 = vector.load %arg4[%c48_356, %c6_357] : memref<64x25xf32, #tpu.memory_space<vmem>>, vector<16x1xf32>
    %c48_358 = arith.constant 48 : index
    %c111_359 = arith.constant 111 : index
    %526 = vector.load %arg8[%c48_358, %c111_359] : memref<64x512xf32, #tpu.memory_space<vmem>>, vector<16x256xf32>
    %527 = vector.broadcast %525 : vector<16x1xf32> to vector<16x256xf32>
    %528 = arith.mulf %527, %526 : vector<16x256xf32>
    %529 = arith.addf %524, %528 : vector<16x256xf32>
    %c48_360 = arith.constant 48 : index
    %c11_361 = arith.constant 11 : index
    %530 = vector.load %arg4[%c48_360, %c11_361] : memref<64x25xf32, #tpu.memory_space<vmem>>, vector<16x1xf32>
    %c48_362 = arith.constant 48 : index
    %c127_363 = arith.constant 127 : index
    %531 = vector.load %arg8[%c48_362, %c127_363] : memref<64x512xf32, #tpu.memory_space<vmem>>, vector<16x256xf32>
    %532 = vector.broadcast %530 : vector<16x1xf32> to vector<16x256xf32>
    %533 = arith.mulf %532, %531 : vector<16x256xf32>
    %534 = arith.addf %529, %533 : vector<16x256xf32>
    %c48_364 = arith.constant 48 : index
    %c16_365 = arith.constant 16 : index
    %535 = vector.load %arg4[%c48_364, %c16_365] : memref<64x25xf32, #tpu.memory_space<vmem>>, vector<16x1xf32>
    %c48_366 = arith.constant 48 : index
    %c143_367 = arith.constant 143 : index
    %536 = vector.load %arg8[%c48_366, %c143_367] : memref<64x512xf32, #tpu.memory_space<vmem>>, vector<16x256xf32>
    %537 = vector.broadcast %535 : vector<16x1xf32> to vector<16x256xf32>
    %538 = arith.mulf %537, %536 : vector<16x256xf32>
    %539 = arith.addf %534, %538 : vector<16x256xf32>
    %c48_368 = arith.constant 48 : index
    %c21_369 = arith.constant 21 : index
    %540 = vector.load %arg4[%c48_368, %c21_369] : memref<64x25xf32, #tpu.memory_space<vmem>>, vector<16x1xf32>
    %c48_370 = arith.constant 48 : index
    %c159_371 = arith.constant 159 : index
    %541 = vector.load %arg8[%c48_370, %c159_371] : memref<64x512xf32, #tpu.memory_space<vmem>>, vector<16x256xf32>
    %542 = vector.broadcast %540 : vector<16x1xf32> to vector<16x256xf32>
    %543 = arith.mulf %542, %541 : vector<16x256xf32>
    %544 = arith.addf %539, %543 : vector<16x256xf32>
    %c1_372 = arith.constant 1 : index
    %c0_373 = arith.constant 0 : index
    %545 = vector.load %arg6[%c1_372, %c0_373] : memref<8x256xf32, #tpu.memory_space<vmem>>, vector<1x256xf32>
    %546 = vector.broadcast %545 : vector<1x256xf32> to vector<16x256xf32>
    %547 = arith.mulf %546, %544 : vector<16x256xf32>
    %548 = arith.addf %518, %547 : vector<16x256xf32>
    %cst_374 = arith.constant 0.000000e+00 : f32
    %549 = vector.broadcast %cst_374 : f32 to vector<16x256xf32>
    %c48_375 = arith.constant 48 : index
    %c2_376 = arith.constant 2 : index
    %550 = vector.load %arg4[%c48_375, %c2_376] : memref<64x25xf32, #tpu.memory_space<vmem>>, vector<16x1xf32>
    %c48_377 = arith.constant 48 : index
    %c96_378 = arith.constant 96 : index
    %551 = vector.load %arg8[%c48_377, %c96_378] : memref<64x512xf32, #tpu.memory_space<vmem>>, vector<16x256xf32>
    %552 = vector.broadcast %550 : vector<16x1xf32> to vector<16x256xf32>
    %553 = arith.mulf %552, %551 : vector<16x256xf32>
    %554 = arith.addf %549, %553 : vector<16x256xf32>
    %c48_379 = arith.constant 48 : index
    %c7_380 = arith.constant 7 : index
    %555 = vector.load %arg4[%c48_379, %c7_380] : memref<64x25xf32, #tpu.memory_space<vmem>>, vector<16x1xf32>
    %c48_381 = arith.constant 48 : index
    %c112_382 = arith.constant 112 : index
    %556 = vector.load %arg8[%c48_381, %c112_382] : memref<64x512xf32, #tpu.memory_space<vmem>>, vector<16x256xf32>
    %557 = vector.broadcast %555 : vector<16x1xf32> to vector<16x256xf32>
    %558 = arith.mulf %557, %556 : vector<16x256xf32>
    %559 = arith.addf %554, %558 : vector<16x256xf32>
    %c48_383 = arith.constant 48 : index
    %c12_384 = arith.constant 12 : index
    %560 = vector.load %arg4[%c48_383, %c12_384] : memref<64x25xf32, #tpu.memory_space<vmem>>, vector<16x1xf32>
    %c48_385 = arith.constant 48 : index
    %c128_386 = arith.constant 128 : index
    %561 = vector.load %arg8[%c48_385, %c128_386] : memref<64x512xf32, #tpu.memory_space<vmem>>, vector<16x256xf32>
    %562 = vector.broadcast %560 : vector<16x1xf32> to vector<16x256xf32>
    %563 = arith.mulf %562, %561 : vector<16x256xf32>
    %564 = arith.addf %559, %563 : vector<16x256xf32>
    %c48_387 = arith.constant 48 : index
    %c17_388 = arith.constant 17 : index
    %565 = vector.load %arg4[%c48_387, %c17_388] : memref<64x25xf32, #tpu.memory_space<vmem>>, vector<16x1xf32>
    %c48_389 = arith.constant 48 : index
    %c144_390 = arith.constant 144 : index
    %566 = vector.load %arg8[%c48_389, %c144_390] : memref<64x512xf32, #tpu.memory_space<vmem>>, vector<16x256xf32>
    %567 = vector.broadcast %565 : vector<16x1xf32> to vector<16x256xf32>
    %568 = arith.mulf %567, %566 : vector<16x256xf32>
    %569 = arith.addf %564, %568 : vector<16x256xf32>
    %c48_391 = arith.constant 48 : index
    %c22_392 = arith.constant 22 : index
    %570 = vector.load %arg4[%c48_391, %c22_392] : memref<64x25xf32, #tpu.memory_space<vmem>>, vector<16x1xf32>
    %c48_393 = arith.constant 48 : index
    %c160_394 = arith.constant 160 : index
    %571 = vector.load %arg8[%c48_393, %c160_394] : memref<64x512xf32, #tpu.memory_space<vmem>>, vector<16x256xf32>
    %572 = vector.broadcast %570 : vector<16x1xf32> to vector<16x256xf32>
    %573 = arith.mulf %572, %571 : vector<16x256xf32>
    %574 = arith.addf %569, %573 : vector<16x256xf32>
    %575 = arith.addf %548, %574 : vector<16x256xf32>
    %cst_395 = arith.constant 0.000000e+00 : f32
    %576 = vector.broadcast %cst_395 : f32 to vector<16x256xf32>
    %c48_396 = arith.constant 48 : index
    %c3_397 = arith.constant 3 : index
    %577 = vector.load %arg4[%c48_396, %c3_397] : memref<64x25xf32, #tpu.memory_space<vmem>>, vector<16x1xf32>
    %c48_398 = arith.constant 48 : index
    %c97_399 = arith.constant 97 : index
    %578 = vector.load %arg8[%c48_398, %c97_399] : memref<64x512xf32, #tpu.memory_space<vmem>>, vector<16x256xf32>
    %579 = vector.broadcast %577 : vector<16x1xf32> to vector<16x256xf32>
    %580 = arith.mulf %579, %578 : vector<16x256xf32>
    %581 = arith.addf %576, %580 : vector<16x256xf32>
    %c48_400 = arith.constant 48 : index
    %c8_401 = arith.constant 8 : index
    %582 = vector.load %arg4[%c48_400, %c8_401] : memref<64x25xf32, #tpu.memory_space<vmem>>, vector<16x1xf32>
    %c48_402 = arith.constant 48 : index
    %c113_403 = arith.constant 113 : index
    %583 = vector.load %arg8[%c48_402, %c113_403] : memref<64x512xf32, #tpu.memory_space<vmem>>, vector<16x256xf32>
    %584 = vector.broadcast %582 : vector<16x1xf32> to vector<16x256xf32>
    %585 = arith.mulf %584, %583 : vector<16x256xf32>
    %586 = arith.addf %581, %585 : vector<16x256xf32>
    %c48_404 = arith.constant 48 : index
    %c13_405 = arith.constant 13 : index
    %587 = vector.load %arg4[%c48_404, %c13_405] : memref<64x25xf32, #tpu.memory_space<vmem>>, vector<16x1xf32>
    %c48_406 = arith.constant 48 : index
    %c129_407 = arith.constant 129 : index
    %588 = vector.load %arg8[%c48_406, %c129_407] : memref<64x512xf32, #tpu.memory_space<vmem>>, vector<16x256xf32>
    %589 = vector.broadcast %587 : vector<16x1xf32> to vector<16x256xf32>
    %590 = arith.mulf %589, %588 : vector<16x256xf32>
    %591 = arith.addf %586, %590 : vector<16x256xf32>
    %c48_408 = arith.constant 48 : index
    %c18_409 = arith.constant 18 : index
    %592 = vector.load %arg4[%c48_408, %c18_409] : memref<64x25xf32, #tpu.memory_space<vmem>>, vector<16x1xf32>
    %c48_410 = arith.constant 48 : index
    %c145_411 = arith.constant 145 : index
    %593 = vector.load %arg8[%c48_410, %c145_411] : memref<64x512xf32, #tpu.memory_space<vmem>>, vector<16x256xf32>
    %594 = vector.broadcast %592 : vector<16x1xf32> to vector<16x256xf32>
    %595 = arith.mulf %594, %593 : vector<16x256xf32>
    %596 = arith.addf %591, %595 : vector<16x256xf32>
    %c48_412 = arith.constant 48 : index
    %c23_413 = arith.constant 23 : index
    %597 = vector.load %arg4[%c48_412, %c23_413] : memref<64x25xf32, #tpu.memory_space<vmem>>, vector<16x1xf32>
    %c48_414 = arith.constant 48 : index
    %c161_415 = arith.constant 161 : index
    %598 = vector.load %arg8[%c48_414, %c161_415] : memref<64x512xf32, #tpu.memory_space<vmem>>, vector<16x256xf32>
    %599 = vector.broadcast %597 : vector<16x1xf32> to vector<16x256xf32>
    %600 = arith.mulf %599, %598 : vector<16x256xf32>
    %601 = arith.addf %596, %600 : vector<16x256xf32>
    %c3_416 = arith.constant 3 : index
    %c0_417 = arith.constant 0 : index
    %602 = vector.load %arg6[%c3_416, %c0_417] : memref<8x256xf32, #tpu.memory_space<vmem>>, vector<1x256xf32>
    %603 = vector.broadcast %602 : vector<1x256xf32> to vector<16x256xf32>
    %604 = arith.mulf %603, %601 : vector<16x256xf32>
    %605 = arith.addf %575, %604 : vector<16x256xf32>
    %cst_418 = arith.constant 0.000000e+00 : f32
    %606 = vector.broadcast %cst_418 : f32 to vector<16x256xf32>
    %c48_419 = arith.constant 48 : index
    %c4_420 = arith.constant 4 : index
    %607 = vector.load %arg4[%c48_419, %c4_420] : memref<64x25xf32, #tpu.memory_space<vmem>>, vector<16x1xf32>
    %c48_421 = arith.constant 48 : index
    %c98_422 = arith.constant 98 : index
    %608 = vector.load %arg8[%c48_421, %c98_422] : memref<64x512xf32, #tpu.memory_space<vmem>>, vector<16x256xf32>
    %609 = vector.broadcast %607 : vector<16x1xf32> to vector<16x256xf32>
    %610 = arith.mulf %609, %608 : vector<16x256xf32>
    %611 = arith.addf %606, %610 : vector<16x256xf32>
    %c48_423 = arith.constant 48 : index
    %c9_424 = arith.constant 9 : index
    %612 = vector.load %arg4[%c48_423, %c9_424] : memref<64x25xf32, #tpu.memory_space<vmem>>, vector<16x1xf32>
    %c48_425 = arith.constant 48 : index
    %c114_426 = arith.constant 114 : index
    %613 = vector.load %arg8[%c48_425, %c114_426] : memref<64x512xf32, #tpu.memory_space<vmem>>, vector<16x256xf32>
    %614 = vector.broadcast %612 : vector<16x1xf32> to vector<16x256xf32>
    %615 = arith.mulf %614, %613 : vector<16x256xf32>
    %616 = arith.addf %611, %615 : vector<16x256xf32>
    %c48_427 = arith.constant 48 : index
    %c14_428 = arith.constant 14 : index
    %617 = vector.load %arg4[%c48_427, %c14_428] : memref<64x25xf32, #tpu.memory_space<vmem>>, vector<16x1xf32>
    %c48_429 = arith.constant 48 : index
    %c130_430 = arith.constant 130 : index
    %618 = vector.load %arg8[%c48_429, %c130_430] : memref<64x512xf32, #tpu.memory_space<vmem>>, vector<16x256xf32>
    %619 = vector.broadcast %617 : vector<16x1xf32> to vector<16x256xf32>
    %620 = arith.mulf %619, %618 : vector<16x256xf32>
    %621 = arith.addf %616, %620 : vector<16x256xf32>
    %c48_431 = arith.constant 48 : index
    %c19_432 = arith.constant 19 : index
    %622 = vector.load %arg4[%c48_431, %c19_432] : memref<64x25xf32, #tpu.memory_space<vmem>>, vector<16x1xf32>
    %c48_433 = arith.constant 48 : index
    %c146_434 = arith.constant 146 : index
    %623 = vector.load %arg8[%c48_433, %c146_434] : memref<64x512xf32, #tpu.memory_space<vmem>>, vector<16x256xf32>
    %624 = vector.broadcast %622 : vector<16x1xf32> to vector<16x256xf32>
    %625 = arith.mulf %624, %623 : vector<16x256xf32>
    %626 = arith.addf %621, %625 : vector<16x256xf32>
    %c48_435 = arith.constant 48 : index
    %c24_436 = arith.constant 24 : index
    %627 = vector.load %arg4[%c48_435, %c24_436] : memref<64x25xf32, #tpu.memory_space<vmem>>, vector<16x1xf32>
    %c48_437 = arith.constant 48 : index
    %c162_438 = arith.constant 162 : index
    %628 = vector.load %arg8[%c48_437, %c162_438] : memref<64x512xf32, #tpu.memory_space<vmem>>, vector<16x256xf32>
    %629 = vector.broadcast %627 : vector<16x1xf32> to vector<16x256xf32>
    %630 = arith.mulf %629, %628 : vector<16x256xf32>
    %631 = arith.addf %626, %630 : vector<16x256xf32>
    %c4_439 = arith.constant 4 : index
    %c0_440 = arith.constant 0 : index
    %632 = vector.load %arg6[%c4_439, %c0_440] : memref<8x256xf32, #tpu.memory_space<vmem>>, vector<1x256xf32>
    %633 = vector.broadcast %632 : vector<1x256xf32> to vector<16x256xf32>
    %634 = arith.mulf %633, %631 : vector<16x256xf32>
    %635 = arith.addf %605, %634 : vector<16x256xf32>
    %cst_441 = arith.constant 0.000000e+00 : f32
    %636 = vector.broadcast %cst_441 : f32 to vector<16x256xf32>
    %637 = arith.subf %636, %635 : vector<16x256xf32>
    %638 = math.exp %637 : vector<16x256xf32>
    %cst_442 = arith.constant 1.000000e+00 : f32
    %639 = vector.broadcast %cst_442 : f32 to vector<16x256xf32>
    %640 = arith.addf %639, %638 : vector<16x256xf32>
    %cst_443 = arith.constant 1.000000e+00 : f32
    %641 = vector.broadcast %cst_443 : f32 to vector<16x256xf32>
    %642 = arith.divf %641, %640 : vector<16x256xf32>
    %c0_444 = arith.constant 0 : index
    %c48_445 = arith.constant 48 : index
    %c0_446 = arith.constant 0 : index
    %643 = vector.load %arg7[%c0_444, %c48_445, %c0_446] : memref<1x64x256xf32, #tpu.memory_space<vmem>>, vector<1x16x256xf32>
    %644 = vector.shape_cast %643 : vector<1x16x256xf32> to vector<16x256xf32>
    %645 = vector.shape_cast %642 : vector<16x256xf32> to vector<1x16x256xf32>
    tpu.vector_store %arg7[%c0_444, %c48_445, %c0_446], %645 {strides = array<i32>} : memref<1x64x256xf32, #tpu.memory_space<vmem>>, vector<1x16x256xf32>,
    return
  }
  func.func @transform_0(%arg0: i32) -> (i32, i32, i32) {
    %c0_i32 = arith.constant 0 : i32
    %c0_i32_0 = arith.constant 0 : i32
    %c0_i32_1 = arith.constant 0 : i32
    return %arg0, %c0_i32, %c0_i32_0 : i32, i32, i32
  }
  func.func @transform_1(%arg0: i32) -> (i32, i32) {
    %c0_i32 = arith.constant 0 : i32
    %c0_i32_0 = arith.constant 0 : i32
    %c0_i32_1 = arith.constant 0 : i32
    return %c0_i32, %c0_i32_0 : i32, i32
  }
  func.func @transform_2(%arg0: i32) -> (i32, i32) {
    %c0_i32 = arith.constant 0 : i32
    %c0_i32_0 = arith.constant 0 : i32
    %c0_i32_1 = arith.constant 0 : i32
    return %c0_i32, %c0_i32_0 : i32, i32
  }
  func.func @transform_3(%arg0: i32) -> (i32, i32) {
    %c0_i32 = arith.constant 0 : i32
    %c0_i32_0 = arith.constant 0 : i32
    %c0_i32_1 = arith.constant 0 : i32
    return %c0_i32, %c0_i32_0 : i32, i32
  }
  func.func @transform_4(%arg0: i32) -> (i32, i32) {
    %c0_i32 = arith.constant 0 : i32
    %c0_i32_0 = arith.constant 0 : i32
    %c0_i32_1 = arith.constant 0 : i32
    return %c0_i32, %c0_i32_0 : i32, i32
  }
  func.func @transform_5(%arg0: i32) -> (i32, i32) {
    %c0_i32 = arith.constant 0 : i32
    %c0_i32_0 = arith.constant 0 : i32
    %c0_i32_1 = arith.constant 0 : i32
    return %c0_i32, %c0_i32_0 : i32, i32
  }
  func.func @transform_6(%arg0: i32) -> (i32, i32, i32) {
    %c0_i32 = arith.constant 0 : i32
    %c0_i32_0 = arith.constant 0 : i32
    %c0_i32_1 = arith.constant 0 : i32
    return %arg0, %c0_i32, %c0_i32_0 : i32, i32, i32
  }
}

</mosaic_0001>

<bundles_post_ra>
// kernel: cealayer_apply.1
= control target key start
LH: loop header
LB: loop body
LE: loop exit
PB: predicated region body
PF: predicated region fallthrough
CT: control target
= control target key end

     0   :  { %s6354_s21 = smov 0   ;;  %s9713_s0 = inlined_call_operand.vmem [shape: f32[2,64,256], index: 0, kind: input, shape index: {}]   ;;  %s9714_s1 = inlined_call_operand.vmem [shape: f32[64,64], index: 1, kind: input, shape index: {}]   ;;  %s9715_s2 = inlined_call_operand.vmem [shape: f32[64,1], index: 2, kind: input, shape index: {}]   ;;  %s9716_s3 = inlined_call_operand.vmem [shape: f32[64,25], index: 3, kind: input, shape index: {}]   ;;  %s9717_s4 = inlined_call_operand.vmem [shape: f32[64,256], index: 4, kind: input, shape index: {}]   ;;  %s9718_s5 = inlined_call_operand.vmem [shape: f32[8,256], index: 5, kind: input, shape index: {}]   ;;  %s9719_s6 = inlined_call_operand.vmem [shape: f32[2,64,256], index: 6, kind: output, shape index: {}]  }
   0x1 LB: > { %s5905_s22 = sadd.s32 4294967295, %s6283_s21   ;;  %p5909_p0 = scmp.ge.s32.totalorder %s6283_s21, 1  ;;  %s6283_s21 = sphi %s6354_s21, %s16_s21  }
   0x2   : > { %p212_p1 = scmp.lt.s32.totalorder %s6283_s21, 3 }
   0x4   : > { %p213_p2 = pnand %p5909_p0, %p212_p1 }
   0x6   : > { %216 = sbr.rel (%p213_p2) target bundleno = 11806 (0x2e1e), region = 44 }
   0xb   : > { %v278_v0 = vld [vmem:[%s9715_s2 + $0x10] sm:$0xff]  ;;  %p242_p3 = scmp.lt.s32.totalorder %s5905_s22, 1  ;;  %v276_v1 = vld [vmem:[%s9715_s2] sm:$0xff]  ;;  %v9740_v3 = vmov 0   ;;  %v279_v8 = vld [vmem:[%s9715_s2 + $0x18] sm:$0xff]  ;;  %vm324_vm0 = vcmask 523264  }
   0xc   : > { %v280_v2 = vld [vmem:[%s9715_s2 + $0x20] sm:$0xff]  ;;  %6005 = vset.pattern.permute.xlu1 %v9740_v3  ;;  %6004 = vset.pattern.permute.xlu0 %v9740_v3  ;;  %v277_v15 = vld [vmem:[%s9715_s2 + $0x8] sm:$0xff]  ;;  %v283_v19 = vld [vmem:[%s9715_s2 + $0x38] sm:$0xff]  ;;  %v9742_v28 = vmov 5   ;;  %v9738_v32 = vmov 10   ;;  %v9736_v35 = vmov 6  }
   0xd   : > { %296 = vperm.xlu1 %6005, %v278_v0   ;;  %s9933_s22 = smov (!%p242_p3, %s5905_s22), 1  ;;  %6006 = vset.pattern.permute.xlu2 %v9740_v3  ;;  %v281_v18 = vld [vmem:[%s9715_s2 + $0x28] sm:$0xff]  ;;  %v252_v24 = vld [vmem:[%s9714_s1] sm:$0xff]  ;;  %v282_v26 = vld [vmem:[%s9715_s2 + $0x30] sm:$0xff]  ;;  %v9734_v38 = vmov 15   ;;  %v9726_v39 = vmov 11  }
   0xe   : > { %286 = vperm.xlu0 %6004, %v276_v1   ;;  %306 = vperm.xlu2 %6006, %v280_v2   ;;  %s5944_s29 = sshll.u32 %s9933_s22, 7  ;;  %v256_v25 = vld [vmem:[%s9714_s1 + $0x20] sm:$0xff]  ;;  %v253_v29 = vld [vmem:[%s9714_s1 + $0x8] sm:$0xff]  ;;  %v254_v33 = vld [vmem:[%s9714_s1 + $0x10] sm:$0xff]  ;;  %v9732_v40 = vmov 20   ;;  %v9728_v41 = vmov 1  }
   0xf   : > { %s6382_s8 = scalar_lea.vmem %s9713_s0, %s5944_s29  ;;  %v6426_v27 = vld [vmem:[%s9716_s3] sm:$0xff]  ;;  %v257_v30 = vld [vmem:[%s9714_s1 + $0x28] sm:$0xff]  ;;  %v258_v34 = vld [vmem:[%s9714_s1 + $0x30] sm:$0xff]  ;;  %s6293_s18 = smov 112   ;;  %vm545_vm1 = vcmask 916480   ;;  %vm594_vm2 = vcmask 785408  }
  0x10   : > { %v274_v4 = vld [vmem:[%s6382_s8 + $0x70] sm:$0xff]  ;;  %v275_v5 = vld [vmem:[%s6382_s8 + $0x78] sm:$0xff]  ;;  %v272_v6 = vld [vmem:[%s6382_s8 + $0x60] sm:$0xff]  ;;  %9824 = vst [vmem:[#allocation3_spill] sm:$0xff] %v6426_v27  ;;  %s6294_s19 = smov 96   ;;  %s6295_s20 = smov 80  }
  0x11   : > { %357 = vmatpush.msra.mxu0 %v274_v4  ;;  %5946 = vmatpush.msra.mxu2 %v274_v4  ;;  %v273_v7 = vld [vmem:[%s6382_s8 + $0x68] sm:$0xff]  ;;  %v270_v9 = vld [vmem:[%s6382_s8 + $0x50] sm:$0xff]  ;;  %v271_v10 = vld [vmem:[%s6382_s8 + $0x58] sm:$0xff]  ;;  %s6296_s23 = smov 64   ;;  %vm649_vm3 = vcmask 654336   ;;  %s6302_s24 = smov 34  }
  0x12   : > { %398 = vmatpush.msra.mxu1 %v275_v5  ;;  %5954 = vmatpush.msra.mxu3 %v275_v5  ;;  %v268_v11 = vld [vmem:[%s6382_s8 + $0x40] sm:$0xff]  ;;  %v269_v12 = vld [vmem:[%s6382_s8 + $0x48] sm:$0xff]  ;;  %v266_v13 = vld [vmem:[%s6382_s8 + $0x30] sm:$0xff]  ;;  %s6303_s25 = smov 33   ;;  %s6307_s26 = smov 32   ;;  %vm738_vm4 = vcmask 277504  }
  0x13   : > { %358 = vmatpush.msra.mxu0 %v272_v6  ;;  %5947 = vmatpush.msra.mxu2 %v272_v6  ;;  %v267_v14 = vld [vmem:[%s6382_s8 + $0x38] sm:$0xff]  ;;  %v264_v16 = vld [vmem:[%s6382_s8 + $0x20] sm:$0xff]  ;;  %v265_v17 = vld [vmem:[%s6382_s8 + $0x28] sm:$0xff]  ;;  %s6318_s9 = smov 30   ;;  %vm992_vm5 = vcmask 269312   ;;  %vm1479_vm6 = vcmask 252928   ;;  %s7460_s30 = scalar_lea.vmem %s9719_s6, %s5944_s29 }
  0x14   : > { %399 = vmatpush.msra.mxu1 %v273_v7  ;;  %5955 = vmatpush.msra.mxu3 %v273_v7  ;;  %v262_v20 = vld [vmem:[%s6382_s8 + $0x10] sm:$0xff]  ;;  %v263_v21 = vld [vmem:[%s6382_s8 + $0x18] sm:$0xff]  ;;  %v260_v22 = vld [vmem:[%s6382_s8] sm:$0xff]  ;;  %vm1229_vm7 = vcmask 261120   ;;  %vm9780_vm8 = vcmask 244736  }
  0x15   : > { %301 = vperm.xlu1 %6005, %v279_v8   ;;  %359 = vmatpush.msra.mxu0 %v270_v9  ;;  %v261_v23 = vld [vmem:[%s6382_s8 + $0x8] sm:$0xff]  ;;  %v255_v36 = vld [vmem:[%s9714_s1 + $0x18] sm:$0xff]  ;;  %s6314_s8 = smov 31  }
  0x16   : > { %5948 = vmatpush.msra.mxu2 %v270_v9  ;;  %400 = vmatpush.msra.mxu1 %v271_v10  ;;  %v6442_v31 = vld [vmem:[%s9716_s3 + $0x8] sm:$0xff]  ;;  %v259_v37 = vld [vmem:[%s9714_s1 + $0x38] sm:$0xff] }
  0x17   : > { %5956 = vmatpush.msra.mxu3 %v271_v10  ;;  %360 = vmatpush.msra.mxu0 %v268_v11 }
  0x18   : > { %5949 = vmatpush.msra.mxu2 %v268_v11  ;;  %401 = vmatpush.msra.mxu1 %v269_v12 }
  0x19   : > { %5957 = vmatpush.msra.mxu3 %v269_v12  ;;  %361 = vmatpush.msra.mxu0 %v266_v13 }
  0x1a   : > { %5950 = vmatpush.msra.mxu2 %v266_v13  ;;  %402 = vmatpush.msra.mxu1 %v267_v14 }
  0x1b   : > { %5958 = vmatpush.msra.mxu3 %v267_v14  ;;  %291 = vperm.xlu0 %6004, %v277_v15  }
  0x1c   : > { %362 = vmatpush.msra.mxu0 %v264_v16  ;;  %5951 = vmatpush.msra.mxu2 %v264_v16 }
  0x1d   : > { %403 = vmatpush.msra.mxu1 %v265_v17  ;;  %5959 = vmatpush.msra.mxu3 %v265_v17 }
  0x1e   : > { %311 = vperm.xlu2 %6006, %v281_v18   ;;  %321 = vperm.xlu1 %6005, %v283_v19  }
  0x1f   : > { %363 = vmatpush.msra.mxu0 %v262_v20  ;;  %5952 = vmatpush.msra.mxu2 %v262_v20 }
  0x20   : > { %404 = vmatpush.msra.mxu1 %v263_v21  ;;  %5960 = vmatpush.msra.mxu3 %v263_v21 }
  0x21   : > { %364 = vmatpush.msra.mxu0 %v260_v22  ;;  %5953 = vmatpush.msra.mxu2 %v260_v22 }
  0x22   : > { %405 = vmatpush.msra.mxu1 %v261_v23  ;;  %5961 = vmatpush.msra.mxu3 %v261_v23 }
  0x23   : > { %5914 = vmatmul.msk.f32.vlgmr.msra.gmra.mxu0 %vm324_vm0, %v252_v24  ;;  %5918 = vmatmul.msk.f32.vlgmr.msra.gmra.mxu2 %vm324_vm0, %v256_v25 }
  0x24   : > { %5922 = vmatmul.msk.f32.vlgmr.msra.gmra.mxu1 %vm324_vm0, %v252_v24  ;;  %5926 = vmatmul.msk.f32.vlgmr.msra.gmra.mxu3 %vm324_vm0, %v256_v25 }
  0x25   : > { %316 = vperm.xlu0 %6004, %v282_v26  }
  0x26   : > { %493 = vperm.xlu2 %6006, %v6426_v27   ;;  %6007 = vset.pattern.permute.xlu1 %v9742_v28 }
  0x27   : > { %514 = vperm.xlu1 %6007, %v6426_v27  }
  0x2b   : > { %5915 = vmatmul.msk.f32.gmra.mxu0 %vm324_vm0, %v253_v29  ;;  %5919 = vmatmul.msk.f32.gmra.mxu2 %vm324_vm0, %v257_v30 }
  0x2c   : > { %5923 = vmatmul.msk.f32.gmra.mxu1 %vm324_vm0, %v253_v29  ;;  %5927 = vmatmul.msk.f32.gmra.mxu3 %vm324_vm0, %v257_v30 }
  0x2d   : > { %498 = vperm.xlu0 %6004, %v6442_v31  }
  0x2e   : > { %6008 = vset.pattern.permute.xlu2 %v9742_v28 }
  0x2f   : > { %518 = vperm.xlu2 %6008, %v6442_v31   ;;  %6010 = vset.pattern.permute.xlu1 %v9738_v32 }
  0x30   : > { %567 = vperm.xlu1 %6010, %v6442_v31  }
  0x33   : > { %5916 = vmatmul.msk.f32.gmra.mxu0 %vm324_vm0, %v254_v33  ;;  %5920 = vmatmul.msk.f32.gmra.mxu2 %vm324_vm0, %v258_v34 }
  0x34   : > { %5924 = vmatmul.msk.f32.gmra.mxu1 %vm324_vm0, %v254_v33  ;;  %5928 = vmatmul.msk.f32.gmra.mxu3 %vm324_vm0, %v258_v34 }
  0x35   : > { %6009 = vset.pattern.permute.xlu0 %v9738_v32 }
  0x36   : > { %563 = vperm.xlu0 %6009, %v6426_v27  }
  0x37   : > { %6017 = vset.pattern.permute.xlu2 %v9736_v35 }
  0x38   : > { %776 = vperm.xlu2 %6017, %v6426_v27   ;;  %6012 = vset.pattern.permute.xlu1 %v9734_v38 }
  0x39   : > { %622 = vperm.xlu1 %6012, %v6442_v31  }
  0x3b   : > { %5917 = vmatmul.msk.f32.gmra.mxu0 %vm324_vm0, %v255_v36  ;;  %5921 = vmatmul.msk.f32.gmra.mxu2 %vm324_vm0, %v259_v37 }
  0x3c   : > { %5925 = vmatmul.msk.f32.gmra.mxu1 %vm324_vm0, %v255_v36  ;;  %5929 = vmatmul.msk.f32.gmra.mxu3 %vm324_vm0, %v259_v37 }
  0x3e   : > { %6011 = vset.pattern.permute.xlu0 %v9734_v38 }
  0x3f   : > { %618 = vperm.xlu0 %6011, %v6426_v27  }
  0x40   : > { %6019 = vset.pattern.permute.xlu2 %v9726_v39 }
  0x41   : > { %824 = vperm.xlu2 %6019, %v6426_v27   ;;  %6014 = vset.pattern.permute.xlu1 %v9732_v40 }
  0x42   : > { %671 = vperm.xlu1 %6014, %v6442_v31  }
  0x47   : > { %6013 = vset.pattern.permute.xlu0 %v9732_v40 }
  0x48   : > { %667 = vperm.xlu0 %6013, %v6426_v27  }
  0x4a   : > { %6016 = vset.pattern.permute.xlu1 %v9728_v41 }
  0x4b   : > { %760 = vperm.xlu1 %6016, %v6442_v31  }
  0x50   : > { %6015 = vset.pattern.permute.xlu0 %v9728_v41 }
  0x51   : > { %756 = vperm.xlu0 %6015, %v6426_v27  }
  0x53   : > { %6018 = vset.pattern.permute.xlu1 %v9736_v35  ;;  %v9749_v35 = vmov 12  }
  0x54   : > { %780 = vperm.xlu1 %6018, %v6442_v31  }
  0x59   : > { %6020 = vset.pattern.permute.xlu0 %v9726_v39 }
  0x68   : > { %v6494_v42 = vpop.permute.xlu2 %306 }
  0x69   : > { %9825 = vst [vmem:[#allocation4_spill] sm:$0xff] %v6494_v42 }
  0x78   : > { %v6496_v43 = vpop.permute.xlu2 %311 }
  0x79   : > { %9826 = vst [vmem:[#allocation5_spill] sm:$0xff] %v6496_v43 }
  0x7f   : > { %v6498_v44 = vpop.permute.xlu1 %296 }
  0x80   : > { %9827 = vst [vmem:[#allocation6_spill] sm:$0xff] %v6498_v44  ;;  %v6500_v45 = vpop.permute.xlu2 %493  ;;  %v287_v46 = vpop.permute.xlu0 %286 }
  0x87   : > { %v6502_v47 = vpop.permute.xlu1 %301 }
  0x88   : > { %9828 = vst [vmem:[#allocation7_spill] sm:$0xff] %v6502_v47 }
  0x89   : > { %v6504_v48 = vpop.permute.xlu2 %518 }
  0x8a   : > { %v524_v59 = vmul.f32 0.0, %v6504_v48 }
  0x8d   : > { %v6506_v49 = vpop.permute.xlu0 %291 }
  0x90   : > { %v6508_v50 = vpop.permute.xlu1 %321 }
  0x91   : > { %9829 = vst [vmem:[#allocation8_spill] sm:$0xff] %v6508_v50 }
  0x92   : > { %v777_v51 = vpop.permute.xlu2 %776 }
  0x93   : > { %v783_v30 = vmul.f32 0.0, %v777_v51 }
  0x97   : > { %v6510_v52 = vpop.permute.xlu0 %316 }
  0x98   : > { %9830 = vst [vmem:[#allocation9_spill] sm:$0xff] %v6510_v52 }
  0x99   : > { %v6512_v53 = vpop.permute.xlu1 %514 }
  0x9a   : > { %v521_v54 = vmul.f32 0.0, %v6512_v53 }
  0x9b   : > { %v6515_v55 = vpop.permute.xlu2 %824 }
  0x9c   : > { %533 = vrot.lane.b32.xlu0 %v521_v54, %s6293_s18  ;;  %v831_v56 = vmul.f32 0.0, %v6515_v55 }
  0x9e   : > { %843 = vrot.lane.b32.xlu1 %v831_v56, %s6294_s19 }
  0x9f   : > { %v6520_v57 = vpop.permute.xlu0 %498 }
  0xa0   : > { %v366_v58 = vpop.f32.mrf.mxu0 }
  0xa1   : > { %v367_v60 = vadd.f32 %v366_v58, %v287_v46  ;;  %v407_v4 = vpop.f32.mrf.mxu1 }
  0xa2   : > { %v6528_v63 = vpop.permute.xlu1 %567  ;;  %v408_v6 = vadd.f32 %v407_v4, %v287_v46 }
  0xa3   : > { %v6523_v61 = vmax.f32 %v367_v60, 0.0  ;;  %v573_v1 = vmul.f32 0.0, %v6528_v63 }
  0xa4   : > { %539 = vrot.lane.b32.xlu0 %v524_v59, %s6293_s18  ;;  %v6540_v7 = vmax.f32 %v408_v6, 0.0 }
  0xa5   : > { %v522_v62 = vmul.f32 %v6512_v53, %v6523_v61  ;;  %v784_v14 = vmul.f32 %v777_v51, %v6523_v61 }
  0xa6   : > { %v785_v22 = vmul.f32 %v777_v51, %v6540_v7  ;;  %v833_v26 = vmul.f32 %v6515_v55, %v6540_v7 }
  0xa7   : > { %535 = vrot.lane.b32.xlu1 %v522_v62, %s6293_s18 }
  0xa8   : > { %v6531_v0 = vpop.permute.xlu0 %563  ;;  %v369_v12 = vpop.f32.mrf.mxu0 }
  0xa9   : > { %v570_v2 = vmul.f32 0.0, %v6531_v0  ;;  %v571_v5 = vmul.f32 %v6531_v0, %v6523_v61  ;;  %v370_v15 = vadd.f32 %v369_v12, %v6506_v49  ;;  %v410_v37 = vpop.f32.mrf.mxu1 }
  0xaa   : > { %v411_v51 = vadd.f32 %v410_v37, %v6506_v49  ;;  %v9724_v49 = vmov 16  }
  0xab   : > { %582 = vrot.lane.b32.xlu2 %v570_v2, %s6294_s19  ;;  %v623_v9 = vpop.permute.xlu1 %622  ;;  %v6558_v19 = vmax.f32 %v370_v15, 0.0  ;;  %v832_v15 = vmul.f32 %v6515_v55, %v6523_v61 }
  0xac   : > { %588 = vrot.lane.b32.xlu0 %v573_v1, %s6294_s19  ;;  %v630_v13 = vmul.f32 0.0, %v623_v9  ;;  %v6586_v54 = vmax.f32 %v411_v51, 0.0  ;;  %6021 = vset.pattern.permute.xlu2 %v9724_v49 }
  0xad   : > { %v628_v21 = vmul.f32 %v623_v9, %v6558_v19  ;;  %v525_v34 = vmul.f32 %v6504_v48, %v6558_v19  ;;  %v574_v46 = vmul.f32 %v6528_v63, %v6558_v19 }
  0xae   : > { %v629_v56 = vmul.f32 %v623_v9, %v6586_v54 }
  0xaf   : > { %584 = vrot.lane.b32.xlu1 %v571_v5, %s6294_s19 }
  0xb1   : > { %v6542_v8 = vpop.permute.xlu0 %618 }
  0xb2   : > { %v627_v10 = vmul.f32 0.0, %v6542_v8  ;;  %v626_v11 = vmul.f32 %v6542_v8, %v6540_v7  ;;  %v625_v12 = vmul.f32 %v6542_v8, %v6523_v61  ;;  %v526_v8 = vmul.f32 %v6504_v48, %v6586_v54 }
  0xb4   : > { %828 = vperm.xlu0 %6020, %v6442_v31   ;;  %641 = vrot.lane.b32.xlu2 %v627_v10, %s6295_s20  ;;  %v672_v17 = vpop.permute.xlu1 %671  ;;  %v523_v10 = vmul.f32 %v6512_v53, %v6540_v7 }
  0xb5   : > { %v679_v24 = vmul.f32 0.0, %v672_v17  ;;  %v677_v25 = vmul.f32 %v672_v17, %v6558_v19  ;;  %v678_v58 = vmul.f32 %v672_v17, %v6586_v54 }
  0xb7   : > { %639 = vrot.lane.b32.xlu1 %v626_v11, %s6295_s20  ;;  %v572_v11 = vmul.f32 %v6531_v0, %v6540_v7 }
  0xba   : > { %v6552_v16 = vpop.permute.xlu0 %667 }
  0xbb   : > { %v675_v18 = vmul.f32 %v6552_v16, %v6540_v7  ;;  %v676_v20 = vmul.f32 0.0, %v6552_v16 }
  0xbc   : > { %647 = vrot.lane.b32.xlu2 %v630_v13, %s6295_s20  ;;  %797 = vrot.lane.b32.xlu0 %v784_v14, %s6293_s18  ;;  %v674_v14 = vmul.f32 %v6552_v16, %v6523_v61  ;;  %v575_v16 = vmul.f32 %v6528_v63, %v6586_v54  ;;  %v9722_v63 = vmov 21  }
  0xbd   : > { %v6566_v23 = vpop.permute.xlu1 %760  ;;  %6022 = vset.pattern.permute.xlu0 %v9724_v49 }
  0xbf   : > { %688 = vrot.lane.b32.xlu1 %v675_v18, %s6296_s23 }
  0xc3   : > { %v6594_v60 = vpop.permute.xlu0 %756 }
  0xc4   : > { %690 = vrot.lane.b32.xlu2 %v676_v20, %s6296_s23  ;;  %643 = vrot.lane.b32.xlu0 %v628_v21, %s6295_s20 }
  0xc6   : > { %v781_v29 = vpop.permute.xlu1 %780 }
  0xc7   : > { %799 = vrot.lane.b32.xlu1 %v785_v22, %s6293_s18  ;;  %v787_v33 = vmul.f32 %v781_v29, %v6558_v19  ;;  %v786_v36 = vmul.f32 0.0, %v781_v29  ;;  %v788_v59 = vmul.f32 %v781_v29, %v6586_v54 }
  0xcc   : > { %696 = vrot.lane.b32.xlu2 %v679_v24, %s6296_s23  ;;  %692 = vrot.lane.b32.xlu0 %v677_v25, %s6296_s23 }
  0xcf   : > { %847 = vrot.lane.b32.xlu1 %v833_v26, %s6294_s19 }
  0xd4   : > { %795 = vrot.lane.b32.xlu2 %v783_v30, %s6293_s18  ;;  %803 = vrot.lane.b32.xlu0 %v787_v33, %s6293_s18 }
  0xd7   : > { %541 = vrot.lane.b32.xlu1 %v525_v34, %s6293_s18 }
  0xdc   : > { %801 = vrot.lane.b32.xlu2 %v786_v36, %s6293_s18 }
  0xdf   : > { %590 = vrot.lane.b32.xlu1 %v574_v46, %s6294_s19 }
  0xe7   : > { %645 = vrot.lane.b32.xlu1 %v629_v56, %s6295_s20 }
  0xef   : > { %694 = vrot.lane.b32.xlu1 %v678_v58, %s6296_s23 }
  0xf7   : > { %805 = vrot.lane.b32.xlu1 %v788_v59, %s6293_s18 }
 0x105   : > { %v6618_v13 = vpop.permute.xlu2 %582 }
 0x10e   : > { %v6596_v62 = vpop.permute.xlu0 %533  ;;  %v6624_v53 = vpop.permute.xlu2 %641 }
 0x116   : > { %v6600_v1 = vpop.permute.xlu0 %539  ;;  %v6629_v0 = vpop.permute.xlu2 %647 }
 0x11e   : > { %v6602_v2 = vpop.permute.xlu0 %588  ;;  %v6634_v17 = vpop.permute.xlu2 %690 }
 0x126   : > { %v829_v4 = vpop.permute.xlu0 %828  ;;  %v6639_v18 = vpop.permute.xlu2 %696 }
 0x127   : > { %v834_v5 = vmul.f32 0.0, %v829_v4  ;;  %v835_v6 = vmul.f32 %v829_v4, %v6558_v19  ;;  %v836_v9 = vmul.f32 %v829_v4, %v6586_v54  ;;  %9831 = vst [vmem:[#allocation10_spill] sm:$0xff] %v6639_v18 }
 0x129   : > { %849 = vrot.lane.b32.xlu2 %v834_v5, %s6294_s19  ;;  %851 = vrot.lane.b32.xlu0 %v835_v6, %s6294_s19 }
 0x12a   : > { %853 = vrot.lane.b32.xlu1 %v836_v9, %s6294_s19 }
 0x12e   : > { %v6642_v55 = vpop.permute.xlu2 %795  ;;  %v6644_v20 = vpop.permute.xlu0 %797 }
 0x131   : > { %537 = vrot.lane.b32.xlu2 %v523_v10, %s6293_s18  ;;  %876 = vperm.xlu0 %6022, %v6442_v31   ;;  %v6686_v10 = vpop.permute.xlu1 %843 }
 0x136   : > { %v6646_v21 = vpop.permute.xlu2 %801  ;;  %v6648_v48 = vpop.permute.xlu0 %643 }
 0x137   : > { %9832 = vst [vmem:[#allocation11_spill] sm:$0xff] %v6646_v21 }
 0x139   : > { %586 = vrot.lane.b32.xlu2 %v572_v11, %s6294_s19  ;;  %6024 = vset.pattern.permute.xlu0 %v9722_v63  ;;  %v9720_v11 = vmov 2  }
 0x13e   : > { %v6652_v24 = vpop.permute.xlu0 %692 }
 0x141   : > { %637 = vrot.lane.b32.xlu2 %v625_v12, %s6295_s20  ;;  %v6690_v12 = vpop.permute.xlu1 %535 }
 0x146   : > { %v6658_v26 = vpop.permute.xlu0 %803 }
 0x149   : > { %686 = vrot.lane.b32.xlu2 %v674_v14, %s6296_s23 }
 0x151   : > { %845 = vrot.lane.b32.xlu2 %v832_v15, %s6294_s19  ;;  %v6694_v15 = vpop.permute.xlu1 %584 }
 0x159   : > { %543 = vrot.lane.b32.xlu2 %v526_v8, %s6293_s18 }
 0x161   : > { %592 = vrot.lane.b32.xlu2 %v575_v16, %s6294_s19 }
 0x169   : > { %872 = vperm.xlu2 %6021, %v6426_v27  }
 0x171   : > { %6023 = vset.pattern.permute.xlu2 %v9722_v63 }
 0x183   : > { %v6650_v22 = vpop.permute.xlu2 %849 }
 0x184   : > { %9833 = vst [vmem:[#allocation12_spill] sm:$0xff] %v6650_v22  ;;  %v501_v22 = vmul.f32 0.0, %v6500_v45 }
 0x18b   : > { %v6654_v25 = vpop.permute.xlu2 %537 }
 0x193   : > { %v6660_v29 = vpop.permute.xlu2 %586 }
 0x19b   : > { %v6662_v30 = vpop.permute.xlu0 %851  ;;  %v6664_v33 = vpop.permute.xlu2 %637 }
 0x1a3   : > { %v877_v34 = vpop.permute.xlu0 %876  ;;  %v6666_v36 = vpop.permute.xlu2 %686 }
 0x1a4   : > { %v883_v37 = vmul.f32 %v877_v34, %v6586_v54  ;;  %v882_v5 = vmul.f32 %v877_v34, %v6558_v19  ;;  %v884_v9 = vmul.f32 0.0, %v877_v34 }
 0x1a6   : > { %899 = vrot.lane.b32.xlu0 %v883_v37, %s6295_s20 }
 0x1ab   : > { %v6670_v46 = vpop.permute.xlu2 %845 }
 0x1ae   : > { %924 = vperm.xlu0 %6024, %v6442_v31  }
 0x1b3   : > { %v6673_v51 = vpop.permute.xlu2 %543 }
 0x1b6   : > { %6026 = vset.pattern.permute.xlu0 %v9720_v11 }
 0x1bb   : > { %v6675_v56 = vpop.permute.xlu2 %592 }
 0x1c3   : > { %v873_v58 = vpop.permute.xlu2 %872 }
 0x1c4   : > { %v880_v59 = vmul.f32 %v873_v58, %v6540_v7  ;;  %v879_v4 = vmul.f32 %v873_v58, %v6523_v61  ;;  %v881_v6 = vmul.f32 0.0, %v873_v58  ;;  %v6702_v58 = vpop.permute.xlu1 %639 }
 0x1c6   : > { %893 = vrot.lane.b32.xlu2 %v880_v59, %s6295_s20  ;;  %891 = vrot.lane.b32.xlu1 %v879_v4, %s6295_s20  ;;  %v9730_v59 = vmov 7  }
 0x1c7   : > { %6027 = vset.pattern.permute.xlu1 %v9730_v59 }
 0x1ce   : > { %897 = vrot.lane.b32.xlu2 %v882_v5, %s6295_s20  ;;  %895 = vrot.lane.b32.xlu1 %v881_v6, %s6295_s20 }
 0x1d6   : > { %920 = vperm.xlu2 %6023, %v6426_v27   ;;  %901 = vrot.lane.b32.xlu1 %v884_v9, %s6295_s20  ;;  %v6708_v9 = vpop.permute.xlu1 %688 }
 0x1de   : > { %6025 = vset.pattern.permute.xlu2 %v9720_v11  ;;  %v800_v63 = vpop.permute.xlu1 %799 }
 0x1df   : > { %v808_v21 = vsel %vm545_vm1, %v6644_v20, %v800_v63 }
 0x1e6   : > { %v6717_v39 = vpop.permute.xlu1 %847 }
 0x218   : > { %v6692_v14 = vpop.permute.xlu0 %899 }
 0x220   : > { %v925_v8 = vpop.permute.xlu0 %924  ;;  %v6696_v16 = vpop.permute.xlu2 %893 }
 0x221   : > { %v931_v34 = vmul.f32 %v925_v8, %v6586_v54  ;;  %v932_v49 = vmul.f32 0.0, %v925_v8 }
 0x223   : > { %947 = vrot.lane.b32.xlu0 %v931_v34, %s6296_s23  ;;  %v930_v34 = vmul.f32 %v925_v8, %v6558_v19 }
 0x228   : > { %v6700_v37 = vpop.permute.xlu2 %897 }
 0x22b   : > { %1014 = vperm.xlu0 %6026, %v6442_v31  }
 0x230   : > { %v921_v4 = vpop.permute.xlu2 %920 }
 0x231   : > { %v928_v5 = vmul.f32 %v921_v4, %v6540_v7  ;;  %v927_v6 = vmul.f32 %v921_v4, %v6523_v61  ;;  %v929_v11 = vmul.f32 0.0, %v921_v4 }
 0x233   : > { %941 = vrot.lane.b32.xlu2 %v928_v5, %s6296_s23  ;;  %939 = vrot.lane.b32.xlu1 %v927_v6, %s6296_s23  ;;  %v6722_v5 = vpop.permute.xlu1 %541 }
 0x23b   : > { %945 = vrot.lane.b32.xlu2 %v930_v34, %s6296_s23  ;;  %943 = vrot.lane.b32.xlu1 %v929_v11, %s6296_s23  ;;  %v6724_v4 = vpop.permute.xlu1 %590 }
 0x243   : > { %1010 = vperm.xlu2 %6025, %v6426_v27   ;;  %949 = vrot.lane.b32.xlu1 %v932_v49, %s6296_s23  ;;  %v6726_v6 = vpop.permute.xlu1 %645 }
 0x24b   : > { %6028 = vset.pattern.permute.xlu2 %v9730_v59  ;;  %1030 = vperm.xlu1 %6027, %v6426_v27   ;;  %v6728_v11 = vpop.permute.xlu1 %694 }
 0x24c   : > { %1034 = vperm.xlu2 %6028, %v6442_v31   ;;  %9834 = vst [vmem:[#allocation13_spill] sm:$0xff] %v6728_v11 }
 0x253   : > { %v6730_v8 = vpop.permute.xlu1 %805  ;;  %6029 = vset.pattern.permute.xlu1 %v9749_v35 }
 0x254   : > { %6030 = vset.pattern.permute.xlu2 %v9749_v35 }
 0x25b   : > { %v6732_v34 = vpop.permute.xlu1 %853 }
 0x263   : > { %v6734_v49 = vpop.permute.xlu1 %891 }
 0x26b   : > { %v896_v41 = vpop.permute.xlu1 %895 }
 0x273   : > { %v6736_v59 = vpop.permute.xlu1 %901 }
 0x28d   : > { %v942_v40 = vpop.permute.xlu2 %941 }
 0x295   : > { %v6742_v3 = vpop.permute.xlu2 %945 }
 0x29d   : > { %v6746_v50 = vpop.permute.xlu2 %1010 }
 0x29e   : > { %9835 = vst [vmem:[#allocation14_spill] sm:$0xff] %v6746_v50  ;;  %v546_v50 = vsel %vm545_vm1, %v6596_v62, %v6690_v12  ;;  %v503_v62 = vmul.f32 %v6500_v45, %v6540_v7 }
 0x2a5   : > { %v6738_v38 = vpop.permute.xlu1 %939 }
 0x2a6   : > { %v1035_v35 = vpop.permute.xlu2 %1034 }
 0x2a7   : > { %v1040_v44 = vmul.f32 0.0, %v1035_v35  ;;  %v1042_v11 = vmul.f32 %v1035_v35, %v6586_v54 }
 0x2ad   : > { %v944_v32 = vpop.permute.xlu1 %943 }
 0x2b5   : > { %v6744_v28 = vpop.permute.xlu1 %949 }
 0x2bd   : > { %v1031_v52 = vpop.permute.xlu1 %1030 }
 0x2be   : > { %v1037_v43 = vmul.f32 0.0, %v1031_v52  ;;  %v1039_v42 = vmul.f32 %v1031_v52, %v6540_v7  ;;  %v1038_v47 = vmul.f32 %v1031_v52, %v6523_v61  ;;  %v556_v52 = vadd.f32 %v546_v50, %v501_v22 }
 0x2c0   : > { %1049 = vrot.lane.b32.xlu1 %v1037_v43, %s6293_s18  ;;  %1053 = vrot.lane.b32.xlu0 %v1039_v42, %s6293_s18  ;;  %v595_v43 = vsel %vm594_vm2, %v6618_v13, %v6694_v15  ;;  %v1041_v42 = vmul.f32 %v1035_v35, %v6558_v19  ;;  %v558_v13 = vadd.f32 %v6654_v25, %v503_v62 }
 0x2c1   : > { %1051 = vrot.lane.b32.xlu2 %v1038_v47, %s6293_s18  ;;  %v605_v47 = vadd.f32 %v595_v43, %v556_v52  ;;  %v764_v35 = vmul.f32 %v6594_v60, %v6523_v61  ;;  %v548_v52 = vsel %vm545_vm1, %v6600_v1, %v6722_v5  ;;  %v597_v1 = vsel %vm594_vm2, %v6602_v2, %v6724_v4 }
 0x2c2   : > { %v607_v22 = vadd.f32 %v6660_v29, %v558_v13  ;;  %v547_v2 = vsel %vm545_vm1, %v6690_v12, %v6654_v25 }
 0x2c3   : > { %v660_v18 = vadd.f32 %v6664_v33, %v605_v47  ;;  %v818_v43 = vadd.f32 %v808_v21, %v764_v35  ;;  %v904_v47 = vsel %vm649_vm3, %v6696_v16, %v896_v41  ;;  %v504_v21 = vmul.f32 0.0, %v6520_v57 }
 0x2c4   : > { %v952_v41 = vsel %vm324_vm0, %v942_v40, %v944_v32 }
 0x2c5   : > { %v708_v50 = vadd.f32 %v6666_v36, %v660_v18  ;;  %v903_v18 = vsel %vm649_vm3, %v6734_v49, %v6696_v16  ;;  %v559_v16 = vadd.f32 %v548_v52, %v504_v21  ;;  %v767_v52 = vmul.f32 %v6566_v23, %v6558_v19 }
 0x2c8   : > { %1055 = vrot.lane.b32.xlu1 %v1040_v44, %s6293_s18  ;;  %1059 = vrot.lane.b32.xlu0 %v1042_v11, %s6293_s18  ;;  %v765_v44 = vmul.f32 %v6594_v60, %v6540_v7  ;;  %v856_v11 = vsel %vm594_vm2, %v6670_v46, %v6717_v39 }
 0x2c9   : > { %1057 = vrot.lane.b32.xlu2 %v1041_v42, %s6293_s18  ;;  %v866_v13 = vadd.f32 %v856_v11, %v818_v43  ;;  %v608_v11 = vadd.f32 %v597_v1, %v559_v16  ;;  %v763_v43 = vmul.f32 0.0, %v6594_v60  ;;  %v549_v1 = vsel %vm545_vm1, %v6722_v5, %v6673_v51 }
 0x2ca   : > { %v819_v42 = vadd.f32 %v800_v63, %v765_v44  ;;  %v651_v63 = vsel %vm649_vm3, %v6702_v58, %v6624_v53  ;;  %v951_v44 = vsel %vm324_vm0, %v6738_v38, %v942_v40  ;;  %v807_v53 = vsel %vm545_vm1, %v6642_v55, %v6644_v20 }
 0x2cb   : > { %v662_v35 = vadd.f32 %v651_v63, %v607_v22  ;;  %v699_v22 = vsel %vm324_vm0, %v6708_v9, %v6634_v17  ;;  %v596_v55 = vsel %vm594_vm2, %v6694_v15, %v6660_v29  ;;  %v817_v17 = vadd.f32 %v807_v53, %v763_v43  ;;  %v9839_v43 = vld [vmem:[#allocation12_spill] sm:$0xff] }
 0x2cc   : > { %v867_v62 = vadd.f32 %v6717_v39, %v819_v42  ;;  %v502_v39 = vmul.f32 %v6500_v45, %v6523_v61  ;;  %v855_v45 = vsel %vm594_vm2, %v6686_v10, %v6670_v46  ;;  %v663_v25 = vadd.f32 %v6648_v48, %v608_v11 }
 0x2cd   : > { %v710_v20 = vadd.f32 %v699_v22, %v662_v35  ;;  %v698_v29 = vsel %vm324_vm0, %v6666_v36, %v6708_v9  ;;  %v865_v46 = vadd.f32 %v855_v45, %v817_v17  ;;  %v506_v10 = vmul.f32 %v6520_v57, %v6586_v54 }
 0x2ce   : > { %v557_v42 = vadd.f32 %v547_v2, %v502_v39  ;;  %v810_v15 = vsel %vm545_vm1, %v6658_v26, %v6730_v8  ;;  %v711_v36 = vadd.f32 %v6652_v24, %v663_v25  ;;  %v905_v35 = vsel %vm649_vm3, %v6700_v37, %v6692_v14  ;;  %v9836_v39 = vld [vmem:[#allocation11_spill] sm:$0xff]  ;;  %v9837_v2 = vld [vmem:[#allocation10_spill] sm:$0xff] }
 0x2cf   : > { %v598_v5 = vsel %vm594_vm2, %v6724_v4, %v6675_v56 }
 0x2d0   : > { %1078 = vperm.xlu1 %6029, %v6426_v27   ;;  %726 = vrot.lane.b32.xlu0 %v708_v50, %s6302_s24  ;;  %v914_v50 = vadd.f32 %v903_v18, %v866_v13  ;;  %v915_v27 = vadd.f32 %v904_v47, %v867_v62  ;;  %v606_v60 = vadd.f32 %v596_v55, %v557_v42  ;;  %v948_v13 = vpop.permute.xlu0 %947 }
 0x2d1   : > { %1082 = vperm.xlu2 %6030, %v6442_v31   ;;  %v768_v18 = vmul.f32 %v6566_v23, %v6586_v54  ;;  %v858_v47 = vsel %vm594_vm2, %v6662_v30, %v6732_v34  ;;  %v821_v62 = vadd.f32 %v810_v15, %v767_v52 }
 0x2d2   : > { %v963_v32 = vadd.f32 %v952_v41, %v915_v27  ;;  %v962_v40 = vadd.f32 %v951_v44, %v914_v50  ;;  %v650_v27 = vsel %vm649_vm3, %v6664_v33, %v6702_v58  ;;  %v561_v33 = vadd.f32 %v6673_v51, %v506_v10 }
 0x2d3   : > { %v661_v12 = vadd.f32 %v650_v27, %v606_v60  ;;  %v913_v58 = vadd.f32 %v6734_v49, %v865_v46  ;;  %v822_v49 = vadd.f32 %v6730_v8, %v768_v18  ;;  %v653_v8 = vsel %vm649_vm3, %v6726_v6, %v6629_v0 }
 0x2d4   : > { %v610_v21 = vadd.f32 %v6675_v56, %v561_v33  ;;  %v869_v44 = vadd.f32 %v858_v47, %v821_v62  ;;  %v505_v51 = vmul.f32 %v6520_v57, %v6558_v19  ;;  %v9838_v57 = vld [vmem:[#allocation13_spill] sm:$0xff]  ;;  %v9778_v27 = vmov 17  }
 0x2d5   : > { %v709_v9 = vadd.f32 %v698_v29, %v661_v12  ;;  %v961_v63 = vadd.f32 %v6738_v38, %v913_v58  ;;  %v906_v38 = vsel %vm649_vm3, %v6692_v14, %v6736_v59  ;;  %v870_v41 = vadd.f32 %v6732_v34, %v822_v49  ;;  %v9840_v12 = vld [vmem:[#allocation3_spill] sm:$0xff] }
 0x2d6   : > { %v665_v16 = vadd.f32 %v653_v8, %v610_v21  ;;  %v953_v14 = vsel %vm324_vm0, %v6742_v3, %v948_v13  ;;  %v954_v59 = vsel %vm324_vm0, %v948_v13, %v6744_v28  ;;  %v560_v50 = vadd.f32 %v549_v1, %v505_v51 }
 0x2d7   : > { %v917_v53 = vadd.f32 %v905_v35, %v869_v44  ;;  %v918_v0 = vadd.f32 %v906_v38, %v870_v41  ;;  %v809_v34 = vsel %vm545_vm1, %v9836_v39, %v6658_v26  ;;  %v701_v22 = vsel %vm324_vm0, %v9838_v57, %v9837_v2 }
 0x2d8   : > { %984 = vrot.lane.b32.xlu1 %v963_v32, %s6303_s25  ;;  %982 = vrot.lane.b32.xlu0 %v962_v40, %s6303_s25  ;;  %v609_v11 = vadd.f32 %v598_v5, %v560_v50  ;;  %v766_v32 = vmul.f32 0.0, %v6566_v23  ;;  %v713_v40 = vadd.f32 %v701_v22, %v665_v16  ;;  %v857_v28 = vsel %vm594_vm2, %v9839_v43, %v6662_v30  ;;  %v6950_v51 = vpop.permute.xlu0 %1014 }
 0x2d9   : > { %730 = vrot.lane.b32.xlu2 %v710_v20, %s6302_s24  ;;  %v966_v56 = vadd.f32 %v954_v59, %v918_v0  ;;  %v965_v4 = vadd.f32 %v953_v14, %v917_v53  ;;  %v652_v26 = vsel %vm649_vm3, %v6648_v48, %v6726_v6  ;;  %v700_v23 = vsel %vm324_vm0, %v6652_v24, %v9838_v57 }
 0x2da   : > { %v820_v55 = vadd.f32 %v809_v34, %v766_v32  ;;  %v664_v20 = vadd.f32 %v652_v26, %v609_v11  ;;  %6032 = vset.pattern.permute.xlu2 %v9778_v27  ;;  %6031 = vset.pattern.permute.xlu1 %v9778_v27 }
 0x2dc   : > { %v868_v42 = vadd.f32 %v857_v28, %v820_v55  ;;  %v712_v30 = vadd.f32 %v700_v23, %v664_v20 }
 0x2de   : > { %v916_v45 = vadd.f32 %v6700_v37, %v868_v42  ;;  %v9841_v42 = vld [vmem:[#allocation14_spill] sm:$0xff] }
 0x2df   : > { %v1017_v23 = vmul.f32 0.0, %v9841_v42 }
 0x2e0   : > { %732 = vrot.lane.b32.xlu0 %v711_v36, %s6302_s24  ;;  %728 = vrot.lane.b32.xlu1 %v709_v9, %s6302_s24  ;;  %v964_v17 = vadd.f32 %v6742_v3, %v916_v45  ;;  %v9774_v9 = vmov 22  }
 0x2e1   : > { %980 = vrot.lane.b32.xlu2 %v961_v63, %s6303_s25  ;;  %6033 = vset.pattern.permute.xlu0 %v9774_v9 }
 0x2e8   : > { %988 = vrot.lane.b32.xlu0 %v965_v4, %s6303_s25  ;;  %990 = vrot.lane.b32.xlu1 %v966_v56, %s6303_s25 }
 0x2e9   : > { %736 = vrot.lane.b32.xlu2 %v713_v40, %s6302_s24 }
 0x2f0   : > { %734 = vrot.lane.b32.xlu1 %v712_v30, %s6302_s24 }
 0x2f1   : > { %986 = vrot.lane.b32.xlu2 %v964_v17, %s6303_s25 }
 0x31b   : > { %v6898_v48 = vpop.permute.xlu2 %1051 }
 0x323   : > { %v6900_v6 = vpop.permute.xlu2 %1057 }
 0x32b   : > { %v1083_v60 = vpop.permute.xlu2 %1082 }
 0x32c   : > { %v1087_v24 = vmul.f32 %v1083_v60, %v6558_v19  ;;  %v1088_v10 = vmul.f32 %v1083_v60, %v6586_v54 }
 0x32e   : > { %1097 = vrot.lane.b32.xlu2 %v1087_v24, %s6294_s19 }
 0x332   : > { %v6904_v37 = vpop.permute.xlu1 %1049  ;;  %v1054_v5 = vpop.permute.xlu0 %1053 }
 0x333   : > { %v6918_v33 = vpop.permute.xlu2 %730  ;;  %v1061_v26 = vsel %vm545_vm1, %v6904_v37, %v6898_v48  ;;  %v1020_v37 = vmul.f32 0.0, %v6950_v51 }
 0x334   : > { %v1071_v45 = vadd.f32 %v1061_v26, %v1017_v23 }
 0x336   : > { %1120 = vperm.xlu2 %6032, %v6442_v31  }
 0x33a   : > { %v6907_v3 = vpop.permute.xlu1 %1055  ;;  %v6952_v16 = vpop.permute.xlu0 %1059 }
 0x33b   : > { %v6922_v52 = vpop.permute.xlu2 %980 }
 0x342   : > { %v1079_v25 = vpop.permute.xlu1 %1078  ;;  %v6954_v14 = vpop.permute.xlu0 %726 }
 0x343   : > { %v1085_v29 = vmul.f32 %v1079_v25, %v6523_v61  ;;  %v1086_v46 = vmul.f32 %v1079_v25, %v6540_v7  ;;  %v6926_v36 = vpop.permute.xlu2 %736  ;;  %v9772_v25 = vmov 3  }
 0x345   : > { %1093 = vrot.lane.b32.xlu0 %v1085_v29, %s6294_s19  ;;  %1095 = vrot.lane.b32.xlu1 %v1086_v46, %s6294_s19  ;;  %v9776_v29 = vmov 8   ;;  %v1063_v46 = vsel %vm545_vm1, %v6907_v3, %v6900_v6 }
 0x346   : > { %6037 = vset.pattern.permute.xlu2 %v9776_v29 }
 0x34a   : > { %v6916_v15 = vpop.permute.xlu1 %984  ;;  %v6956_v59 = vpop.permute.xlu0 %982 }
 0x34b   : > { %v6932_v21 = vpop.permute.xlu2 %986 }
 0x34d   : > { %1099 = vrot.lane.b32.xlu0 %v1088_v10, %s6294_s19  ;;  %1116 = vperm.xlu1 %6031, %v9840_v12   ;;  %v1062_v10 = vsel %vm545_vm1, %v6898_v48, %v1054_v5 }
 0x352   : > { %v6920_v58 = vpop.permute.xlu1 %728  ;;  %v6958_v50 = vpop.permute.xlu0 %732 }
 0x355   : > { %6034 = vset.pattern.permute.xlu1 %v9774_v9 }
 0x35a   : > { %v6924_v18 = vpop.permute.xlu1 %990  ;;  %v6960_v53 = vpop.permute.xlu0 %988 }
 0x362   : > { %v6930_v47 = vpop.permute.xlu1 %734 }
 0x388   : > { %v6936_v62 = vpop.permute.xlu2 %1097 }
 0x390   : > { %v1121_v38 = vpop.permute.xlu2 %1120 }
 0x391   : > { %v1128_v8 = vmul.f32 0.0, %v1121_v38  ;;  %v1127_v44 = vmul.f32 %v1121_v38, %v6586_v54  ;;  %v1126_v41 = vmul.f32 %v1121_v38, %v6558_v19 }
 0x3b7   : > { %v6934_v63 = vpop.permute.xlu1 %1095  ;;  %v1094_v0 = vpop.permute.xlu0 %1093 }
 0x3b8   : > { %v1109_v30 = vadd.f32 %v1094_v0, %v1071_v45 }
 0x3bf   : > { %v1117_v49 = vpop.permute.xlu1 %1116  ;;  %v6962_v39 = vpop.permute.xlu0 %1099 }
 0x3c0   : > { %v1125_v13 = vmul.f32 0.0, %v1117_v49  ;;  %v1124_v1 = vmul.f32 %v1117_v49, %v6540_v7  ;;  %v1123_v35 = vmul.f32 %v1117_v49, %v6523_v61  ;;  %v1019_v49 = vmul.f32 %v9841_v42, %v6540_v7 }
 0x3c1   : > { %v1102_v26 = vsel %vm594_vm2, %v6936_v62, %v6962_v39 }
 0x3c2   : > { %1139 = vrot.lane.b32.xlu2 %v1125_v13, %s6295_s20  ;;  %1137 = vrot.lane.b32.xlu1 %v1124_v1, %s6295_s20  ;;  %v1074_v13 = vadd.f32 %v1063_v46, %v1020_v37  ;;  %v1101_v1 = vsel %vm594_vm2, %v1094_v0, %v6934_v63  ;;  %v1073_v38 = vadd.f32 %v1054_v5, %v1019_v49  ;;  %v7030_v46 = vld [vmem:[%s9716_s3] sm:$0xff] }
 0x3c3   : > { %1135 = vrot.lane.b32.xlu0 %v1123_v35, %s6295_s20  ;;  %v1064_v5 = vsel %vm545_vm1, %v6900_v6, %v6952_v16 }
 0x3c4   : > { %v1111_v48 = vadd.f32 %v6934_v63, %v1073_v38  ;;  %v1022_v63 = vmul.f32 %v6950_v51, %v6586_v54 }
 0x3c6   : > { %v1076_v6 = vadd.f32 %v6952_v16, %v1022_v63 }
 0x3ca   : > { %1145 = vrot.lane.b32.xlu2 %v1128_v8, %s6295_s20  ;;  %1143 = vrot.lane.b32.xlu1 %v1127_v44, %s6295_s20  ;;  %v1112_v8 = vadd.f32 %v6936_v62, %v1074_v13 }
 0x3cb   : > { %1141 = vrot.lane.b32.xlu0 %v1126_v41, %s6295_s20 }
 0x3d2   : > { %1168 = vperm.xlu1 %6034, %v6442_v31  }
 0x3d3   : > { %1164 = vperm.xlu0 %6033, %v9840_v12   ;;  %v1018_v12 = vmul.f32 %v9841_v42, %v6523_v61 }
 0x3d5   : > { %v1072_v35 = vadd.f32 %v1062_v10, %v1018_v12 }
 0x3d7   : > { %v1110_v41 = vadd.f32 %v1101_v1, %v1072_v35  ;;  %v9770_v35 = vmov 13  }
 0x3da   : > { %6036 = vset.pattern.permute.xlu1 %v9772_v25 }
 0x3db   : > { %6035 = vset.pattern.permute.xlu0 %v9772_v25 }
 0x41c   : > { %v1140_v55 = vpop.permute.xlu2 %1139 }
 0x424   : > { %v1146_v20 = vpop.permute.xlu2 %1145 }
 0x434   : > { %v1138_v34 = vpop.permute.xlu1 %1137 }
 0x435   : > { %v1136_v31 = vpop.permute.xlu0 %1135  ;;  %v1148_v44 = vsel %vm649_vm3, %v1138_v34, %v1140_v55 }
 0x436   : > { %v1157_v17 = vadd.f32 %v1136_v31, %v1109_v30  ;;  %v1147_v3 = vsel %vm649_vm3, %v1136_v31, %v1138_v34  ;;  %v1021_v34 = vmul.f32 %v6950_v51, %v6558_v19  ;;  %v1114_v30 = vadd.f32 %v6962_v39, %v1076_v6  ;;  %v7039_v39 = vld [vmem:[%s9716_s3 + $0x8] sm:$0xff] }
 0x438   : > { %v1075_v42 = vadd.f32 %v1064_v5, %v1021_v34 }
 0x43a   : > { %v1113_v45 = vadd.f32 %v1102_v26, %v1075_v42 }
 0x43c   : > { %v6964_v2 = vpop.permute.xlu1 %1143 }
 0x43d   : > { %v6966_v57 = vpop.permute.xlu0 %1141  ;;  %v1150_v23 = vsel %vm649_vm3, %v6964_v2, %v1146_v20 }
 0x43e   : > { %v1149_v51 = vsel %vm649_vm3, %v6966_v57, %v6964_v2 }
 0x444   : > { %v1169_v22 = vpop.permute.xlu1 %1168 }
 0x445   : > { %v1165_v11 = vpop.permute.xlu0 %1164  ;;  %v1174_v56 = vmul.f32 %v1169_v22, %v6558_v19  ;;  %v1175_v40 = vmul.f32 %v1169_v22, %v6586_v54  ;;  %v1176_v28 = vmul.f32 0.0, %v1169_v22  ;;  %v1160_v22 = vadd.f32 %v6966_v57, %v1112_v8 }
 0x446   : > { %v1172_v4 = vmul.f32 %v1165_v11, %v6540_v7  ;;  %v1171_v32 = vmul.f32 %v1165_v11, %v6523_v61  ;;  %v1173_v43 = vmul.f32 0.0, %v1165_v11 }
 0x447   : > { %1189 = vrot.lane.b32.xlu0 %v1174_v56, %s6296_s23 }
 0x448   : > { %1185 = vrot.lane.b32.xlu1 %v1172_v4, %s6296_s23  ;;  %1183 = vrot.lane.b32.xlu2 %v1171_v32, %s6296_s23  ;;  %v1159_v4 = vadd.f32 %v1148_v44, %v1111_v48  ;;  %v1158_v32 = vadd.f32 %v1147_v3, %v1110_v41 }
 0x450   : > { %1191 = vrot.lane.b32.xlu1 %v1175_v40, %s6296_s23  ;;  %1187 = vrot.lane.b32.xlu2 %v1173_v43, %s6296_s23 }
 0x458   : > { %1193 = vrot.lane.b32.xlu2 %v1176_v28, %s6296_s23 }
 0x4a2   : > { %v1184_v60 = vpop.permute.xlu2 %1183 }
 0x4a3   : > { %v1205_v24 = vadd.f32 %v1184_v60, %v1157_v17  ;;  %v1162_v17 = vadd.f32 %v1150_v23, %v1114_v30 }
 0x4a5   : > { %1217 = vrot.lane.b32.xlu0 %v1205_v24, %s6307_s26 }
 0x4aa   : > { %v1188_v11 = vpop.permute.xlu2 %1187 }
 0x4b2   : > { %v1194_v62 = vpop.permute.xlu2 %1193 }
 0x4b9   : > { %v1190_v56 = vpop.permute.xlu0 %1189 }
 0x4ba   : > { %v1186_v40 = vpop.permute.xlu1 %1185  ;;  %v1208_v43 = vadd.f32 %v1190_v56, %v1160_v22 }
 0x4bb   : > { %v1195_v0 = vsel %vm324_vm0, %v1184_v60, %v1186_v40  ;;  %v1196_v28 = vsel %vm324_vm0, %v1186_v40, %v1188_v11  ;;  %v1161_v60 = vadd.f32 %v1149_v51, %v1113_v45  ;;  %v9766_v40 = vmov 18  }
 0x4bc   : > { %1223 = vrot.lane.b32.xlu0 %v1208_v43, %s6307_s26  ;;  %v1206_v31 = vadd.f32 %v1195_v0, %v1158_v32  ;;  %v1207_v55 = vadd.f32 %v1196_v28, %v1159_v4  ;;  %v9758_v45 = vmov 23  }
 0x4be   : > { %1219 = vrot.lane.b32.xlu1 %v1206_v31, %s6307_s26  ;;  %1221 = vrot.lane.b32.xlu2 %v1207_v55, %s6307_s26 }
 0x4c2   : > { %v1192_v24 = vpop.permute.xlu1 %1191 }
 0x4c3   : > { %v1197_v16 = vsel %vm324_vm0, %v1190_v56, %v1192_v24  ;;  %v1198_v37 = vsel %vm324_vm0, %v1192_v24, %v1194_v62 }
 0x4c4   : > { %1243 = vperm.xlu0 %6035, %v7030_v46   ;;  %v1210_v20 = vadd.f32 %v1198_v37, %v1162_v17  ;;  %v1209_v2 = vadd.f32 %v1197_v16, %v1161_v60 }
 0x4c6   : > { %1227 = vrot.lane.b32.xlu2 %v1210_v20, %s6307_s26  ;;  %1225 = vrot.lane.b32.xlu1 %v1209_v2, %s6307_s26 }
 0x4cc   : > { %6040 = vset.pattern.permute.xlu0 %v9770_v35 }
 0x4ce   : > { %1263 = vperm.xlu2 %6037, %v7030_v46   ;;  %1247 = vperm.xlu1 %6036, %v7039_v39  }
 0x4d6   : > { %6038 = vset.pattern.permute.xlu1 %v9776_v29  ;;  %6039 = vset.pattern.permute.xlu2 %v9770_v35 }
 0x4d7   : > { %1267 = vperm.xlu1 %6038, %v7039_v39  }
 0x517   : > { %v7070_v56 = vpop.permute.xlu0 %1217 }
 0x518   : > { %v7044_v57 = vpop.permute.xlu2 %1221 }
 0x520   : > { %v7046_v10 = vpop.permute.xlu2 %1227 }
 0x528   : > { %v1264_v12 = vpop.permute.xlu2 %1263 }
 0x529   : > { %v1271_v49 = vmul.f32 %v1264_v12, %v6523_v61  ;;  %v1272_v13 = vmul.f32 %v1264_v12, %v6540_v7  ;;  %v1270_v1 = vmul.f32 0.0, %v1264_v12 }
 0x52b   : > { %1284 = vrot.lane.b32.xlu0 %v1271_v49, %s6293_s18  ;;  %1286 = vrot.lane.b32.xlu1 %v1272_v13, %s6293_s18 }
 0x52c   : > { %1282 = vrot.lane.b32.xlu2 %v1270_v1, %s6293_s18 }
 0x52e   : > { %v7072_v4 = vpop.permute.xlu0 %1223 }
 0x530   : > { %v7055_v38 = vpop.permute.xlu1 %1219 }
 0x536   : > { %v7078_v5 = vpop.permute.xlu0 %1243 }
 0x538   : > { %v7057_v8 = vpop.permute.xlu1 %1225 }
 0x540   : > { %v7059_v44 = vpop.permute.xlu1 %1247 }
 0x549   : > { %v1268_v3 = vpop.permute.xlu1 %1267 }
 0x54a   : > { %v1273_v41 = vmul.f32 0.0, %v1268_v3  ;;  %v1275_v48 = vmul.f32 %v1268_v3, %v6586_v54  ;;  %v1274_v22 = vmul.f32 %v1268_v3, %v6558_v19 }
 0x54c   : > { %1288 = vrot.lane.b32.xlu2 %v1273_v41, %s6293_s18  ;;  %1292 = vrot.lane.b32.xlu1 %v1275_v48, %s6293_s18 }
 0x54d   : > { %1290 = vrot.lane.b32.xlu0 %v1274_v22, %s6293_s18 }
 0x554   : > { %1311 = vperm.xlu2 %6039, %v7030_v46  }
 0x555   : > { %1315 = vperm.xlu0 %6040, %v7039_v39  }
 0x55c   : > { %6041 = vset.pattern.permute.xlu2 %v9766_v40 }
 0x55d   : > { %6042 = vset.pattern.permute.xlu0 %v9766_v40 }
 0x586   : > { %v7068_v11 = vpop.permute.xlu2 %1282 }
 0x59d   : > { %v7084_v63 = vpop.permute.xlu0 %1284 }
 0x5a6   : > { %v7074_v32 = vpop.permute.xlu2 %1288 }
 0x5ae   : > { %v1312_v43 = vpop.permute.xlu2 %1311 }
 0x5af   : > { %v1318_v0 = vmul.f32 %v1312_v43, %v6523_v61  ;;  %v1319_v28 = vmul.f32 %v1312_v43, %v6540_v7  ;;  %v1320_v34 = vmul.f32 0.0, %v1312_v43 }
 0x5b1   : > { %1332 = vrot.lane.b32.xlu2 %v1319_v28, %s6294_s19  ;;  %1330 = vrot.lane.b32.xlu1 %v1318_v0, %s6294_s19 }
 0x5b9   : > { %1334 = vrot.lane.b32.xlu1 %v1320_v34, %s6294_s19  ;;  %v1287_v34 = vpop.permute.xlu1 %1286 }
 0x5bf   : > { %v7087_v31 = vpop.permute.xlu0 %1290 }
 0x5c7   : > { %v1316_v55 = vpop.permute.xlu0 %1315 }
 0x5c8   : > { %v1321_v26 = vmul.f32 %v1316_v55, %v6558_v19  ;;  %v1323_v42 = vmul.f32 0.0, %v1316_v55  ;;  %v1322_v6 = vmul.f32 %v1316_v55, %v6586_v54  ;;  %v1293_v55 = vpop.permute.xlu1 %1292 }
 0x5ca   : > { %1340 = vrot.lane.b32.xlu1 %v1323_v42, %s6294_s19  ;;  %1338 = vrot.lane.b32.xlu0 %v1322_v6, %s6294_s19 }
 0x5cb   : > { %1336 = vrot.lane.b32.xlu2 %v1321_v26, %s6294_s19 }
 0x5d2   : > { %1363 = vperm.xlu0 %6042, %v7039_v39  }
 0x5d3   : > { %1359 = vperm.xlu2 %6041, %v7030_v46  }
 0x5da   : > { %6044 = vset.pattern.permute.xlu0 %v9758_v45 }
 0x5db   : > { %6043 = vset.pattern.permute.xlu2 %v9758_v45 }
 0x60b   : > { %v7096_v23 = vpop.permute.xlu2 %1332 }
 0x623   : > { %v1331_v26 = vpop.permute.xlu1 %1330 }
 0x625   : > { %v7098_v51 = vpop.permute.xlu2 %1336 }
 0x62b   : > { %v1335_v42 = vpop.permute.xlu1 %1334 }
 0x62d   : > { %v1360_v30 = vpop.permute.xlu2 %1359 }
 0x62e   : > { %v1366_v17 = vmul.f32 %v1360_v30, %v6523_v61  ;;  %v1367_v60 = vmul.f32 %v1360_v30, %v6540_v7  ;;  %v1368_v62 = vmul.f32 0.0, %v1360_v30 }
 0x630   : > { %1380 = vrot.lane.b32.xlu2 %v1367_v60, %s6295_s20  ;;  %1378 = vrot.lane.b32.xlu1 %v1366_v17, %s6295_s20  ;;  %v9756_v17 = vmov 4  }
 0x638   : > { %1382 = vrot.lane.b32.xlu1 %v1368_v62, %s6295_s20  ;;  %v1250_v62 = vmul.f32 0.0, %v7078_v5 }
 0x63c   : > { %v7107_v24 = vpop.permute.xlu0 %1338  ;;  %v1341_v6 = vpop.permute.xlu1 %1340 }
 0x644   : > { %v1364_v16 = vpop.permute.xlu0 %1363 }
 0x645   : > { %v1369_v37 = vmul.f32 %v1364_v16, %v6558_v19  ;;  %v1371_v20 = vmul.f32 0.0, %v1364_v16  ;;  %v1370_v2 = vmul.f32 %v1364_v16, %v6586_v54  ;;  %v1294_v16 = vsel %vm545_vm1, %v7068_v11, %v7084_v63 }
 0x647   : > { %1386 = vrot.lane.b32.xlu0 %v1370_v2, %s6295_s20  ;;  %1384 = vrot.lane.b32.xlu2 %v1369_v37, %s6295_s20  ;;  %v1251_v2 = vmul.f32 %v7078_v5, %v6523_v61 }
 0x648   : > { %1388 = vrot.lane.b32.xlu1 %v1371_v20, %s6295_s20  ;;  %v1295_v20 = vsel %vm545_vm1, %v7084_v63, %v1287_v34  ;;  %v1296_v63 = vsel %vm545_vm1, %v7074_v32, %v7087_v31 }
 0x64f   : > { %1411 = vperm.xlu0 %6044, %v7039_v39   ;;  %1407 = vperm.xlu2 %6043, %v7030_v46  }
 0x657   : > { %6045 = vset.pattern.permute.xlu2 %v9756_v17  ;;  %6046 = vset.pattern.permute.xlu0 %v9756_v17 }
 0x68a   : > { %v1381_v12 = vpop.permute.xlu2 %1380 }
 0x6a1   : > { %v7116_v49 = vpop.permute.xlu2 %1384 }
 0x6a2   : > { %v1379_v30 = vpop.permute.xlu1 %1378 }
 0x6a9   : > { %v1408_v13 = vpop.permute.xlu2 %1407 }
 0x6aa   : > { %v1414_v1 = vmul.f32 %v1408_v13, %v6523_v61  ;;  %v1415_v3 = vmul.f32 %v1408_v13, %v6540_v7  ;;  %v1416_v41 = vmul.f32 0.0, %v1408_v13  ;;  %v1383_v60 = vpop.permute.xlu1 %1382  ;;  %v1304_v13 = vadd.f32 %v1294_v16, %v1250_v62 }
 0x6ab   : > { %v1253_v62 = vmul.f32 0.0, %v7059_v44 }
 0x6ac   : > { %1428 = vrot.lane.b32.xlu2 %v1415_v3, %s6296_s23  ;;  %1426 = vrot.lane.b32.xlu1 %v1414_v1, %s6296_s23  ;;  %v1342_v1 = vsel %vm594_vm2, %v1331_v26, %v7096_v23  ;;  %v1305_v3 = vadd.f32 %v1295_v20, %v1251_v2  ;;  %v1252_v2 = vmul.f32 %v7078_v5, %v6540_v7 }
 0x6b4   : > { %1430 = vrot.lane.b32.xlu1 %v1416_v41, %s6296_s23  ;;  %v9768_v41 = vmov 9  }
 0x6b5   : > { %6047 = vset.pattern.permute.xlu1 %v9768_v41 }
 0x6b9   : > { %v7123_v48 = vpop.permute.xlu0 %1386 }
 0x6ba   : > { %v1389_v37 = vpop.permute.xlu1 %1388 }
 0x6c1   : > { %v1412_v22 = vpop.permute.xlu0 %1411 }
 0x6c2   : > { %v1417_v43 = vmul.f32 %v1412_v22, %v6558_v19  ;;  %v1419_v0 = vmul.f32 0.0, %v1412_v22  ;;  %v1418_v28 = vmul.f32 %v1412_v22, %v6586_v54  ;;  %v1352_v22 = vadd.f32 %v1331_v26, %v1304_v13 }
 0x6c3   : > { %v1307_v13 = vadd.f32 %v1296_v63, %v1253_v62  ;;  %v1345_v63 = vsel %vm594_vm2, %v7107_v24, %v1341_v6 }
 0x6c4   : > { %1434 = vrot.lane.b32.xlu0 %v1418_v28, %s6296_s23  ;;  %1432 = vrot.lane.b32.xlu2 %v1417_v43, %s6296_s23  ;;  %v1390_v43 = vsel %vm649_vm3, %v1379_v30, %v1381_v12  ;;  %v1400_v28 = vadd.f32 %v1379_v30, %v1352_v22  ;;  %v1306_v30 = vadd.f32 %v1287_v34, %v1252_v2 }
 0x6c5   : > { %1436 = vrot.lane.b32.xlu1 %v1419_v0, %s6296_s23  ;;  %v1353_v0 = vadd.f32 %v1342_v1, %v1305_v3  ;;  %v1343_v1 = vsel %vm594_vm2, %v7096_v23, %v1335_v42  ;;  %v1355_v32 = vadd.f32 %v7098_v51, %v1307_v13  ;;  %v1391_v3 = vsel %vm649_vm3, %v1381_v12, %v1383_v60 }
 0x6c6   : > { %v1354_v22 = vadd.f32 %v1343_v1, %v1306_v30  ;;  %v1297_v34 = vsel %vm545_vm1, %v7087_v31, %v1293_v55  ;;  %v1254_v12 = vmul.f32 %v7059_v44, %v6558_v19  ;;  %v1255_v42 = vmul.f32 %v7059_v44, %v6586_v54 }
 0x6c7   : > { %v1401_v17 = vadd.f32 %v1390_v43, %v1353_v0  ;;  %v1403_v43 = vadd.f32 %v7116_v49, %v1355_v32  ;;  %v1344_v60 = vsel %vm594_vm2, %v7098_v51, %v7107_v24  ;;  %v1392_v31 = vsel %vm649_vm3, %v7116_v49, %v7123_v48 }
 0x6c8   : > { %v1402_v5 = vadd.f32 %v1391_v3, %v1354_v22  ;;  %v1309_v62 = vadd.f32 %v1293_v55, %v1255_v42 }
 0x6ca   : > { %v1357_v44 = vadd.f32 %v1345_v63, %v1309_v62 }
 0x706   : > { %v1429_v11 = vpop.permute.xlu2 %1428 }
 0x71e   : > { %v1427_v45 = vpop.permute.xlu1 %1426 }
 0x71f   : > { %v1438_v16 = vsel %vm324_vm0, %v1427_v45, %v1429_v11  ;;  %v1448_v20 = vadd.f32 %v1427_v45, %v1400_v28  ;;  %v1433_v45 = vpop.permute.xlu2 %1432 }
 0x720   : > { %v1449_v26 = vadd.f32 %v1438_v16, %v1401_v17  ;;  %v1451_v0 = vadd.f32 %v1433_v45, %v1403_v43 }
 0x721   : > { %1467 = vrot.lane.b32.xlu2 %v1448_v20, %s6314_s8  ;;  %v1393_v20 = vsel %vm649_vm3, %v7123_v48, %v1389_v37  ;;  %v9764_v48 = vmov 14  }
 0x722   : > { %1469 = vrot.lane.b32.xlu0 %v1449_v26, %s6314_s8  ;;  %v1405_v13 = vadd.f32 %v1393_v20, %v1357_v44 }
 0x726   : > { %v1431_v17 = vpop.permute.xlu1 %1430 }
 0x727   : > { %v1439_v28 = vsel %vm324_vm0, %v1429_v11, %v1431_v17  ;;  %v1308_v11 = vadd.f32 %v1297_v34, %v1254_v12  ;;  %v9842_v34 = vmov 5   ;;  %v9762_v12 = vmov 19  }
 0x728   : > { %v1450_v23 = vadd.f32 %v1439_v28, %v1402_v5 }
 0x729   : > { %1473 = vrot.lane.b32.xlu2 %v1451_v0, %s6314_s8  ;;  %v1356_v16 = vadd.f32 %v1344_v60, %v1308_v11 }
 0x72a   : > { %1471 = vrot.lane.b32.xlu1 %v1450_v23, %s6314_s8 }
 0x72b   : > { %v1404_v2 = vadd.f32 %v1392_v31, %v1356_v16 }
 0x731   : > { %1497 = vperm.xlu2 %6045, %v7030_v46  }
 0x736   : > { %v1435_v26 = vpop.permute.xlu0 %1434 }
 0x737   : > { %v1440_v51 = vsel %vm324_vm0, %v1433_v45, %v1435_v26  ;;  %v1437_v1 = vpop.permute.xlu1 %1436 }
 0x738   : > { %v1441_v30 = vsel %vm324_vm0, %v1435_v26, %v1437_v1  ;;  %v1452_v32 = vadd.f32 %v1440_v51, %v1404_v2 }
 0x739   : > { %v1453_v24 = vadd.f32 %v1441_v30, %v1405_v13  ;;  %6048 = vset.pattern.permute.xlu2 %v9768_v41 }
 0x73a   : > { %1521 = vperm.xlu2 %6048, %v7039_v39   ;;  %1475 = vrot.lane.b32.xlu0 %v1452_v32, %s6314_s8 }
 0x73b   : > { %1477 = vrot.lane.b32.xlu1 %v1453_v24, %s6314_s8  ;;  %v9760_v24 = vmov 24  }
 0x742   : > { %1501 = vperm.xlu0 %6046, %v7039_v39   ;;  %6050 = vset.pattern.permute.xlu2 %v9764_v48 }
 0x743   : > { %1517 = vperm.xlu1 %6047, %v7030_v46  }
 0x74a   : > { %6051 = vset.pattern.permute.xlu0 %v9762_v12 }
 0x74b   : > { %6049 = vset.pattern.permute.xlu1 %v9764_v48 }
 0x77b   : > { %v7186_v49 = vpop.permute.xlu2 %1467 }
 0x783   : > { %v7192_v6 = vpop.permute.xlu2 %1473 }
 0x78b   : > { %v7196_v3 = vpop.permute.xlu2 %1497 }
 0x78c   : > { %v1504_v48 = vmul.f32 0.0, %v7196_v3 }
 0x794   : > { %v1522_v17 = vpop.permute.xlu2 %1521  ;;  %v7233_v51 = vpop.permute.xlu0 %1469 }
 0x795   : > { %v1527_v0 = vmul.f32 0.0, %v1522_v17  ;;  %v1529_v28 = vmul.f32 %v1522_v17, %v6586_v54  ;;  %v1528_v23 = vmul.f32 %v1522_v17, %v6558_v19 }
 0x79c   : > { %v7190_v55 = vpop.permute.xlu1 %1471 }
 0x7ac   : > { %v7235_v1 = vpop.permute.xlu0 %1475 }
 0x7ad   : > { %v7194_v37 = vpop.permute.xlu1 %1477 }
 0x7b4   : > { %v7237_v30 = vpop.permute.xlu0 %1501 }
 0x7b5   : > { %v1518_v22 = vpop.permute.xlu1 %1517  ;;  %v1507_v9 = vmul.f32 0.0, %v7237_v30 }
 0x7b6   : > { %v1524_v45 = vmul.f32 0.0, %v1518_v22  ;;  %v1525_v43 = vmul.f32 %v1518_v22, %v6523_v61  ;;  %v1526_v5 = vmul.f32 %v1518_v22, %v6540_v7 }
 0x7b8   : > { %1536 = vrot.lane.b32.xlu1 %v1524_v45, %s6293_s18  ;;  %1540 = vrot.lane.b32.xlu0 %v1526_v5, %s6293_s18 }
 0x7b9   : > { %1538 = vrot.lane.b32.xlu2 %v1525_v43, %s6293_s18 }
 0x7c0   : > { %1542 = vrot.lane.b32.xlu1 %v1527_v0, %s6293_s18  ;;  %1546 = vrot.lane.b32.xlu0 %v1529_v28, %s6293_s18 }
 0x7c1   : > { %1544 = vrot.lane.b32.xlu2 %v1528_v23, %s6293_s18 }
 0x7c8   : > { %1565 = vperm.xlu1 %6049, %v7030_v46  }
 0x7c9   : > { %1569 = vperm.xlu2 %6050, %v7039_v39  }
 0x7d0   : > { %6052 = vset.pattern.permute.xlu1 %v9762_v12 }
 0x7d1   : > { %6057 = vset.pattern.permute.xlu2 %v9842_v34 }
 0x813   : > { %v7215_v60 = vpop.permute.xlu2 %1538 }
 0x81b   : > { %v7219_v63 = vpop.permute.xlu2 %1544 }
 0x823   : > { %v1570_v44 = vpop.permute.xlu2 %1569 }
 0x824   : > { %v1577_v2 = vmul.f32 0.0, %v1570_v44  ;;  %v1575_v26 = vmul.f32 %v1570_v44, %v6558_v19  ;;  %v1576_v13 = vmul.f32 %v1570_v44, %v6586_v54 }
 0x82a   : > { %v7213_v42 = vpop.permute.xlu1 %1536  ;;  %v7239_v32 = vpop.permute.xlu0 %1540 }
 0x832   : > { %v7217_v11 = vpop.permute.xlu1 %1542  ;;  %v7243_v22 = vpop.permute.xlu0 %1546 }
 0x83a   : > { %v1566_v62 = vpop.permute.xlu1 %1565 }
 0x83b   : > { %v1572_v31 = vmul.f32 %v1566_v62, %v6523_v61  ;;  %v1573_v16 = vmul.f32 %v1566_v62, %v6540_v7  ;;  %v1574_v20 = vmul.f32 0.0, %v1566_v62 }
 0x83d   : > { %1586 = vrot.lane.b32.xlu1 %v1573_v16, %s6294_s19  ;;  %1584 = vrot.lane.b32.xlu0 %v1572_v31, %s6294_s19 }
 0x83e   : > { %1588 = vrot.lane.b32.xlu2 %v1574_v20, %s6294_s19 }
 0x845   : > { %1592 = vrot.lane.b32.xlu1 %v1576_v13, %s6294_s19  ;;  %1590 = vrot.lane.b32.xlu0 %v1575_v26, %s6294_s19 }
 0x846   : > { %1594 = vrot.lane.b32.xlu2 %v1577_v2, %s6294_s19  ;;  %v9843_v2 = vmov 0  }
 0x84d   : > { %1617 = vperm.xlu1 %6052, %v7039_v39   ;;  %1613 = vperm.xlu0 %6051, %v7030_v46  }
 0x855   : > { %6053 = vset.pattern.permute.xlu0 %v9760_v24  ;;  %6054 = vset.pattern.permute.xlu1 %v9760_v24 }
 0x8af   : > { %v1587_v45 = vpop.permute.xlu1 %1586  ;;  %v1585_v43 = vpop.permute.xlu0 %1584 }
 0x8b7   : > { %v7245_v5 = vpop.permute.xlu1 %1592  ;;  %v7247_v17 = vpop.permute.xlu0 %1590 }
 0x8bf   : > { %v1618_v0 = vpop.permute.xlu1 %1617  ;;  %v1614_v28 = vpop.permute.xlu0 %1613 }
 0x8c0   : > { %v1623_v23 = vmul.f32 %v1618_v0, %v6558_v19  ;;  %v1620_v62 = vmul.f32 %v1614_v28, %v6523_v61  ;;  %v1621_v31 = vmul.f32 %v1614_v28, %v6540_v7  ;;  %v1622_v16 = vmul.f32 0.0, %v1614_v28 }
 0x8c1   : > { %v1624_v20 = vmul.f32 %v1618_v0, %v6586_v54  ;;  %v1625_v44 = vmul.f32 0.0, %v1618_v0 }
 0x8c2   : > { %1638 = vrot.lane.b32.xlu0 %v1623_v23, %s6295_s20  ;;  %1632 = vrot.lane.b32.xlu2 %v1620_v62, %s6295_s20 }
 0x8c3   : > { %1634 = vrot.lane.b32.xlu1 %v1621_v31, %s6295_s20 }
 0x8ca   : > { %1661 = vperm.xlu0 %6053, %v7030_v46   ;;  %1636 = vrot.lane.b32.xlu2 %v1622_v16, %s6295_s20 }
 0x8cb   : > { %1640 = vrot.lane.b32.xlu1 %v1624_v20, %s6295_s20 }
 0x8d2   : > { %1642 = vrot.lane.b32.xlu2 %v1625_v44, %s6295_s20  ;;  %6055 = vset.pattern.permute.xlu0 %v9843_v2  ;;  %v1589_v44 = vpop.permute.xlu2 %1588 }
 0x8d3   : > { %1665 = vperm.xlu1 %6054, %v7039_v39  }
 0x8da   : > { %v1595_v24 = vpop.permute.xlu2 %1594 }
 0x8db   : > { %6056 = vset.pattern.permute.xlu1 %v9843_v2 }
 0x934   : > { %v7263_v26 = vpop.permute.xlu0 %1638 }
 0x935   : > { %v1635_v13 = vpop.permute.xlu1 %1634 }
 0x93c   : > { %v1662_v28 = vpop.permute.xlu0 %1661 }
 0x93d   : > { %v1641_v23 = vpop.permute.xlu1 %1640  ;;  %v1668_v46 = vmul.f32 %v1662_v28, %v6523_v61  ;;  %v1669_v62 = vmul.f32 %v1662_v28, %v6540_v7  ;;  %v1670_v0 = vmul.f32 0.0, %v1662_v28  ;;  %v1548_v28 = vsel %vm545_vm1, %v7213_v42, %v7215_v60 }
 0x93e   : > { %v1558_v40 = vadd.f32 %v1548_v28, %v1504_v48  ;;  %v1506_v42 = vmul.f32 %v7196_v3, %v6540_v7  ;;  %v1550_v7 = vsel %vm545_vm1, %v7217_v11, %v7219_v63  ;;  %v1599_v11 = vsel %vm594_vm2, %v7245_v5, %v1595_v24 }
 0x93f   : > { %1682 = vrot.lane.b32.xlu1 %v1669_v62, %s6296_s23  ;;  %1680 = vrot.lane.b32.xlu2 %v1668_v46, %s6296_s23  ;;  %v1633_v62 = vpop.permute.xlu2 %1632 }
 0x940   : > { %v1644_v28 = vsel %vm649_vm3, %v1633_v62, %v1635_v13 }
 0x945   : > { %v1666_v31 = vpop.permute.xlu1 %1665 }
 0x946   : > { %v1671_v16 = vmul.f32 %v1666_v31, %v6558_v19  ;;  %v1672_v39 = vmul.f32 %v1666_v31, %v6586_v54  ;;  %v1673_v20 = vmul.f32 0.0, %v1666_v31  ;;  %v1549_v31 = vsel %vm545_vm1, %v7215_v60, %v7239_v32 }
 0x947   : > { %1684 = vrot.lane.b32.xlu2 %v1670_v0, %s6296_s23  ;;  %v1637_v12 = vpop.permute.xlu2 %1636  ;;  %v1606_v0 = vadd.f32 %v1585_v43, %v1558_v40  ;;  %v1596_v40 = vsel %vm594_vm2, %v1585_v43, %v1587_v45 }
 0x948   : > { %1686 = vrot.lane.b32.xlu0 %v1671_v16, %s6296_s23  ;;  %1688 = vrot.lane.b32.xlu1 %v1672_v39, %s6296_s23  ;;  %v1505_v39 = vmul.f32 %v7196_v3, %v6523_v61 }
 0x949   : > { %v1654_v41 = vadd.f32 %v1633_v62, %v1606_v0 }
 0x94a   : > { %v1559_v48 = vadd.f32 %v1549_v31, %v1505_v39 }
 0x94c   : > { %v1607_v25 = vadd.f32 %v1596_v40, %v1559_v48 }
 0x94e   : > { %v1655_v61 = vadd.f32 %v1644_v28, %v1607_v25  ;;  %v1509_v25 = vmul.f32 %v7237_v30, %v6586_v54  ;;  %v1646_v54 = vsel %vm649_vm3, %v7263_v26, %v1641_v23 }
 0x94f   : > { %1690 = vrot.lane.b32.xlu2 %v1673_v20, %s6296_s23  ;;  %v1643_v46 = vpop.permute.xlu2 %1642  ;;  %v1597_v20 = vsel %vm594_vm2, %v1587_v45, %v1589_v44  ;;  %v1561_v44 = vadd.f32 %v1550_v7, %v1507_v9 }
 0x950   : > { %v1647_v9 = vsel %vm649_vm3, %v1641_v23, %v1643_v46  ;;  %v7331_v23 = vld [vmem:[%s9716_s3 + $0x18] sm:$0xff]  ;;  %v9844_v46 = vmov 10  }
 0x999   : > { %v1681_v16 = vpop.permute.xlu2 %1680 }
 0x99a   : > { %v1702_v35 = vadd.f32 %v1681_v16, %v1654_v41  ;;  %v1560_v41 = vadd.f32 %v7239_v32, %v1506_v42 }
 0x99c   : > { %1721 = vrot.lane.b32.xlu0 %v1702_v35, %s6318_s9  ;;  %v1645_v35 = vsel %vm649_vm3, %v1635_v13, %v1637_v12  ;;  %v1608_v0 = vadd.f32 %v1597_v20, %v1560_v41  ;;  %v1551_v12 = vsel %vm545_vm1, %v7219_v63, %v7243_v22  ;;  %v1508_v13 = vmul.f32 %v7237_v30, %v6558_v19 }
 0x99d   : > { %v1609_v19 = vadd.f32 %v7247_v17, %v1561_v44  ;;  %v9845_v41 = vmov 6  }
 0x99e   : > { %v1656_v29 = vadd.f32 %v1645_v35, %v1608_v0  ;;  %v1562_v63 = vadd.f32 %v1551_v12, %v1508_v13  ;;  %v714_v35 = vld [vmem:[%s9718_s5] ss:$8 sm:$0x3]  ;;  %v372_v0 = vpop.f32.mrf.mxu0  ;;  %v740_v12 = vsel %vm738_vm4, %v6920_v58, %v6918_v33  ;;  %v994_v33 = vsel %vm992_vm5, %v6956_v59, %v6916_v15 }
 0x99f   : > { %v1657_v62 = vadd.f32 %v7263_v26, %v1609_v19  ;;  %v7326_v26 = vld [vmem:[%s9716_s3 + $0x10] sm:$0xff]  ;;  %v717_v7 = vperm.slane %v714_v35, 1  ;;  %v7378_v19 = vld [vmem:[%s9718_s5 + $0x3] ss:$8 sm:$0x3] }
 0x9a1   : > { %v1685_v60 = vpop.permute.xlu2 %1684 }
 0x9b1   : > { %v1683_v27 = vpop.permute.xlu1 %1682 }
 0x9b2   : > { %v1692_v3 = vsel %vm324_vm0, %v1681_v16, %v1683_v27  ;;  %v1693_v32 = vsel %vm324_vm0, %v1683_v27, %v1685_v60  ;;  %v1598_v27 = vsel %vm594_vm2, %v7247_v17, %v7245_v5  ;;  %v1691_v16 = vpop.permute.xlu2 %1690  ;;  %v413_v60 = vpop.f32.mrf.mxu1 }
 0x9b3   : > { %v1703_v45 = vadd.f32 %v1692_v3, %v1655_v61  ;;  %v1704_v43 = vadd.f32 %v1693_v32, %v1656_v29  ;;  %v1563_v29 = vadd.f32 %v7243_v22, %v1509_v25  ;;  %v1610_v24 = vadd.f32 %v1598_v27, %v1562_v63  ;;  %v7349_v3 = vld [vmem:[%s9718_s5 + $0x1] ss:$8 sm:$0x3] }
 0x9b4   : > { %v716_v61 = vperm.slane %v714_v35, 0  ;;  %v739_v32 = vsel %vm738_vm4, %v6954_v14, %v6920_v58  ;;  %v970_v44 = vperm.slane %v7349_v3, 0  ;;  %v748_v63 = vmul.f32 %v740_v12, %v717_v7  ;;  %v479_v58 = vld [vmem:[%s9717_s4] sm:$0xff] }
 0x9b5   : > { %1723 = vrot.lane.b32.xlu1 %v1703_v45, %s6318_s9  ;;  %1725 = vrot.lane.b32.xlu2 %v1704_v43, %s6318_s9  ;;  %v1611_v30 = vadd.f32 %v1599_v11, %v1563_v29  ;;  %v1658_v5 = vadd.f32 %v1646_v54, %v1610_v24  ;;  %v9846_v43 = vld [vmem:[#allocation6_spill] sm:$0xff]  ;;  %v971_v11 = vperm.slane %v7349_v3, 1  ;;  %v993_v14 = vsel %vm992_vm5, %v6922_v52, %v6956_v59  ;;  %v480_v29 = vld [vmem:[%s9717_s4 + $0x8] sm:$0xff] }
 0x9b6   : > { %v373_v13 = vadd.f32 %v372_v0, %v9846_v43  ;;  %v414_v25 = vadd.f32 %v413_v60, %v9846_v43  ;;  %v747_v27 = vmul.f32 %v739_v32, %v716_v61  ;;  %v741_v24 = vsel %vm738_vm4, %v6958_v50, %v6930_v47  ;;  %v5932_v50 = vld [vmem:[%s9718_s5 + $0x4] ss:$8 sm:$0x3] }
 0x9b7   : > { %v1659_v31 = vadd.f32 %v1647_v9, %v1611_v30  ;;  %v1001_v9 = vmul.f32 %v993_v14, %v970_v44  ;;  %v1002_v15 = vmul.f32 %v994_v33, %v971_v11  ;;  %v752_v30 = vadd.f32 %v748_v63, %v480_v29 }
 0x9b8   : > { %v7380_v54 = vmax.f32 %v373_v13, 0.0  ;;  %v7382_v52 = vmax.f32 %v414_v25, 0.0  ;;  %v751_v59 = vadd.f32 %v747_v27, %v479_v58  ;;  %v1230_v35 = vsel %vm1229_vm7, %v7070_v56, %v7055_v38 }
 0x9b9   : > { %v1711_v0 = vperm.slane %v5932_v50, 0  ;;  %v1712_v60 = vperm.slane %v5932_v50, 1  ;;  %v995_v56 = vsel %vm992_vm5, %v6932_v21, %v6960_v53  ;;  %v996_v43 = vsel %vm992_vm5, %v6960_v53, %v6924_v18 }
 0x9ba   : > { %v1689_v39 = vpop.permute.xlu1 %1688  ;;  %v1687_v42 = vpop.permute.xlu0 %1686  ;;  %v1003_v33 = vmul.f32 %v995_v56, %v970_v44  ;;  %v1482_v29 = vsel %vm1479_vm6, %v7192_v6, %v7235_v1  ;;  %v1483_v18 = vsel %vm1479_vm6, %v7235_v1, %v7194_v37  ;;  %v1233_v44 = vsel %vm1229_vm7, %v7057_v8, %v7046_v10 }
 0x9bb   : > { %v1695_v20 = vsel %vm324_vm0, %v1689_v39, %v1691_v16  ;;  %v1694_v22 = vsel %vm324_vm0, %v1687_v42, %v1689_v39  ;;  %v1705_v40 = vadd.f32 %v1687_v42, %v1657_v62  ;;  %v1457_v62 = vperm.slane %v7378_v19, 0  ;;  %v416_v56 = vpop.f32.mrf.mxu1 }
 0x9bc   : > { %v1707_v17 = vadd.f32 %v1695_v20, %v1659_v31  ;;  %v1706_v48 = vadd.f32 %v1694_v22, %v1658_v5  ;;  %v1458_v16 = vperm.slane %v7378_v19, 1  ;;  %v1480_v31 = vsel %vm1479_vm6, %v7186_v49, %v7233_v51 }
 0x9bd   : > { %1727 = vrot.lane.b32.xlu0 %v1705_v40, %s6318_s9  ;;  %v1481_v22 = vsel %vm1479_vm6, %v7233_v51, %v7190_v55  ;;  %v742_v40 = vsel %vm738_vm4, %v6930_v47, %v6926_v36  ;;  %v749_v49 = vmul.f32 %v741_v24, %v716_v61  ;;  %v1231_v55 = vsel %vm1229_vm7, %v7055_v38, %v7044_v57  ;;  %v481_v36 = vld [vmem:[%s9717_s4 + $0x10] sm:$0xff]  ;;  %v482_v57 = vld [vmem:[%s9717_s4 + $0x18] sm:$0xff] }
 0x9be   : > { %1729 = vrot.lane.b32.xlu1 %v1706_v48, %s6318_s9  ;;  %1731 = vrot.lane.b32.xlu2 %v1707_v17, %s6318_s9  ;;  %v1005_v17 = vadd.f32 %v1001_v9, %v751_v59  ;;  %v1006_v48 = vadd.f32 %v1002_v15, %v752_v30  ;;  %v1488_v51 = vmul.f32 %v1480_v31, %v1457_v62 }
 0x9bf   : > { %v1489_v47 = vmul.f32 %v1481_v22, %v1458_v16  ;;  %v750_v61 = vmul.f32 %v742_v40, %v717_v7  ;;  %v753_v13 = vadd.f32 %v749_v49, %v481_v36  ;;  %v1004_v9 = vmul.f32 %v996_v43, %v971_v11  ;;  %v375_v36 = vpop.f32.mrf.mxu0 }
 0x9c0   : > { %v1238_v38 = vadd.f32 %v1230_v35, %v1005_v17  ;;  %v1239_v3 = vadd.f32 %v1231_v55, %v1006_v48  ;;  %v1490_v59 = vmul.f32 %v1482_v29, %v1457_v62 }
 0x9c1   : > { %v754_v58 = vadd.f32 %v750_v61, %v482_v57  ;;  %v1007_v15 = vadd.f32 %v1003_v33, %v753_v13 }
 0x9c2   : > { %v1492_v27 = vadd.f32 %v1488_v51, %v1238_v38  ;;  %v1493_v21 = vadd.f32 %v1489_v47, %v1239_v3 }
 0x9c3   : > { %v1008_v6 = vadd.f32 %v1004_v9, %v754_v58 }
 0x9c5   : > { %1844 = vperm.xlu0 %6055, %v7326_v26  }
 0x9c6   : > { %1849 = vperm.xlu1 %6056, %v7331_v23   ;;  %1865 = vperm.xlu2 %6057, %v7326_v26  }
 0x9cd   : > { %6060 = vset.pattern.permute.xlu0 %v9844_v46 }
 0x9ce   : > { %6058 = vset.pattern.permute.xlu1 %v9842_v34  ;;  %6059 = vset.pattern.permute.xlu2 %v9844_v46 }
 0x9cf   : > { %1869 = vperm.xlu1 %6058, %v7331_v23  }
 0x9d7   : > { %6067 = vset.pattern.permute.xlu1 %v9845_v41 }
 0xa0e   : > { %v1722_v32 = vpop.permute.xlu0 %1721 }
 0xa0f   : > { %v7341_v28 = vpop.permute.xlu2 %1725 }
 0xa18   : > { %v7357_v45 = vpop.permute.xlu2 %1731 }
 0xa20   : > { %v1866_v5 = vpop.permute.xlu2 %1865 }
 0xa21   : > { %v1872_v39 = vmul.f32 0.0, %v1866_v5  ;;  %v1873_v42 = vmul.f32 %v1866_v5, %v7380_v54  ;;  %v1874_v20 = vmul.f32 %v1866_v5, %v7382_v52  ;;  %v1491_v5 = vmul.f32 %v1483_v18, %v1458_v16 }
 0xa23   : > { %1888 = vrot.lane.b32.xlu1 %v1874_v20, %s6293_s18  ;;  %1886 = vrot.lane.b32.xlu0 %v1873_v42, %s6293_s18  ;;  %v1241_v42 = vadd.f32 %v1233_v44, %v1008_v6 }
 0xa24   : > { %1884 = vrot.lane.b32.xlu2 %v1872_v39, %s6293_s18 }
 0xa25   : > { %v1495_v50 = vadd.f32 %v1491_v5, %v1241_v42 }
 0xa27   : > { %v1724_v12 = vpop.permute.xlu1 %1723 }
 0xa28   : > { %v1734_v25 = vsel %vm9780_vm8, %v1722_v32, %v1724_v12  ;;  %v1735_v7 = vsel %vm9780_vm8, %v1724_v12, %v7341_v28  ;;  %v1232_v28 = vsel %vm1229_vm7, %v7072_v4, %v7057_v8 }
 0xa29   : > { %v1742_v63 = vmul.f32 %v1734_v25, %v1711_v0  ;;  %v1743_v14 = vmul.f32 %v1735_v7, %v1712_v60  ;;  %v1240_v31 = vadd.f32 %v1232_v28, %v1007_v15 }
 0xa2b   : > { %v1746_v53 = vadd.f32 %v1742_v63, %v1492_v27  ;;  %v1747_v19 = vadd.f32 %v1743_v14, %v1493_v21  ;;  %v1494_v20 = vadd.f32 %v1490_v59, %v1240_v31 }
 0xa2d   : > { %v1750_v30 = vsub.f32 0.0, %v1746_v53  ;;  %v1751_v24 = vsub.f32 0.0, %v1747_v19 }
 0xa2f   : > { %v1754_v39 = vmul.f32 1.442695, %v1750_v30  ;;  %v1756_v37 = vmul.f32 1.442695, %v1751_v24  ;;  %v1728_v1 = vpop.permute.xlu0 %1727 }
 0xa30   : > { %v1730_v11 = vpop.permute.xlu1 %1729 }
 0xa31   : > { %6205 = vpow2.f32 %v1754_v39  ;;  %v1736_v22 = vsel %vm9780_vm8, %v1728_v1, %v1730_v11  ;;  %v1737_v4 = vsel %vm9780_vm8, %v1730_v11, %v7357_v45  ;;  %v9847_v45 = vld [vmem:[#allocation7_spill] sm:$0xff] }
 0xa32   : > { %6207 = vpow2.f32 %v1756_v37  ;;  %v1744_v10 = vmul.f32 %v1736_v22, %v1711_v0  ;;  %v1745_v8 = vmul.f32 %v1737_v4, %v1712_v60  ;;  %v376_v57 = vadd.f32 %v375_v36, %v9847_v45 }
 0xa33   : > { %v417_v0 = vadd.f32 %v416_v56, %v9847_v45 }
 0xa34   : > { %v1748_v62 = vadd.f32 %v1744_v10, %v1494_v20  ;;  %v1749_v40 = vadd.f32 %v1745_v8, %v1495_v50  ;;  %v7446_v38 = vmax.f32 %v376_v57, 0.0 }
 0xa35   : > { %v7448_v32 = vmax.f32 %v417_v0, 0.0 }
 0xa36   : > { %v1752_v16 = vsub.f32 0.0, %v1748_v62  ;;  %v1753_v17 = vsub.f32 0.0, %v1749_v40 }
 0xa37   : > { %v6206_v48 = vpop.eup %6205  ;;  %v7474_v57 = vpop.permute.xlu0 %1844 }
 0xa38   : > { %v6208_v49 = vpop.eup %6207  ;;  %v1762_v35 = vadd.f32 1.0, %v6206_v48  ;;  %v1758_v55 = vmul.f32 1.442695, %v1752_v16  ;;  %v7442_v51 = vpop.permute.xlu1 %1849  ;;  %v1760_v61 = vmul.f32 1.442695, %v1753_v17 }
 0xa39   : > { %v1763_v47 = vadd.f32 1.0, %v6208_v49 }
 0xa3a   : > { %6209 = vrcp.f32 %v1762_v35  ;;  %v1775_v58 = vand.u32 2147483647, %v1762_v35  ;;  %v1777_v29 = vand.u32 2147483648, %v1762_v35  ;;  %vm1771_vm11 = vweird.f32 %v1762_v35 }
 0xa3b   : > { %6211 = vrcp.f32 %v1763_v47  ;;  %v1792_v9 = vand.u32 2147483648, %v1763_v47  ;;  %v1790_v28 = vand.u32 2147483647, %v1763_v47  ;;  %vm1786_vm13 = vweird.f32 %v1763_v47 }
 0xa3c   : > { %6213 = vpow2.f32 %v1758_v55  ;;  %v1778_v59 = vor.u32 1.1754944e-38, %v1777_v29  ;;  %vm1776_vm14 = vcmp.eq.f32.partialorder %v1775_v58, 8.507059e+37  ;;  %v9848_v55 = vmov 15  }
 0xa3d   : > { %6215 = vpow2.f32 %v1760_v61  ;;  %v1793_v6 = vor.u32 1.1754944e-38, %v1792_v9  ;;  %vm1791_vm8 = vcmp.eq.f32.partialorder %v1790_v28, 8.507059e+37 }
 0xa40   : > { %v6210_v60 = vpop.eup %6209 }
 0xa41   : > { %v6212_v3 = vpop.eup %6211  ;;  %v1767_v12 = vmul.f32 %v6210_v60, %v1762_v35  ;;  %v1870_v43 = vpop.permute.xlu1 %1869  ;;  %vm1772_vm9 = vweird.f32 %v6210_v60 }
 0xa42   : > { %v6214_v13 = vpop.eup %6213  ;;  %v1782_v25 = vmul.f32 %v6212_v3, %v1763_v47  ;;  %v1875_v7 = vmul.f32 0.0, %v1870_v43  ;;  %v1876_v27 = vmul.f32 %v1870_v43, %v7446_v38  ;;  %v1877_v33 = vmul.f32 %v1870_v43, %v7448_v32  ;;  %vm1773_vm12 = vmor %vm1771_vm11, %vm1772_vm9 }
 0xa43   : > { %v6216_v21 = vpop.eup %6215  ;;  %v1768_v63 = vsub.f32 1.0, %v1767_v12  ;;  %v1764_v14 = vadd.f32 1.0, %v6214_v13  ;;  %vm1787_vm10 = vweird.f32 %v6212_v3 }
 0xa44   : > { %v1783_v18 = vsub.f32 1.0, %v1782_v25  ;;  %v1765_v53 = vadd.f32 1.0, %v6216_v21  ;;  %1890 = vrot.lane.b32.xlu2 %v1875_v7, %s6293_s18  ;;  %1892 = vrot.lane.b32.xlu0 %v1876_v27, %s6293_s18  ;;  %vm1788_vm15 = vmor %vm1786_vm13, %vm1787_vm10 }
 0xa45   : > { %v1769_v19 = vmul.f32 %v6210_v60, %v1768_v63  ;;  %6217 = vrcp.f32 %v1764_v14  ;;  %1894 = vrot.lane.b32.xlu1 %v1877_v33, %s6293_s18  ;;  %v1807_v22 = vand.u32 2147483648, %v1764_v14  ;;  %v1805_v10 = vand.u32 2147483647, %v1764_v14 }
 0xa46   : > { %v1784_v15 = vmul.f32 %v6212_v3, %v1783_v18  ;;  %6219 = vrcp.f32 %v1765_v53  ;;  %v1822_v8 = vand.u32 2147483648, %v1765_v53  ;;  %v1820_v40 = vand.u32 2147483647, %v1765_v53 }
 0xa47   : > { %v1770_v44 = vadd.f32 %v6210_v60, %v1769_v19  ;;  %v1808_v17 = vor.u32 1.1754944e-38, %v1807_v22  ;;  %vm1806_vm13 = vcmp.eq.f32.partialorder %v1805_v10, 8.507059e+37  ;;  %v9849_v63 = vmov 20  }
 0xa48   : > { %v1785_v30 = vadd.f32 %v6212_v3, %v1784_v15  ;;  %v1823_v35 = vor.u32 1.1754944e-38, %v1822_v8 }
 0xa49   : > { %v1774_v24 = vsel %vm1773_vm12, %v6210_v60, %v1770_v44  ;;  %vm1816_vm12 = vweird.f32 %v1765_v53 }
 0xa4a   : > { %v1779_v5 = vsel %vm1776_vm14, %v1778_v59, %v1774_v24  ;;  %v1789_v31 = vsel %vm1788_vm15, %v6212_v3, %v1785_v30  ;;  %vm1821_vm15 = vcmp.eq.f32.partialorder %v1820_v40, 8.507059e+37  ;;  %v9850_v59 = vmov 1  }
 0xa4b   : > { %v6218_v39 = vpop.eup %6217  ;;  %v1794_v37 = vsel %vm1791_vm8, %v1793_v6, %v1789_v31  ;;  %1826 = vst [vmem:[%s7460_s30] sm:$0xff] %v1779_v5  ;;  %vm1801_vm8 = vweird.f32 %v1764_v14 }
 0xa4c   : > { %v6220_v1 = vpop.eup %6219  ;;  %1827 = vst [vmem:[%s7460_s30 + $0x8] sm:$0xff] %v1794_v37  ;;  %v1797_v42 = vmul.f32 %v6218_v39, %v1764_v14  ;;  %1913 = vperm.xlu2 %6059, %v7326_v26   ;;  %1917 = vperm.xlu0 %6060, %v7331_v23   ;;  %vm1802_vm9 = vweird.f32 %v6218_v39 }
 0xa4d   : > { %v1812_v11 = vmul.f32 %v6220_v1, %v1765_v53  ;;  %vm1817_vm10 = vweird.f32 %v6220_v1  ;;  %vm1803_vm11 = vmor %vm1801_vm8, %vm1802_vm9  ;;  %vm9871_vm9 = vcmask 244736  }
 0xa4e   : > { %v1798_v20 = vsub.f32 1.0, %v1797_v42  ;;  %vm1818_vm14 = vmor %vm1816_vm12, %vm1817_vm10 }
 0xa4f   : > { %v1813_v4 = vsub.f32 1.0, %v1812_v11  ;;  %vm9872_vm10 = vmmov %vm9871_vm9 }
 0xa50   : > { %v1799_v50 = vmul.f32 %v6218_v39, %v1798_v20  ;;  %vm9874_vm8 = vmmov %vm9871_vm9 }
 0xa51   : > { %v1814_v62 = vmul.f32 %v6220_v1, %v1813_v4 }
 0xa52   : > { %v1800_v16 = vadd.f32 %v6218_v39, %v1799_v50 }
 0xa53   : > { %v1815_v48 = vadd.f32 %v6220_v1, %v1814_v62 }
 0xa54   : > { %v1804_v49 = vsel %vm1803_vm11, %v6218_v39, %v1800_v16  ;;  %6061 = vset.pattern.permute.xlu2 %v9848_v55  ;;  %6062 = vset.pattern.permute.xlu0 %v9848_v55  ;;  %v1852_v16 = vmul.f32 0.0, %v7474_v57  ;;  %vm9875_vm11 = vmmov %vm9874_vm8 }
 0xa55   : > { %v1809_v36 = vsel %vm1806_vm13, %v1808_v17, %v1804_v49  ;;  %v1819_v47 = vsel %vm1818_vm14, %v6220_v1, %v1815_v48 }
 0xa56   : > { %v1824_v61 = vsel %vm1821_vm15, %v1823_v35, %v1819_v47  ;;  %1828 = vst [vmem:[%s7460_s30 + $0x10] sm:$0xff] %v1809_v36  ;;  %v1853_v35 = vmul.f32 %v7474_v57, %v7380_v54 }
 0xa57   : > { %1829 = vst [vmem:[%s7460_s30 + $0x18] sm:$0xff] %v1824_v61 }
 0xa7e   : > { %v7470_v56 = vpop.permute.xlu2 %1884 }
 0xa95   : > { %v7479_v12 = vpop.permute.xlu0 %1886  ;;  %v1889_v22 = vpop.permute.xlu1 %1888 }
 0xa96   : > { %v1896_v17 = vsel %vm545_vm1, %v7470_v56, %v7479_v12  ;;  %v1897_v49 = vsel %vm545_vm1, %v7479_v12, %v1889_v22 }
 0xa97   : > { %v1906_v47 = vadd.f32 %v1896_v17, %v1852_v16 }
 0xa9e   : > { %v7472_v45 = vpop.permute.xlu2 %1890 }
 0xaa6   : > { %v1914_v0 = vpop.permute.xlu2 %1913 }
 0xaa7   : > { %v1920_v60 = vmul.f32 0.0, %v1914_v0  ;;  %v1921_v3 = vmul.f32 %v1914_v0, %v7380_v54  ;;  %v1922_v43 = vmul.f32 %v1914_v0, %v7382_v52  ;;  %v1907_v0 = vadd.f32 %v1897_v49, %v1853_v35 }
 0xaa9   : > { %1934 = vrot.lane.b32.xlu2 %v1921_v3, %s6294_s19  ;;  %1932 = vrot.lane.b32.xlu1 %v1920_v60, %s6294_s19 }
 0xab1   : > { %1936 = vrot.lane.b32.xlu1 %v1922_v43, %s6294_s19 }
 0xab6   : > { %v7483_v13 = vpop.permute.xlu0 %1892 }
 0xab7   : > { %v1895_v4 = vpop.permute.xlu1 %1894  ;;  %v1898_v56 = vsel %vm545_vm1, %v7472_v45, %v7483_v13 }
 0xabe   : > { %v1918_v25 = vpop.permute.xlu0 %1917 }
 0xabf   : > { %v1923_v7 = vmul.f32 0.0, %v1918_v25  ;;  %v1924_v27 = vmul.f32 %v1918_v25, %v7446_v38  ;;  %v1925_v21 = vmul.f32 %v1918_v25, %v7448_v32 }
 0xac1   : > { %1938 = vrot.lane.b32.xlu2 %v1923_v7, %s6294_s19  ;;  %1942 = vrot.lane.b32.xlu1 %v1925_v21, %s6294_s19  ;;  %v1855_v21 = vmul.f32 0.0, %v7442_v51 }
 0xac2   : > { %1940 = vrot.lane.b32.xlu0 %v1924_v27, %s6294_s19 }
 0xac9   : > { %1967 = vperm.xlu2 %6061, %v7326_v26  }
 0xaca   : > { %1971 = vperm.xlu0 %6062, %v7331_v23  }
 0xad1   : > { %6063 = vset.pattern.permute.xlu2 %v9849_v63 }
 0xad2   : > { %6064 = vset.pattern.permute.xlu0 %v9849_v63 }
 0xb03   : > { %v1935_v14 = vpop.permute.xlu2 %1934 }
 0xb1b   : > { %v7494_v33 = vpop.permute.xlu2 %1938  ;;  %v1933_v50 = vpop.permute.xlu1 %1932 }
 0xb1c   : > { %v1944_v36 = vsel %vm594_vm2, %v1933_v50, %v1935_v14 }
 0xb1d   : > { %v1954_v60 = vadd.f32 %v1944_v36, %v1906_v47 }
 0xb23   : > { %v1968_v58 = vpop.permute.xlu2 %1967  ;;  %v1937_v10 = vpop.permute.xlu1 %1936 }
 0xb24   : > { %v1974_v29 = vmul.f32 %v1968_v58, %v7380_v54  ;;  %v1975_v18 = vmul.f32 %v1968_v58, %v7382_v52  ;;  %v1976_v53 = vmul.f32 0.0, %v1968_v58  ;;  %v1945_v61 = vsel %vm594_vm2, %v1935_v14, %v1937_v10 }
 0xb25   : > { %v1955_v43 = vadd.f32 %v1945_v61, %v1907_v0  ;;  %v1854_v14 = vmul.f32 %v7474_v57, %v7382_v52 }
 0xb26   : > { %1988 = vrot.lane.b32.xlu2 %v1975_v18, %s6295_s20  ;;  %1986 = vrot.lane.b32.xlu1 %v1974_v29, %s6295_s20 }
 0xb2e   : > { %1990 = vrot.lane.b32.xlu1 %v1976_v53, %s6295_s20 }
 0xb33   : > { %v1943_v8 = vpop.permute.xlu1 %1942 }
 0xb34   : > { %v7501_v19 = vpop.permute.xlu0 %1940 }
 0xb35   : > { %v1946_v18 = vsel %vm594_vm2, %v7494_v33, %v7501_v19 }
 0xb3c   : > { %v1972_v9 = vpop.permute.xlu0 %1971 }
 0xb3d   : > { %v1977_v15 = vmul.f32 %v1972_v9, %v7446_v38  ;;  %v1978_v28 = vmul.f32 %v1972_v9, %v7448_v32  ;;  %v1979_v44 = vmul.f32 0.0, %v1972_v9  ;;  %v1909_v9 = vadd.f32 %v1898_v56, %v1855_v21 }
 0xb3e   : > { %v9853_v21 = vmov 7  }
 0xb3f   : > { %1996 = vrot.lane.b32.xlu1 %v1979_v44, %s6295_s20  ;;  %1994 = vrot.lane.b32.xlu0 %v1978_v28, %s6295_s20  ;;  %v1957_v45 = vadd.f32 %v1946_v18, %v1909_v9 }
 0xb40   : > { %1992 = vrot.lane.b32.xlu2 %v1977_v15, %s6295_s20  ;;  %v1908_v15 = vadd.f32 %v1889_v22, %v1854_v14 }
 0xb42   : > { %v1956_v44 = vadd.f32 %v1937_v10, %v1908_v15 }
 0xb47   : > { %2019 = vperm.xlu0 %6064, %v7331_v23  }
 0xb48   : > { %2015 = vperm.xlu2 %6063, %v7326_v26  }
 0xb4f   : > { %6066 = vset.pattern.permute.xlu0 %v9850_v59 }
 0xb50   : > { %6065 = vset.pattern.permute.xlu2 %v9850_v59 }
 0xb80   : > { %v1989_v30 = vpop.permute.xlu2 %1988 }
 0xb98   : > { %v1987_v62 = vpop.permute.xlu1 %1986 }
 0xb99   : > { %v1998_v3 = vsel %vm649_vm3, %v1987_v62, %v1989_v30  ;;  %v2008_v7 = vadd.f32 %v1987_v62, %v1954_v60 }
 0xb9a   : > { %v7512_v24 = vpop.permute.xlu2 %1992  ;;  %v2009_v12 = vadd.f32 %v1998_v3, %v1955_v43 }
 0xba0   : > { %v1991_v40 = vpop.permute.xlu1 %1990 }
 0xba1   : > { %v1999_v28 = vsel %vm649_vm3, %v1989_v30, %v1991_v40  ;;  %v1856_v30 = vmul.f32 %v7442_v51, %v7446_v38 }
 0xba2   : > { %v2016_v6 = vpop.permute.xlu2 %2015 }
 0xba3   : > { %v2022_v5 = vmul.f32 %v2016_v6, %v7380_v54  ;;  %v2023_v31 = vmul.f32 %v2016_v6, %v7382_v52  ;;  %v2024_v39 = vmul.f32 0.0, %v2016_v6 }
 0xba5   : > { %2036 = vrot.lane.b32.xlu2 %v2023_v31, %s6296_s23  ;;  %2034 = vrot.lane.b32.xlu1 %v2022_v5, %s6296_s23  ;;  %v2011_v5 = vadd.f32 %v7512_v24, %v1957_v45  ;;  %v2010_v31 = vadd.f32 %v1999_v28, %v1956_v44 }
 0xbad   : > { %2038 = vrot.lane.b32.xlu1 %v2024_v39, %s6296_s23 }
 0xbb1   : > { %v7519_v37 = vpop.permute.xlu0 %1994  ;;  %v1997_v48 = vpop.permute.xlu1 %1996 }
 0xbb2   : > { %v2000_v10 = vsel %vm649_vm3, %v7512_v24, %v7519_v37  ;;  %v9851_v24 = vmov 11  }
 0xbb9   : > { %v2020_v1 = vpop.permute.xlu0 %2019 }
 0xbba   : > { %v2025_v42 = vmul.f32 %v2020_v1, %v7446_v38  ;;  %v2026_v11 = vmul.f32 %v2020_v1, %v7448_v32  ;;  %v2027_v20 = vmul.f32 0.0, %v2020_v1 }
 0xbbc   : > { %2042 = vrot.lane.b32.xlu0 %v2026_v11, %s6296_s23  ;;  %2040 = vrot.lane.b32.xlu2 %v2025_v42, %s6296_s23  ;;  %v1899_v42 = vsel %vm545_vm1, %v7483_v13, %v1895_v4  ;;  %v1857_v11 = vmul.f32 %v7442_v51, %v7448_v32  ;;  %v2001_v13 = vsel %vm649_vm3, %v7519_v37, %v1997_v48  ;;  %v9852_v37 = vmov 16  }
 0xbbd   : > { %2044 = vrot.lane.b32.xlu1 %v2027_v20, %s6296_s23  ;;  %v1947_v20 = vsel %vm594_vm2, %v7501_v19, %v1943_v8  ;;  %v1910_v22 = vadd.f32 %v1899_v42, %v1856_v30 }
 0xbbe   : > { %v1911_v50 = vadd.f32 %v1895_v4, %v1857_v11 }
 0xbbf   : > { %v1958_v62 = vadd.f32 %v1947_v20, %v1910_v22 }
 0xbc0   : > { %v1959_v40 = vadd.f32 %v1943_v8, %v1911_v50 }
 0xbc1   : > { %v2012_v16 = vadd.f32 %v2000_v10, %v1958_v62 }
 0xbc2   : > { %v2013_v49 = vadd.f32 %v2001_v13, %v1959_v40 }
 0xbff   : > { %v2037_v25 = vpop.permute.xlu2 %2036 }
 0xc16   : > { %v2041_v6 = vpop.permute.xlu2 %2040 }
 0xc17   : > { %v2035_v27 = vpop.permute.xlu1 %2034  ;;  %v2059_v39 = vadd.f32 %v2041_v6, %v2011_v5 }
 0xc18   : > { %v2046_v58 = vsel %vm324_vm0, %v2035_v27, %v2037_v25  ;;  %v2056_v29 = vadd.f32 %v2035_v27, %v2008_v7 }
 0xc19   : > { %v2057_v53 = vadd.f32 %v2046_v58, %v2009_v12 }
 0xc1a   : > { %2074 = vrot.lane.b32.xlu2 %v2056_v29, %s6302_s24 }
 0xc1b   : > { %2076 = vrot.lane.b32.xlu0 %v2057_v53, %s6302_s24 }
 0xc1f   : > { %v2039_v57 = vpop.permute.xlu1 %2038 }
 0xc20   : > { %v2047_v1 = vsel %vm324_vm0, %v2037_v25, %v2039_v57 }
 0xc21   : > { %v2058_v33 = vadd.f32 %v2047_v1, %v2010_v31  ;;  %v9854_v31 = vmov 21  }
 0xc22   : > { %2080 = vrot.lane.b32.xlu2 %v2059_v39, %s6302_s24 }
 0xc23   : > { %2078 = vrot.lane.b32.xlu1 %v2058_v33, %s6302_s24 }
 0xc2a   : > { %2103 = vperm.xlu2 %6065, %v7326_v26  }
 0xc2e   : > { %v2043_v17 = vpop.permute.xlu0 %2042 }
 0xc2f   : > { %v2048_v51 = vsel %vm324_vm0, %v2041_v6, %v2043_v17  ;;  %v2045_v35 = vpop.permute.xlu1 %2044 }
 0xc30   : > { %v2060_v19 = vadd.f32 %v2048_v51, %v2012_v16  ;;  %v2049_v36 = vsel %vm324_vm0, %v2043_v17, %v2045_v35  ;;  %v9855_v51 = vmov 2  }
 0xc31   : > { %v2061_v47 = vadd.f32 %v2049_v36, %v2013_v49 }
 0xc32   : > { %6068 = vset.pattern.permute.xlu2 %v9845_v41  ;;  %2082 = vrot.lane.b32.xlu0 %v2060_v19, %s6302_s24 }
 0xc33   : > { %2127 = vperm.xlu2 %6068, %v7331_v23   ;;  %2084 = vrot.lane.b32.xlu1 %v2061_v47, %s6302_s24 }
 0xc3a   : > { %2107 = vperm.xlu0 %6066, %v7331_v23  }
 0xc3b   : > { %2123 = vperm.xlu1 %6067, %v7326_v26   ;;  %6070 = vset.pattern.permute.xlu2 %v9851_v24 }
 0xc42   : > { %6071 = vset.pattern.permute.xlu0 %v9852_v37 }
 0xc43   : > { %6069 = vset.pattern.permute.xlu1 %v9851_v24 }
 0xc74   : > { %v7579_v4 = vpop.permute.xlu2 %2074 }
 0xc7c   : > { %v7583_v48 = vpop.permute.xlu2 %2080 }
 0xc84   : > { %v7587_v0 = vpop.permute.xlu2 %2103 }
 0xc8d   : > { %v2128_v7 = vpop.permute.xlu2 %2127  ;;  %v7625_v57 = vpop.permute.xlu0 %2076 }
 0xc8e   : > { %v2133_v56 = vmul.f32 0.0, %v2128_v7  ;;  %v2135_v12 = vmul.f32 %v2128_v7, %v7448_v32  ;;  %v2134_v27 = vmul.f32 %v2128_v7, %v7446_v38 }
 0xc95   : > { %v7581_v8 = vpop.permute.xlu1 %2078 }
 0xca4   : > { %v7627_v39 = vpop.permute.xlu0 %2082 }
 0xca5   : > { %v7585_v61 = vpop.permute.xlu1 %2084 }
 0xcac   : > { %v7629_v1 = vpop.permute.xlu0 %2107 }
 0xcad   : > { %v2124_v60 = vpop.permute.xlu1 %2123 }
 0xcae   : > { %v2130_v3 = vmul.f32 0.0, %v2124_v60  ;;  %v2131_v43 = vmul.f32 %v2124_v60, %v7380_v54  ;;  %v2132_v25 = vmul.f32 %v2124_v60, %v7382_v52 }
 0xcb0   : > { %2142 = vrot.lane.b32.xlu1 %v2130_v3, %s6293_s18  ;;  %2146 = vrot.lane.b32.xlu0 %v2132_v25, %s6293_s18 }
 0xcb1   : > { %2144 = vrot.lane.b32.xlu2 %v2131_v43, %s6293_s18 }
 0xcb8   : > { %2148 = vrot.lane.b32.xlu1 %v2133_v56, %s6293_s18  ;;  %2152 = vrot.lane.b32.xlu0 %v2135_v12, %s6293_s18 }
 0xcb9   : > { %2150 = vrot.lane.b32.xlu2 %v2134_v27, %s6293_s18 }
 0xcc0   : > { %2171 = vperm.xlu1 %6069, %v7326_v26  }
 0xcc1   : > { %2175 = vperm.xlu2 %6070, %v7331_v23  }
 0xcc8   : > { %6072 = vset.pattern.permute.xlu1 %v9852_v37 }
 0xcc9   : > { %6077 = vset.pattern.permute.xlu2 %v9853_v21 }
 0xd0b   : > { %v7605_v29 = vpop.permute.xlu2 %2144 }
 0xd13   : > { %v7609_v18 = vpop.permute.xlu2 %2150 }
 0xd1b   : > { %v2176_v28 = vpop.permute.xlu2 %2175 }
 0xd1c   : > { %v2181_v44 = vmul.f32 0.0, %v2176_v28  ;;  %v2182_v6 = vmul.f32 %v2176_v28, %v7446_v38  ;;  %v2183_v5 = vmul.f32 %v2176_v28, %v7448_v32 }
 0xd22   : > { %v7603_v58 = vpop.permute.xlu1 %2142  ;;  %v2147_v33 = vpop.permute.xlu0 %2146 }
 0xd2a   : > { %v7607_v14 = vpop.permute.xlu1 %2148  ;;  %v7631_v42 = vpop.permute.xlu0 %2152 }
 0xd32   : > { %v2172_v53 = vpop.permute.xlu1 %2171 }
 0xd33   : > { %v2178_v9 = vmul.f32 0.0, %v2172_v53  ;;  %v2179_v15 = vmul.f32 %v2172_v53, %v7380_v54  ;;  %v2180_v45 = vmul.f32 %v2172_v53, %v7382_v52 }
 0xd35   : > { %2192 = vrot.lane.b32.xlu1 %v2179_v15, %s6294_s19  ;;  %2190 = vrot.lane.b32.xlu0 %v2178_v9, %s6294_s19 }
 0xd36   : > { %2194 = vrot.lane.b32.xlu2 %v2180_v45, %s6294_s19  ;;  %v2154_v45 = vsel %vm545_vm1, %v7603_v58, %v7605_v29  ;;  %v2112_v58 = vmul.f32 %v7587_v0, %v7382_v52 }
 0xd3d   : > { %2196 = vrot.lane.b32.xlu0 %v2181_v44, %s6294_s19  ;;  %2198 = vrot.lane.b32.xlu1 %v2182_v6, %s6294_s19  ;;  %v2110_v44 = vmul.f32 0.0, %v7587_v0 }
 0xd3e   : > { %2200 = vrot.lane.b32.xlu2 %v2183_v5, %s6294_s19 }
 0xd3f   : > { %v2164_v5 = vadd.f32 %v2154_v45, %v2110_v44 }
 0xd45   : > { %2219 = vperm.xlu0 %6071, %v7326_v26   ;;  %2223 = vperm.xlu1 %6072, %v7331_v23  }
 0xd4d   : > { %6073 = vset.pattern.permute.xlu0 %v9854_v31  ;;  %6074 = vset.pattern.permute.xlu1 %v9854_v31 }
 0xd90   : > { %v2195_v27 = vpop.permute.xlu2 %2194 }
 0xd98   : > { %v2201_v53 = vpop.permute.xlu2 %2200 }
 0xda7   : > { %v2193_v30 = vpop.permute.xlu1 %2192  ;;  %v2191_v11 = vpop.permute.xlu0 %2190 }
 0xda8   : > { %v2202_v6 = vsel %vm594_vm2, %v2191_v11, %v2193_v30  ;;  %v2166_v11 = vadd.f32 %v2147_v33, %v2112_v58 }
 0xdaf   : > { %v7633_v20 = vpop.permute.xlu0 %2196  ;;  %v7635_v22 = vpop.permute.xlu1 %2198 }
 0xdb7   : > { %v2220_v50 = vpop.permute.xlu0 %2219  ;;  %v2224_v10 = vpop.permute.xlu1 %2223 }
 0xdb8   : > { %v2226_v62 = vmul.f32 %v2220_v50, %v7380_v54  ;;  %v2227_v13 = vmul.f32 %v2220_v50, %v7382_v52  ;;  %v2229_v40 = vmul.f32 %v2224_v10, %v7446_v38  ;;  %v2228_v16 = vmul.f32 0.0, %v2220_v50 }
 0xdb9   : > { %v2230_v17 = vmul.f32 %v2224_v10, %v7448_v32  ;;  %v2231_v49 = vmul.f32 0.0, %v2224_v10  ;;  %v2212_v50 = vadd.f32 %v2202_v6, %v2164_v5  ;;  %v2205_v6 = vsel %vm594_vm2, %v7635_v22, %v2201_v53 }
 0xdba   : > { %2238 = vrot.lane.b32.xlu2 %v2226_v62, %s6295_s20  ;;  %2240 = vrot.lane.b32.xlu1 %v2227_v13, %s6295_s20 }
 0xdbb   : > { %2244 = vrot.lane.b32.xlu0 %v2229_v40, %s6295_s20  ;;  %v2155_v40 = vsel %vm545_vm1, %v7605_v29, %v2147_v33  ;;  %v2156_v29 = vsel %vm545_vm1, %v7607_v14, %v7609_v18  ;;  %v2157_v33 = vsel %vm545_vm1, %v7609_v18, %v7631_v42  ;;  %v2115_v14 = vmul.f32 %v7629_v1, %v7448_v32 }
 0xdbd   : > { %v2169_v18 = vadd.f32 %v7631_v42, %v2115_v14 }
 0xdc2   : > { %2242 = vrot.lane.b32.xlu2 %v2228_v16, %s6295_s20  ;;  %2246 = vrot.lane.b32.xlu1 %v2230_v17, %s6295_s20  ;;  %v2111_v16 = vmul.f32 %v7587_v0, %v7380_v54  ;;  %v2203_v17 = vsel %vm594_vm2, %v2193_v30, %v2195_v27  ;;  %v2114_v0 = vmul.f32 %v7629_v1, %v7446_v38 }
 0xdc3   : > { %2267 = vperm.xlu0 %6073, %v7326_v26  }
 0xdc4   : > { %v2168_v5 = vadd.f32 %v2157_v33, %v2114_v0  ;;  %v7739_v33 = vld [vmem:[%s9716_s3 + $0x10] sm:$0xff] }
 0xdca   : > { %2248 = vrot.lane.b32.xlu2 %v2231_v49, %s6295_s20  ;;  %2271 = vperm.xlu1 %6074, %v7331_v23   ;;  %v2165_v49 = vadd.f32 %v2155_v40, %v2111_v16 }
 0xdcb   : > { %6075 = vset.pattern.permute.xlu0 %v9855_v51 }
 0xdd2   : > { %6076 = vset.pattern.permute.xlu1 %v9855_v51 }
 0xe14   : > { %v2239_v9 = vpop.permute.xlu2 %2238 }
 0xe15   : > { %v2260_v10 = vadd.f32 %v2239_v9, %v2212_v50 }
 0xe1c   : > { %v2243_v15 = vpop.permute.xlu2 %2242 }
 0xe24   : > { %v2249_v28 = vpop.permute.xlu2 %2248 }
 0xe2c   : > { %v2241_v35 = vpop.permute.xlu1 %2240 }
 0xe2d   : > { %v7651_v19 = vpop.permute.xlu0 %2244 }
 0xe34   : > { %v2247_v36 = vpop.permute.xlu1 %2246 }
 0xe35   : > { %v2268_v47 = vpop.permute.xlu0 %2267 }
 0xe36   : > { %v2274_v60 = vmul.f32 %v2268_v47, %v7380_v54  ;;  %v2275_v3 = vmul.f32 %v2268_v47, %v7382_v52  ;;  %v2276_v56 = vmul.f32 0.0, %v2268_v47  ;;  %v2250_v47 = vsel %vm649_vm3, %v2239_v9, %v2241_v35 }
 0xe38   : > { %2288 = vrot.lane.b32.xlu1 %v2275_v3, %s6296_s23  ;;  %2286 = vrot.lane.b32.xlu2 %v2274_v60, %s6296_s23  ;;  %v2251_v60 = vsel %vm649_vm3, %v2241_v35, %v2243_v15  ;;  %v2113_v3 = vmul.f32 0.0, %v7629_v1  ;;  %v2204_v35 = vsel %vm594_vm2, %v7633_v20, %v7635_v22  ;;  %v2252_v20 = vsel %vm649_vm3, %v7651_v19, %v2247_v36 }
 0xe39   : > { %v2216_v1 = vadd.f32 %v2205_v6, %v2168_v5 }
 0xe3a   : > { %v2167_v15 = vadd.f32 %v2156_v29, %v2113_v3 }
 0xe3b   : > { %v2264_v16 = vadd.f32 %v2252_v20, %v2216_v1 }
 0xe3c   : > { %v2272_v43 = vpop.permute.xlu1 %2271  ;;  %v2215_v50 = vadd.f32 %v2204_v35, %v2167_v15  ;;  %v7745_v35 = vld [vmem:[%s9716_s3 + $0x18] sm:$0xff] }
 0xe3d   : > { %v2277_v25 = vmul.f32 %v2272_v43, %v7446_v38  ;;  %v2278_v7 = vmul.f32 %v2272_v43, %v7448_v32  ;;  %v2279_v12 = vmul.f32 0.0, %v2272_v43  ;;  %v2214_v43 = vadd.f32 %v2195_v27, %v2166_v11 }
 0xe3f   : > { %2292 = vrot.lane.b32.xlu0 %v2277_v25, %s6296_s23  ;;  %v2213_v25 = vadd.f32 %v2203_v17, %v2165_v49  ;;  %v2262_v30 = vadd.f32 %v2251_v60, %v2214_v43 }
 0xe40   : > { %2290 = vrot.lane.b32.xlu2 %v2276_v56, %s6296_s23  ;;  %2294 = vrot.lane.b32.xlu1 %v2278_v7, %s6296_s23 }
 0xe41   : > { %v2261_v56 = vadd.f32 %v2250_v47, %v2213_v25 }
 0xe48   : > { %2296 = vrot.lane.b32.xlu2 %v2279_v12, %s6296_s23 }
 0xe92   : > { %v2287_v62 = vpop.permute.xlu2 %2286 }
 0xe93   : > { %v2308_v13 = vadd.f32 %v2287_v62, %v2260_v10  ;;  %v2253_v10 = vsel %vm649_vm3, %v2247_v36, %v2249_v28  ;;  %v9857_v36 = vmov 17  }
 0xe95   : > { %2326 = vrot.lane.b32.xlu0 %v2308_v13, %s6303_s25  ;;  %v2263_v13 = vadd.f32 %v7651_v19, %v2215_v50  ;;  %v9856_v19 = vmov 12  }
 0xe9a   : > { %v2291_v7 = vpop.permute.xlu2 %2290 }
 0xea2   : > { %v2297_v58 = vpop.permute.xlu2 %2296 }
 0xeaa   : > { %v2289_v12 = vpop.permute.xlu1 %2288 }
 0xeab   : > { %v2298_v27 = vsel %vm324_vm0, %v2287_v62, %v2289_v12  ;;  %v2299_v9 = vsel %vm324_vm0, %v2289_v12, %v2291_v7  ;;  %v2217_v62 = vadd.f32 %v2201_v53, %v2169_v18 }
 0xeac   : > { %v2309_v45 = vadd.f32 %v2298_v27, %v2261_v56  ;;  %v2310_v44 = vadd.f32 %v2299_v9, %v2262_v30  ;;  %v9858_v27 = vmov 8   ;;  %v9859_v9 = vmov 22  }
 0xead   : > { %v2265_v22 = vadd.f32 %v2253_v10, %v2217_v62 }
 0xeae   : > { %2328 = vrot.lane.b32.xlu1 %v2309_v45, %s6303_s25  ;;  %2330 = vrot.lane.b32.xlu2 %v2310_v44, %s6303_s25 }
 0xeb1   : > { %v2293_v40 = vpop.permute.xlu0 %2292 }
 0xeb2   : > { %v2311_v17 = vadd.f32 %v2293_v40, %v2263_v13  ;;  %v2295_v42 = vpop.permute.xlu1 %2294 }
 0xeb3   : > { %v2300_v49 = vsel %vm324_vm0, %v2293_v40, %v2295_v42  ;;  %v2301_v11 = vsel %vm324_vm0, %v2295_v42, %v2297_v58 }
 0xeb4   : > { %v2312_v47 = vadd.f32 %v2300_v49, %v2264_v16  ;;  %v2313_v60 = vadd.f32 %v2301_v11, %v2265_v22  ;;  %2332 = vrot.lane.b32.xlu0 %v2311_v17, %s6303_s25 }
 0xeb6   : > { %2334 = vrot.lane.b32.xlu1 %v2312_v47, %s6303_s25  ;;  %2336 = vrot.lane.b32.xlu2 %v2313_v60, %s6303_s25 }
 0xebc   : > { %2355 = vperm.xlu0 %6075, %v7326_v26  }
 0xebe   : > { %2359 = vperm.xlu1 %6076, %v7331_v23   ;;  %2375 = vperm.xlu2 %6077, %v7326_v26  }
 0xec4   : > { %6080 = vset.pattern.permute.xlu0 %v9856_v19 }
 0xec6   : > { %6078 = vset.pattern.permute.xlu1 %v9853_v21  ;;  %6079 = vset.pattern.permute.xlu2 %v9856_v19 }
 0xec7   : > { %2379 = vperm.xlu1 %6078, %v7331_v23  }
 0xecf   : > { %6082 = vset.pattern.permute.xlu1 %v9857_v36 }
 0xf07   : > { %v7754_v14 = vpop.permute.xlu0 %2326 }
 0xf08   : > { %v7716_v53 = vpop.permute.xlu2 %2330 }
 0xf10   : > { %v7718_v28 = vpop.permute.xlu2 %2336 }
 0xf18   : > { %v2376_v3 = vpop.permute.xlu2 %2375 }
 0xf19   : > { %v2382_v43 = vmul.f32 0.0, %v2376_v3  ;;  %v2383_v25 = vmul.f32 %v2376_v3, %v7380_v54  ;;  %v2384_v26 = vmul.f32 %v2376_v3, %v7382_v52 }
 0xf1b   : > { %2398 = vrot.lane.b32.xlu1 %v2384_v26, %s6293_s18  ;;  %2396 = vrot.lane.b32.xlu0 %v2383_v25, %s6293_s18  ;;  %v9860_v25 = vmov 3  }
 0xf1c   : > { %2394 = vrot.lane.b32.xlu2 %v2382_v43, %s6293_s18 }
 0xf20   : > { %v7725_v7 = vpop.permute.xlu1 %2328 }
 0xf26   : > { %v7756_v45 = vpop.permute.xlu0 %2332 }
 0xf28   : > { %v7727_v23 = vpop.permute.xlu1 %2334 }
 0xf2e   : > { %v7760_v5 = vpop.permute.xlu0 %2355 }
 0xf30   : > { %v7729_v29 = vpop.permute.xlu1 %2359 }
 0xf39   : > { %v2380_v0 = vpop.permute.xlu1 %2379 }
 0xf3a   : > { %v2385_v56 = vmul.f32 0.0, %v2380_v0  ;;  %v2386_v30 = vmul.f32 %v2380_v0, %v7446_v38  ;;  %v2387_v12 = vmul.f32 %v2380_v0, %v7448_v32 }
 0xf3c   : > { %2400 = vrot.lane.b32.xlu2 %v2385_v56, %s6293_s18  ;;  %2404 = vrot.lane.b32.xlu1 %v2387_v12, %s6293_s18 }
 0xf3d   : > { %2402 = vrot.lane.b32.xlu0 %v2386_v30, %s6293_s18 }
 0xf44   : > { %2423 = vperm.xlu2 %6079, %v7739_v33  }
 0xf45   : > { %2427 = vperm.xlu0 %6080, %v7745_v35  }
 0xf4c   : > { %6087 = vset.pattern.permute.xlu2 %v9858_v27 }
 0xf4d   : > { %6081 = vset.pattern.permute.xlu0 %v9857_v36 }
 0xf4e   : > { %2461 = vperm.xlu0 %6081, %v7739_v33  }
 0xf56   : > { %6083 = vset.pattern.permute.xlu0 %v9859_v9 }
 0xf76   : > { %v7752_v15 = vpop.permute.xlu2 %2394 }
 0xf8d   : > { %v7766_v20 = vpop.permute.xlu0 %2396  ;;  %v2399_v17 = vpop.permute.xlu1 %2398 }
 0xf96   : > { %v7758_v44 = vpop.permute.xlu2 %2400 }
 0xf9e   : > { %v2424_v6 = vpop.permute.xlu2 %2423 }
 0xf9f   : > { %v2430_v18 = vmul.f32 %v2424_v6, %v7380_v54  ;;  %v2431_v50 = vmul.f32 %v2424_v6, %v7382_v52 }
 0xfa1   : > { %2440 = vrot.lane.b32.xlu2 %v2431_v50, %s6294_s19  ;;  %2438 = vrot.lane.b32.xlu1 %v2430_v18, %s6294_s19 }
 0xfae   : > { %v7781_v42 = vpop.permute.xlu1 %2404 }
 0xfaf   : > { %v7768_v10 = vpop.permute.xlu0 %2402 }
 0xfb7   : > { %v2428_v62 = vpop.permute.xlu0 %2427 }
 0xfb8   : > { %v2432_v1 = vmul.f32 %v2428_v62, %v7446_v38  ;;  %v2433_v13 = vmul.f32 %v2428_v62, %v7448_v32 }
 0xfba   : > { %2444 = vrot.lane.b32.xlu2 %v2433_v13, %s6294_s19  ;;  %2442 = vrot.lane.b32.xlu1 %v2432_v1, %s6294_s19 }
 0xfc0   : > { %v2462_v40 = vpop.permute.xlu0 %2461 }
 0xfc1   : > { %v2468_v16 = vmul.f32 %v2462_v40, %v7380_v54  ;;  %v2470_v22 = vmul.f32 0.0, %v2462_v40  ;;  %v2469_v58 = vmul.f32 %v2462_v40, %v7382_v52 }
 0xfc2   : > { %2465 = vperm.xlu1 %6082, %v7745_v35  }
 0xfc3   : > { %2480 = vrot.lane.b32.xlu2 %v2468_v16, %s6295_s20 }
 0xfca   : > { %2482 = vrot.lane.b32.xlu1 %v2469_v58, %s6295_s20 }
 0xfcb   : > { %2484 = vrot.lane.b32.xlu2 %v2470_v22, %s6295_s20  ;;  %6084 = vset.pattern.permute.xlu1 %v9859_v9 }
 0xffb   : > { %v2441_v40 = vpop.permute.xlu2 %2440 }
0x1013   : > { %v2439_v49 = vpop.permute.xlu1 %2438 }
0x1014   : > { %v2445_v16 = vpop.permute.xlu2 %2444 }
0x101d   : > { %v2481_v22 = vpop.permute.xlu2 %2480 }
0x1025   : > { %v2485_v58 = vpop.permute.xlu2 %2484 }
0x102c   : > { %v7783_v11 = vpop.permute.xlu1 %2442 }
0x1034   : > { %v2466_v47 = vpop.permute.xlu1 %2465 }
0x1035   : > { %v2471_v60 = vmul.f32 %v2466_v47, %v7446_v38  ;;  %v2472_v3 = vmul.f32 %v2466_v47, %v7448_v32  ;;  %v2473_v43 = vmul.f32 0.0, %v2466_v47  ;;  %v2362_v47 = vmul.f32 0.0, %v7760_v5 }
0x1037   : > { %2486 = vrot.lane.b32.xlu0 %v2471_v60, %s6295_s20  ;;  %2488 = vrot.lane.b32.xlu1 %v2472_v3, %s6295_s20  ;;  %v2406_v60 = vsel %vm545_vm1, %v7752_v15, %v7766_v20  ;;  %v2363_v15 = vmul.f32 %v7760_v5, %v7380_v54 }
0x1038   : > { %2490 = vrot.lane.b32.xlu2 %v2473_v43, %s6295_s20  ;;  %v2416_v43 = vadd.f32 %v2406_v60, %v2362_v47  ;;  %v2446_v60 = vsel %vm594_vm2, %v2439_v49, %v2441_v40 }
0x103c   : > { %v2483_v26 = vpop.permute.xlu1 %2482 }
0x103f   : > { %2509 = vperm.xlu0 %6083, %v7739_v33   ;;  %2513 = vperm.xlu1 %6084, %v7745_v35  }
0x1047   : > { %6085 = vset.pattern.permute.xlu0 %v9860_v25  ;;  %6086 = vset.pattern.permute.xlu1 %v9860_v25 }
0x1092   : > { %v2491_v3 = vpop.permute.xlu2 %2490 }
0x10a9   : > { %v7794_v0 = vpop.permute.xlu1 %2488  ;;  %v7796_v56 = vpop.permute.xlu0 %2486 }
0x10b1   : > { %v2514_v30 = vpop.permute.xlu1 %2513  ;;  %v2510_v12 = vpop.permute.xlu0 %2509 }
0x10b2   : > { %v2519_v6 = vmul.f32 %v2514_v30, %v7446_v38  ;;  %v2516_v18 = vmul.f32 %v2510_v12, %v7380_v54  ;;  %v2517_v50 = vmul.f32 %v2510_v12, %v7382_v52  ;;  %v2518_v62 = vmul.f32 0.0, %v2510_v12 }
0x10b3   : > { %v2520_v1 = vmul.f32 %v2514_v30, %v7448_v32  ;;  %v2521_v13 = vmul.f32 0.0, %v2514_v30  ;;  %v2454_v12 = vadd.f32 %v2439_v49, %v2416_v43  ;;  %v2408_v30 = vsel %vm545_vm1, %v7758_v44, %v7768_v10 }
0x10b4   : > { %2534 = vrot.lane.b32.xlu0 %v2519_v6, %s6296_s23  ;;  %2528 = vrot.lane.b32.xlu2 %v2516_v18, %s6296_s23  ;;  %v2492_v44 = vsel %vm649_vm3, %v2481_v22, %v2483_v26 }
0x10b5   : > { %2530 = vrot.lane.b32.xlu1 %v2517_v50, %s6296_s23  ;;  %v2502_v6 = vadd.f32 %v2481_v22, %v2454_v12 }
0x10bc   : > { %2532 = vrot.lane.b32.xlu2 %v2518_v62, %s6296_s23  ;;  %v2365_v62 = vmul.f32 0.0, %v7729_v29 }
0x10bd   : > { %2536 = vrot.lane.b32.xlu1 %v2520_v1, %s6296_s23  ;;  %v2407_v1 = vsel %vm545_vm1, %v7766_v20, %v2399_v17 }
0x10be   : > { %v2419_v47 = vadd.f32 %v2408_v30, %v2365_v62  ;;  %v2417_v12 = vadd.f32 %v2407_v1, %v2363_v15 }
0x10c0   : > { %v2455_v9 = vadd.f32 %v2446_v60, %v2417_v12 }
0x10c2   : > { %v2503_v51 = vadd.f32 %v2492_v44, %v2455_v9  ;;  %v2447_v9 = vsel %vm594_vm2, %v7783_v11, %v2445_v16 }
0x10c4   : > { %2538 = vrot.lane.b32.xlu2 %v2521_v13, %s6296_s23  ;;  %v2364_v13 = vmul.f32 %v7760_v5, %v7382_v52 }
0x10c6   : > { %v2418_v43 = vadd.f32 %v2399_v17, %v2364_v13  ;;  %v2409_v17 = vsel %vm545_vm1, %v7768_v10, %v7781_v42 }
0x10c8   : > { %v2456_v25 = vadd.f32 %v2441_v40, %v2418_v43  ;;  %v2367_v40 = vmul.f32 %v7729_v29, %v7448_v32 }
0x110e   : > { %v2529_v18 = vpop.permute.xlu2 %2528 }
0x110f   : > { %v2550_v50 = vadd.f32 %v2529_v18, %v2502_v6  ;;  %v2457_v6 = vadd.f32 %v7783_v11, %v2419_v47 }
0x1111   : > { %2562 = vrot.lane.b32.xlu0 %v2550_v50, %s6307_s26  ;;  %v2493_v50 = vsel %vm649_vm3, %v2483_v26, %v2485_v58  ;;  %v2505_v20 = vadd.f32 %v7796_v56, %v2457_v6  ;;  %v2366_v26 = vmul.f32 %v7729_v29, %v7446_v38 }
0x1112   : > { %v2504_v31 = vadd.f32 %v2493_v50, %v2456_v25  ;;  %v2421_v25 = vadd.f32 %v7781_v42, %v2367_v40 }
0x1113   : > { %v2420_v10 = vadd.f32 %v2409_v17, %v2366_v26 }
0x1115   : > { %v2458_v29 = vadd.f32 %v2447_v9, %v2420_v10 }
0x1116   : > { %v2533_v36 = vpop.permute.xlu2 %2532 }
0x111e   : > { %v2539_v15 = vpop.permute.xlu2 %2538 }
0x1126   : > { %v2535_v19 = vpop.permute.xlu0 %2534 }
0x1127   : > { %v2531_v5 = vpop.permute.xlu1 %2530  ;;  %v2553_v30 = vadd.f32 %v2535_v19, %v2505_v20 }
0x1128   : > { %v2540_v49 = vsel %vm324_vm0, %v2529_v18, %v2531_v5  ;;  %v2541_v22 = vsel %vm324_vm0, %v2531_v5, %v2533_v36  ;;  %v2495_v36 = vsel %vm649_vm3, %v7794_v0, %v2491_v3  ;;  %v9861_v3 = vmov 13  }
0x1129   : > { %v2551_v58 = vadd.f32 %v2540_v49, %v2503_v51  ;;  %v2552_v62 = vadd.f32 %v2541_v22, %v2504_v31  ;;  %2568 = vrot.lane.b32.xlu0 %v2553_v30, %s6307_s26  ;;  %v2494_v51 = vsel %vm649_vm3, %v7796_v56, %v7794_v0  ;;  %v2459_v31 = vadd.f32 %v2445_v16, %v2421_v25 }
0x112a   : > { %v2506_v1 = vadd.f32 %v2494_v51, %v2458_v29  ;;  %v9864_v22 = vmov 18  }
0x112b   : > { %2564 = vrot.lane.b32.xlu1 %v2551_v58, %s6307_s26  ;;  %2566 = vrot.lane.b32.xlu2 %v2552_v62, %s6307_s26  ;;  %v2507_v18 = vadd.f32 %v2495_v36, %v2459_v31 }
0x112f   : > { %v2537_v11 = vpop.permute.xlu1 %2536 }
0x1130   : > { %v2542_v42 = vsel %vm324_vm0, %v2535_v19, %v2537_v11  ;;  %v2543_v13 = vsel %vm324_vm0, %v2537_v11, %v2539_v15  ;;  %v9862_v19 = vmov 9  }
0x1131   : > { %v2554_v47 = vadd.f32 %v2542_v42, %v2506_v1  ;;  %v2555_v60 = vadd.f32 %v2543_v13, %v2507_v18  ;;  %2587 = vperm.xlu0 %6085, %v7739_v33   ;;  %v9865_v42 = vmov 23  }
0x1133   : > { %2572 = vrot.lane.b32.xlu2 %v2555_v60, %s6307_s26  ;;  %2570 = vrot.lane.b32.xlu1 %v2554_v47, %s6307_s26 }
0x1139   : > { %6090 = vset.pattern.permute.xlu0 %v9861_v3 }
0x113b   : > { %2607 = vperm.xlu2 %6087, %v7739_v33   ;;  %2591 = vperm.xlu1 %6086, %v7745_v35  }
0x1143   : > { %6088 = vset.pattern.permute.xlu1 %v9858_v27  ;;  %6089 = vset.pattern.permute.xlu2 %v9861_v3 }
0x1144   : > { %2611 = vperm.xlu1 %6088, %v7745_v35  }
0x114c   : > { %6097 = vset.pattern.permute.xlu1 %v9862_v19 }
0x1183   : > { %v7886_v40 = vpop.permute.xlu0 %2562 }
0x1185   : > { %v7860_v0 = vpop.permute.xlu2 %2566 }
0x118d   : > { %v7862_v56 = vpop.permute.xlu2 %2572 }
0x118e   : > { %9863 = vst [vmem:[#allocation11_spill] sm:$0xff] %v7862_v56 }
0x1195   : > { %v2608_v16 = vpop.permute.xlu2 %2607 }
0x1196   : > { %v2614_v43 = vmul.f32 0.0, %v2608_v16  ;;  %v2615_v12 = vmul.f32 %v2608_v16, %v7380_v54  ;;  %v2616_v6 = vmul.f32 %v2608_v16, %v7382_v52 }
0x1198   : > { %2628 = vrot.lane.b32.xlu0 %v2615_v12, %s6293_s18  ;;  %2630 = vrot.lane.b32.xlu1 %v2616_v6, %s6293_s18 }
0x1199   : > { %2626 = vrot.lane.b32.xlu2 %v2614_v43, %s6293_s18 }
0x119b   : > { %v7888_v58 = vpop.permute.xlu0 %2568 }
0x119d   : > { %v7869_v44 = vpop.permute.xlu1 %2564 }
0x11a3   : > { %v7892_v25 = vpop.permute.xlu0 %2587 }
0x11a5   : > { %v7871_v50 = vpop.permute.xlu1 %2570 }
0x11ad   : > { %v7873_v20 = vpop.permute.xlu1 %2591 }
0x11ae   : > { %v2597_v63 = vmul.f32 0.0, %v7873_v20 }
0x11b6   : > { %v2612_v5 = vpop.permute.xlu1 %2611 }
0x11b7   : > { %v2617_v30 = vmul.f32 0.0, %v2612_v5  ;;  %v2618_v17 = vmul.f32 %v2612_v5, %v7446_v38  ;;  %v2619_v49 = vmul.f32 %v2612_v5, %v7448_v32 }
0x11b9   : > { %2632 = vrot.lane.b32.xlu2 %v2617_v30, %s6293_s18  ;;  %2636 = vrot.lane.b32.xlu1 %v2619_v49, %s6293_s18 }
0x11ba   : > { %2634 = vrot.lane.b32.xlu0 %v2618_v17, %s6293_s18 }
0x11c1   : > { %2655 = vperm.xlu2 %6089, %v7739_v33  }
0x11c2   : > { %2659 = vperm.xlu0 %6090, %v7745_v35  }
0x11c9   : > { %6091 = vset.pattern.permute.xlu2 %v9864_v22 }
0x11ca   : > { %6092 = vset.pattern.permute.xlu0 %v9864_v22 }
0x11f3   : > { %v7884_v26 = vpop.permute.xlu2 %2626 }
0x120a   : > { %v7898_v31 = vpop.permute.xlu0 %2628 }
0x1213   : > { %v7890_v62 = vpop.permute.xlu2 %2632 }
0x121b   : > { %v2656_v9 = vpop.permute.xlu2 %2655 }
0x121c   : > { %v2662_v10 = vmul.f32 %v2656_v9, %v7380_v54  ;;  %v2663_v36 = vmul.f32 %v2656_v9, %v7382_v52  ;;  %v2664_v51 = vmul.f32 0.0, %v2656_v9  ;;  %v9866_v9 = vmov 4  }
0x121e   : > { %2676 = vrot.lane.b32.xlu2 %v2663_v36, %s6294_s19  ;;  %2674 = vrot.lane.b32.xlu1 %v2662_v10, %s6294_s19 }
0x1226   : > { %2678 = vrot.lane.b32.xlu1 %v2664_v51, %s6294_s19 }
0x122c   : > { %v7901_v29 = vpop.permute.xlu0 %2634 }
0x1234   : > { %v2660_v18 = vpop.permute.xlu0 %2659 }
0x1235   : > { %v2665_v1 = vmul.f32 %v2660_v18, %v7446_v38  ;;  %v2666_v15 = vmul.f32 %v2660_v18, %v7448_v32  ;;  %v2667_v11 = vmul.f32 0.0, %v2660_v18 }
0x1237   : > { %2684 = vrot.lane.b32.xlu1 %v2667_v11, %s6294_s19  ;;  %2682 = vrot.lane.b32.xlu0 %v2666_v15, %s6294_s19 }
0x1238   : > { %2680 = vrot.lane.b32.xlu2 %v2665_v1, %s6294_s19 }
0x123f   : > { %2707 = vperm.xlu0 %6092, %v7745_v35  }
0x1240   : > { %2703 = vperm.xlu2 %6091, %v7739_v33  }
0x1247   : > { %6094 = vset.pattern.permute.xlu0 %v9865_v42 }
0x1248   : > { %6093 = vset.pattern.permute.xlu2 %v9865_v42 }
0x1278   : > { %v7912_v13 = vpop.permute.xlu2 %2676 }
0x1292   : > { %v7914_v47 = vpop.permute.xlu2 %2680 }
0x129a   : > { %v2704_v60 = vpop.permute.xlu2 %2703 }
0x129b   : > { %v2710_v16 = vmul.f32 %v2704_v60, %v7380_v54  ;;  %v2711_v43 = vmul.f32 %v2704_v60, %v7382_v52  ;;  %v2712_v12 = vmul.f32 0.0, %v2704_v60 }
0x129d   : > { %2724 = vrot.lane.b32.xlu2 %v2711_v43, %s6295_s20  ;;  %2722 = vrot.lane.b32.xlu1 %v2710_v16, %s6295_s20 }
0x12a5   : > { %2726 = vrot.lane.b32.xlu1 %v2712_v12, %s6295_s20 }
0x12a9   : > { %v7921_v6 = vpop.permute.xlu0 %2682 }
0x12b1   : > { %v2708_v5 = vpop.permute.xlu0 %2707 }
0x12b2   : > { %v2713_v30 = vmul.f32 %v2708_v5, %v7446_v38  ;;  %v2714_v17 = vmul.f32 %v2708_v5, %v7448_v32  ;;  %v2715_v49 = vmul.f32 0.0, %v2708_v5  ;;  %v2631_v5 = vpop.permute.xlu1 %2630 }
0x12b4   : > { %2730 = vrot.lane.b32.xlu0 %v2714_v17, %s6295_s20  ;;  %2728 = vrot.lane.b32.xlu2 %v2713_v30, %s6295_s20 }
0x12b5   : > { %2732 = vrot.lane.b32.xlu1 %v2715_v49, %s6295_s20 }
0x12ba   : > { %v2637_v30 = vpop.permute.xlu1 %2636 }
0x12bc   : > { %2755 = vperm.xlu0 %6094, %v7745_v35   ;;  %2751 = vperm.xlu2 %6093, %v7739_v33  }
0x12c2   : > { %v2675_v17 = vpop.permute.xlu1 %2674 }
0x12c3   : > { %v2686_v42 = vsel %vm594_vm2, %v2675_v17, %v7912_v13 }
0x12c4   : > { %6095 = vset.pattern.permute.xlu2 %v9866_v9  ;;  %6096 = vset.pattern.permute.xlu0 %v9866_v9  ;;  %v2638_v9 = vsel %vm545_vm1, %v7884_v26, %v7898_v31  ;;  %v2640_v26 = vsel %vm545_vm1, %v7890_v62, %v7901_v29 }
0x12ca   : > { %v2679_v49 = vpop.permute.xlu1 %2678 }
0x12f7   : > { %v2725_v10 = vpop.permute.xlu2 %2724 }
0x130e   : > { %v7932_v36 = vpop.permute.xlu2 %2728 }
0x1316   : > { %v2752_v51 = vpop.permute.xlu2 %2751 }
0x1317   : > { %v2758_v18 = vmul.f32 %v2752_v51, %v7380_v54  ;;  %v2759_v1 = vmul.f32 %v2752_v51, %v7382_v52  ;;  %v2760_v15 = vmul.f32 0.0, %v2752_v51  ;;  %v2685_v51 = vpop.permute.xlu1 %2684 }
0x1319   : > { %2772 = vrot.lane.b32.xlu2 %v2759_v1, %s6296_s23  ;;  %2770 = vrot.lane.b32.xlu1 %v2758_v18, %s6296_s23 }
0x131f   : > { %v2723_v18 = vpop.permute.xlu1 %2722 }
0x1320   : > { %v2734_v27 = vsel %vm649_vm3, %v2723_v18, %v2725_v10 }
0x1321   : > { %2774 = vrot.lane.b32.xlu1 %v2760_v15, %s6296_s23  ;;  %v2594_v15 = vmul.f32 0.0, %v7892_v25 }
0x1326   : > { %v7939_v11 = vpop.permute.xlu0 %2730 }
0x1327   : > { %v2727_v1 = vpop.permute.xlu1 %2726 }
0x132e   : > { %v2756_v60 = vpop.permute.xlu0 %2755 }
0x132f   : > { %v2761_v16 = vmul.f32 %v2756_v60, %v7446_v38  ;;  %v2762_v43 = vmul.f32 %v2756_v60, %v7448_v32  ;;  %v2763_v12 = vmul.f32 0.0, %v2756_v60  ;;  %v2733_v60 = vpop.permute.xlu1 %2732 }
0x1331   : > { %2778 = vrot.lane.b32.xlu0 %v2762_v43, %s6296_s23  ;;  %2776 = vrot.lane.b32.xlu2 %v2761_v16, %s6296_s23  ;;  %v2639_v43 = vsel %vm545_vm1, %v7898_v31, %v2631_v5  ;;  %v2595_v16 = vmul.f32 %v7892_v25, %v7380_v54 }
0x1332   : > { %2780 = vrot.lane.b32.xlu1 %v2763_v12, %s6296_s23  ;;  %v2648_v12 = vadd.f32 %v2638_v9, %v2594_v15 }
0x1333   : > { %v2649_v22 = vadd.f32 %v2639_v43, %v2595_v16  ;;  %v2596_v43 = vmul.f32 %v7892_v25, %v7382_v52  ;;  %v2651_v16 = vadd.f32 %v2640_v26, %v2597_v63 }
0x1334   : > { %v2696_v3 = vadd.f32 %v2675_v17, %v2648_v12 }
0x1335   : > { %v2697_v21 = vadd.f32 %v2686_v42, %v2649_v22  ;;  %v2687_v22 = vsel %vm594_vm2, %v7912_v13, %v2679_v49  ;;  %v2641_v13 = vsel %vm545_vm1, %v7901_v29, %v2637_v30  ;;  %v2688_v49 = vsel %vm594_vm2, %v7914_v47, %v7921_v6 }
0x1336   : > { %v2744_v24 = vadd.f32 %v2723_v18, %v2696_v3  ;;  %v2650_v3 = vadd.f32 %v2631_v5, %v2596_v43  ;;  %v2599_v5 = vmul.f32 %v7873_v20, %v7448_v32  ;;  %v2736_v29 = vsel %vm649_vm3, %v7932_v36, %v7939_v11 }
0x1337   : > { %v2745_v59 = vadd.f32 %v2734_v27, %v2697_v21  ;;  %v2699_v21 = vadd.f32 %v7914_v47, %v2651_v16  ;;  %v2735_v27 = vsel %vm649_vm3, %v2725_v10, %v2727_v1  ;;  %v2598_v10 = vmul.f32 %v7873_v20, %v7446_v38 }
0x1338   : > { %v2698_v62 = vadd.f32 %v2687_v22, %v2650_v3  ;;  %v2689_v1 = vsel %vm594_vm2, %v7921_v6, %v2685_v51  ;;  %v2653_v26 = vadd.f32 %v2637_v30, %v2599_v5 }
0x133a   : > { %v2746_v18 = vadd.f32 %v2735_v27, %v2698_v62  ;;  %v2701_v20 = vadd.f32 %v2689_v1, %v2653_v26 }
0x1373   : > { %v2773_v37 = vpop.permute.xlu2 %2772 }
0x138b   : > { %v2771_v31 = vpop.permute.xlu1 %2770  ;;  %v2777_v42 = vpop.permute.xlu2 %2776 }
0x138c   : > { %v2782_v9 = vsel %vm324_vm0, %v2771_v31, %v2773_v37  ;;  %v2792_v15 = vadd.f32 %v2771_v31, %v2744_v24  ;;  %v2747_v24 = vadd.f32 %v7932_v36, %v2699_v21  ;;  %v9867_v36 = vmov 14  }
0x138d   : > { %v2793_v17 = vadd.f32 %v2782_v9, %v2745_v59  ;;  %v2737_v9 = vsel %vm649_vm3, %v7939_v11, %v2733_v60  ;;  %v9868_v11 = vmov 19  }
0x138e   : > { %2810 = vrot.lane.b32.xlu2 %v2792_v15, %s6314_s8  ;;  %v2795_v59 = vadd.f32 %v2777_v42, %v2747_v24 }
0x138f   : > { %2812 = vrot.lane.b32.xlu0 %v2793_v17, %s6314_s8  ;;  %v2749_v17 = vadd.f32 %v2737_v9, %v2701_v20 }
0x1393   : > { %v2775_v25 = vpop.permute.xlu1 %2774 }
0x1394   : > { %v2783_v63 = vsel %vm324_vm0, %v2773_v37, %v2775_v25  ;;  %v2652_v37 = vadd.f32 %v2641_v13, %v2598_v10 }
0x1395   : > { %v2794_v12 = vadd.f32 %v2783_v63, %v2746_v18 }
0x1396   : > { %2816 = vrot.lane.b32.xlu2 %v2795_v59, %s6314_s8  ;;  %v2700_v31 = vadd.f32 %v2688_v49, %v2652_v37 }
0x1397   : > { %2814 = vrot.lane.b32.xlu1 %v2794_v12, %s6314_s8 }
0x1398   : > { %v2748_v15 = vadd.f32 %v2736_v29, %v2700_v31 }
0x139e   : > { %2839 = vperm.xlu2 %6095, %v7739_v33  }
0x13a3   : > { %v2779_v43 = vpop.permute.xlu0 %2778 }
0x13a4   : > { %v2784_v47 = vsel %vm324_vm0, %v2777_v42, %v2779_v43  ;;  %v2781_v16 = vpop.permute.xlu1 %2780 }
0x13a5   : > { %v2796_v22 = vadd.f32 %v2784_v47, %v2748_v15  ;;  %v2785_v3 = vsel %vm324_vm0, %v2779_v43, %v2781_v16  ;;  %v9869_v43 = vmov 24  }
0x13a6   : > { %v2797_v6 = vadd.f32 %v2785_v3, %v2749_v17  ;;  %6098 = vset.pattern.permute.xlu2 %v9862_v19 }
0x13a7   : > { %2863 = vperm.xlu2 %6098, %v7745_v35   ;;  %2818 = vrot.lane.b32.xlu0 %v2796_v22, %s6314_s8 }
0x13a8   : > { %2820 = vrot.lane.b32.xlu1 %v2797_v6, %s6314_s8 }
0x13af   : > { %2843 = vperm.xlu0 %6096, %v7745_v35   ;;  %6100 = vset.pattern.permute.xlu2 %v9867_v36 }
0x13b0   : > { %2859 = vperm.xlu1 %6097, %v7739_v33  }
0x13b7   : > { %6101 = vset.pattern.permute.xlu0 %v9868_v11 }
0x13b8   : > { %6099 = vset.pattern.permute.xlu1 %v9867_v36 }
0x13e8   : > { %v8002_v30 = vpop.permute.xlu2 %2810 }
0x13f0   : > { %v8006_v60 = vpop.permute.xlu2 %2816 }
0x13f8   : > { %v8010_v27 = vpop.permute.xlu2 %2839 }
0x1401   : > { %v2864_v25 = vpop.permute.xlu2 %2863  ;;  %v8048_v17 = vpop.permute.xlu0 %2812 }
0x1402   : > { %v2869_v59 = vmul.f32 0.0, %v2864_v25  ;;  %v2871_v63 = vmul.f32 %v2864_v25, %v7448_v32  ;;  %v2870_v12 = vmul.f32 %v2864_v25, %v7446_v38 }
0x1409   : > { %v8004_v51 = vpop.permute.xlu1 %2814 }
0x1419   : > { %v8050_v47 = vpop.permute.xlu0 %2818 }
0x141a   : > { %v8008_v21 = vpop.permute.xlu1 %2820 }
0x1421   : > { %v8052_v16 = vpop.permute.xlu0 %2843 }
0x1422   : > { %v2860_v62 = vpop.permute.xlu1 %2859 }
0x1423   : > { %v2866_v42 = vmul.f32 0.0, %v2860_v62  ;;  %v2867_v24 = vmul.f32 %v2860_v62, %v7380_v54  ;;  %v2868_v18 = vmul.f32 %v2860_v62, %v7382_v52 }
0x1425   : > { %2878 = vrot.lane.b32.xlu1 %v2866_v42, %s6293_s18  ;;  %2882 = vrot.lane.b32.xlu0 %v2868_v18, %s6293_s18 }
0x1426   : > { %2880 = vrot.lane.b32.xlu2 %v2867_v24, %s6293_s18 }
0x142d   : > { %2884 = vrot.lane.b32.xlu1 %v2869_v59, %s6293_s18  ;;  %2888 = vrot.lane.b32.xlu0 %v2871_v63, %s6293_s18 }
0x142e   : > { %2886 = vrot.lane.b32.xlu2 %v2870_v12, %s6293_s18 }
0x1435   : > { %2907 = vperm.xlu1 %6099, %v7739_v33  }
0x1436   : > { %2911 = vperm.xlu2 %6100, %v7745_v35  }
0x143d   : > { %6102 = vset.pattern.permute.xlu1 %v9868_v11 }
0x143e   : > { %6107 = vset.pattern.permute.xlu2 %v9842_v34 }
0x1480   : > { %v8028_v10 = vpop.permute.xlu2 %2880 }
0x1488   : > { %v8032_v49 = vpop.permute.xlu2 %2886 }
0x1490   : > { %v2912_v31 = vpop.permute.xlu2 %2911 }
0x1491   : > { %v2919_v9 = vmul.f32 0.0, %v2912_v31  ;;  %v2917_v20 = vmul.f32 %v2912_v31, %v7446_v38  ;;  %v2918_v15 = vmul.f32 %v2912_v31, %v7448_v32 }
0x1497   : > { %v8026_v13 = vpop.permute.xlu1 %2878  ;;  %v2883_v22 = vpop.permute.xlu0 %2882 }
0x149f   : > { %v8030_v5 = vpop.permute.xlu1 %2884  ;;  %v8054_v3 = vpop.permute.xlu0 %2888 }
0x14a7   : > { %v2908_v37 = vpop.permute.xlu1 %2907 }
0x14a8   : > { %v2914_v1 = vmul.f32 %v2908_v37, %v7380_v54  ;;  %v2915_v26 = vmul.f32 %v2908_v37, %v7382_v52  ;;  %v2916_v29 = vmul.f32 0.0, %v2908_v37 }
0x14aa   : > { %2928 = vrot.lane.b32.xlu1 %v2915_v26, %s6294_s19  ;;  %2926 = vrot.lane.b32.xlu0 %v2914_v1, %s6294_s19 }
0x14ab   : > { %2930 = vrot.lane.b32.xlu2 %v2916_v29, %s6294_s19 }
0x14b2   : > { %2934 = vrot.lane.b32.xlu1 %v2918_v15, %s6294_s19  ;;  %2932 = vrot.lane.b32.xlu0 %v2917_v20, %s6294_s19 }
0x14b3   : > { %2936 = vrot.lane.b32.xlu2 %v2919_v9, %s6294_s19 }
0x14ba   : > { %2959 = vperm.xlu1 %6102, %v7745_v35   ;;  %2955 = vperm.xlu0 %6101, %v7739_v33  }
0x14c2   : > { %6103 = vset.pattern.permute.xlu0 %v9869_v43  ;;  %6104 = vset.pattern.permute.xlu1 %v9869_v43 }
0x151c   : > { %v2929_v6 = vpop.permute.xlu1 %2928  ;;  %v2927_v62 = vpop.permute.xlu0 %2926 }
0x151d   : > { %v2938_v36 = vsel %vm594_vm2, %v2927_v62, %v2929_v6 }
0x1524   : > { %v8056_v42 = vpop.permute.xlu1 %2934  ;;  %v8058_v24 = vpop.permute.xlu0 %2932 }
0x152c   : > { %v2960_v18 = vpop.permute.xlu1 %2959  ;;  %v2956_v25 = vpop.permute.xlu0 %2955 }
0x152d   : > { %v2965_v59 = vmul.f32 %v2960_v18, %v7446_v38  ;;  %v2962_v63 = vmul.f32 %v2956_v25, %v7380_v54  ;;  %v2963_v12 = vmul.f32 %v2956_v25, %v7382_v52  ;;  %v2964_v37 = vmul.f32 0.0, %v2956_v25 }
0x152e   : > { %v2966_v1 = vmul.f32 %v2960_v18, %v7448_v32  ;;  %v2967_v26 = vmul.f32 0.0, %v2960_v18 }
0x152f   : > { %2980 = vrot.lane.b32.xlu0 %v2965_v59, %s6295_s20  ;;  %2974 = vrot.lane.b32.xlu2 %v2962_v63, %s6295_s20 }
0x1530   : > { %2976 = vrot.lane.b32.xlu1 %v2963_v12, %s6295_s20  ;;  %v2931_v12 = vpop.permute.xlu2 %2930 }
0x1537   : > { %3003 = vperm.xlu0 %6103, %v7739_v33   ;;  %2978 = vrot.lane.b32.xlu2 %v2964_v37, %s6295_s20 }
0x1538   : > { %2982 = vrot.lane.b32.xlu1 %v2966_v1, %s6295_s20  ;;  %v2937_v37 = vpop.permute.xlu2 %2936 }
0x153f   : > { %2984 = vrot.lane.b32.xlu2 %v2967_v26, %s6295_s20  ;;  %6105 = vset.pattern.permute.xlu0 %v9843_v2 }
0x1540   : > { %3007 = vperm.xlu1 %6104, %v7745_v35  }
0x1548   : > { %6106 = vset.pattern.permute.xlu1 %v9843_v2 }
0x1589   : > { %v2975_v1 = vpop.permute.xlu2 %2974 }
0x1591   : > { %v2979_v26 = vpop.permute.xlu2 %2978 }
0x15a1   : > { %v8074_v29 = vpop.permute.xlu0 %2980 }
0x15a2   : > { %v2977_v31 = vpop.permute.xlu1 %2976 }
0x15a9   : > { %v3004_v9 = vpop.permute.xlu0 %3003 }
0x15aa   : > { %v2983_v20 = vpop.permute.xlu1 %2982  ;;  %v3010_v33 = vmul.f32 %v3004_v9, %v7380_v54  ;;  %v3011_v15 = vmul.f32 %v3004_v9, %v7382_v52  ;;  %v3012_v18 = vmul.f32 0.0, %v3004_v9  ;;  %v2890_v9 = vsel %vm545_vm1, %v8026_v13, %v8028_v10 }
0x15ab   : > { %v2939_v13 = vsel %vm594_vm2, %v2929_v6, %v2931_v12  ;;  %v2893_v6 = vsel %vm545_vm1, %v8032_v49, %v8054_v3  ;;  %v2851_v12 = vmul.f32 %v8052_v16, %v7448_v32 }
0x15ac   : > { %3024 = vrot.lane.b32.xlu1 %v3011_v15, %s6296_s23  ;;  %3022 = vrot.lane.b32.xlu2 %v3010_v33, %s6296_s23  ;;  %v2985_v33 = vpop.permute.xlu2 %2984  ;;  %v2846_v15 = vmul.f32 0.0, %v8010_v27 }
0x15ae   : > { %v2900_v2 = vadd.f32 %v2890_v9, %v2846_v15  ;;  %v2986_v15 = vsel %vm649_vm3, %v2975_v1, %v2977_v31 }
0x15b2   : > { %v3008_v25 = vpop.permute.xlu1 %3007 }
0x15b3   : > { %v3013_v59 = vmul.f32 %v3008_v25, %v7446_v38  ;;  %v3014_v35 = vmul.f32 %v3008_v25, %v7448_v32  ;;  %v3015_v63 = vmul.f32 0.0, %v3008_v25  ;;  %v2891_v25 = vsel %vm545_vm1, %v8028_v10, %v2883_v22 }
0x15b4   : > { %3026 = vrot.lane.b32.xlu2 %v3012_v18, %s6296_s23  ;;  %v2948_v18 = vadd.f32 %v2927_v62, %v2900_v2  ;;  %v2849_v10 = vmul.f32 0.0, %v8052_v16  ;;  %v2988_v32 = vsel %vm649_vm3, %v8074_v29, %v2983_v20 }
0x15b5   : > { %3028 = vrot.lane.b32.xlu0 %v3013_v59, %s6296_s23  ;;  %3030 = vrot.lane.b32.xlu1 %v3014_v35, %s6296_s23  ;;  %v2847_v35 = vmul.f32 %v8010_v27, %v7380_v54 }
0x15b6   : > { %v2996_v43 = vadd.f32 %v2975_v1, %v2948_v18 }
0x15b7   : > { %v2901_v9 = vadd.f32 %v2891_v25, %v2847_v35 }
0x15b9   : > { %v2949_v18 = vadd.f32 %v2938_v36, %v2901_v9 }
0x15bb   : > { %v2997_v55 = vadd.f32 %v2986_v15, %v2949_v18  ;;  %v2062_v15 = vld [vmem:[%s9718_s5] ss:$8 sm:$0x3] }
0x15bc   : > { %3032 = vrot.lane.b32.xlu2 %v3015_v63, %s6296_s23  ;;  %v2848_v63 = vmul.f32 %v8010_v27, %v7382_v52  ;;  %v2892_v52 = vsel %vm545_vm1, %v8030_v5, %v8032_v49  ;;  %v2941_v5 = vsel %vm594_vm2, %v8056_v42, %v2937_v37  ;;  %v2989_v49 = vsel %vm649_vm3, %v2983_v20, %v2985_v33  ;;  %v8140_v20 = vld [vmem:[%s9716_s3 + $0x28] sm:$0xff] }
0x15bd   : > { %v2903_v1 = vadd.f32 %v2892_v52, %v2849_v10  ;;  %v2064_v18 = vperm.slane %v2062_v15, 0  ;;  %v8156_v10 = vld [vmem:[%s9718_s5 + $0x1] ss:$8 sm:$0x3]  ;;  %v2086_v52 = vsel %vm738_vm4, %v7579_v4, %v7625_v57 }
0x15be   : > { %v2902_v2 = vadd.f32 %v2883_v22, %v2848_v63  ;;  %v1830_v4 = vld [vmem:[%s9717_s4 + $0x20] sm:$0xff] }
0x1606   : > { %v3023_v59 = vpop.permute.xlu2 %3022 }
0x1607   : > { %v3044_v11 = vadd.f32 %v3023_v59, %v2996_v43  ;;  %v2987_v43 = vsel %vm649_vm3, %v2977_v31, %v2979_v26  ;;  %v2850_v31 = vmul.f32 %v8052_v16, %v7446_v38  ;;  %v2951_v38 = vadd.f32 %v8058_v24, %v2903_v1 }
0x1608   : > { %v2317_v1 = vperm.slane %v8156_v10, 1 }
0x1609   : > { %3062 = vrot.lane.b32.xlu0 %v3044_v11, %s6318_s9  ;;  %v2950_v11 = vadd.f32 %v2939_v13, %v2902_v2  ;;  %v2999_v26 = vadd.f32 %v8074_v29, %v2951_v38  ;;  %v8135_v29 = vld [vmem:[%s9716_s3 + $0x20] sm:$0xff] }
0x160b   : > { %v2998_v54 = vadd.f32 %v2987_v43, %v2950_v11  ;;  %v378_v43 = vpop.f32.mrf.mxu2  ;;  %v419_v11 = vpop.f32.mrf.mxu3 }
0x160e   : > { %v3027_v19 = vpop.permute.xlu2 %3026 }
0x161e   : > { %v3025_v56 = vpop.permute.xlu1 %3024 }
0x161f   : > { %v3034_v27 = vsel %vm324_vm0, %v3023_v59, %v3025_v56  ;;  %v3035_v22 = vsel %vm324_vm0, %v3025_v56, %v3027_v19  ;;  %v2940_v19 = vsel %vm594_vm2, %v8058_v24, %v8056_v42  ;;  %v2905_v56 = vadd.f32 %v8054_v3, %v2851_v12  ;;  %v3033_v59 = vpop.permute.xlu2 %3032 }
0x1620   : > { %v3045_v62 = vadd.f32 %v3034_v27, %v2997_v55  ;;  %v3046_v36 = vadd.f32 %v3035_v22, %v2998_v54  ;;  %v2904_v55 = vadd.f32 %v2893_v6, %v2850_v31  ;;  %v2065_v27 = vperm.slane %v2062_v15, 1  ;;  %v9870_v22 = vld [vmem:[#allocation4_spill] sm:$0xff] }
0x1621   : > { %v2953_v16 = vadd.f32 %v2941_v5, %v2905_v56  ;;  %v379_v6 = vadd.f32 %v378_v43, %v9870_v22  ;;  %v2316_v31 = vperm.slane %v8156_v10, 0  ;;  %v2094_v12 = vmul.f32 %v2086_v52, %v2064_v18 }
0x1622   : > { %3064 = vrot.lane.b32.xlu1 %v3045_v62, %s6318_s9  ;;  %3066 = vrot.lane.b32.xlu2 %v3046_v36, %s6318_s9  ;;  %v2952_v37 = vadd.f32 %v2940_v19, %v2904_v55  ;;  %v420_v62 = vadd.f32 %v419_v11, %v9870_v22  ;;  %v2087_v36 = vsel %vm738_vm4, %v7625_v57, %v7581_v8  ;;  %v8182_v8 = vld [vmem:[%s9718_s5 + $0x3] ss:$8 sm:$0x3] }
0x1623   : > { %v3001_v25 = vadd.f32 %v2989_v49, %v2953_v16  ;;  %v2338_v5 = vsel %vm992_vm5, %v7754_v14, %v7725_v7  ;;  %v2339_v19 = vsel %vm992_vm5, %v7725_v7, %v7716_v53  ;;  %v2095_v57 = vmul.f32 %v2087_v36, %v2065_v27  ;;  %v1831_v14 = vld [vmem:[%s9717_s4 + $0x28] sm:$0xff] }
0x1624   : > { %v3000_v42 = vadd.f32 %v2988_v32, %v2952_v37  ;;  %v8184_v55 = vmax.f32 %v379_v6, 0.0  ;;  %v8186_v56 = vmax.f32 %v420_v62, 0.0  ;;  %v2346_v38 = vmul.f32 %v2338_v5, %v2316_v31 }
0x1625   : > { %v2098_v32 = vadd.f32 %v2094_v12, %v1830_v4  ;;  %v2347_v49 = vmul.f32 %v2339_v19, %v2317_v1  ;;  %v2800_v16 = vperm.slane %v8182_v8, 0  ;;  %v2801_v7 = vperm.slane %v8182_v8, 1 }
0x1626   : > { %v2341_v43 = vsel %vm992_vm5, %v7727_v23, %v7718_v28 }
0x1627   : > { %v3031_v35 = vpop.permute.xlu1 %3030  ;;  %v3029_v63 = vpop.permute.xlu0 %3028  ;;  %v2349_v28 = vmul.f32 %v2341_v43, %v2317_v1 }
0x1628   : > { %v3037_v13 = vsel %vm324_vm0, %v3031_v35, %v3033_v59  ;;  %v3036_v3 = vsel %vm324_vm0, %v3029_v63, %v3031_v35  ;;  %v3047_v9 = vadd.f32 %v3029_v63, %v2999_v26  ;;  %v2823_v35 = vsel %vm1479_vm6, %v8048_v17, %v8004_v51  ;;  %v5935_v63 = vld [vmem:[%s9718_s5 + $0x4] ss:$8 sm:$0x3]  ;;  %v422_v43 = vpop.f32.mrf.mxu3 }
0x1629   : > { %v3049_v24 = vadd.f32 %v3037_v13, %v3001_v25  ;;  %v3048_v2 = vadd.f32 %v3036_v3, %v3000_v42  ;;  %v2099_v42 = vadd.f32 %v2095_v57, %v1831_v14  ;;  %v2822_v25 = vsel %vm1479_vm6, %v8002_v30, %v8048_v17  ;;  %v9873_v14 = vld [vmem:[#allocation11_spill] sm:$0xff] }
0x162a   : > { %3068 = vrot.lane.b32.xlu0 %v3047_v9, %s6318_s9  ;;  %v2088_v13 = vsel %vm738_vm4, %v7583_v48, %v7627_v39  ;;  %v2089_v3 = vsel %vm738_vm4, %v7627_v39, %v7585_v61  ;;  %v2350_v9 = vadd.f32 %v2346_v38, %v2098_v32  ;;  %v2340_v30 = vsel %vm992_vm5, %v7756_v45, %v7727_v23  ;;  %v1832_v45 = vld [vmem:[%s9717_s4 + $0x30] sm:$0xff] }
0x162b   : > { %3070 = vrot.lane.b32.xlu1 %v3048_v2, %s6318_s9  ;;  %3072 = vrot.lane.b32.xlu2 %v3049_v24, %s6318_s9  ;;  %v2351_v51 = vadd.f32 %v2347_v49, %v2099_v42  ;;  %v2574_v17 = vsel %vm1229_vm7, %v7886_v40, %v7869_v44  ;;  %v2575_v48 = vsel %vm1229_vm7, %v7869_v44, %v7860_v0  ;;  %v3052_v24 = vperm.slane %v5935_v63, 0 }
0x162c   : > { %v2830_v61 = vmul.f32 %v2822_v25, %v2800_v16  ;;  %v2831_v39 = vmul.f32 %v2823_v35, %v2801_v7  ;;  %v3053_v2 = vperm.slane %v5935_v63, 1  ;;  %v2096_v15 = vmul.f32 %v2088_v13, %v2064_v18  ;;  %v1833_v18 = vld [vmem:[%s9717_s4 + $0x38] sm:$0xff] }
0x162d   : > { %v2582_v40 = vadd.f32 %v2574_v17, %v2350_v9  ;;  %v2583_v11 = vadd.f32 %v2575_v48, %v2351_v51  ;;  %v2097_v0 = vmul.f32 %v2089_v3, %v2065_v27  ;;  %v2348_v44 = vmul.f32 %v2340_v30, %v2316_v31 }
0x162e   : > { %v2100_v4 = vadd.f32 %v2096_v15, %v1832_v45  ;;  %v2824_v23 = vsel %vm1479_vm6, %v8006_v60, %v8050_v47  ;;  %v2825_v27 = vsel %vm1479_vm6, %v8050_v47, %v8008_v21  ;;  %v2576_v57 = vsel %vm1229_vm7, %v7888_v58, %v7871_v50 }
0x162f   : > { %v2834_v62 = vadd.f32 %v2830_v61, %v2582_v40  ;;  %v2835_v36 = vadd.f32 %v2831_v39, %v2583_v11  ;;  %v2101_v19 = vadd.f32 %v2097_v0, %v1833_v18  ;;  %v2577_v1 = vsel %vm1229_vm7, %v7871_v50, %v9873_v14  ;;  %v381_v39 = vpop.f32.mrf.mxu2 }
0x1630   : > { %v2352_v8 = vadd.f32 %v2348_v44, %v2100_v4  ;;  %v2832_v38 = vmul.f32 %v2824_v23, %v2800_v16 }
0x1631   : > { %v2353_v60 = vadd.f32 %v2349_v28, %v2101_v19 }
0x1632   : > { %3184 = vperm.xlu0 %6105, %v8135_v29  }
0x1633   : > { %3189 = vperm.xlu1 %6106, %v8140_v20   ;;  %3205 = vperm.xlu2 %6107, %v8135_v29  }
0x163a   : > { %6110 = vset.pattern.permute.xlu0 %v9844_v46 }
0x163b   : > { %6108 = vset.pattern.permute.xlu1 %v9842_v34  ;;  %6109 = vset.pattern.permute.xlu2 %v9844_v46 }
0x163c   : > { %3209 = vperm.xlu1 %6108, %v8140_v20  }
0x1644   : > { %6117 = vset.pattern.permute.xlu1 %v9845_v41 }
0x167b   : > { %v3063_v10 = vpop.permute.xlu0 %3062 }
0x167c   : > { %v3067_v33 = vpop.permute.xlu2 %3066 }
0x1685   : > { %v8158_v54 = vpop.permute.xlu2 %3072 }
0x168d   : > { %v3206_v53 = vpop.permute.xlu2 %3205 }
0x168e   : > { %v3212_v37 = vmul.f32 0.0, %v3206_v53  ;;  %v3213_v26 = vmul.f32 %v3206_v53, %v8184_v55  ;;  %v3214_v59 = vmul.f32 %v3206_v53, %v8186_v56  ;;  %v2833_v53 = vmul.f32 %v2825_v27, %v2801_v7 }
0x1690   : > { %3228 = vrot.lane.b32.xlu1 %v3214_v59, %s6293_s18  ;;  %3226 = vrot.lane.b32.xlu0 %v3213_v26, %s6293_s18  ;;  %v2585_v59 = vadd.f32 %v2577_v1, %v2353_v60 }
0x1691   : > { %3224 = vrot.lane.b32.xlu2 %v3212_v37, %s6293_s18  ;;  %v2584_v37 = vadd.f32 %v2576_v57, %v2352_v8 }
0x1692   : > { %v2837_v63 = vadd.f32 %v2833_v53, %v2585_v59 }
0x1693   : > { %v2836_v25 = vadd.f32 %v2832_v38, %v2584_v37 }
0x1694   : > { %v3065_v52 = vpop.permute.xlu1 %3064 }
0x1695   : > { %v3074_v22 = vsel %vm9871_vm9, %v3063_v10, %v3065_v52  ;;  %v3075_v6 = vsel %vm9872_vm10, %v3065_v52, %v3067_v33 }
0x1696   : > { %v3082_v12 = vmul.f32 %v3074_v22, %v3052_v24  ;;  %v3083_v5 = vmul.f32 %v3075_v6, %v3053_v2 }
0x1698   : > { %v3086_v31 = vadd.f32 %v3082_v12, %v2834_v62  ;;  %v3087_v33 = vadd.f32 %v3083_v5, %v2835_v36 }
0x169a   : > { %v3090_v32 = vsub.f32 0.0, %v3086_v31  ;;  %v3091_v49 = vsub.f32 0.0, %v3087_v33 }
0x169c   : > { %v3094_v26 = vmul.f32 1.442695, %v3090_v32  ;;  %v3096_v21 = vmul.f32 1.442695, %v3091_v49  ;;  %v3069_v47 = vpop.permute.xlu0 %3068 }
0x169d   : > { %v3071_v42 = vpop.permute.xlu1 %3070 }
0x169e   : > { %6221 = vpow2.f32 %v3094_v26  ;;  %v3076_v35 = vsel %vm9874_vm8, %v3069_v47, %v3071_v42  ;;  %v3077_v58 = vsel %vm9875_vm11, %v3071_v42, %v8158_v54  ;;  %v9876_v54 = vld [vmem:[#allocation5_spill] sm:$0xff] }
0x169f   : > { %6223 = vpow2.f32 %v3096_v21  ;;  %v3084_v50 = vmul.f32 %v3076_v35, %v3052_v24  ;;  %v3085_v16 = vmul.f32 %v3077_v58, %v3053_v2  ;;  %v382_v40 = vadd.f32 %v381_v39, %v9876_v54 }
0x16a0   : > { %v423_v24 = vadd.f32 %v422_v43, %v9876_v54 }
0x16a1   : > { %v3088_v13 = vadd.f32 %v3084_v50, %v2836_v25  ;;  %v3089_v3 = vadd.f32 %v3085_v16, %v2837_v63  ;;  %v8252_v11 = vmax.f32 %v382_v40, 0.0 }
0x16a2   : > { %v8254_v52 = vmax.f32 %v423_v24, 0.0 }
0x16a3   : > { %v3092_v7 = vsub.f32 0.0, %v3088_v13  ;;  %v3093_v9 = vsub.f32 0.0, %v3089_v3 }
0x16a4   : > { %v6222_v30 = vpop.eup %6221  ;;  %v8273_v54 = vpop.permute.xlu0 %3184 }
0x16a5   : > { %v6224_v51 = vpop.eup %6223  ;;  %v3102_v17 = vadd.f32 1.0, %v6222_v30  ;;  %v3098_v48 = vmul.f32 1.442695, %v3092_v7  ;;  %v8248_v61 = vpop.permute.xlu1 %3189  ;;  %v3100_v45 = vmul.f32 1.442695, %v3093_v9 }
0x16a6   : > { %v3103_v15 = vadd.f32 1.0, %v6224_v51 }
0x16a7   : > { %6225 = vrcp.f32 %v3102_v17  ;;  %v3115_v28 = vand.u32 2147483647, %v3102_v17  ;;  %v3117_v23 = vand.u32 2147483648, %v3102_v17  ;;  %vm3111_vm14 = vweird.f32 %v3102_v17 }
0x16a8   : > { %6227 = vrcp.f32 %v3103_v15  ;;  %v3132_v19 = vand.u32 2147483648, %v3103_v15  ;;  %v3130_v57 = vand.u32 2147483647, %v3103_v15  ;;  %vm3126_vm9 = vweird.f32 %v3103_v15 }
0x16a9   : > { %6229 = vpow2.f32 %v3098_v48  ;;  %v3118_v1 = vor.u32 1.1754944e-38, %v3117_v23  ;;  %vm3116_vm10 = vcmp.eq.f32.partialorder %v3115_v28, 8.507059e+37 }
0x16aa   : > { %6231 = vpow2.f32 %v3100_v45  ;;  %v3133_v49 = vor.u32 1.1754944e-38, %v3132_v19  ;;  %vm3131_vm11 = vcmp.eq.f32.partialorder %v3130_v57, 8.507059e+37 }
0x16ad   : > { %v6226_v2 = vpop.eup %6225 }
0x16ae   : > { %v6228_v10 = vpop.eup %6227  ;;  %v3107_v0 = vmul.f32 %v6226_v2, %v3102_v17  ;;  %v3210_v44 = vpop.permute.xlu1 %3209  ;;  %vm3112_vm12 = vweird.f32 %v6226_v2  ;;  %v9877_v17 = vmov 15  }
0x16af   : > { %v6230_v22 = vpop.eup %6229  ;;  %v3122_v6 = vmul.f32 %v6228_v10, %v3103_v15  ;;  %v3215_v18 = vmul.f32 0.0, %v3210_v44  ;;  %v3216_v62 = vmul.f32 %v3210_v44, %v8252_v11  ;;  %v3217_v4 = vmul.f32 %v3210_v44, %v8254_v52  ;;  %vm3113_vm15 = vmor %vm3111_vm14, %vm3112_vm12 }
0x16b0   : > { %v6232_v36 = vpop.eup %6231  ;;  %v3108_v12 = vsub.f32 1.0, %v3107_v0  ;;  %v3104_v5 = vadd.f32 1.0, %v6230_v22  ;;  %vm3127_vm13 = vweird.f32 %v6228_v10 }
0x16b1   : > { %v3123_v27 = vsub.f32 1.0, %v3122_v6  ;;  %v3105_v31 = vadd.f32 1.0, %v6232_v36  ;;  %3230 = vrot.lane.b32.xlu2 %v3215_v18, %s6293_s18  ;;  %3232 = vrot.lane.b32.xlu0 %v3216_v62, %s6293_s18  ;;  %vm3128_vm8 = vmor %vm3126_vm9, %vm3127_vm13  ;;  %v9878_v36 = vmov 20  }
0x16b2   : > { %v3109_v33 = vmul.f32 %v6226_v2, %v3108_v12  ;;  %6233 = vrcp.f32 %v3104_v5  ;;  %3234 = vrot.lane.b32.xlu1 %v3217_v4, %s6293_s18  ;;  %v3147_v25 = vand.u32 2147483648, %v3104_v5  ;;  %v3145_v63 = vand.u32 2147483647, %v3104_v5 }
0x16b3   : > { %v3124_v8 = vmul.f32 %v6228_v10, %v3123_v27  ;;  %6235 = vrcp.f32 %v3105_v31  ;;  %v3162_v50 = vand.u32 2147483648, %v3105_v31  ;;  %v3160_v13 = vand.u32 2147483647, %v3105_v31 }
0x16b4   : > { %v3110_v14 = vadd.f32 %v6226_v2, %v3109_v33  ;;  %vm3141_vm14 = vweird.f32 %v3104_v5  ;;  %v3148_v7 = vor.u32 1.1754944e-38, %v3147_v25  ;;  %vm3156_vm9 = vweird.f32 %v3105_v31 }
0x16b5   : > { %v3125_v38 = vadd.f32 %v6228_v10, %v3124_v8  ;;  %v3163_v51 = vor.u32 1.1754944e-38, %v3162_v50 }
0x16b6   : > { %v3114_v32 = vsel %vm3113_vm15, %v6226_v2, %v3110_v14  ;;  %v9879_v14 = vmov 1  }
0x16b7   : > { %v3119_v60 = vsel %vm3116_vm10, %v3118_v1, %v3114_v32  ;;  %v3129_v53 = vsel %vm3128_vm8, %v6228_v10, %v3125_v38  ;;  %vm3146_vm10 = vcmp.eq.f32.partialorder %v3145_v63, 8.507059e+37 }
0x16b8   : > { %v6234_v37 = vpop.eup %6233  ;;  %v3134_v26 = vsel %vm3131_vm11, %v3133_v49, %v3129_v53  ;;  %3166 = vst [vmem:[%s7460_s30 + $0x20] sm:$0xff] %v3119_v60  ;;  %vm3161_vm11 = vcmp.eq.f32.partialorder %v3160_v13, 8.507059e+37  ;;  %v3192_v13 = vmul.f32 0.0, %v8273_v54 }
0x16b9   : > { %v6236_v21 = vpop.eup %6235  ;;  %3167 = vst [vmem:[%s7460_s30 + $0x28] sm:$0xff] %v3134_v26  ;;  %v3137_v47 = vmul.f32 %v6234_v37, %v3104_v5  ;;  %3253 = vperm.xlu2 %6109, %v8135_v29   ;;  %3257 = vperm.xlu0 %6110, %v8140_v20   ;;  %vm3142_vm12 = vweird.f32 %v6234_v37 }
0x16ba   : > { %v3152_v59 = vmul.f32 %v6236_v21, %v3105_v31  ;;  %vm3157_vm13 = vweird.f32 %v6236_v21  ;;  %vm3143_vm15 = vmor %vm3141_vm14, %vm3142_vm12  ;;  %vm9901_vm12 = vcmask 244736  }
0x16bb   : > { %v3138_v42 = vsub.f32 1.0, %v3137_v47  ;;  %vm3158_vm8 = vmor %vm3156_vm9, %vm3157_vm13 }
0x16bc   : > { %v3153_v35 = vsub.f32 1.0, %v3152_v59  ;;  %vm9902_vm13 = vmmov %vm9901_vm12 }
0x16bd   : > { %v3139_v58 = vmul.f32 %v6234_v37, %v3138_v42  ;;  %vm9904_vm14 = vmmov %vm9901_vm12 }
0x16be   : > { %v3154_v16 = vmul.f32 %v6236_v21, %v3153_v35 }
0x16bf   : > { %v3140_v3 = vadd.f32 %v6234_v37, %v3139_v58 }
0x16c0   : > { %v3155_v9 = vadd.f32 %v6236_v21, %v3154_v16 }
0x16c1   : > { %v3144_v30 = vsel %vm3143_vm15, %v6234_v37, %v3140_v3  ;;  %6111 = vset.pattern.permute.xlu2 %v9877_v17  ;;  %6112 = vset.pattern.permute.xlu0 %v9877_v17  ;;  %vm9905_vm15 = vmmov %vm9901_vm12 }
0x16c2   : > { %v3149_v48 = vsel %vm3146_vm10, %v3148_v7, %v3144_v30  ;;  %v3159_v39 = vsel %vm3158_vm8, %v6236_v21, %v3155_v9  ;;  %v3193_v30 = vmul.f32 %v8273_v54, %v8184_v55 }
0x16c3   : > { %v3164_v15 = vsel %vm3161_vm11, %v3163_v51, %v3159_v39  ;;  %3168 = vst [vmem:[%s7460_s30 + $0x30] sm:$0xff] %v3149_v48 }
0x16c4   : > { %3169 = vst [vmem:[%s7460_s30 + $0x38] sm:$0xff] %v3164_v15 }
0x16eb   : > { %v8269_v45 = vpop.permute.xlu2 %3224 }
0x1702   : > { %v8278_v10 = vpop.permute.xlu0 %3226  ;;  %v3229_v42 = vpop.permute.xlu1 %3228 }
0x1703   : > { %v3236_v3 = vsel %vm545_vm1, %v8269_v45, %v8278_v10  ;;  %v3237_v9 = vsel %vm545_vm1, %v8278_v10, %v3229_v42 }
0x1704   : > { %v3246_v48 = vadd.f32 %v3236_v3, %v3192_v13  ;;  %v3247_v15 = vadd.f32 %v3237_v9, %v3193_v30 }
0x170b   : > { %v8271_v43 = vpop.permute.xlu2 %3230 }
0x1713   : > { %v3254_v40 = vpop.permute.xlu2 %3253 }
0x1714   : > { %v3260_v24 = vmul.f32 0.0, %v3254_v40  ;;  %v3261_v2 = vmul.f32 %v3254_v40, %v8184_v55  ;;  %v3262_v0 = vmul.f32 %v3254_v40, %v8186_v56 }
0x1716   : > { %3274 = vrot.lane.b32.xlu2 %v3261_v2, %s6294_s19  ;;  %3272 = vrot.lane.b32.xlu1 %v3260_v24, %s6294_s19 }
0x171e   : > { %3276 = vrot.lane.b32.xlu1 %v3262_v0, %s6294_s19 }
0x1723   : > { %v8282_v44 = vpop.permute.xlu0 %3232 }
0x1724   : > { %v3235_v25 = vpop.permute.xlu1 %3234  ;;  %v3238_v45 = vsel %vm545_vm1, %v8271_v43, %v8282_v44 }
0x172b   : > { %v3258_v22 = vpop.permute.xlu0 %3257 }
0x172c   : > { %v3263_v6 = vmul.f32 0.0, %v3258_v22  ;;  %v3264_v18 = vmul.f32 %v3258_v22, %v8252_v11  ;;  %v3265_v62 = vmul.f32 %v3258_v22, %v8254_v52 }
0x172e   : > { %3278 = vrot.lane.b32.xlu2 %v3263_v6, %s6294_s19  ;;  %3282 = vrot.lane.b32.xlu1 %v3265_v62, %s6294_s19 }
0x172f   : > { %3280 = vrot.lane.b32.xlu0 %v3264_v18, %s6294_s19  ;;  %v3195_v18 = vmul.f32 0.0, %v8248_v61 }
0x1736   : > { %3307 = vperm.xlu2 %6111, %v8135_v29  }
0x1737   : > { %3311 = vperm.xlu0 %6112, %v8140_v20  }
0x173e   : > { %6113 = vset.pattern.permute.xlu2 %v9878_v36 }
0x173f   : > { %6114 = vset.pattern.permute.xlu0 %v9878_v36 }
0x1770   : > { %v3275_v12 = vpop.permute.xlu2 %3274 }
0x1788   : > { %v8293_v5 = vpop.permute.xlu2 %3278  ;;  %v3273_v35 = vpop.permute.xlu1 %3272 }
0x1789   : > { %v3284_v51 = vsel %vm594_vm2, %v3273_v35, %v3275_v12 }
0x178a   : > { %v3294_v40 = vadd.f32 %v3284_v51, %v3246_v48 }
0x1790   : > { %v3308_v4 = vpop.permute.xlu2 %3307  ;;  %v3277_v58 = vpop.permute.xlu1 %3276 }
0x1791   : > { %v3314_v28 = vmul.f32 %v3308_v4, %v8184_v55  ;;  %v3315_v23 = vmul.f32 %v3308_v4, %v8186_v56  ;;  %v3316_v27 = vmul.f32 0.0, %v3308_v4  ;;  %v3285_v39 = vsel %vm594_vm2, %v3275_v12, %v3277_v58 }
0x1792   : > { %v3295_v2 = vadd.f32 %v3285_v39, %v3247_v15  ;;  %v3194_v12 = vmul.f32 %v8273_v54, %v8186_v56 }
0x1793   : > { %3328 = vrot.lane.b32.xlu2 %v3315_v23, %s6295_s20  ;;  %3326 = vrot.lane.b32.xlu1 %v3314_v28, %s6295_s20 }
0x179b   : > { %3330 = vrot.lane.b32.xlu1 %v3316_v27, %s6295_s20  ;;  %v3249_v27 = vadd.f32 %v3238_v45, %v3195_v18 }
0x17a0   : > { %v3283_v63 = vpop.permute.xlu1 %3282 }
0x17a1   : > { %v8300_v31 = vpop.permute.xlu0 %3280 }
0x17a2   : > { %v3286_v28 = vsel %vm594_vm2, %v8293_v5, %v8300_v31 }
0x17a3   : > { %v3297_v43 = vadd.f32 %v3286_v28, %v3249_v27 }
0x17a9   : > { %v3312_v33 = vpop.permute.xlu0 %3311 }
0x17aa   : > { %v3317_v19 = vmul.f32 %v3312_v33, %v8252_v11  ;;  %v3318_v8 = vmul.f32 %v3312_v33, %v8254_v52  ;;  %v3319_v57 = vmul.f32 0.0, %v3312_v33  ;;  %v3248_v33 = vadd.f32 %v3229_v42, %v3194_v12 }
0x17ac   : > { %3336 = vrot.lane.b32.xlu1 %v3319_v57, %s6295_s20  ;;  %3334 = vrot.lane.b32.xlu0 %v3318_v8, %s6295_s20  ;;  %v3296_v8 = vadd.f32 %v3277_v58, %v3248_v33 }
0x17ad   : > { %3332 = vrot.lane.b32.xlu2 %v3317_v19, %s6295_s20 }
0x17b4   : > { %3359 = vperm.xlu0 %6114, %v8140_v20  }
0x17b5   : > { %3355 = vperm.xlu2 %6113, %v8135_v29  }
0x17bc   : > { %6116 = vset.pattern.permute.xlu0 %v9879_v14 }
0x17bd   : > { %6115 = vset.pattern.permute.xlu2 %v9879_v14 }
0x17ed   : > { %v3329_v1 = vpop.permute.xlu2 %3328 }
0x1805   : > { %v3327_v50 = vpop.permute.xlu1 %3326 }
0x1806   : > { %v3338_v24 = vsel %vm649_vm3, %v3327_v50, %v3329_v1  ;;  %v3348_v22 = vadd.f32 %v3327_v50, %v3294_v40 }
0x1807   : > { %v8311_v38 = vpop.permute.xlu2 %3332  ;;  %v3349_v10 = vadd.f32 %v3338_v24, %v3295_v2 }
0x180d   : > { %v3331_v16 = vpop.permute.xlu1 %3330 }
0x180e   : > { %v3339_v19 = vsel %vm649_vm3, %v3329_v1, %v3331_v16  ;;  %v3196_v1 = vmul.f32 %v8248_v61, %v8252_v11 }
0x180f   : > { %v3356_v32 = vpop.permute.xlu2 %3355 }
0x1810   : > { %v3362_v49 = vmul.f32 %v3356_v32, %v8184_v55  ;;  %v3363_v60 = vmul.f32 %v3356_v32, %v8186_v56  ;;  %v3364_v53 = vmul.f32 0.0, %v3356_v32  ;;  %v3351_v32 = vadd.f32 %v8311_v38, %v3297_v43 }
0x1812   : > { %3376 = vrot.lane.b32.xlu2 %v3363_v60, %s6296_s23  ;;  %3374 = vrot.lane.b32.xlu1 %v3362_v49, %s6296_s23  ;;  %v3350_v49 = vadd.f32 %v3339_v19, %v3296_v8 }
0x181a   : > { %3378 = vrot.lane.b32.xlu1 %v3364_v53, %s6296_s23 }
0x181e   : > { %v8318_v37 = vpop.permute.xlu0 %3334  ;;  %v3337_v7 = vpop.permute.xlu1 %3336 }
0x181f   : > { %v3340_v35 = vsel %vm649_vm3, %v8311_v38, %v8318_v37  ;;  %v9880_v38 = vmov 11  }
0x1826   : > { %v3360_v26 = vpop.permute.xlu0 %3359 }
0x1827   : > { %v3365_v21 = vmul.f32 %v3360_v26, %v8252_v11  ;;  %v3366_v47 = vmul.f32 %v3360_v26, %v8254_v52  ;;  %v3367_v59 = vmul.f32 0.0, %v3360_v26  ;;  %v3239_v26 = vsel %vm545_vm1, %v8282_v44, %v3235_v25 }
0x1828   : > { %v3341_v44 = vsel %vm649_vm3, %v8318_v37, %v3337_v7  ;;  %v9881_v37 = vmov 16  }
0x1829   : > { %3382 = vrot.lane.b32.xlu0 %v3366_v47, %s6296_s23  ;;  %3380 = vrot.lane.b32.xlu2 %v3365_v21, %s6296_s23  ;;  %v3197_v21 = vmul.f32 %v8248_v61, %v8254_v52  ;;  %v3287_v47 = vsel %vm594_vm2, %v8300_v31, %v3283_v63 }
0x182a   : > { %3384 = vrot.lane.b32.xlu1 %v3367_v59, %s6296_s23  ;;  %v3250_v59 = vadd.f32 %v3239_v26, %v3196_v1 }
0x182b   : > { %v3251_v42 = vadd.f32 %v3235_v25, %v3197_v21 }
0x182c   : > { %v3298_v58 = vadd.f32 %v3287_v47, %v3250_v59 }
0x182d   : > { %v3299_v50 = vadd.f32 %v3283_v63, %v3251_v42 }
0x182e   : > { %v3352_v16 = vadd.f32 %v3340_v35, %v3298_v58 }
0x182f   : > { %v3353_v3 = vadd.f32 %v3341_v44, %v3299_v50 }
0x186c   : > { %v3377_v0 = vpop.permute.xlu2 %3376 }
0x1883   : > { %v3381_v57 = vpop.permute.xlu2 %3380 }
0x1884   : > { %v3375_v6 = vpop.permute.xlu1 %3374  ;;  %v3399_v60 = vadd.f32 %v3381_v57, %v3351_v32  ;;  %v9883_v32 = vmov 21  }
0x1885   : > { %v3386_v62 = vsel %vm324_vm0, %v3375_v6, %v3377_v0  ;;  %v3396_v4 = vadd.f32 %v3375_v6, %v3348_v22  ;;  %v9882_v6 = vmov 7  }
0x1886   : > { %v3397_v23 = vadd.f32 %v3386_v62, %v3349_v10 }
0x1887   : > { %3414 = vrot.lane.b32.xlu2 %v3396_v4, %s6302_s24 }
0x1888   : > { %3416 = vrot.lane.b32.xlu0 %v3397_v23, %s6302_s24 }
0x188c   : > { %v3379_v54 = vpop.permute.xlu1 %3378 }
0x188d   : > { %v3387_v53 = vsel %vm324_vm0, %v3377_v0, %v3379_v54 }
0x188e   : > { %v3398_v5 = vadd.f32 %v3387_v53, %v3350_v49 }
0x188f   : > { %3420 = vrot.lane.b32.xlu2 %v3399_v60, %s6302_s24 }
0x1890   : > { %3418 = vrot.lane.b32.xlu1 %v3398_v5, %s6302_s24 }
0x1897   : > { %3443 = vperm.xlu2 %6115, %v8135_v29  }
0x189b   : > { %v3383_v13 = vpop.permute.xlu0 %3382 }
0x189c   : > { %v3388_v61 = vsel %vm324_vm0, %v3381_v57, %v3383_v13  ;;  %v3385_v9 = vpop.permute.xlu1 %3384 }
0x189d   : > { %v3400_v31 = vadd.f32 %v3388_v61, %v3352_v16  ;;  %v3389_v30 = vsel %vm324_vm0, %v3383_v13, %v3385_v9 }
0x189e   : > { %v3401_v51 = vadd.f32 %v3389_v30, %v3353_v3  ;;  %v9884_v3 = vmov 2  }
0x189f   : > { %6118 = vset.pattern.permute.xlu2 %v9845_v41  ;;  %3422 = vrot.lane.b32.xlu0 %v3400_v31, %s6302_s24 }
0x18a0   : > { %3467 = vperm.xlu2 %6118, %v8140_v20   ;;  %3424 = vrot.lane.b32.xlu1 %v3401_v51, %s6302_s24 }
0x18a7   : > { %3447 = vperm.xlu0 %6116, %v8140_v20  }
0x18a8   : > { %3463 = vperm.xlu1 %6117, %v8135_v29   ;;  %6120 = vset.pattern.permute.xlu2 %v9880_v38 }
0x18af   : > { %6121 = vset.pattern.permute.xlu0 %v9881_v37 }
0x18b0   : > { %6119 = vset.pattern.permute.xlu1 %v9880_v38 }
0x18e1   : > { %v8378_v25 = vpop.permute.xlu2 %3414 }
0x18e9   : > { %v8382_v7 = vpop.permute.xlu2 %3420 }
0x18f1   : > { %v8386_v39 = vpop.permute.xlu2 %3443 }
0x18fa   : > { %v3468_v0 = vpop.permute.xlu2 %3467  ;;  %v8424_v49 = vpop.permute.xlu0 %3416 }
0x18fb   : > { %v3473_v22 = vmul.f32 0.0, %v3468_v0  ;;  %v3475_v45 = vmul.f32 %v3468_v0, %v8254_v52  ;;  %v3474_v10 = vmul.f32 %v3468_v0, %v8252_v11 }
0x1902   : > { %v8380_v63 = vpop.permute.xlu1 %3418 }
0x1911   : > { %v8426_v54 = vpop.permute.xlu0 %3422 }
0x1912   : > { %v8384_v48 = vpop.permute.xlu1 %3424 }
0x1919   : > { %v8428_v60 = vpop.permute.xlu0 %3447 }
0x191a   : > { %v3464_v15 = vpop.permute.xlu1 %3463 }
0x191b   : > { %v3470_v40 = vmul.f32 0.0, %v3464_v15  ;;  %v3471_v24 = vmul.f32 %v3464_v15, %v8184_v55  ;;  %v3472_v2 = vmul.f32 %v3464_v15, %v8186_v56 }
0x191d   : > { %3482 = vrot.lane.b32.xlu1 %v3470_v40, %s6293_s18  ;;  %3486 = vrot.lane.b32.xlu0 %v3472_v2, %s6293_s18 }
0x191e   : > { %3484 = vrot.lane.b32.xlu2 %v3471_v24, %s6293_s18 }
0x1925   : > { %3488 = vrot.lane.b32.xlu1 %v3473_v22, %s6293_s18  ;;  %3492 = vrot.lane.b32.xlu0 %v3475_v45, %s6293_s18 }
0x1926   : > { %3490 = vrot.lane.b32.xlu2 %v3474_v10, %s6293_s18 }
0x192d   : > { %3511 = vperm.xlu1 %6119, %v8135_v29  }
0x192e   : > { %3515 = vperm.xlu2 %6120, %v8140_v20  }
0x1935   : > { %6122 = vset.pattern.permute.xlu1 %v9881_v37 }
0x1936   : > { %6127 = vset.pattern.permute.xlu2 %v9882_v6 }
0x1978   : > { %v8404_v62 = vpop.permute.xlu2 %3484 }
0x1980   : > { %v8408_v12 = vpop.permute.xlu2 %3490 }
0x1988   : > { %v3516_v43 = vpop.permute.xlu2 %3515 }
0x1989   : > { %v3521_v19 = vmul.f32 0.0, %v3516_v43  ;;  %v3522_v8 = vmul.f32 %v3516_v43, %v8252_v11  ;;  %v3523_v57 = vmul.f32 %v3516_v43, %v8254_v52  ;;  %v3450_v43 = vmul.f32 0.0, %v8386_v39 }
0x198f   : > { %v8402_v18 = vpop.permute.xlu1 %3482  ;;  %v3487_v53 = vpop.permute.xlu0 %3486 }
0x1997   : > { %v8406_v4 = vpop.permute.xlu1 %3488  ;;  %v8430_v5 = vpop.permute.xlu0 %3492 }
0x199f   : > { %v3512_v28 = vpop.permute.xlu1 %3511 }
0x19a0   : > { %v3518_v23 = vmul.f32 0.0, %v3512_v28  ;;  %v3519_v27 = vmul.f32 %v3512_v28, %v8184_v55  ;;  %v3520_v33 = vmul.f32 %v3512_v28, %v8186_v56 }
0x19a2   : > { %3532 = vrot.lane.b32.xlu1 %v3519_v27, %s6294_s19  ;;  %3530 = vrot.lane.b32.xlu0 %v3518_v23, %s6294_s19  ;;  %v3494_v27 = vsel %vm545_vm1, %v8402_v18, %v8404_v62  ;;  %v3452_v18 = vmul.f32 %v8386_v39, %v8186_v56 }
0x19a3   : > { %3534 = vrot.lane.b32.xlu2 %v3520_v33, %s6294_s19 }
0x19aa   : > { %3536 = vrot.lane.b32.xlu0 %v3521_v19, %s6294_s19  ;;  %3538 = vrot.lane.b32.xlu1 %v3522_v8, %s6294_s19  ;;  %v3504_v8 = vadd.f32 %v3494_v27, %v3450_v43 }
0x19ab   : > { %3540 = vrot.lane.b32.xlu2 %v3523_v57, %s6294_s19 }
0x19b2   : > { %3559 = vperm.xlu0 %6121, %v8135_v29   ;;  %3563 = vperm.xlu1 %6122, %v8140_v20  }
0x19ba   : > { %6123 = vset.pattern.permute.xlu0 %v9883_v32  ;;  %6124 = vset.pattern.permute.xlu1 %v9883_v32 }
0x19fd   : > { %v3535_v45 = vpop.permute.xlu2 %3534 }
0x1a05   : > { %v3541_v10 = vpop.permute.xlu2 %3540 }
0x1a14   : > { %v3533_v26 = vpop.permute.xlu1 %3532  ;;  %v3531_v1 = vpop.permute.xlu0 %3530 }
0x1a15   : > { %v3542_v19 = vsel %vm594_vm2, %v3531_v1, %v3533_v26  ;;  %v3506_v1 = vadd.f32 %v3487_v53, %v3452_v18 }
0x1a16   : > { %v3552_v57 = vadd.f32 %v3542_v19, %v3504_v8 }
0x1a1c   : > { %v8432_v21 = vpop.permute.xlu0 %3536  ;;  %v8434_v47 = vpop.permute.xlu1 %3538 }
0x1a1d   : > { %v3545_v43 = vsel %vm594_vm2, %v8434_v47, %v3541_v10 }
0x1a24   : > { %v3560_v59 = vpop.permute.xlu0 %3559  ;;  %v3564_v42 = vpop.permute.xlu1 %3563 }
0x1a25   : > { %v3566_v35 = vmul.f32 %v3560_v59, %v8184_v55  ;;  %v3567_v58 = vmul.f32 %v3560_v59, %v8186_v56  ;;  %v3569_v44 = vmul.f32 %v3564_v42, %v8252_v11  ;;  %v3568_v50 = vmul.f32 0.0, %v3560_v59 }
0x1a26   : > { %v3570_v16 = vmul.f32 %v3564_v42, %v8254_v52  ;;  %v3571_v13 = vmul.f32 0.0, %v3564_v42 }
0x1a27   : > { %3578 = vrot.lane.b32.xlu2 %v3566_v35, %s6295_s20  ;;  %3580 = vrot.lane.b32.xlu1 %v3567_v58, %s6295_s20  ;;  %v3495_v58 = vsel %vm545_vm1, %v8404_v62, %v3487_v53  ;;  %v3496_v62 = vsel %vm545_vm1, %v8406_v4, %v8408_v12  ;;  %v3497_v53 = vsel %vm545_vm1, %v8408_v12, %v8430_v5 }
0x1a28   : > { %3584 = vrot.lane.b32.xlu0 %v3569_v44, %s6295_s20  ;;  %v3451_v44 = vmul.f32 %v8386_v39, %v8184_v55  ;;  %v3454_v39 = vmul.f32 %v8428_v60, %v8252_v11  ;;  %v3455_v4 = vmul.f32 %v8428_v60, %v8254_v52 }
0x1a2a   : > { %v3508_v19 = vadd.f32 %v3497_v53, %v3454_v39  ;;  %v3509_v12 = vadd.f32 %v8430_v5, %v3455_v4  ;;  %v8544_v53 = vld [vmem:[%s9716_s3 + $0x28] sm:$0xff] }
0x1a2f   : > { %3582 = vrot.lane.b32.xlu2 %v3568_v50, %s6295_s20  ;;  %3586 = vrot.lane.b32.xlu1 %v3570_v16, %s6295_s20  ;;  %v3543_v50 = vsel %vm594_vm2, %v3533_v26, %v3535_v45  ;;  %v3505_v16 = vadd.f32 %v3495_v58, %v3451_v44 }
0x1a30   : > { %3607 = vperm.xlu0 %6123, %v8135_v29  }
0x1a37   : > { %3588 = vrot.lane.b32.xlu2 %v3571_v13, %s6295_s20  ;;  %3611 = vperm.xlu1 %6124, %v8140_v20  }
0x1a38   : > { %6125 = vset.pattern.permute.xlu0 %v9884_v3 }
0x1a3f   : > { %6126 = vset.pattern.permute.xlu1 %v9884_v3 }
0x1a81   : > { %v3579_v28 = vpop.permute.xlu2 %3578 }
0x1a82   : > { %v3600_v59 = vadd.f32 %v3579_v28, %v3552_v57 }
0x1a89   : > { %v3583_v23 = vpop.permute.xlu2 %3582 }
0x1a91   : > { %v3589_v33 = vpop.permute.xlu2 %3588 }
0x1a99   : > { %v3581_v61 = vpop.permute.xlu1 %3580 }
0x1a9a   : > { %v8450_v9 = vpop.permute.xlu0 %3584  ;;  %v3590_v13 = vsel %vm649_vm3, %v3579_v28, %v3581_v61 }
0x1aa1   : > { %v3587_v31 = vpop.permute.xlu1 %3586 }
0x1aa2   : > { %v3608_v30 = vpop.permute.xlu0 %3607  ;;  %v3593_v57 = vsel %vm649_vm3, %v3587_v31, %v3589_v33 }
0x1aa3   : > { %v3614_v51 = vmul.f32 %v3608_v30, %v8184_v55  ;;  %v3615_v15 = vmul.f32 %v3608_v30, %v8186_v56  ;;  %v3616_v0 = vmul.f32 0.0, %v3608_v30  ;;  %v3591_v30 = vsel %vm649_vm3, %v3581_v61, %v3583_v23 }
0x1aa4   : > { %v3544_v61 = vsel %vm594_vm2, %v8432_v21, %v8434_v47  ;;  %v3592_v21 = vsel %vm649_vm3, %v8450_v9, %v3587_v31  ;;  %v9886_v31 = vmov 17  }
0x1aa5   : > { %3628 = vrot.lane.b32.xlu1 %v3615_v15, %s6296_s23  ;;  %3626 = vrot.lane.b32.xlu2 %v3614_v51, %s6296_s23  ;;  %v3453_v51 = vmul.f32 0.0, %v8428_v60  ;;  %v3554_v15 = vadd.f32 %v3535_v45, %v3506_v1  ;;  %v3556_v60 = vadd.f32 %v3545_v43, %v3508_v19 }
0x1aa7   : > { %v3602_v26 = vadd.f32 %v3591_v30, %v3554_v15  ;;  %v3507_v28 = vadd.f32 %v3496_v62, %v3453_v51  ;;  %v3604_v58 = vadd.f32 %v3592_v21, %v3556_v60 }
0x1aa9   : > { %v3612_v40 = vpop.permute.xlu1 %3611  ;;  %v3555_v8 = vadd.f32 %v3544_v61, %v3507_v28  ;;  %v9887_v61 = vmov 8  }
0x1aaa   : > { %v3617_v24 = vmul.f32 %v3612_v40, %v8252_v11  ;;  %v3618_v2 = vmul.f32 %v3612_v40, %v8254_v52  ;;  %v3619_v22 = vmul.f32 0.0, %v3612_v40  ;;  %v3553_v40 = vadd.f32 %v3543_v50, %v3505_v16 }
0x1aac   : > { %3632 = vrot.lane.b32.xlu0 %v3617_v24, %s6296_s23 }
0x1aad   : > { %3630 = vrot.lane.b32.xlu2 %v3616_v0, %s6296_s23  ;;  %3634 = vrot.lane.b32.xlu1 %v3618_v2, %s6296_s23  ;;  %v3601_v2 = vadd.f32 %v3590_v13, %v3553_v40 }
0x1ab5   : > { %3636 = vrot.lane.b32.xlu2 %v3619_v22, %s6296_s23 }
0x1aff   : > { %v3627_v42 = vpop.permute.xlu2 %3626 }
0x1b00   : > { %v3648_v35 = vadd.f32 %v3627_v42, %v3600_v59  ;;  %v3557_v59 = vadd.f32 %v3541_v10, %v3509_v12 }
0x1b02   : > { %3666 = vrot.lane.b32.xlu0 %v3648_v35, %s6303_s25  ;;  %v3605_v47 = vadd.f32 %v3593_v57, %v3557_v59 }
0x1b07   : > { %v3631_v24 = vpop.permute.xlu2 %3630 }
0x1b0f   : > { %v3637_v44 = vpop.permute.xlu2 %3636 }
0x1b17   : > { %v3629_v0 = vpop.permute.xlu1 %3628 }
0x1b18   : > { %v3638_v22 = vsel %vm324_vm0, %v3627_v42, %v3629_v0  ;;  %v3639_v45 = vsel %vm324_vm0, %v3629_v0, %v3631_v24  ;;  %v3603_v42 = vadd.f32 %v8450_v9, %v3555_v8  ;;  %v9885_v9 = vmov 12   ;;  %v8538_v0 = vld [vmem:[%s9716_s3 + $0x20] sm:$0xff] }
0x1b19   : > { %v3649_v23 = vadd.f32 %v3638_v22, %v3601_v2  ;;  %v3650_v27 = vadd.f32 %v3639_v45, %v3602_v26  ;;  %v9888_v22 = vmov 22  }
0x1b1b   : > { %3668 = vrot.lane.b32.xlu1 %v3649_v23, %s6303_s25  ;;  %3670 = vrot.lane.b32.xlu2 %v3650_v27, %s6303_s25 }
0x1b1e   : > { %v3633_v35 = vpop.permute.xlu0 %3632 }
0x1b1f   : > { %v3651_v18 = vadd.f32 %v3633_v35, %v3603_v42  ;;  %v3635_v5 = vpop.permute.xlu1 %3634 }
0x1b20   : > { %v3640_v50 = vsel %vm324_vm0, %v3633_v35, %v3635_v5  ;;  %v3641_v16 = vsel %vm324_vm0, %v3635_v5, %v3637_v44 }
0x1b21   : > { %v3652_v1 = vadd.f32 %v3640_v50, %v3604_v58  ;;  %v3653_v13 = vadd.f32 %v3641_v16, %v3605_v47  ;;  %3672 = vrot.lane.b32.xlu0 %v3651_v18, %s6303_s25 }
0x1b23   : > { %3674 = vrot.lane.b32.xlu1 %v3652_v1, %s6303_s25  ;;  %3676 = vrot.lane.b32.xlu2 %v3653_v13, %s6303_s25 }
0x1b29   : > { %3695 = vperm.xlu0 %6125, %v8135_v29  }
0x1b2b   : > { %3699 = vperm.xlu1 %6126, %v8140_v20   ;;  %3715 = vperm.xlu2 %6127, %v8135_v29  }
0x1b31   : > { %6130 = vset.pattern.permute.xlu0 %v9885_v9 }
0x1b33   : > { %6128 = vset.pattern.permute.xlu1 %v9882_v6  ;;  %6129 = vset.pattern.permute.xlu2 %v9885_v9 }
0x1b34   : > { %3719 = vperm.xlu1 %6128, %v8140_v20  }
0x1b3c   : > { %6132 = vset.pattern.permute.xlu1 %v9886_v31 }
0x1b74   : > { %v8553_v28 = vpop.permute.xlu0 %3666 }
0x1b75   : > { %v8515_v10 = vpop.permute.xlu2 %3670 }
0x1b7d   : > { %v8517_v33 = vpop.permute.xlu2 %3676 }
0x1b85   : > { %v3716_v30 = vpop.permute.xlu2 %3715 }
0x1b86   : > { %v3722_v51 = vmul.f32 0.0, %v3716_v30  ;;  %v3723_v15 = vmul.f32 %v3716_v30, %v8184_v55  ;;  %v3724_v29 = vmul.f32 %v3716_v30, %v8186_v56 }
0x1b88   : > { %3738 = vrot.lane.b32.xlu1 %v3724_v29, %s6293_s18  ;;  %3736 = vrot.lane.b32.xlu0 %v3723_v15, %s6293_s18 }
0x1b89   : > { %3734 = vrot.lane.b32.xlu2 %v3722_v51, %s6293_s18  ;;  %v9889_v51 = vmov 3  }
0x1b8d   : > { %v8524_v40 = vpop.permute.xlu1 %3668 }
0x1b93   : > { %v8555_v4 = vpop.permute.xlu0 %3672 }
0x1b95   : > { %v8526_v20 = vpop.permute.xlu1 %3674 }
0x1b9b   : > { %v8559_v43 = vpop.permute.xlu0 %3695 }
0x1b9d   : > { %v8528_v24 = vpop.permute.xlu1 %3699 }
0x1ba6   : > { %v3720_v62 = vpop.permute.xlu1 %3719 }
0x1ba7   : > { %v3725_v39 = vmul.f32 0.0, %v3720_v62  ;;  %v3726_v2 = vmul.f32 %v3720_v62, %v8252_v11  ;;  %v3727_v26 = vmul.f32 %v3720_v62, %v8254_v52 }
0x1ba9   : > { %3740 = vrot.lane.b32.xlu2 %v3725_v39, %s6293_s18  ;;  %3744 = vrot.lane.b32.xlu1 %v3727_v26, %s6293_s18 }
0x1baa   : > { %3742 = vrot.lane.b32.xlu0 %v3726_v2, %s6293_s18 }
0x1bb1   : > { %3763 = vperm.xlu2 %6129, %v8538_v0  }
0x1bb2   : > { %3767 = vperm.xlu0 %6130, %v8544_v53  }
0x1bb9   : > { %6137 = vset.pattern.permute.xlu2 %v9887_v61 }
0x1bba   : > { %6131 = vset.pattern.permute.xlu0 %v9886_v31 }
0x1bbb   : > { %3801 = vperm.xlu0 %6131, %v8538_v0  }
0x1bc3   : > { %6133 = vset.pattern.permute.xlu0 %v9888_v22 }
0x1be3   : > { %v8551_v45 = vpop.permute.xlu2 %3734 }
0x1bfa   : > { %v8565_v8 = vpop.permute.xlu0 %3736  ;;  %v3739_v44 = vpop.permute.xlu1 %3738 }
0x1c03   : > { %v8557_v23 = vpop.permute.xlu2 %3740 }
0x1c0b   : > { %v3764_v27 = vpop.permute.xlu2 %3763 }
0x1c0c   : > { %v3770_v19 = vmul.f32 %v3764_v27, %v8184_v55  ;;  %v3771_v12 = vmul.f32 %v3764_v27, %v8186_v56 }
0x1c0e   : > { %3780 = vrot.lane.b32.xlu2 %v3771_v12, %s6294_s19  ;;  %3778 = vrot.lane.b32.xlu1 %v3770_v19, %s6294_s19 }
0x1c1b   : > { %v8580_v18 = vpop.permute.xlu1 %3744 }
0x1c1c   : > { %v8567_v21 = vpop.permute.xlu0 %3742 }
0x1c24   : > { %v3768_v57 = vpop.permute.xlu0 %3767 }
0x1c25   : > { %v3772_v59 = vmul.f32 %v3768_v57, %v8252_v11  ;;  %v3773_v60 = vmul.f32 %v3768_v57, %v8254_v52 }
0x1c27   : > { %3784 = vrot.lane.b32.xlu2 %v3773_v60, %s6294_s19  ;;  %3782 = vrot.lane.b32.xlu1 %v3772_v59, %s6294_s19 }
0x1c2d   : > { %v3802_v42 = vpop.permute.xlu0 %3801 }
0x1c2e   : > { %v3808_v35 = vmul.f32 %v3802_v42, %v8184_v55  ;;  %v3810_v58 = vmul.f32 0.0, %v3802_v42  ;;  %v3809_v47 = vmul.f32 %v3802_v42, %v8186_v56 }
0x1c2f   : > { %3805 = vperm.xlu1 %6132, %v8544_v53  }
0x1c30   : > { %3820 = vrot.lane.b32.xlu2 %v3808_v35, %s6295_s20 }
0x1c37   : > { %3822 = vrot.lane.b32.xlu1 %v3809_v47, %s6295_s20  ;;  %v3702_v47 = vmul.f32 0.0, %v8559_v43 }
0x1c38   : > { %3824 = vrot.lane.b32.xlu2 %v3810_v58, %s6295_s20  ;;  %6134 = vset.pattern.permute.xlu1 %v9888_v22 }
0x1c68   : > { %v3781_v60 = vpop.permute.xlu2 %3780 }
0x1c80   : > { %v3779_v5 = vpop.permute.xlu1 %3778 }
0x1c81   : > { %v3785_v42 = vpop.permute.xlu2 %3784 }
0x1c8a   : > { %v3821_v35 = vpop.permute.xlu2 %3820 }
0x1c92   : > { %v3825_v58 = vpop.permute.xlu2 %3824 }
0x1c99   : > { %v8582_v50 = vpop.permute.xlu1 %3782 }
0x1ca1   : > { %v3806_v16 = vpop.permute.xlu1 %3805 }
0x1ca2   : > { %v3811_v1 = vmul.f32 %v3806_v16, %v8252_v11  ;;  %v3812_v13 = vmul.f32 %v3806_v16, %v8254_v52  ;;  %v3813_v30 = vmul.f32 0.0, %v3806_v16  ;;  %v3746_v16 = vsel %vm545_vm1, %v8551_v45, %v8565_v8 }
0x1ca3   : > { %v3703_v45 = vmul.f32 %v8559_v43, %v8184_v55 }
0x1ca4   : > { %3826 = vrot.lane.b32.xlu0 %v3811_v1, %s6295_s20  ;;  %3828 = vrot.lane.b32.xlu1 %v3812_v13, %s6295_s20  ;;  %v3756_v13 = vadd.f32 %v3746_v16, %v3702_v47  ;;  %v3786_v47 = vsel %vm594_vm2, %v3779_v5, %v3781_v60 }
0x1ca5   : > { %3830 = vrot.lane.b32.xlu2 %v3813_v30, %s6295_s20 }
0x1ca6   : > { %v3794_v30 = vadd.f32 %v3779_v5, %v3756_v13 }
0x1ca9   : > { %v3823_v15 = vpop.permute.xlu1 %3822 }
0x1cac   : > { %3849 = vperm.xlu0 %6133, %v8538_v0   ;;  %3853 = vperm.xlu1 %6134, %v8544_v53  }
0x1cb4   : > { %6135 = vset.pattern.permute.xlu0 %v9889_v51  ;;  %6136 = vset.pattern.permute.xlu1 %v9889_v51 }
0x1cff   : > { %v3831_v1 = vpop.permute.xlu2 %3830 }
0x1d16   : > { %v8593_v29 = vpop.permute.xlu1 %3828  ;;  %v8595_v62 = vpop.permute.xlu0 %3826 }
0x1d1e   : > { %v3854_v39 = vpop.permute.xlu1 %3853  ;;  %v3850_v2 = vpop.permute.xlu0 %3849 }
0x1d1f   : > { %v3859_v26 = vmul.f32 %v3854_v39, %v8252_v11  ;;  %v3856_v27 = vmul.f32 %v3850_v2, %v8184_v55  ;;  %v3857_v19 = vmul.f32 %v3850_v2, %v8186_v56  ;;  %v3858_v12 = vmul.f32 0.0, %v3850_v2 }
0x1d20   : > { %v3860_v57 = vmul.f32 %v3854_v39, %v8254_v52  ;;  %v3861_v59 = vmul.f32 0.0, %v3854_v39  ;;  %v3842_v2 = vadd.f32 %v3821_v35, %v3794_v30  ;;  %v3748_v39 = vsel %vm545_vm1, %v8557_v23, %v8567_v21 }
0x1d21   : > { %3874 = vrot.lane.b32.xlu0 %v3859_v26, %s6296_s23  ;;  %3868 = vrot.lane.b32.xlu2 %v3856_v27, %s6296_s23  ;;  %v3832_v23 = vsel %vm649_vm3, %v3821_v35, %v3823_v15 }
0x1d22   : > { %3870 = vrot.lane.b32.xlu1 %v3857_v19, %s6296_s23  ;;  %v3705_v19 = vmul.f32 0.0, %v8528_v24 }
0x1d29   : > { %3872 = vrot.lane.b32.xlu2 %v3858_v12, %s6296_s23  ;;  %v3747_v12 = vsel %vm545_vm1, %v8565_v8, %v3739_v44 }
0x1d2a   : > { %3876 = vrot.lane.b32.xlu1 %v3860_v57, %s6296_s23  ;;  %v3704_v57 = vmul.f32 %v8559_v43, %v8186_v56  ;;  %v3757_v13 = vadd.f32 %v3747_v12, %v3703_v45 }
0x1d2c   : > { %v3758_v16 = vadd.f32 %v3739_v44, %v3704_v57  ;;  %v3795_v51 = vadd.f32 %v3786_v47, %v3757_v13  ;;  %v3749_v44 = vsel %vm545_vm1, %v8567_v21, %v8580_v18 }
0x1d2e   : > { %v3843_v9 = vadd.f32 %v3832_v23, %v3795_v51  ;;  %v3787_v51 = vsel %vm594_vm2, %v8582_v50, %v3785_v42 }
0x1d31   : > { %3878 = vrot.lane.b32.xlu2 %v3861_v59, %s6296_s23  ;;  %v3759_v59 = vadd.f32 %v3748_v39, %v3705_v19 }
0x1d33   : > { %v3797_v30 = vadd.f32 %v8582_v50, %v3759_v59 }
0x1d35   : > { %v3845_v8 = vadd.f32 %v8595_v62, %v3797_v30 }
0x1d7b   : > { %v3869_v26 = vpop.permute.xlu2 %3868 }
0x1d7c   : > { %v3890_v27 = vadd.f32 %v3869_v26, %v3842_v2  ;;  %v3833_v2 = vsel %vm649_vm3, %v3823_v15, %v3825_v58  ;;  %v3706_v15 = vmul.f32 %v8528_v24, %v8252_v11 }
0x1d7e   : > { %3902 = vrot.lane.b32.xlu0 %v3890_v27, %s6307_s26  ;;  %v3796_v27 = vadd.f32 %v3781_v60, %v3758_v16  ;;  %v3707_v60 = vmul.f32 %v8528_v24, %v8254_v52  ;;  %v3760_v21 = vadd.f32 %v3749_v44, %v3706_v15 }
0x1d80   : > { %v3844_v3 = vadd.f32 %v3833_v2, %v3796_v27  ;;  %v3761_v12 = vadd.f32 %v8580_v18, %v3707_v60  ;;  %v3798_v24 = vadd.f32 %v3787_v51, %v3760_v21 }
0x1d83   : > { %v3873_v22 = vpop.permute.xlu2 %3872 }
0x1d8b   : > { %v3879_v57 = vpop.permute.xlu2 %3878 }
0x1d93   : > { %v3875_v31 = vpop.permute.xlu0 %3874 }
0x1d94   : > { %v3871_v43 = vpop.permute.xlu1 %3870  ;;  %v3893_v39 = vadd.f32 %v3875_v31, %v3845_v8 }
0x1d95   : > { %v3880_v5 = vsel %vm324_vm0, %v3869_v26, %v3871_v43  ;;  %v3881_v35 = vsel %vm324_vm0, %v3871_v43, %v3873_v22  ;;  %v3835_v22 = vsel %vm649_vm3, %v8593_v29, %v3831_v1  ;;  %v9890_v1 = vmov 13  }
0x1d96   : > { %v3891_v58 = vadd.f32 %v3880_v5, %v3843_v9  ;;  %v3892_v19 = vadd.f32 %v3881_v35, %v3844_v3  ;;  %3908 = vrot.lane.b32.xlu0 %v3893_v39, %s6307_s26  ;;  %v3834_v9 = vsel %vm649_vm3, %v8595_v62, %v8593_v29  ;;  %v3799_v3 = vadd.f32 %v3785_v42, %v3761_v12 }
0x1d97   : > { %v3846_v45 = vadd.f32 %v3834_v9, %v3798_v24  ;;  %v9893_v35 = vmov 18  }
0x1d98   : > { %3904 = vrot.lane.b32.xlu1 %v3891_v58, %s6307_s26  ;;  %3906 = vrot.lane.b32.xlu2 %v3892_v19, %s6307_s26  ;;  %v3847_v26 = vadd.f32 %v3835_v22, %v3799_v3 }
0x1d9c   : > { %v3877_v50 = vpop.permute.xlu1 %3876 }
0x1d9d   : > { %v3882_v18 = vsel %vm324_vm0, %v3875_v31, %v3877_v50  ;;  %v3883_v59 = vsel %vm324_vm0, %v3877_v50, %v3879_v57  ;;  %v9891_v31 = vmov 9  }
0x1d9e   : > { %v3894_v47 = vadd.f32 %v3882_v18, %v3846_v45  ;;  %v3895_v16 = vadd.f32 %v3883_v59, %v3847_v26  ;;  %3927 = vperm.xlu0 %6135, %v8538_v0   ;;  %v9894_v18 = vmov 23  }
0x1da0   : > { %3912 = vrot.lane.b32.xlu2 %v3895_v16, %s6307_s26  ;;  %3910 = vrot.lane.b32.xlu1 %v3894_v47, %s6307_s26 }
0x1da6   : > { %6140 = vset.pattern.permute.xlu0 %v9890_v1 }
0x1da8   : > { %3947 = vperm.xlu2 %6137, %v8538_v0   ;;  %3931 = vperm.xlu1 %6136, %v8544_v53  }
0x1db0   : > { %6138 = vset.pattern.permute.xlu1 %v9887_v61  ;;  %6139 = vset.pattern.permute.xlu2 %v9890_v1 }
0x1db1   : > { %3951 = vperm.xlu1 %6138, %v8544_v53  }
0x1db9   : > { %6147 = vset.pattern.permute.xlu1 %v9891_v31 }
0x1df0   : > { %v8685_v60 = vpop.permute.xlu0 %3902 }
0x1df2   : > { %v8659_v29 = vpop.permute.xlu2 %3906 }
0x1dfa   : > { %v8661_v62 = vpop.permute.xlu2 %3912 }
0x1dfb   : > { %9892 = vst [vmem:[#allocation10_spill] sm:$0xff] %v8661_v62 }
0x1e02   : > { %v3948_v42 = vpop.permute.xlu2 %3947 }
0x1e03   : > { %v3954_v13 = vmul.f32 0.0, %v3948_v42  ;;  %v3955_v30 = vmul.f32 %v3948_v42, %v8184_v55  ;;  %v3956_v23 = vmul.f32 %v3948_v42, %v8186_v56 }
0x1e05   : > { %3968 = vrot.lane.b32.xlu0 %v3955_v30, %s6293_s18  ;;  %3970 = vrot.lane.b32.xlu1 %v3956_v23, %s6293_s18 }
0x1e06   : > { %3966 = vrot.lane.b32.xlu2 %v3954_v13, %s6293_s18 }
0x1e08   : > { %v8687_v58 = vpop.permute.xlu0 %3908 }
0x1e0a   : > { %v8668_v2 = vpop.permute.xlu1 %3904 }
0x1e10   : > { %v8691_v12 = vpop.permute.xlu0 %3927 }
0x1e12   : > { %v8670_v27 = vpop.permute.xlu1 %3910 }
0x1e1a   : > { %v8672_v8 = vpop.permute.xlu1 %3931 }
0x1e1b   : > { %v3937_v14 = vmul.f32 0.0, %v8672_v8 }
0x1e23   : > { %v3952_v43 = vpop.permute.xlu1 %3951 }
0x1e24   : > { %v3957_v39 = vmul.f32 0.0, %v3952_v43  ;;  %v3958_v44 = vmul.f32 %v3952_v43, %v8252_v11  ;;  %v3959_v5 = vmul.f32 %v3952_v43, %v8254_v52 }
0x1e26   : > { %3972 = vrot.lane.b32.xlu2 %v3957_v39, %s6293_s18  ;;  %3976 = vrot.lane.b32.xlu1 %v3959_v5, %s6293_s18 }
0x1e27   : > { %3974 = vrot.lane.b32.xlu0 %v3958_v44, %s6293_s18 }
0x1e2e   : > { %3995 = vperm.xlu2 %6139, %v8538_v0  }
0x1e2f   : > { %3999 = vperm.xlu0 %6140, %v8544_v53  }
0x1e36   : > { %6141 = vset.pattern.permute.xlu2 %v9893_v35 }
0x1e37   : > { %6142 = vset.pattern.permute.xlu0 %v9893_v35 }
0x1e60   : > { %v8683_v15 = vpop.permute.xlu2 %3966 }
0x1e77   : > { %v8697_v3 = vpop.permute.xlu0 %3968 }
0x1e80   : > { %v8689_v19 = vpop.permute.xlu2 %3972 }
0x1e88   : > { %v3996_v51 = vpop.permute.xlu2 %3995 }
0x1e89   : > { %v4002_v21 = vmul.f32 %v3996_v51, %v8184_v55  ;;  %v4003_v22 = vmul.f32 %v3996_v51, %v8186_v56  ;;  %v4004_v9 = vmul.f32 0.0, %v3996_v51  ;;  %v9895_v51 = vmov 4  }
0x1e8b   : > { %4016 = vrot.lane.b32.xlu2 %v4003_v22, %s6294_s19  ;;  %4014 = vrot.lane.b32.xlu1 %v4002_v21, %s6294_s19 }
0x1e93   : > { %4018 = vrot.lane.b32.xlu1 %v4004_v9, %s6294_s19 }
0x1e99   : > { %v8700_v24 = vpop.permute.xlu0 %3974 }
0x1ea1   : > { %v4000_v26 = vpop.permute.xlu0 %3999 }
0x1ea2   : > { %v4005_v45 = vmul.f32 %v4000_v26, %v8252_v11  ;;  %v4006_v57 = vmul.f32 %v4000_v26, %v8254_v52  ;;  %v4007_v50 = vmul.f32 0.0, %v4000_v26 }
0x1ea4   : > { %4024 = vrot.lane.b32.xlu1 %v4007_v50, %s6294_s19  ;;  %4022 = vrot.lane.b32.xlu0 %v4006_v57, %s6294_s19 }
0x1ea5   : > { %4020 = vrot.lane.b32.xlu2 %v4005_v45, %s6294_s19 }
0x1eac   : > { %4047 = vperm.xlu0 %6142, %v8544_v53  }
0x1ead   : > { %4043 = vperm.xlu2 %6141, %v8538_v0  }
0x1eb4   : > { %6144 = vset.pattern.permute.xlu0 %v9894_v18 }
0x1eb5   : > { %6143 = vset.pattern.permute.xlu2 %v9894_v18 }
0x1ee5   : > { %v8711_v59 = vpop.permute.xlu2 %4016 }
0x1eff   : > { %v8713_v47 = vpop.permute.xlu2 %4020 }
0x1f07   : > { %v4044_v16 = vpop.permute.xlu2 %4043 }
0x1f08   : > { %v4050_v42 = vmul.f32 %v4044_v16, %v8184_v55  ;;  %v4051_v13 = vmul.f32 %v4044_v16, %v8186_v56  ;;  %v4052_v30 = vmul.f32 0.0, %v4044_v16 }
0x1f0a   : > { %4064 = vrot.lane.b32.xlu2 %v4051_v13, %s6295_s20  ;;  %4062 = vrot.lane.b32.xlu1 %v4050_v42, %s6295_s20 }
0x1f12   : > { %4066 = vrot.lane.b32.xlu1 %v4052_v30, %s6295_s20 }
0x1f16   : > { %v8720_v23 = vpop.permute.xlu0 %4022 }
0x1f1e   : > { %v4048_v43 = vpop.permute.xlu0 %4047 }
0x1f1f   : > { %v4053_v39 = vmul.f32 %v4048_v43, %v8252_v11  ;;  %v4054_v44 = vmul.f32 %v4048_v43, %v8254_v52  ;;  %v4055_v5 = vmul.f32 0.0, %v4048_v43  ;;  %v3971_v43 = vpop.permute.xlu1 %3970 }
0x1f21   : > { %4070 = vrot.lane.b32.xlu0 %v4054_v44, %s6295_s20  ;;  %4068 = vrot.lane.b32.xlu2 %v4053_v39, %s6295_s20 }
0x1f22   : > { %4072 = vrot.lane.b32.xlu1 %v4055_v5, %s6295_s20 }
0x1f27   : > { %v3977_v39 = vpop.permute.xlu1 %3976 }
0x1f29   : > { %4095 = vperm.xlu0 %6144, %v8544_v53   ;;  %4091 = vperm.xlu2 %6143, %v8538_v0  }
0x1f2f   : > { %v4015_v44 = vpop.permute.xlu1 %4014 }
0x1f30   : > { %v4026_v18 = vsel %vm594_vm2, %v4015_v44, %v8711_v59 }
0x1f31   : > { %6145 = vset.pattern.permute.xlu2 %v9895_v51  ;;  %6146 = vset.pattern.permute.xlu0 %v9895_v51  ;;  %v3978_v51 = vsel %vm545_vm1, %v8683_v15, %v8697_v3  ;;  %v3980_v15 = vsel %vm545_vm1, %v8689_v19, %v8700_v24 }
0x1f37   : > { %v4019_v5 = vpop.permute.xlu1 %4018 }
0x1f64   : > { %v4065_v21 = vpop.permute.xlu2 %4064 }
0x1f7b   : > { %v8731_v22 = vpop.permute.xlu2 %4068 }
0x1f83   : > { %v4092_v9 = vpop.permute.xlu2 %4091 }
0x1f84   : > { %v4098_v26 = vmul.f32 %v4092_v9, %v8184_v55  ;;  %v4099_v45 = vmul.f32 %v4092_v9, %v8186_v56  ;;  %v4100_v57 = vmul.f32 0.0, %v4092_v9  ;;  %v4025_v9 = vpop.permute.xlu1 %4024 }
0x1f86   : > { %4112 = vrot.lane.b32.xlu2 %v4099_v45, %s6296_s23  ;;  %4110 = vrot.lane.b32.xlu1 %v4098_v26, %s6296_s23 }
0x1f8c   : > { %v4063_v26 = vpop.permute.xlu1 %4062 }
0x1f8d   : > { %v4074_v61 = vsel %vm649_vm3, %v4063_v26, %v4065_v21 }
0x1f8e   : > { %4114 = vrot.lane.b32.xlu1 %v4100_v57, %s6296_s23  ;;  %v3934_v57 = vmul.f32 0.0, %v8691_v12 }
0x1f93   : > { %v8738_v50 = vpop.permute.xlu0 %4070 }
0x1f94   : > { %v4067_v45 = vpop.permute.xlu1 %4066 }
0x1f9b   : > { %v4096_v16 = vpop.permute.xlu0 %4095 }
0x1f9c   : > { %v4101_v42 = vmul.f32 %v4096_v16, %v8252_v11  ;;  %v4102_v13 = vmul.f32 %v4096_v16, %v8254_v52  ;;  %v4103_v30 = vmul.f32 0.0, %v4096_v16  ;;  %v4073_v16 = vpop.permute.xlu1 %4072 }
0x1f9e   : > { %4118 = vrot.lane.b32.xlu0 %v4102_v13, %s6296_s23  ;;  %4116 = vrot.lane.b32.xlu2 %v4101_v42, %s6296_s23  ;;  %v3979_v13 = vsel %vm545_vm1, %v8697_v3, %v3971_v43  ;;  %v3935_v42 = vmul.f32 %v8691_v12, %v8184_v55 }
0x1f9f   : > { %4120 = vrot.lane.b32.xlu1 %v4103_v30, %s6296_s23  ;;  %v3988_v30 = vadd.f32 %v3978_v51, %v3934_v57 }
0x1fa0   : > { %v3989_v35 = vadd.f32 %v3979_v13, %v3935_v42  ;;  %v3936_v13 = vmul.f32 %v8691_v12, %v8186_v56  ;;  %v3991_v42 = vadd.f32 %v3980_v15, %v3937_v14 }
0x1fa1   : > { %v4036_v1 = vadd.f32 %v4015_v44, %v3988_v30 }
0x1fa2   : > { %v4037_v32 = vadd.f32 %v4026_v18, %v3989_v35  ;;  %v4027_v35 = vsel %vm594_vm2, %v8711_v59, %v4019_v5  ;;  %v3981_v59 = vsel %vm545_vm1, %v8700_v24, %v3977_v39  ;;  %v4028_v5 = vsel %vm594_vm2, %v8713_v47, %v8720_v23 }
0x1fa3   : > { %v4084_v37 = vadd.f32 %v4063_v26, %v4036_v1  ;;  %v3990_v1 = vadd.f32 %v3971_v43, %v3936_v13  ;;  %v3939_v43 = vmul.f32 %v8672_v8, %v8254_v52  ;;  %v4076_v24 = vsel %vm649_vm3, %v8731_v22, %v8738_v50 }
0x1fa4   : > { %v4085_v38 = vadd.f32 %v4074_v61, %v4037_v32  ;;  %v4039_v32 = vadd.f32 %v8713_v47, %v3991_v42  ;;  %v4075_v61 = vsel %vm649_vm3, %v4065_v21, %v4067_v45  ;;  %v3938_v21 = vmul.f32 %v8672_v8, %v8252_v11 }
0x1fa5   : > { %v4038_v19 = vadd.f32 %v4027_v35, %v3990_v1  ;;  %v4029_v45 = vsel %vm594_vm2, %v8720_v23, %v4025_v9  ;;  %v3993_v15 = vadd.f32 %v3977_v39, %v3939_v43 }
0x1fa7   : > { %v4086_v26 = vadd.f32 %v4075_v61, %v4038_v19  ;;  %v4041_v8 = vadd.f32 %v4029_v45, %v3993_v15 }
0x1fe0   : > { %v4113_v6 = vpop.permute.xlu2 %4112 }
0x1ff8   : > { %v4111_v3 = vpop.permute.xlu1 %4110  ;;  %v4117_v18 = vpop.permute.xlu2 %4116 }
0x1ff9   : > { %v4122_v51 = vsel %vm324_vm0, %v4111_v3, %v4113_v6  ;;  %v4132_v57 = vadd.f32 %v4111_v3, %v4084_v37  ;;  %v4087_v37 = vadd.f32 %v8731_v22, %v4039_v32  ;;  %v9896_v22 = vmov 14  }
0x1ffa   : > { %v4133_v44 = vadd.f32 %v4122_v51, %v4085_v38  ;;  %v4077_v51 = vsel %vm649_vm3, %v8738_v50, %v4073_v16  ;;  %v9897_v50 = vmov 19  }
0x1ffb   : > { %4150 = vrot.lane.b32.xlu2 %v4132_v57, %s6314_s8  ;;  %v4135_v38 = vadd.f32 %v4117_v18, %v4087_v37 }
0x1ffc   : > { %4152 = vrot.lane.b32.xlu0 %v4133_v44, %s6314_s8  ;;  %v4089_v44 = vadd.f32 %v4077_v51, %v4041_v8 }
0x2000   : > { %v4115_v12 = vpop.permute.xlu1 %4114 }
0x2001   : > { %v4123_v14 = vsel %vm324_vm0, %v4113_v6, %v4115_v12  ;;  %v3992_v6 = vadd.f32 %v3981_v59, %v3938_v21 }
0x2002   : > { %v4134_v30 = vadd.f32 %v4123_v14, %v4086_v26 }
0x2003   : > { %4156 = vrot.lane.b32.xlu2 %v4135_v38, %s6314_s8  ;;  %v4040_v3 = vadd.f32 %v4028_v5, %v3992_v6 }
0x2004   : > { %4154 = vrot.lane.b32.xlu1 %v4134_v30, %s6314_s8 }
0x2005   : > { %v4088_v57 = vadd.f32 %v4076_v24, %v4040_v3 }
0x200b   : > { %4179 = vperm.xlu2 %6145, %v8538_v0  }
0x2010   : > { %v4119_v13 = vpop.permute.xlu0 %4118 }
0x2011   : > { %v4124_v47 = vsel %vm324_vm0, %v4117_v18, %v4119_v13  ;;  %v4121_v42 = vpop.permute.xlu1 %4120 }
0x2012   : > { %v4136_v35 = vadd.f32 %v4124_v47, %v4088_v57  ;;  %v4125_v1 = vsel %vm324_vm0, %v4119_v13, %v4121_v42  ;;  %v9898_v13 = vmov 24  }
0x2013   : > { %v4137_v23 = vadd.f32 %v4125_v1, %v4089_v44  ;;  %6148 = vset.pattern.permute.xlu2 %v9891_v31 }
0x2014   : > { %4203 = vperm.xlu2 %6148, %v8544_v53   ;;  %4158 = vrot.lane.b32.xlu0 %v4136_v35, %s6314_s8 }
0x2015   : > { %4160 = vrot.lane.b32.xlu1 %v4137_v23, %s6314_s8 }
0x201c   : > { %4183 = vperm.xlu0 %6146, %v8544_v53   ;;  %6150 = vset.pattern.permute.xlu2 %v9896_v22 }
0x201d   : > { %4199 = vperm.xlu1 %6147, %v8538_v0  }
0x2024   : > { %6151 = vset.pattern.permute.xlu0 %v9897_v50 }
0x2025   : > { %6149 = vset.pattern.permute.xlu1 %v9896_v22 }
0x2055   : > { %v8801_v39 = vpop.permute.xlu2 %4150 }
0x205d   : > { %v8805_v16 = vpop.permute.xlu2 %4156 }
0x2065   : > { %v8809_v61 = vpop.permute.xlu2 %4179 }
0x206e   : > { %v4204_v12 = vpop.permute.xlu2 %4203  ;;  %v8847_v44 = vpop.permute.xlu0 %4152 }
0x206f   : > { %v4209_v38 = vmul.f32 0.0, %v4204_v12  ;;  %v4211_v14 = vmul.f32 %v4204_v12, %v8254_v52  ;;  %v4210_v30 = vmul.f32 %v4204_v12, %v8252_v11 }
0x2076   : > { %v8803_v9 = vpop.permute.xlu1 %4154 }
0x2086   : > { %v8849_v47 = vpop.permute.xlu0 %4158 }
0x2087   : > { %v8807_v32 = vpop.permute.xlu1 %4160 }
0x208e   : > { %v8851_v42 = vpop.permute.xlu0 %4183 }
0x208f   : > { %v4200_v19 = vpop.permute.xlu1 %4199 }
0x2090   : > { %v4206_v18 = vmul.f32 0.0, %v4200_v19  ;;  %v4207_v37 = vmul.f32 %v4200_v19, %v8184_v55  ;;  %v4208_v26 = vmul.f32 %v4200_v19, %v8186_v56 }
0x2092   : > { %4218 = vrot.lane.b32.xlu1 %v4206_v18, %s6293_s18  ;;  %4222 = vrot.lane.b32.xlu0 %v4208_v26, %s6293_s18 }
0x2093   : > { %4220 = vrot.lane.b32.xlu2 %v4207_v37, %s6293_s18 }
0x209a   : > { %4224 = vrot.lane.b32.xlu1 %v4209_v38, %s6293_s18  ;;  %4228 = vrot.lane.b32.xlu0 %v4211_v14, %s6293_s18 }
0x209b   : > { %4226 = vrot.lane.b32.xlu2 %v4210_v30, %s6293_s18 }
0x20a2   : > { %4247 = vperm.xlu1 %6149, %v8538_v0  }
0x20a3   : > { %4251 = vperm.xlu2 %6150, %v8544_v53  }
0x20aa   : > { %6152 = vset.pattern.permute.xlu1 %v9897_v50 }
0x20ab   : > { %6157 = vset.pattern.permute.xlu2 %v9842_v34 }
0x20ed   : > { %v8827_v21 = vpop.permute.xlu2 %4220 }
0x20f5   : > { %v8831_v5 = vpop.permute.xlu2 %4226 }
0x20fd   : > { %v4252_v3 = vpop.permute.xlu2 %4251 }
0x20fe   : > { %v4259_v51 = vmul.f32 0.0, %v4252_v3  ;;  %v4257_v8 = vmul.f32 %v4252_v3, %v8252_v11  ;;  %v4258_v57 = vmul.f32 %v4252_v3, %v8254_v52 }
0x2104   : > { %v8825_v59 = vpop.permute.xlu1 %4218  ;;  %v4223_v35 = vpop.permute.xlu0 %4222 }
0x210c   : > { %v8829_v43 = vpop.permute.xlu1 %4224  ;;  %v8853_v1 = vpop.permute.xlu0 %4228 }
0x2114   : > { %v4248_v6 = vpop.permute.xlu1 %4247 }
0x2115   : > { %v4254_v45 = vmul.f32 %v4248_v6, %v8184_v55  ;;  %v4255_v15 = vmul.f32 %v4248_v6, %v8186_v56  ;;  %v4256_v24 = vmul.f32 0.0, %v4248_v6 }
0x2117   : > { %4268 = vrot.lane.b32.xlu1 %v4255_v15, %s6294_s19  ;;  %4266 = vrot.lane.b32.xlu0 %v4254_v45, %s6294_s19 }
0x2118   : > { %4270 = vrot.lane.b32.xlu2 %v4256_v24, %s6294_s19  ;;  %v9899_v24 = vmov 0  }
0x211f   : > { %4274 = vrot.lane.b32.xlu1 %v4258_v57, %s6294_s19  ;;  %4272 = vrot.lane.b32.xlu0 %v4257_v8, %s6294_s19 }
0x2120   : > { %4276 = vrot.lane.b32.xlu2 %v4259_v51, %s6294_s19 }
0x2127   : > { %4299 = vperm.xlu1 %6152, %v8544_v53   ;;  %4295 = vperm.xlu0 %6151, %v8538_v0  }
0x212f   : > { %6153 = vset.pattern.permute.xlu0 %v9898_v13  ;;  %6154 = vset.pattern.permute.xlu1 %v9898_v13 }
0x2189   : > { %v4269_v23 = vpop.permute.xlu1 %4268  ;;  %v4267_v19 = vpop.permute.xlu0 %4266 }
0x218a   : > { %v4278_v31 = vsel %vm594_vm2, %v4267_v19, %v4269_v23 }
0x2191   : > { %v8855_v18 = vpop.permute.xlu1 %4274  ;;  %v8857_v37 = vpop.permute.xlu0 %4272 }
0x2199   : > { %v4300_v26 = vpop.permute.xlu1 %4299  ;;  %v4296_v12 = vpop.permute.xlu0 %4295 }
0x219a   : > { %v4305_v38 = vmul.f32 %v4300_v26, %v8252_v11  ;;  %v4302_v14 = vmul.f32 %v4296_v12, %v8184_v55  ;;  %v4303_v30 = vmul.f32 %v4296_v12, %v8186_v56  ;;  %v4304_v6 = vmul.f32 0.0, %v4296_v12 }
0x219b   : > { %v4306_v45 = vmul.f32 %v4300_v26, %v8254_v52  ;;  %v4307_v15 = vmul.f32 0.0, %v4300_v26 }
0x219c   : > { %4320 = vrot.lane.b32.xlu0 %v4305_v38, %s6295_s20  ;;  %4314 = vrot.lane.b32.xlu2 %v4302_v14, %s6295_s20 }
0x219d   : > { %4316 = vrot.lane.b32.xlu1 %v4303_v30, %s6295_s20 }
0x21a4   : > { %4343 = vperm.xlu0 %6153, %v8538_v0   ;;  %4318 = vrot.lane.b32.xlu2 %v4304_v6, %s6295_s20  ;;  %v4271_v6 = vpop.permute.xlu2 %4270 }
0x21a5   : > { %4322 = vrot.lane.b32.xlu1 %v4306_v45, %s6295_s20 }
0x21ac   : > { %4324 = vrot.lane.b32.xlu2 %v4307_v15, %s6295_s20  ;;  %6155 = vset.pattern.permute.xlu0 %v9899_v24  ;;  %v4277_v45 = vpop.permute.xlu2 %4276 }
0x21ad   : > { %4347 = vperm.xlu1 %6154, %v8544_v53  }
0x21b5   : > { %6156 = vset.pattern.permute.xlu1 %v9899_v24 }
0x21f6   : > { %v4315_v15 = vpop.permute.xlu2 %4314 }
0x21fe   : > { %v4319_v24 = vpop.permute.xlu2 %4318 }
0x220e   : > { %v8873_v3 = vpop.permute.xlu0 %4320 }
0x220f   : > { %v4317_v51 = vpop.permute.xlu1 %4316 }
0x2216   : > { %v4344_v8 = vpop.permute.xlu0 %4343 }
0x2217   : > { %v4323_v57 = vpop.permute.xlu1 %4322  ;;  %v4350_v0 = vmul.f32 %v4344_v8, %v8184_v55  ;;  %v4351_v12 = vmul.f32 %v4344_v8, %v8186_v56  ;;  %v4352_v26 = vmul.f32 0.0, %v4344_v8  ;;  %v4230_v8 = vsel %vm545_vm1, %v8825_v59, %v8827_v21 }
0x2218   : > { %v4279_v59 = vsel %vm594_vm2, %v4269_v23, %v4271_v6  ;;  %v4233_v23 = vsel %vm545_vm1, %v8831_v5, %v8853_v1  ;;  %v4191_v6 = vmul.f32 %v8851_v42, %v8254_v52 }
0x2219   : > { %4364 = vrot.lane.b32.xlu1 %v4351_v12, %s6296_s23  ;;  %4362 = vrot.lane.b32.xlu2 %v4350_v0, %s6296_s23  ;;  %v4325_v0 = vpop.permute.xlu2 %4324  ;;  %v4186_v12 = vmul.f32 0.0, %v8809_v61 }
0x221b   : > { %v4240_v13 = vadd.f32 %v4230_v8, %v4186_v12  ;;  %v4326_v12 = vsel %vm649_vm3, %v4315_v15, %v4317_v51 }
0x221f   : > { %v4348_v38 = vpop.permute.xlu1 %4347 }
0x2220   : > { %v4353_v14 = vmul.f32 %v4348_v38, %v8252_v11  ;;  %v4354_v53 = vmul.f32 %v4348_v38, %v8254_v52  ;;  %v4355_v30 = vmul.f32 0.0, %v4348_v38  ;;  %v4231_v38 = vsel %vm545_vm1, %v8827_v21, %v4223_v35 }
0x2221   : > { %4366 = vrot.lane.b32.xlu2 %v4352_v26, %s6296_s23  ;;  %v4288_v26 = vadd.f32 %v4267_v19, %v4240_v13  ;;  %v4189_v21 = vmul.f32 0.0, %v8851_v42  ;;  %v4328_v52 = vsel %vm649_vm3, %v8873_v3, %v4323_v57 }
0x2222   : > { %4368 = vrot.lane.b32.xlu0 %v4353_v14, %s6296_s23  ;;  %4370 = vrot.lane.b32.xlu1 %v4354_v53, %s6296_s23  ;;  %v4187_v53 = vmul.f32 %v8809_v61, %v8184_v55 }
0x2223   : > { %v4336_v50 = vadd.f32 %v4315_v15, %v4288_v26 }
0x2224   : > { %v4241_v8 = vadd.f32 %v4231_v38, %v4187_v53 }
0x2226   : > { %v4289_v26 = vadd.f32 %v4278_v31, %v4241_v8 }
0x2228   : > { %v4337_v17 = vadd.f32 %v4326_v12, %v4289_v26  ;;  %v3402_v12 = vld [vmem:[%s9718_s5] ss:$8 sm:$0x3] }
0x2229   : > { %4372 = vrot.lane.b32.xlu2 %v4355_v30, %s6296_s23  ;;  %v4188_v30 = vmul.f32 %v8809_v61, %v8186_v56  ;;  %v4232_v56 = vsel %vm545_vm1, %v8829_v43, %v8831_v5  ;;  %v4281_v43 = vsel %vm594_vm2, %v8855_v18, %v4277_v45  ;;  %v4329_v5 = vsel %vm649_vm3, %v4323_v57, %v4325_v0  ;;  %v8939_v57 = vld [vmem:[%s9716_s3 + $0x38] sm:$0xff] }
0x222a   : > { %v4243_v15 = vadd.f32 %v4232_v56, %v4189_v21  ;;  %v425_v21 = vpop.f32.mrf.mxu3  ;;  %v9900_v56 = vld [vmem:[#allocation9_spill] sm:$0xff] }
0x222b   : > { %v4242_v13 = vadd.f32 %v4223_v35, %v4188_v30 }
0x2273   : > { %v4363_v14 = vpop.permute.xlu2 %4362 }
0x2274   : > { %v4384_v22 = vadd.f32 %v4363_v14, %v4336_v50  ;;  %v4327_v50 = vsel %vm649_vm3, %v4317_v51, %v4319_v24  ;;  %v4190_v51 = vmul.f32 %v8851_v42, %v8252_v11  ;;  %v4291_v11 = vadd.f32 %v8857_v37, %v4243_v15 }
0x2275   : > { %v3679_v15 = vsel %vm992_vm5, %v8524_v40, %v8515_v10 }
0x2276   : > { %4402 = vrot.lane.b32.xlu0 %v4384_v22, %s6318_s9  ;;  %v4290_v22 = vadd.f32 %v4279_v59, %v4242_v13  ;;  %v4339_v24 = vadd.f32 %v8873_v3, %v4291_v11  ;;  %v8934_v3 = vld [vmem:[%s9716_s3 + $0x30] sm:$0xff] }
0x2278   : > { %v4338_v55 = vadd.f32 %v4327_v50, %v4290_v22  ;;  %v3404_v50 = vperm.slane %v3402_v12, 0  ;;  %v8955_v22 = vld [vmem:[%s9718_s5 + $0x1] ss:$8 sm:$0x3] }
0x227b   : > { %v4367_v36 = vpop.permute.xlu2 %4366 }
0x228b   : > { %v4365_v62 = vpop.permute.xlu1 %4364 }
0x228c   : > { %v4374_v61 = vsel %vm324_vm0, %v4363_v14, %v4365_v62  ;;  %v4375_v35 = vsel %vm324_vm0, %v4365_v62, %v4367_v36  ;;  %v4280_v36 = vsel %vm594_vm2, %v8857_v37, %v8855_v18  ;;  %v4245_v62 = vadd.f32 %v8853_v1, %v4191_v6  ;;  %v4373_v14 = vpop.permute.xlu2 %4372  ;;  %v3170_v6 = vld [vmem:[%s9717_s4 + $0x40] sm:$0xff] }
0x228d   : > { %v4385_v19 = vadd.f32 %v4374_v61, %v4337_v17  ;;  %v4386_v31 = vadd.f32 %v4375_v35, %v4338_v55  ;;  %v4244_v17 = vadd.f32 %v4233_v23, %v4190_v51  ;;  %v3405_v55 = vperm.slane %v3402_v12, 1 }
0x228e   : > { %v4293_v42 = vadd.f32 %v4281_v43, %v4245_v62  ;;  %v426_v35 = vadd.f32 %v425_v21, %v9900_v56  ;;  %v3427_v23 = vsel %vm738_vm4, %v8424_v49, %v8380_v63  ;;  %v3657_v51 = vperm.slane %v8955_v22, 1  ;;  %v8981_v63 = vld [vmem:[%s9718_s5 + $0x3] ss:$8 sm:$0x3] }
0x228f   : > { %4404 = vrot.lane.b32.xlu1 %v4385_v19, %s6318_s9  ;;  %4406 = vrot.lane.b32.xlu2 %v4386_v31, %s6318_s9  ;;  %v4292_v45 = vadd.f32 %v4280_v36, %v4244_v17  ;;  %v3656_v19 = vperm.slane %v8955_v22, 0 }
0x2290   : > { %v4341_v38 = vadd.f32 %v4329_v5, %v4293_v42  ;;  %v8985_v36 = vmax.f32 %v426_v35, 0.0  ;;  %v3687_v11 = vmul.f32 %v3679_v15, %v3657_v51  ;;  %v3916_v15 = vsel %vm1229_vm7, %v8687_v58, %v8670_v27 }
0x2291   : > { %v4340_v18 = vadd.f32 %v4328_v52, %v4292_v45  ;;  %v4140_v52 = vperm.slane %v8981_v63, 0 }
0x2294   : > { %v4371_v53 = vpop.permute.xlu1 %4370  ;;  %v4369_v30 = vpop.permute.xlu0 %4368 }
0x2295   : > { %v4377_v59 = vsel %vm324_vm0, %v4371_v53, %v4373_v14  ;;  %v4376_v1 = vsel %vm324_vm0, %v4369_v30, %v4371_v53  ;;  %v4387_v8 = vadd.f32 %v4369_v30, %v4339_v24  ;;  %v4162_v14 = vsel %vm1479_vm6, %v8801_v39, %v8847_v44 }
0x2296   : > { %v4389_v37 = vadd.f32 %v4377_v59, %v4341_v38  ;;  %v4388_v13 = vadd.f32 %v4376_v1, %v4340_v18  ;;  %v4163_v18 = vsel %vm1479_vm6, %v8847_v44, %v8803_v9  ;;  %v5938_v38 = vld [vmem:[%s9718_s5 + $0x4] ss:$8 sm:$0x3]  ;;  %v3428_v53 = vsel %vm738_vm4, %v8382_v7, %v8426_v54 }
0x2297   : > { %4408 = vrot.lane.b32.xlu0 %v4387_v8, %s6318_s9  ;;  %v3429_v30 = vsel %vm738_vm4, %v8426_v54, %v8384_v48  ;;  %v3680_v39 = vsel %vm992_vm5, %v8555_v4, %v8526_v20  ;;  %v3914_v44 = vsel %vm1229_vm7, %v8685_v60, %v8668_v2  ;;  %v3915_v7 = vsel %vm1229_vm7, %v8668_v2, %v8659_v29  ;;  %v3172_v4 = vld [vmem:[%s9717_s4 + $0x50] sm:$0xff] }
0x2298   : > { %4410 = vrot.lane.b32.xlu1 %v4388_v13, %s6318_s9  ;;  %4412 = vrot.lane.b32.xlu2 %v4389_v37, %s6318_s9  ;;  %v4170_v48 = vmul.f32 %v4162_v14, %v4140_v52  ;;  %v4392_v1 = vperm.slane %v5938_v38, 0  ;;  %v4393_v8 = vperm.slane %v5938_v38, 1  ;;  %v3436_v37 = vmul.f32 %v3428_v53, %v3404_v50 }
0x2299   : > { %v3681_v13 = vsel %vm992_vm5, %v8526_v20, %v8517_v33  ;;  %v3437_v29 = vmul.f32 %v3429_v30, %v3405_v55  ;;  %v3688_v2 = vmul.f32 %v3680_v39, %v3656_v19  ;;  %v4164_v20 = vsel %vm1479_vm6, %v8805_v16, %v8849_v47 }
0x229a   : > { %v3689_v33 = vmul.f32 %v3681_v13, %v3657_v51 }
0x229f   : > { %4524 = vperm.xlu0 %6155, %v8934_v3  }
0x22a0   : > { %4529 = vperm.xlu1 %6156, %v8939_v57   ;;  %4545 = vperm.xlu2 %6157, %v8934_v3  }
0x22a7   : > { %6160 = vset.pattern.permute.xlu0 %v9844_v46 }
0x22a8   : > { %6158 = vset.pattern.permute.xlu1 %v9842_v34  ;;  %6159 = vset.pattern.permute.xlu2 %v9844_v46  ;;  %v3426_v34 = vsel %vm738_vm4, %v8378_v25, %v8424_v49  ;;  %v384_v46 = vpop.f32.mrf.mxu2  ;;  %v3678_v25 = vsel %vm992_vm5, %v8553_v28, %v8524_v40  ;;  %v3435_v49 = vmul.f32 %v3427_v23, %v3405_v55  ;;  %v3171_v28 = vld [vmem:[%s9717_s4 + $0x48] sm:$0xff]  ;;  %v4141_v40 = vperm.slane %v8981_v63, 1  ;;  %v9903_v63 = vld [vmem:[#allocation10_spill] sm:$0xff] }
0x22a9   : > { %4549 = vperm.xlu1 %6158, %v8939_v57   ;;  %v385_v61 = vadd.f32 %v384_v46, %v9900_v56  ;;  %v3434_v31 = vmul.f32 %v3426_v34, %v3404_v50  ;;  %v3686_v17 = vmul.f32 %v3678_v25, %v3656_v19  ;;  %v3173_v50 = vld [vmem:[%s9717_s4 + $0x58] sm:$0xff]  ;;  %v4165_v55 = vsel %vm1479_vm6, %v8849_v47, %v8807_v32 }
0x22aa   : > { %v3439_v24 = vadd.f32 %v3435_v49, %v3171_v28  ;;  %v4171_v54 = vmul.f32 %v4163_v18, %v4141_v40  ;;  %v3441_v25 = vadd.f32 %v3437_v29, %v3173_v50  ;;  %v3917_v51 = vsel %vm1229_vm7, %v8670_v27, %v9903_v63 }
0x22ab   : > { %v8983_v43 = vmax.f32 %v385_v61, 0.0  ;;  %v3438_v62 = vadd.f32 %v3434_v31, %v3170_v6  ;;  %v3440_v31 = vadd.f32 %v3436_v37, %v3172_v4  ;;  %v4172_v49 = vmul.f32 %v4164_v20, %v4140_v52  ;;  %v428_v37 = vpop.f32.mrf.mxu3 }
0x22ac   : > { %v3691_v9 = vadd.f32 %v3687_v11, %v3439_v24  ;;  %v3693_v16 = vadd.f32 %v3689_v33, %v3441_v25 }
0x22ad   : > { %v3690_v59 = vadd.f32 %v3686_v17, %v3438_v62  ;;  %v3692_v6 = vadd.f32 %v3688_v2, %v3440_v31  ;;  %v4173_v62 = vmul.f32 %v4165_v55, %v4141_v40 }
0x22ae   : > { %v3923_v12 = vadd.f32 %v3915_v7, %v3691_v9 }
0x22af   : > { %v3922_v60 = vadd.f32 %v3914_v44, %v3690_v59  ;;  %v3924_v11 = vadd.f32 %v3916_v15, %v3692_v6 }
0x22b0   : > { %v4175_v61 = vadd.f32 %v4171_v54, %v3923_v12  ;;  %v387_v7 = vpop.f32.mrf.mxu2 }
0x22b1   : > { %6167 = vset.pattern.permute.xlu1 %v9845_v41  ;;  %v4174_v56 = vadd.f32 %v4170_v48, %v3922_v60 }
0x22e8   : > { %v4403_v22 = vpop.permute.xlu0 %4402 }
0x22e9   : > { %v4407_v0 = vpop.permute.xlu2 %4406 }
0x22f2   : > { %v8957_v26 = vpop.permute.xlu2 %4412 }
0x22fa   : > { %v4546_v10 = vpop.permute.xlu2 %4545 }
0x22fb   : > { %v4552_v5 = vmul.f32 0.0, %v4546_v10  ;;  %v4553_v42 = vmul.f32 %v4546_v10, %v8983_v43  ;;  %v4554_v45 = vmul.f32 %v4546_v10, %v8985_v36 }
0x22fd   : > { %4568 = vrot.lane.b32.xlu1 %v4554_v45, %s6293_s18  ;;  %4566 = vrot.lane.b32.xlu0 %v4553_v42, %s6293_s18  ;;  %v4176_v45 = vadd.f32 %v4172_v49, %v3924_v11 }
0x22fe   : > { %4564 = vrot.lane.b32.xlu2 %v4552_v5, %s6293_s18  ;;  %v3925_v5 = vadd.f32 %v3917_v51, %v3693_v16 }
0x2300   : > { %v4177_v14 = vadd.f32 %v4173_v62, %v3925_v5 }
0x2301   : > { %v4405_v34 = vpop.permute.xlu1 %4404 }
0x2302   : > { %v4414_v46 = vsel %vm9901_vm12, %v4403_v22, %v4405_v34  ;;  %v4415_v21 = vsel %vm9902_vm13, %v4405_v34, %v4407_v0 }
0x2303   : > { %v4422_v35 = vmul.f32 %v4414_v46, %v4392_v1  ;;  %v4423_v23 = vmul.f32 %v4415_v21, %v4393_v8 }
0x2305   : > { %v4426_v19 = vadd.f32 %v4422_v35, %v4174_v56  ;;  %v4427_v0 = vadd.f32 %v4423_v23, %v4175_v61 }
0x2307   : > { %v4430_v28 = vsub.f32 0.0, %v4426_v19  ;;  %v4431_v17 = vsub.f32 0.0, %v4427_v0 }
0x2309   : > { %v4434_v10 = vmul.f32 1.442695, %v4430_v28  ;;  %v4436_v32 = vmul.f32 1.442695, %v4431_v17  ;;  %v4409_v47 = vpop.permute.xlu0 %4408 }
0x230a   : > { %v4411_v42 = vpop.permute.xlu1 %4410 }
0x230b   : > { %6237 = vpow2.f32 %v4434_v10  ;;  %v4416_v24 = vsel %vm9904_vm14, %v4409_v47, %v4411_v42  ;;  %v4417_v58 = vsel %vm9905_vm15, %v4411_v42, %v8957_v26  ;;  %v9906_v26 = vld [vmem:[#allocation8_spill] sm:$0xff] }
0x230c   : > { %6239 = vpow2.f32 %v4436_v32  ;;  %v4424_v27 = vmul.f32 %v4416_v24, %v4392_v1  ;;  %v4425_v52 = vmul.f32 %v4417_v58, %v4393_v8  ;;  %v388_v4 = vadd.f32 %v387_v7, %v9906_v26 }
0x230d   : > { %v429_v1 = vadd.f32 %v428_v37, %v9906_v26 }
0x230e   : > { %v4428_v18 = vadd.f32 %v4424_v27, %v4176_v45  ;;  %v4429_v38 = vadd.f32 %v4425_v52, %v4177_v14  ;;  %v9051_v13 = vmax.f32 %v388_v4, 0.0 }
0x230f   : > { %v9053_v12 = vmax.f32 %v429_v1, 0.0 }
0x2310   : > { %v4432_v40 = vsub.f32 0.0, %v4428_v18  ;;  %v4433_v53 = vsub.f32 0.0, %v4429_v38 }
0x2311   : > { %v6238_v30 = vpop.eup %6237 }
0x2312   : > { %v6240_v59 = vpop.eup %6239  ;;  %v4442_v39 = vadd.f32 1.0, %v6238_v30  ;;  %v4438_v9 = vmul.f32 1.442695, %v4432_v40  ;;  %v9047_v44 = vpop.permute.xlu1 %4529  ;;  %v4440_v54 = vmul.f32 1.442695, %v4433_v53  ;;  %v9907_v30 = vmov 15  }
0x2313   : > { %v4443_v48 = vadd.f32 1.0, %v6240_v59 }
0x2314   : > { %6241 = vrcp.f32 %v4442_v39  ;;  %v4455_v23 = vand.u32 2147483647, %v4442_v39  ;;  %v4457_v31 = vand.u32 2147483648, %v4442_v39  ;;  %vm4451_vm8 = vweird.f32 %v4442_v39 }
0x2315   : > { %6243 = vrcp.f32 %v4443_v48  ;;  %v4472_v19 = vand.u32 2147483648, %v4443_v48  ;;  %v4470_v25 = vand.u32 2147483647, %v4443_v48  ;;  %vm4466_vm12 = vweird.f32 %v4443_v48 }
0x2316   : > { %6245 = vpow2.f32 %v4438_v9  ;;  %v4458_v15 = vor.u32 1.1754944e-38, %v4457_v31  ;;  %vm4456_vm13 = vcmp.eq.f32.partialorder %v4455_v23, 8.507059e+37 }
0x2317   : > { %6247 = vpow2.f32 %v4440_v54  ;;  %v4473_v49 = vor.u32 1.1754944e-38, %v4472_v19  ;;  %vm4471_vm15 = vcmp.eq.f32.partialorder %v4470_v25, 8.507059e+37  ;;  %v9072_v54 = vpop.permute.xlu0 %4524 }
0x231a   : > { %v6242_v8 = vpop.eup %6241 }
0x231b   : > { %v6244_v60 = vpop.eup %6243  ;;  %v4447_v22 = vmul.f32 %v6242_v8, %v4442_v39  ;;  %v4550_v34 = vpop.permute.xlu1 %4549  ;;  %vm4452_vm9 = vweird.f32 %v6242_v8 }
0x231c   : > { %v6246_v29 = vpop.eup %6245  ;;  %v4462_v2 = vmul.f32 %v6244_v60, %v4443_v48  ;;  %v4555_v46 = vmul.f32 0.0, %v4550_v34  ;;  %v4556_v21 = vmul.f32 %v4550_v34, %v9051_v13  ;;  %v4557_v35 = vmul.f32 %v4550_v34, %v9053_v12  ;;  %vm4453_vm11 = vmor %vm4451_vm8, %vm4452_vm9 }
0x231d   : > { %v6248_v50 = vpop.eup %6247  ;;  %v4448_v56 = vsub.f32 1.0, %v4447_v22  ;;  %v4444_v61 = vadd.f32 1.0, %v6246_v29  ;;  %vm4467_vm10 = vweird.f32 %v6244_v60 }
0x231e   : > { %v4463_v33 = vsub.f32 1.0, %v4462_v2  ;;  %v4445_v20 = vadd.f32 1.0, %v6248_v50  ;;  %4570 = vrot.lane.b32.xlu2 %v4555_v46, %s6293_s18  ;;  %4572 = vrot.lane.b32.xlu0 %v4556_v21, %s6293_s18  ;;  %vm4468_vm14 = vmor %vm4466_vm12, %vm4467_vm10  ;;  %v9908_v46 = vmov 20  }
0x231f   : > { %v4449_v55 = vmul.f32 %v6242_v8, %v4448_v56  ;;  %6249 = vrcp.f32 %v4444_v61  ;;  %4574 = vrot.lane.b32.xlu1 %v4557_v35, %s6293_s18  ;;  %v4487_v5 = vand.u32 2147483648, %v4444_v61  ;;  %v4485_v24 = vand.u32 2147483647, %v4444_v61 }
0x2320   : > { %v4464_v0 = vmul.f32 %v6244_v60, %v4463_v33  ;;  %6251 = vrcp.f32 %v4445_v20  ;;  %v4502_v58 = vand.u32 2147483648, %v4445_v20  ;;  %v4500_v27 = vand.u32 2147483647, %v4445_v20 }
0x2321   : > { %v4450_v6 = vadd.f32 %v6242_v8, %v4449_v55  ;;  %vm4481_vm8 = vweird.f32 %v4444_v61  ;;  %v4488_v18 = vor.u32 1.1754944e-38, %v4487_v5  ;;  %vm4496_vm12 = vweird.f32 %v4445_v20 }
0x2322   : > { %v4465_v63 = vadd.f32 %v6244_v60, %v4464_v0  ;;  %v4503_v53 = vor.u32 1.1754944e-38, %v4502_v58  ;;  %v9909_v0 = vmov 1   ;;  %v4532_v58 = vmul.f32 0.0, %v9072_v54 }
0x2323   : > { %v4454_v51 = vsel %vm4453_vm11, %v6242_v8, %v4450_v6 }
0x2324   : > { %v4459_v28 = vsel %vm4456_vm13, %v4458_v15, %v4454_v51  ;;  %v4469_v17 = vsel %vm4468_vm14, %v6244_v60, %v4465_v63  ;;  %vm4486_vm13 = vcmp.eq.f32.partialorder %v4485_v24, 8.507059e+37 }
0x2325   : > { %v6250_v16 = vpop.eup %6249  ;;  %v4474_v62 = vsel %vm4471_vm15, %v4473_v49, %v4469_v17  ;;  %4506 = vst [vmem:[%s7460_s30 + $0x40] sm:$0xff] %v4459_v28  ;;  %vm4501_vm15 = vcmp.eq.f32.partialorder %v4500_v27, 8.507059e+37 }
0x2326   : > { %v6252_v11 = vpop.eup %6251  ;;  %4507 = vst [vmem:[%s7460_s30 + $0x48] sm:$0xff] %v4474_v62  ;;  %v4477_v10 = vmul.f32 %v6250_v16, %v4444_v61  ;;  %4593 = vperm.xlu2 %6159, %v8934_v3   ;;  %4597 = vperm.xlu0 %6160, %v8939_v57   ;;  %vm4482_vm9 = vweird.f32 %v6250_v16 }
0x2327   : > { %v4492_v32 = vmul.f32 %v6252_v11, %v4445_v20  ;;  %vm4497_vm10 = vweird.f32 %v6252_v11  ;;  %vm4483_vm11 = vmor %vm4481_vm8, %vm4482_vm9 }
0x2328   : > { %v4478_v47 = vsub.f32 1.0, %v4477_v10  ;;  %vm4498_vm14 = vmor %vm4496_vm12, %vm4497_vm10 }
0x2329   : > { %v4493_v42 = vsub.f32 1.0, %v4492_v32 }
0x232a   : > { %v4479_v45 = vmul.f32 %v6250_v16, %v4478_v47 }
0x232b   : > { %v4494_v14 = vmul.f32 %v6252_v11, %v4493_v42 }
0x232c   : > { %v4480_v52 = vadd.f32 %v6250_v16, %v4479_v45 }
0x232d   : > { %v4495_v38 = vadd.f32 %v6252_v11, %v4494_v14 }
0x232e   : > { %v4484_v40 = vsel %vm4483_vm11, %v6250_v16, %v4480_v52  ;;  %6161 = vset.pattern.permute.xlu2 %v9907_v30  ;;  %6162 = vset.pattern.permute.xlu0 %v9907_v30 }
0x232f   : > { %v4489_v59 = vsel %vm4486_vm13, %v4488_v18, %v4484_v40  ;;  %v4499_v39 = vsel %vm4498_vm14, %v6252_v11, %v4495_v38  ;;  %v4533_v18 = vmul.f32 %v9072_v54, %v8983_v43 }
0x2330   : > { %v4504_v9 = vsel %vm4501_vm15, %v4503_v53, %v4499_v39  ;;  %4508 = vst [vmem:[%s7460_s30 + $0x50] sm:$0xff] %v4489_v59 }
0x2331   : > { %4509 = vst [vmem:[%s7460_s30 + $0x58] sm:$0xff] %v4504_v9 }
0x2358   : > { %v9068_v7 = vpop.permute.xlu2 %4564 }
0x236f   : > { %v9077_v1 = vpop.permute.xlu0 %4566  ;;  %v4569_v10 = vpop.permute.xlu1 %4568 }
0x2370   : > { %v4576_v14 = vsel %vm545_vm1, %v9068_v7, %v9077_v1  ;;  %v4577_v52 = vsel %vm545_vm1, %v9077_v1, %v4569_v10 }
0x2371   : > { %v4586_v40 = vadd.f32 %v4576_v14, %v4532_v58  ;;  %v4587_v30 = vadd.f32 %v4577_v52, %v4533_v18 }
0x2378   : > { %v9070_v48 = vpop.permute.xlu2 %4570 }
0x2380   : > { %v4594_v37 = vpop.permute.xlu2 %4593 }
0x2381   : > { %v4600_v26 = vmul.f32 0.0, %v4594_v37  ;;  %v4601_v4 = vmul.f32 %v4594_v37, %v8983_v43  ;;  %v4602_v8 = vmul.f32 %v4594_v37, %v8985_v36 }
0x2383   : > { %4614 = vrot.lane.b32.xlu2 %v4601_v4, %s6294_s19  ;;  %4612 = vrot.lane.b32.xlu1 %v4600_v26, %s6294_s19 }
0x238b   : > { %4616 = vrot.lane.b32.xlu1 %v4602_v8, %s6294_s19  ;;  %v4535_v8 = vmul.f32 0.0, %v9047_v44 }
0x2390   : > { %v9081_v60 = vpop.permute.xlu0 %4572 }
0x2391   : > { %v4575_v32 = vpop.permute.xlu1 %4574  ;;  %v4578_v7 = vsel %vm545_vm1, %v9070_v48, %v9081_v60 }
0x2398   : > { %v4598_v22 = vpop.permute.xlu0 %4597 }
0x2399   : > { %v4603_v34 = vmul.f32 0.0, %v4598_v22  ;;  %v4604_v29 = vmul.f32 %v4598_v22, %v9051_v13  ;;  %v4605_v2 = vmul.f32 %v4598_v22, %v9053_v12 }
0x239b   : > { %4618 = vrot.lane.b32.xlu2 %v4603_v34, %s6294_s19  ;;  %4622 = vrot.lane.b32.xlu1 %v4605_v2, %s6294_s19 }
0x239c   : > { %4620 = vrot.lane.b32.xlu0 %v4604_v29, %s6294_s19  ;;  %v4534_v29 = vmul.f32 %v9072_v54, %v8985_v36 }
0x23a3   : > { %4647 = vperm.xlu2 %6161, %v8934_v3  }
0x23a4   : > { %4651 = vperm.xlu0 %6162, %v8939_v57  }
0x23ab   : > { %6163 = vset.pattern.permute.xlu2 %v9908_v46 }
0x23ac   : > { %6164 = vset.pattern.permute.xlu0 %v9908_v46 }
0x23dd   : > { %v4615_v21 = vpop.permute.xlu2 %4614 }
0x23f5   : > { %v9092_v50 = vpop.permute.xlu2 %4618  ;;  %v4613_v47 = vpop.permute.xlu1 %4612 }
0x23f6   : > { %v4624_v38 = vsel %vm594_vm2, %v4613_v47, %v4615_v21 }
0x23f7   : > { %v4634_v59 = vadd.f32 %v4624_v38, %v4586_v40 }
0x23fd   : > { %v4648_v56 = vpop.permute.xlu2 %4647  ;;  %v4617_v5 = vpop.permute.xlu1 %4616 }
0x23fe   : > { %v4654_v61 = vmul.f32 %v4648_v56, %v8983_v43  ;;  %v4655_v35 = vmul.f32 %v4648_v56, %v8985_v36  ;;  %v4656_v23 = vmul.f32 0.0, %v4648_v56  ;;  %v4625_v53 = vsel %vm594_vm2, %v4615_v21, %v4617_v5 }
0x23ff   : > { %v4635_v9 = vadd.f32 %v4625_v53, %v4587_v30  ;;  %v4589_v21 = vadd.f32 %v4578_v7, %v4535_v8  ;;  %v4588_v56 = vadd.f32 %v4569_v10, %v4534_v29 }
0x2400   : > { %4668 = vrot.lane.b32.xlu2 %v4655_v35, %s6295_s20  ;;  %4666 = vrot.lane.b32.xlu1 %v4654_v61, %s6295_s20 }
0x2401   : > { %v4636_v35 = vadd.f32 %v4617_v5, %v4588_v56 }
0x2408   : > { %4670 = vrot.lane.b32.xlu1 %v4656_v23, %s6295_s20 }
0x240d   : > { %v4623_v42 = vpop.permute.xlu1 %4622 }
0x240e   : > { %v9099_v31 = vpop.permute.xlu0 %4620 }
0x240f   : > { %v4626_v2 = vsel %vm594_vm2, %v9092_v50, %v9099_v31 }
0x2410   : > { %v4637_v48 = vadd.f32 %v4626_v2, %v4589_v21  ;;  %v9913_v21 = vmov 21  }
0x2416   : > { %v4652_v33 = vpop.permute.xlu0 %4651 }
0x2417   : > { %v4657_v20 = vmul.f32 %v4652_v33, %v9051_v13  ;;  %v4658_v55 = vmul.f32 %v4652_v33, %v9053_v12  ;;  %v4659_v19 = vmul.f32 0.0, %v4652_v33 }
0x2419   : > { %4676 = vrot.lane.b32.xlu1 %v4659_v19, %s6295_s20  ;;  %4674 = vrot.lane.b32.xlu0 %v4658_v55, %s6295_s20 }
0x241a   : > { %4672 = vrot.lane.b32.xlu2 %v4657_v20, %s6295_s20 }
0x2421   : > { %4699 = vperm.xlu0 %6164, %v8939_v57  }
0x2422   : > { %4695 = vperm.xlu2 %6163, %v8934_v3  }
0x2429   : > { %6166 = vset.pattern.permute.xlu0 %v9909_v0 }
0x242a   : > { %6165 = vset.pattern.permute.xlu2 %v9909_v0  ;;  %v4579_v0 = vsel %vm545_vm1, %v9081_v60, %v4575_v32 }
0x245a   : > { %v4669_v25 = vpop.permute.xlu2 %4668 }
0x2472   : > { %v4667_v45 = vpop.permute.xlu1 %4666 }
0x2473   : > { %v4678_v39 = vsel %vm649_vm3, %v4667_v45, %v4669_v25  ;;  %v4688_v26 = vadd.f32 %v4667_v45, %v4634_v59 }
0x2474   : > { %v9110_v6 = vpop.permute.xlu2 %4672  ;;  %v4689_v4 = vadd.f32 %v4678_v39, %v4635_v9  ;;  %v9912_v39 = vmov 7  }
0x2475   : > { %v4691_v33 = vadd.f32 %v9110_v6, %v4637_v48 }
0x247a   : > { %v4671_v24 = vpop.permute.xlu1 %4670 }
0x247b   : > { %v4679_v61 = vsel %vm649_vm3, %v4669_v25, %v4671_v24  ;;  %v4536_v25 = vmul.f32 %v9047_v44, %v9051_v13 }
0x247c   : > { %v4696_v15 = vpop.permute.xlu2 %4695  ;;  %v4690_v20 = vadd.f32 %v4679_v61, %v4636_v35 }
0x247d   : > { %v4702_v63 = vmul.f32 %v4696_v15, %v8983_v43  ;;  %v4703_v51 = vmul.f32 %v4696_v15, %v8985_v36  ;;  %v4704_v49 = vmul.f32 0.0, %v4696_v15  ;;  %v4537_v15 = vmul.f32 %v9047_v44, %v9053_v12 }
0x247f   : > { %4716 = vrot.lane.b32.xlu2 %v4703_v51, %s6296_s23  ;;  %4714 = vrot.lane.b32.xlu1 %v4702_v63, %s6296_s23  ;;  %v4627_v63 = vsel %vm594_vm2, %v9099_v31, %v4623_v42  ;;  %v4590_v51 = vadd.f32 %v4579_v0, %v4536_v25 }
0x2487   : > { %4718 = vrot.lane.b32.xlu1 %v4704_v49, %s6296_s23  ;;  %v4591_v49 = vadd.f32 %v4575_v32, %v4537_v15 }
0x248b   : > { %v9117_v28 = vpop.permute.xlu0 %4674  ;;  %v4677_v27 = vpop.permute.xlu1 %4676 }
0x248c   : > { %v4681_v60 = vsel %vm649_vm3, %v9117_v28, %v4677_v27 }
0x2493   : > { %v4700_v17 = vpop.permute.xlu0 %4699 }
0x2494   : > { %v4705_v16 = vmul.f32 %v4700_v17, %v9051_v13  ;;  %v4706_v62 = vmul.f32 %v4700_v17, %v9053_v12  ;;  %v4707_v11 = vmul.f32 0.0, %v4700_v17  ;;  %v4680_v17 = vsel %vm649_vm3, %v9110_v6, %v9117_v28 }
0x2495   : > { %v9910_v6 = vmov 11   ;;  %v9911_v28 = vmov 16  }
0x2496   : > { %4722 = vrot.lane.b32.xlu0 %v4706_v62, %s6296_s23  ;;  %4720 = vrot.lane.b32.xlu2 %v4705_v16, %s6296_s23  ;;  %v4638_v16 = vadd.f32 %v4627_v63, %v4590_v51  ;;  %v4639_v62 = vadd.f32 %v4623_v42, %v4591_v49 }
0x2497   : > { %4724 = vrot.lane.b32.xlu1 %v4707_v11, %s6296_s23 }
0x2498   : > { %v4692_v11 = vadd.f32 %v4680_v17, %v4638_v16  ;;  %v4693_v47 = vadd.f32 %v4681_v60, %v4639_v62  ;;  %v9914_v17 = vmov 2  }
0x24d9   : > { %v4717_v37 = vpop.permute.xlu2 %4716 }
0x24f0   : > { %v4721_v23 = vpop.permute.xlu2 %4720 }
0x24f1   : > { %v4715_v1 = vpop.permute.xlu1 %4714  ;;  %v4739_v55 = vadd.f32 %v4721_v23, %v4691_v33 }
0x24f2   : > { %v4726_v22 = vsel %vm324_vm0, %v4715_v1, %v4717_v37  ;;  %v4736_v34 = vadd.f32 %v4715_v1, %v4688_v26 }
0x24f3   : > { %v4737_v46 = vadd.f32 %v4726_v22, %v4689_v4 }
0x24f4   : > { %4754 = vrot.lane.b32.xlu2 %v4736_v34, %s6302_s24 }
0x24f5   : > { %4756 = vrot.lane.b32.xlu0 %v4737_v46, %s6302_s24 }
0x24f9   : > { %v4719_v54 = vpop.permute.xlu1 %4718 }
0x24fa   : > { %v4727_v19 = vsel %vm324_vm0, %v4717_v37, %v4719_v54 }
0x24fb   : > { %v4738_v50 = vadd.f32 %v4727_v19, %v4690_v20 }
0x24fc   : > { %4760 = vrot.lane.b32.xlu2 %v4739_v55, %s6302_s24 }
0x24fd   : > { %4758 = vrot.lane.b32.xlu1 %v4738_v50, %s6302_s24 }
0x2504   : > { %4783 = vperm.xlu2 %6165, %v8934_v3  }
0x2508   : > { %v4723_v10 = vpop.permute.xlu0 %4722 }
0x2509   : > { %v4728_v44 = vsel %vm324_vm0, %v4721_v23, %v4723_v10  ;;  %v4725_v5 = vpop.permute.xlu1 %4724 }
0x250a   : > { %v4740_v31 = vadd.f32 %v4728_v44, %v4692_v11  ;;  %v4729_v45 = vsel %vm324_vm0, %v4723_v10, %v4725_v5 }
0x250b   : > { %v4741_v24 = vadd.f32 %v4729_v45, %v4693_v47 }
0x250c   : > { %6168 = vset.pattern.permute.xlu2 %v9845_v41  ;;  %4762 = vrot.lane.b32.xlu0 %v4740_v31, %s6302_s24 }
0x250d   : > { %4807 = vperm.xlu2 %6168, %v8939_v57   ;;  %4764 = vrot.lane.b32.xlu1 %v4741_v24, %s6302_s24 }
0x2514   : > { %4787 = vperm.xlu0 %6166, %v8939_v57  }
0x2515   : > { %4803 = vperm.xlu1 %6167, %v8934_v3   ;;  %6170 = vset.pattern.permute.xlu2 %v9910_v6 }
0x251c   : > { %6171 = vset.pattern.permute.xlu0 %v9911_v28 }
0x251d   : > { %6169 = vset.pattern.permute.xlu1 %v9910_v6 }
0x254e   : > { %v9177_v32 = vpop.permute.xlu2 %4754 }
0x2556   : > { %v9181_v41 = vpop.permute.xlu2 %4760 }
0x255e   : > { %v9185_v14 = vpop.permute.xlu2 %4783 }
0x2567   : > { %v4808_v40 = vpop.permute.xlu2 %4807  ;;  %v9221_v56 = vpop.permute.xlu0 %4756 }
0x2568   : > { %v4813_v53 = vmul.f32 0.0, %v4808_v40  ;;  %v4815_v30 = vmul.f32 %v4808_v40, %v9053_v12  ;;  %v4814_v59 = vmul.f32 %v4808_v40, %v9051_v13 }
0x256f   : > { %v9179_v42 = vpop.permute.xlu1 %4758 }
0x257e   : > { %v9223_v48 = vpop.permute.xlu0 %4762 }
0x257f   : > { %v9183_v58 = vpop.permute.xlu1 %4764 }
0x2586   : > { %v9225_v61 = vpop.permute.xlu0 %4787 }
0x2587   : > { %v4804_v27 = vpop.permute.xlu1 %4803  ;;  %v4793_v16 = vmul.f32 0.0, %v9225_v61 }
0x2588   : > { %v4810_v52 = vmul.f32 0.0, %v4804_v27  ;;  %v4811_v18 = vmul.f32 %v4804_v27, %v8983_v43  ;;  %v4812_v38 = vmul.f32 %v4804_v27, %v8985_v36 }
0x258a   : > { %4822 = vrot.lane.b32.xlu1 %v4810_v52, %s6293_s18  ;;  %4826 = vrot.lane.b32.xlu0 %v4812_v38, %s6293_s18 }
0x258b   : > { %4824 = vrot.lane.b32.xlu2 %v4811_v18, %s6293_s18 }
0x2592   : > { %4828 = vrot.lane.b32.xlu1 %v4813_v53, %s6293_s18  ;;  %4832 = vrot.lane.b32.xlu0 %v4815_v30, %s6293_s18 }
0x2593   : > { %4830 = vrot.lane.b32.xlu2 %v4814_v59, %s6293_s18 }
0x259a   : > { %4851 = vperm.xlu1 %6169, %v8934_v3  }
0x259b   : > { %4855 = vperm.xlu2 %6170, %v8939_v57  }
0x25a2   : > { %6172 = vset.pattern.permute.xlu1 %v9911_v28 }
0x25a3   : > { %6177 = vset.pattern.permute.xlu2 %v9912_v39 }
0x25e5   : > { %v9203_v37 = vpop.permute.xlu2 %4824 }
0x25ed   : > { %v9205_v7 = vpop.permute.xlu2 %4830 }
0x25f5   : > { %v4856_v34 = vpop.permute.xlu2 %4855 }
0x25f6   : > { %v4861_v29 = vmul.f32 0.0, %v4856_v34  ;;  %v4862_v2 = vmul.f32 %v4856_v34, %v9051_v13  ;;  %v4863_v46 = vmul.f32 %v4856_v34, %v9053_v12 }
0x25fc   : > { %v9201_v9 = vpop.permute.xlu1 %4822  ;;  %v9227_v35 = vpop.permute.xlu0 %4826 }
0x2604   : > { %v4829_v26 = vpop.permute.xlu1 %4828  ;;  %v9229_v23 = vpop.permute.xlu0 %4832 }
0x2605   : > { %v4836_v60 = vsel %vm545_vm1, %v4829_v26, %v9205_v7 }
0x2606   : > { %v4847_v11 = vadd.f32 %v4836_v60, %v4793_v16 }
0x260c   : > { %v4852_v4 = vpop.permute.xlu1 %4851 }
0x260d   : > { %v4858_v1 = vmul.f32 0.0, %v4852_v4  ;;  %v4859_v8 = vmul.f32 %v4852_v4, %v8983_v43  ;;  %v4860_v22 = vmul.f32 %v4852_v4, %v8985_v36  ;;  %v4834_v4 = vsel %vm545_vm1, %v9201_v9, %v9203_v37 }
0x260e   : > { %v4791_v9 = vmul.f32 %v9185_v14, %v8983_v43 }
0x260f   : > { %4872 = vrot.lane.b32.xlu1 %v4859_v8, %s6294_s19  ;;  %4870 = vrot.lane.b32.xlu0 %v4858_v1, %s6294_s19  ;;  %v4790_v8 = vmul.f32 0.0, %v9185_v14 }
0x2610   : > { %4874 = vrot.lane.b32.xlu2 %v4860_v22, %s6294_s19 }
0x2611   : > { %v4844_v34 = vadd.f32 %v4834_v4, %v4790_v8 }
0x2617   : > { %4876 = vrot.lane.b32.xlu0 %v4861_v29, %s6294_s19  ;;  %4878 = vrot.lane.b32.xlu1 %v4862_v2, %s6294_s19 }
0x2618   : > { %4880 = vrot.lane.b32.xlu2 %v4863_v46, %s6294_s19 }
0x261f   : > { %4899 = vperm.xlu0 %6171, %v8934_v3   ;;  %4903 = vperm.xlu1 %6172, %v8939_v57  }
0x2627   : > { %6173 = vset.pattern.permute.xlu0 %v9913_v21  ;;  %6174 = vset.pattern.permute.xlu1 %v9913_v21 }
0x266a   : > { %v4875_v53 = vpop.permute.xlu2 %4874 }
0x2672   : > { %v4881_v30 = vpop.permute.xlu2 %4880 }
0x2681   : > { %v9231_v33 = vpop.permute.xlu1 %4872  ;;  %v4871_v20 = vpop.permute.xlu0 %4870 }
0x2682   : > { %v4882_v22 = vsel %vm594_vm2, %v4871_v20, %v9231_v33  ;;  %v4883_v20 = vsel %vm594_vm2, %v9231_v33, %v4875_v53 }
0x2683   : > { %v4892_v29 = vadd.f32 %v4882_v22, %v4844_v34  ;;  %v4767_v34 = vsel %vm738_vm4, %v9221_v56, %v9179_v42  ;;  %v4511_v42 = vld [vmem:[%s9717_s4 + $0x68] sm:$0xff] }
0x2689   : > { %v4877_v54 = vpop.permute.xlu0 %4876  ;;  %v9233_v55 = vpop.permute.xlu1 %4878 }
0x268a   : > { %v4884_v62 = vsel %vm594_vm2, %v4877_v54, %v9233_v55  ;;  %v4835_v54 = vsel %vm545_vm1, %v9203_v37, %v9227_v35 }
0x268b   : > { %v4895_v10 = vadd.f32 %v4884_v62, %v4847_v11  ;;  %v4795_v62 = vmul.f32 %v9225_v61, %v9053_v12 }
0x2691   : > { %v4900_v19 = vpop.permute.xlu0 %4899  ;;  %v4904_v50 = vpop.permute.xlu1 %4903 }
0x2692   : > { %v4906_v0 = vmul.f32 %v4900_v19, %v8983_v43  ;;  %v4907_v25 = vmul.f32 %v4900_v19, %v8985_v36  ;;  %v4909_v15 = vmul.f32 %v4904_v50, %v9051_v13  ;;  %v4908_v63 = vmul.f32 0.0, %v4900_v19 }
0x2693   : > { %v4910_v51 = vmul.f32 %v4904_v50, %v9053_v12  ;;  %v4911_v49 = vmul.f32 0.0, %v4904_v50  ;;  %v4792_v19 = vmul.f32 %v9185_v14, %v8985_v36  ;;  %v4845_v50 = vadd.f32 %v4835_v54, %v4791_v9 }
0x2694   : > { %4918 = vrot.lane.b32.xlu2 %v4906_v0, %s6295_s20  ;;  %4920 = vrot.lane.b32.xlu1 %v4907_v25, %s6295_s20  ;;  %v4837_v14 = vsel %vm545_vm1, %v9205_v7, %v9229_v23 }
0x2695   : > { %4924 = vrot.lane.b32.xlu0 %v4909_v15, %s6295_s20  ;;  %v4846_v0 = vadd.f32 %v9227_v35, %v4792_v19  ;;  %v4794_v35 = vmul.f32 %v9225_v61, %v9051_v13 }
0x269c   : > { %4922 = vrot.lane.b32.xlu2 %v4908_v63, %s6295_s20  ;;  %4926 = vrot.lane.b32.xlu1 %v4910_v51, %s6295_s20  ;;  %v4894_v63 = vadd.f32 %v4875_v53, %v4846_v0  ;;  %v4893_v51 = vadd.f32 %v4883_v20, %v4845_v50 }
0x269d   : > { %4947 = vperm.xlu0 %6173, %v8934_v3  }
0x26a4   : > { %4928 = vrot.lane.b32.xlu2 %v4911_v49, %s6295_s20  ;;  %4951 = vperm.xlu1 %6174, %v8939_v57  }
0x26a5   : > { %6175 = vset.pattern.permute.xlu0 %v9914_v17 }
0x26ac   : > { %6176 = vset.pattern.permute.xlu1 %v9914_v17 }
0x26ee   : > { %v4919_v59 = vpop.permute.xlu2 %4918 }
0x26ef   : > { %v4940_v2 = vadd.f32 %v4919_v59, %v4892_v29  ;;  %v5939_v29 = vld [vmem:[%s9718_s5 + $0x1] ss:$8 sm:$0x3] }
0x26f0   : > { %v4996_v54 = vperm.slane %v5939_v29, 0  ;;  %v4997_v9 = vperm.slane %v5939_v29, 1 }
0x26f6   : > { %v4923_v26 = vpop.permute.xlu2 %4922 }
0x26fe   : > { %v4929_v1 = vpop.permute.xlu2 %4928 }
0x2706   : > { %v4921_v47 = vpop.permute.xlu1 %4920 }
0x2707   : > { %v4925_v44 = vpop.permute.xlu0 %4924  ;;  %v4930_v25 = vsel %vm649_vm3, %v4919_v59, %v4921_v47  ;;  %v4931_v15 = vsel %vm649_vm3, %v4921_v47, %v4923_v26  ;;  %v4885_v47 = vsel %vm594_vm2, %v9233_v55, %v4881_v30  ;;  %v4742_v26 = vld [vmem:[%s9718_s5] ss:$8 sm:$0x3] }
0x2708   : > { %v9254_v5 = vadd.f32 %v4925_v44, %v4895_v10  ;;  %v4941_v37 = vadd.f32 %v4930_v25, %v4893_v51  ;;  %v4942_v17 = vadd.f32 %v4931_v15, %v4894_v63  ;;  %v4744_v22 = vperm.slane %v4742_v26, 0 }
0x2709   : > { %v4768_v63 = vsel %vm738_vm4, %v9181_v41, %v9223_v48  ;;  %v4769_v51 = vsel %vm738_vm4, %v9223_v48, %v9183_v58 }
0x270e   : > { %v4927_v31 = vpop.permute.xlu1 %4926 }
0x270f   : > { %v4948_v45 = vpop.permute.xlu0 %4947  ;;  %v4932_v24 = vsel %vm649_vm3, %v4925_v44, %v4927_v31  ;;  %v4848_v44 = vadd.f32 %v4837_v14, %v4794_v35  ;;  %v4933_v7 = vsel %vm649_vm3, %v4927_v31, %v4929_v1  ;;  %v9916_v31 = vmov 17  }
0x2710   : > { %v4954_v6 = vmul.f32 %v4948_v45, %v8983_v43  ;;  %v4955_v28 = vmul.f32 %v4948_v45, %v8985_v36  ;;  %v4956_v38 = vmul.f32 0.0, %v4948_v45  ;;  %v4849_v45 = vadd.f32 %v9229_v23, %v4795_v62 }
0x2712   : > { %4968 = vrot.lane.b32.xlu1 %v4955_v28, %s6296_s23  ;;  %4966 = vrot.lane.b32.xlu2 %v4954_v6, %s6296_s23  ;;  %v4897_v6 = vadd.f32 %v4881_v30, %v4849_v45  ;;  %v4896_v28 = vadd.f32 %v4885_v47, %v4848_v44 }
0x2716   : > { %v4952_v27 = vpop.permute.xlu1 %4951 }
0x2717   : > { %v4957_v52 = vmul.f32 %v4952_v27, %v9051_v13  ;;  %v4958_v18 = vmul.f32 %v4952_v27, %v9053_v12  ;;  %v4959_v40 = vmul.f32 0.0, %v4952_v27 }
0x2719   : > { %4972 = vrot.lane.b32.xlu0 %v4957_v52, %s6296_s23  ;;  %v4944_v52 = vadd.f32 %v4932_v24, %v4896_v28 }
0x271a   : > { %4970 = vrot.lane.b32.xlu2 %v4956_v38, %s6296_s23  ;;  %4974 = vrot.lane.b32.xlu1 %v4958_v18, %s6296_s23  ;;  %v4945_v18 = vadd.f32 %v4933_v7, %v4897_v6 }
0x2722   : > { %4976 = vrot.lane.b32.xlu2 %v4959_v40, %s6296_s23 }
0x276c   : > { %v4967_v46 = vpop.permute.xlu2 %4966 }
0x276d   : > { %v4988_v21 = vadd.f32 %v4967_v46, %v4940_v2 }
0x276f   : > { %5006 = vrot.lane.b32.xlu0 %v4988_v21, %s6303_s25 }
0x2774   : > { %v4971_v49 = vpop.permute.xlu2 %4970 }
0x277c   : > { %v4977_v61 = vpop.permute.xlu2 %4976 }
0x2784   : > { %v4969_v16 = vpop.permute.xlu1 %4968 }
0x2785   : > { %v4978_v60 = vsel %vm324_vm0, %v4967_v46, %v4969_v16  ;;  %v4979_v33 = vsel %vm324_vm0, %v4969_v16, %v4971_v49 }
0x2786   : > { %v4989_v11 = vadd.f32 %v4978_v60, %v4941_v37  ;;  %v4990_v10 = vadd.f32 %v4979_v33, %v4942_v17  ;;  %v4776_v17 = vmul.f32 %v4768_v63, %v4744_v22  ;;  %v4512_v60 = vld [vmem:[%s9717_s4 + $0x70] sm:$0xff]  ;;  %v4513_v33 = vld [vmem:[%s9717_s4 + $0x78] sm:$0xff] }
0x2788   : > { %5008 = vrot.lane.b32.xlu1 %v4989_v11, %s6303_s25  ;;  %5010 = vrot.lane.b32.xlu2 %v4990_v10, %s6303_s25  ;;  %v4780_v48 = vadd.f32 %v4776_v17, %v4512_v60 }
0x278b   : > { %v4973_v27 = vpop.permute.xlu0 %4972 }
0x278c   : > { %v4991_v38 = vadd.f32 %v4973_v27, %v9254_v5  ;;  %v4975_v40 = vpop.permute.xlu1 %4974  ;;  %v9915_v5 = vmov 12  }
0x278d   : > { %v4980_v55 = vsel %vm324_vm0, %v4973_v27, %v4975_v40  ;;  %v4981_v53 = vsel %vm324_vm0, %v4975_v40, %v4977_v61  ;;  %v9917_v61 = vmov 8  }
0x278e   : > { %v4992_v23 = vadd.f32 %v4980_v55, %v4944_v52  ;;  %v4993_v59 = vadd.f32 %v4981_v53, %v4945_v18  ;;  %5012 = vrot.lane.b32.xlu0 %v4991_v38, %s6303_s25  ;;  %v9372_v52 = vld [vmem:[%s9716_s3 + $0x30] sm:$0xff]  ;;  %v9378_v18 = vld [vmem:[%s9716_s3 + $0x38] sm:$0xff]  ;;  %v9918_v38 = vmov 22  }
0x2790   : > { %5014 = vrot.lane.b32.xlu1 %v4992_v23, %s6303_s25  ;;  %5016 = vrot.lane.b32.xlu2 %v4993_v59, %s6303_s25 }
0x2796   : > { %5035 = vperm.xlu0 %6175, %v8934_v3  }
0x2798   : > { %5039 = vperm.xlu1 %6176, %v8939_v57   ;;  %5055 = vperm.xlu2 %6177, %v8934_v3  }
0x279e   : > { %6180 = vset.pattern.permute.xlu0 %v9915_v5 }
0x27a0   : > { %6178 = vset.pattern.permute.xlu1 %v9912_v39  ;;  %6179 = vset.pattern.permute.xlu2 %v9915_v5  ;;  %v4745_v39 = vperm.slane %v4742_v26, 1 }
0x27a1   : > { %5059 = vperm.xlu1 %6178, %v8939_v57   ;;  %v4766_v57 = vsel %vm738_vm4, %v9177_v32, %v9221_v56  ;;  %v4510_v32 = vld [vmem:[%s9717_s4 + $0x60] sm:$0xff] }
0x27a2   : > { %v4774_v2 = vmul.f32 %v4766_v57, %v4744_v22  ;;  %v4775_v46 = vmul.f32 %v4767_v34, %v4745_v39  ;;  %v4777_v16 = vmul.f32 %v4769_v51, %v4745_v39 }
0x27a4   : > { %v4778_v50 = vadd.f32 %v4774_v2, %v4510_v32  ;;  %v4779_v0 = vadd.f32 %v4775_v46, %v4511_v42  ;;  %v4781_v62 = vadd.f32 %v4777_v16, %v4513_v33 }
0x27a9   : > { %6182 = vset.pattern.permute.xlu1 %v9916_v31 }
0x27e1   : > { %v5007_v21 = vpop.permute.xlu0 %5006 }
0x27e2   : > { %v5011_v24 = vpop.permute.xlu2 %5010 }
0x27ea   : > { %v5017_v30 = vpop.permute.xlu2 %5016 }
0x27f2   : > { %v5056_v4 = vpop.permute.xlu2 %5055 }
0x27f3   : > { %v5062_v1 = vmul.f32 0.0, %v5056_v4  ;;  %v5063_v3 = vmul.f32 %v5056_v4, %v8983_v43  ;;  %v5064_v8 = vmul.f32 %v5056_v4, %v8985_v36 }
0x27f5   : > { %5078 = vrot.lane.b32.xlu1 %v5064_v8, %s6293_s18  ;;  %5076 = vrot.lane.b32.xlu0 %v5063_v3, %s6293_s18 }
0x27f6   : > { %5074 = vrot.lane.b32.xlu2 %v5062_v1, %s6293_s18 }
0x27fa   : > { %v5009_v56 = vpop.permute.xlu1 %5008 }
0x27fb   : > { %v5018_v19 = vsel %vm992_vm5, %v5007_v21, %v5009_v56  ;;  %v5019_v20 = vsel %vm992_vm5, %v5009_v56, %v5011_v24 }
0x27fc   : > { %v5026_v25 = vmul.f32 %v5018_v19, %v4996_v54  ;;  %v5027_v15 = vmul.f32 %v5019_v20, %v4997_v9 }
0x27fe   : > { %v9346_v49 = vadd.f32 %v5026_v25, %v4778_v50  ;;  %v9348_v37 = vadd.f32 %v5027_v15, %v4779_v0 }
0x2800   : > { %v5013_v14 = vpop.permute.xlu0 %5012 }
0x2802   : > { %v5015_v41 = vpop.permute.xlu1 %5014 }
0x2803   : > { %v5020_v35 = vsel %vm992_vm5, %v5013_v14, %v5015_v41  ;;  %v5021_v58 = vsel %vm992_vm5, %v5015_v41, %v5017_v30 }
0x2804   : > { %v5028_v11 = vmul.f32 %v5020_v35, %v4996_v54  ;;  %v5029_v10 = vmul.f32 %v5021_v58, %v4997_v9 }
0x2806   : > { %v9358_v47 = vadd.f32 %v5028_v11, %v4780_v48  ;;  %v9360_v44 = vadd.f32 %v5029_v10, %v4781_v62  ;;  %v9919_v48 = vmov 3  }
0x2808   : > { %v9385_v40 = vpop.permute.xlu0 %5035 }
0x2809   : > { %v5042_v42 = vmul.f32 0.0, %v9385_v40  ;;  %v5043_v56 = vmul.f32 %v9385_v40, %v8983_v43 }
0x280a   : > { %v9362_v45 = vpop.permute.xlu1 %5039 }
0x280b   : > { %v5045_v1 = vmul.f32 0.0, %v9362_v45  ;;  %v5046_v3 = vmul.f32 %v9362_v45, %v9051_v13 }
0x2813   : > { %v5060_v7 = vpop.permute.xlu1 %5059 }
0x2814   : > { %v5065_v6 = vmul.f32 0.0, %v5060_v7  ;;  %v5066_v28 = vmul.f32 %v5060_v7, %v9051_v13  ;;  %v5067_v27 = vmul.f32 %v5060_v7, %v9053_v12  ;;  %v5047_v7 = vmul.f32 %v9362_v45, %v9053_v12 }
0x2816   : > { %5080 = vrot.lane.b32.xlu2 %v5065_v6, %s6293_s18  ;;  %5084 = vrot.lane.b32.xlu1 %v5067_v27, %s6293_s18 }
0x2817   : > { %5082 = vrot.lane.b32.xlu0 %v5066_v28, %s6293_s18 }
0x281e   : > { %5103 = vperm.xlu2 %6179, %v9372_v52  }
0x281f   : > { %5107 = vperm.xlu0 %6180, %v9378_v18  }
0x2826   : > { %6187 = vset.pattern.permute.xlu2 %v9917_v61 }
0x2827   : > { %6181 = vset.pattern.permute.xlu0 %v9916_v31 }
0x2828   : > { %5141 = vperm.xlu0 %6181, %v9372_v52  }
0x2830   : > { %6183 = vset.pattern.permute.xlu0 %v9918_v38 }
0x2850   : > { %v5075_v55 = vpop.permute.xlu2 %5074 }
0x2867   : > { %v9387_v53 = vpop.permute.xlu1 %5078  ;;  %v5077_v23 = vpop.permute.xlu0 %5076 }
0x2868   : > { %v5086_v59 = vsel %vm545_vm1, %v5075_v55, %v5077_v23  ;;  %v5087_v5 = vsel %vm545_vm1, %v5077_v23, %v9387_v53 }
0x2869   : > { %v5096_v19 = vadd.f32 %v5086_v59, %v5042_v42  ;;  %v5097_v20 = vadd.f32 %v5087_v5, %v5043_v56 }
0x2870   : > { %v5081_v24 = vpop.permute.xlu2 %5080 }
0x2878   : > { %v5104_v30 = vpop.permute.xlu2 %5103 }
0x2879   : > { %v5110_v26 = vmul.f32 %v5104_v30, %v8983_v43  ;;  %v5111_v31 = vmul.f32 %v5104_v30, %v8985_v36 }
0x287b   : > { %5120 = vrot.lane.b32.xlu2 %v5111_v31, %s6294_s19  ;;  %5118 = vrot.lane.b32.xlu1 %v5110_v26, %s6294_s19 }
0x2888   : > { %v5085_v4 = vpop.permute.xlu1 %5084 }
0x2889   : > { %v5083_v8 = vpop.permute.xlu0 %5082  ;;  %v5101_v6 = vadd.f32 %v5085_v4, %v5047_v7 }
0x288a   : > { %v5088_v22 = vsel %vm545_vm1, %v5081_v24, %v5083_v8  ;;  %v5089_v39 = vsel %vm545_vm1, %v5083_v8, %v5085_v4 }
0x288b   : > { %v5099_v57 = vadd.f32 %v5088_v22, %v5045_v1  ;;  %v5100_v34 = vadd.f32 %v5089_v39, %v5046_v3 }
0x2891   : > { %v5108_v29 = vpop.permute.xlu0 %5107 }
0x2892   : > { %v5112_v2 = vmul.f32 %v5108_v29, %v9051_v13  ;;  %v5113_v46 = vmul.f32 %v5108_v29, %v9053_v12  ;;  %v5044_v29 = vmul.f32 %v9385_v40, %v8985_v36 }
0x2894   : > { %5124 = vrot.lane.b32.xlu2 %v5113_v46, %s6294_s19  ;;  %5122 = vrot.lane.b32.xlu1 %v5112_v2, %s6294_s19  ;;  %v5098_v2 = vadd.f32 %v9387_v53, %v5044_v29 }
0x289a   : > { %v5142_v21 = vpop.permute.xlu0 %5141 }
0x289b   : > { %v5148_v54 = vmul.f32 %v5142_v21, %v8983_v43  ;;  %v5150_v9 = vmul.f32 0.0, %v5142_v21  ;;  %v5149_v32 = vmul.f32 %v5142_v21, %v8985_v36 }
0x289c   : > { %5145 = vperm.xlu1 %6182, %v9378_v18  }
0x289d   : > { %5160 = vrot.lane.b32.xlu2 %v5148_v54, %s6295_s20 }
0x28a4   : > { %5162 = vrot.lane.b32.xlu1 %v5149_v32, %s6295_s20 }
0x28a5   : > { %5164 = vrot.lane.b32.xlu2 %v5150_v9, %s6295_s20  ;;  %6184 = vset.pattern.permute.xlu1 %v9918_v38 }
0x28d5   : > { %v5121_v50 = vpop.permute.xlu2 %5120 }
0x28d6   : > { %v5136_v54 = vadd.f32 %v5121_v50, %v5098_v2 }
0x28ed   : > { %v5119_v0 = vpop.permute.xlu1 %5118 }
0x28ee   : > { %v5126_v25 = vsel %vm594_vm2, %v5119_v0, %v5121_v50  ;;  %v5134_v15 = vadd.f32 %v5119_v0, %v5096_v19  ;;  %v5125_v51 = vpop.permute.xlu2 %5124 }
0x28ef   : > { %v5135_v63 = vadd.f32 %v5126_v25, %v5097_v20  ;;  %v5139_v27 = vadd.f32 %v5125_v51, %v5101_v6 }
0x28f7   : > { %v5161_v62 = vpop.permute.xlu2 %5160 }
0x28f8   : > { %v5182_v39 = vadd.f32 %v5161_v62, %v5134_v15 }
0x28ff   : > { %v5165_v11 = vpop.permute.xlu2 %5164 }
0x2906   : > { %v5123_v17 = vpop.permute.xlu1 %5122 }
0x2907   : > { %v5127_v16 = vsel %vm594_vm2, %v5123_v17, %v5125_v51  ;;  %v5137_v14 = vadd.f32 %v5123_v17, %v5099_v57 }
0x2908   : > { %v5138_v60 = vadd.f32 %v5127_v16, %v5100_v34 }
0x290e   : > { %v5146_v33 = vpop.permute.xlu1 %5145 }
0x290f   : > { %v5151_v41 = vmul.f32 %v5146_v33, %v9051_v13  ;;  %v5152_v35 = vmul.f32 %v5146_v33, %v9053_v12  ;;  %v5153_v58 = vmul.f32 0.0, %v5146_v33 }
0x2911   : > { %5166 = vrot.lane.b32.xlu0 %v5151_v41, %s6295_s20  ;;  %5168 = vrot.lane.b32.xlu1 %v5152_v35, %s6295_s20 }
0x2912   : > { %5170 = vrot.lane.b32.xlu2 %v5153_v58, %s6295_s20 }
0x2916   : > { %v5163_v10 = vpop.permute.xlu1 %5162 }
0x2917   : > { %v5172_v46 = vsel %vm649_vm3, %v5161_v62, %v5163_v10  ;;  %v5173_v21 = vsel %vm649_vm3, %v5163_v10, %v5165_v11 }
0x2918   : > { %v5183_v42 = vadd.f32 %v5172_v46, %v5135_v63  ;;  %v5184_v56 = vadd.f32 %v5173_v21, %v5136_v54 }
0x2919   : > { %5189 = vperm.xlu0 %6183, %v9372_v52   ;;  %5193 = vperm.xlu1 %6184, %v9378_v18  }
0x2921   : > { %6185 = vset.pattern.permute.xlu0 %v9919_v48  ;;  %6186 = vset.pattern.permute.xlu1 %v9919_v48 }
0x296c   : > { %v5171_v28 = vpop.permute.xlu2 %5170 }
0x2983   : > { %v5169_v38 = vpop.permute.xlu1 %5168  ;;  %v5167_v55 = vpop.permute.xlu0 %5166 }
0x2984   : > { %v5175_v23 = vsel %vm649_vm3, %v5169_v38, %v5171_v28  ;;  %v5174_v59 = vsel %vm649_vm3, %v5167_v55, %v5169_v38  ;;  %v5185_v5 = vadd.f32 %v5167_v55, %v5137_v14  ;;  %v9920_v14 = vmov 13  }
0x2985   : > { %v5187_v24 = vadd.f32 %v5175_v23, %v5139_v27  ;;  %v5186_v30 = vadd.f32 %v5174_v59, %v5138_v60  ;;  %v9921_v60 = vmov 9  }
0x298b   : > { %v5194_v26 = vpop.permute.xlu1 %5193  ;;  %v5190_v31 = vpop.permute.xlu0 %5189 }
0x298c   : > { %v5199_v1 = vmul.f32 %v5194_v26, %v9051_v13  ;;  %v5196_v3 = vmul.f32 %v5190_v31, %v8983_v43  ;;  %v5197_v45 = vmul.f32 %v5190_v31, %v8985_v36  ;;  %v5198_v4 = vmul.f32 0.0, %v5190_v31 }
0x298d   : > { %v5200_v8 = vmul.f32 %v5194_v26, %v9053_v12  ;;  %v5201_v22 = vmul.f32 0.0, %v5194_v26 }
0x298e   : > { %5214 = vrot.lane.b32.xlu0 %v5199_v1, %s6296_s23  ;;  %5208 = vrot.lane.b32.xlu2 %v5196_v3, %s6296_s23 }
0x298f   : > { %5210 = vrot.lane.b32.xlu1 %v5197_v45, %s6296_s23 }
0x2996   : > { %5212 = vrot.lane.b32.xlu2 %v5198_v4, %s6296_s23 }
0x2997   : > { %5216 = vrot.lane.b32.xlu1 %v5200_v8, %s6296_s23 }
0x299e   : > { %5218 = vrot.lane.b32.xlu2 %v5201_v22, %s6296_s23 }
0x29e8   : > { %v5209_v57 = vpop.permute.xlu2 %5208 }
0x29e9   : > { %v5230_v34 = vadd.f32 %v5209_v57, %v5182_v39 }
0x29eb   : > { %5242 = vrot.lane.b32.xlu0 %v5230_v34, %s6307_s26 }
0x29f0   : > { %v5213_v9 = vpop.permute.xlu2 %5212 }
0x29f8   : > { %v5219_v40 = vpop.permute.xlu2 %5218 }
0x2a00   : > { %v5215_v32 = vpop.permute.xlu0 %5214 }
0x2a01   : > { %v5211_v19 = vpop.permute.xlu1 %5210  ;;  %v5233_v20 = vadd.f32 %v5215_v32, %v5185_v5 }
0x2a02   : > { %v5220_v0 = vsel %vm324_vm0, %v5209_v57, %v5211_v19  ;;  %v5221_v25 = vsel %vm324_vm0, %v5211_v19, %v5213_v9 }
0x2a03   : > { %v5231_v15 = vadd.f32 %v5220_v0, %v5183_v42  ;;  %v5232_v51 = vadd.f32 %v5221_v25, %v5184_v56  ;;  %5248 = vrot.lane.b32.xlu0 %v5233_v20, %s6307_s26  ;;  %v9923_v0 = vmov 23  }
0x2a05   : > { %5244 = vrot.lane.b32.xlu1 %v5231_v15, %s6307_s26  ;;  %5246 = vrot.lane.b32.xlu2 %v5232_v51, %s6307_s26 }
0x2a09   : > { %v5217_v53 = vpop.permute.xlu1 %5216 }
0x2a0a   : > { %v5222_v50 = vsel %vm324_vm0, %v5215_v32, %v5217_v53  ;;  %v5223_v63 = vsel %vm324_vm0, %v5217_v53, %v5219_v40 }
0x2a0b   : > { %v5234_v17 = vadd.f32 %v5222_v50, %v5186_v30  ;;  %v5235_v16 = vadd.f32 %v5223_v63, %v5187_v24  ;;  %5267 = vperm.xlu0 %6185, %v9372_v52  }
0x2a0d   : > { %5252 = vrot.lane.b32.xlu2 %v5235_v16, %s6307_s26  ;;  %5250 = vrot.lane.b32.xlu1 %v5234_v17, %s6307_s26 }
0x2a13   : > { %6190 = vset.pattern.permute.xlu0 %v9920_v14 }
0x2a15   : > { %5287 = vperm.xlu2 %6187, %v9372_v52   ;;  %5271 = vperm.xlu1 %6186, %v9378_v18  }
0x2a1d   : > { %6188 = vset.pattern.permute.xlu1 %v9917_v61  ;;  %6189 = vset.pattern.permute.xlu2 %v9920_v14 }
0x2a1e   : > { %5291 = vperm.xlu1 %6188, %v9378_v18  }
0x2a26   : > { %6195 = vset.pattern.permute.xlu1 %v9921_v60 }
0x2a5d   : > { %v5243_v61 = vpop.permute.xlu0 %5242 }
0x2a5f   : > { %v5247_v33 = vpop.permute.xlu2 %5246 }
0x2a67   : > { %v5253_v41 = vpop.permute.xlu2 %5252 }
0x2a6f   : > { %v5288_v35 = vpop.permute.xlu2 %5287 }
0x2a70   : > { %v5294_v58 = vmul.f32 0.0, %v5288_v35  ;;  %v5295_v48 = vmul.f32 %v5288_v35, %v8983_v43  ;;  %v5296_v62 = vmul.f32 %v5288_v35, %v8985_v36 }
0x2a72   : > { %5308 = vrot.lane.b32.xlu0 %v5295_v48, %s6293_s18  ;;  %5310 = vrot.lane.b32.xlu1 %v5296_v62, %s6293_s18 }
0x2a73   : > { %5306 = vrot.lane.b32.xlu2 %v5294_v58, %s6293_s18 }
0x2a75   : > { %v5249_v27 = vpop.permute.xlu0 %5248 }
0x2a77   : > { %v5245_v11 = vpop.permute.xlu1 %5244 }
0x2a78   : > { %v5254_v10 = vsel %vm1229_vm7, %v5243_v61, %v5245_v11  ;;  %v5255_v7 = vsel %vm1229_vm7, %v5245_v11, %v5247_v33 }
0x2a79   : > { %v9471_v6 = vadd.f32 %v5254_v10, %v9346_v49  ;;  %v9474_v28 = vadd.f32 %v5255_v7, %v9348_v37 }
0x2a7f   : > { %v5251_v38 = vpop.permute.xlu1 %5250 }
0x2a80   : > { %v5256_v55 = vsel %vm1229_vm7, %v5249_v27, %v5251_v38  ;;  %v5257_v23 = vsel %vm1229_vm7, %v5251_v38, %v5253_v41 }
0x2a81   : > { %v9479_v59 = vadd.f32 %v5256_v55, %v9358_v47  ;;  %v9482_v5 = vadd.f32 %v5257_v23, %v9360_v44  ;;  %v9922_v47 = vmov 18   ;;  %v9495_v44 = vpop.permute.xlu0 %5267 }
0x2a82   : > { %v5275_v51 = vmul.f32 %v9495_v44, %v8983_v43  ;;  %v5276_v14 = vmul.f32 %v9495_v44, %v8985_v36 }
0x2a87   : > { %v9484_v24 = vpop.permute.xlu1 %5271 }
0x2a88   : > { %v5277_v29 = vmul.f32 0.0, %v9484_v24  ;;  %v5278_v2 = vmul.f32 %v9484_v24, %v9051_v13  ;;  %v5279_v10 = vmul.f32 %v9484_v24, %v9053_v12  ;;  %v9924_v24 = vmov 14  }
0x2a90   : > { %v5292_v30 = vpop.permute.xlu1 %5291 }
0x2a91   : > { %v5297_v49 = vmul.f32 0.0, %v5292_v30  ;;  %v5298_v26 = vmul.f32 %v5292_v30, %v9051_v13  ;;  %v5299_v37 = vmul.f32 %v5292_v30, %v9053_v12 }
0x2a93   : > { %5312 = vrot.lane.b32.xlu2 %v5297_v49, %s6293_s18  ;;  %5316 = vrot.lane.b32.xlu1 %v5299_v37, %s6293_s18 }
0x2a94   : > { %5314 = vrot.lane.b32.xlu0 %v5298_v26, %s6293_s18 }
0x2a9b   : > { %5335 = vperm.xlu2 %6189, %v9372_v52  }
0x2a9c   : > { %5339 = vperm.xlu0 %6190, %v9378_v18  }
0x2aa3   : > { %6191 = vset.pattern.permute.xlu2 %v9922_v47 }
0x2aa4   : > { %6192 = vset.pattern.permute.xlu0 %v9922_v47 }
0x2acd   : > { %v5307_v31 = vpop.permute.xlu2 %5306 }
0x2ae4   : > { %v5309_v1 = vpop.permute.xlu0 %5308  ;;  %v5311_v57 = vpop.permute.xlu1 %5310 }
0x2ae5   : > { %v9498_v3 = vsel %vm545_vm1, %v5307_v31, %v5309_v1  ;;  %v5319_v15 = vsel %vm545_vm1, %v5309_v1, %v5311_v57  ;;  %v5330_v33 = vadd.f32 %v5311_v57, %v5276_v14 }
0x2ae6   : > { %v5329_v40 = vadd.f32 %v5319_v15, %v5275_v51  ;;  %v9925_v51 = vmov 19  }
0x2aed   : > { %v5313_v45 = vpop.permute.xlu2 %5312 }
0x2af5   : > { %v5336_v4 = vpop.permute.xlu2 %5335 }
0x2af6   : > { %v5342_v8 = vmul.f32 %v5336_v4, %v8983_v43  ;;  %v5343_v22 = vmul.f32 %v5336_v4, %v8985_v36  ;;  %v5344_v39 = vmul.f32 0.0, %v5336_v4 }
0x2af8   : > { %5356 = vrot.lane.b32.xlu2 %v5343_v22, %s6294_s19  ;;  %5354 = vrot.lane.b32.xlu1 %v5342_v8, %s6294_s19 }
0x2b00   : > { %5358 = vrot.lane.b32.xlu1 %v5344_v39, %s6294_s19 }
0x2b05   : > { %v5317_v34 = vpop.permute.xlu1 %5316 }
0x2b06   : > { %v5315_v46 = vpop.permute.xlu0 %5314  ;;  %v5333_v7 = vadd.f32 %v5317_v34, %v5279_v10 }
0x2b07   : > { %v5320_v21 = vsel %vm545_vm1, %v5313_v45, %v5315_v46  ;;  %v5321_v54 = vsel %vm545_vm1, %v5315_v46, %v5317_v34 }
0x2b08   : > { %v5331_v9 = vadd.f32 %v5320_v21, %v5277_v29  ;;  %v5332_v32 = vadd.f32 %v5321_v54, %v5278_v2 }
0x2b0e   : > { %v5340_v42 = vpop.permute.xlu0 %5339 }
0x2b0f   : > { %v5345_v56 = vmul.f32 %v5340_v42, %v9051_v13  ;;  %v5346_v19 = vmul.f32 %v5340_v42, %v9053_v12  ;;  %v5347_v20 = vmul.f32 0.0, %v5340_v42 }
0x2b11   : > { %5364 = vrot.lane.b32.xlu1 %v5347_v20, %s6294_s19  ;;  %5362 = vrot.lane.b32.xlu0 %v5346_v19, %s6294_s19 }
0x2b12   : > { %5360 = vrot.lane.b32.xlu2 %v5345_v56, %s6294_s19 }
0x2b19   : > { %5387 = vperm.xlu0 %6192, %v9378_v18  }
0x2b1a   : > { %5383 = vperm.xlu2 %6191, %v9372_v52  }
0x2b21   : > { %6194 = vset.pattern.permute.xlu0 %v9923_v0 }
0x2b22   : > { %6193 = vset.pattern.permute.xlu2 %v9923_v0 }
0x2b52   : > { %v5357_v25 = vpop.permute.xlu2 %5356 }
0x2b6a   : > { %v9522_v53 = vpop.permute.xlu1 %5354 }
0x2b6b   : > { %v5366_v50 = vsel %vm594_vm2, %v9522_v53, %v5357_v25 }
0x2b6c   : > { %v5377_v63 = vadd.f32 %v5366_v50, %v5329_v40  ;;  %v5361_v17 = vpop.permute.xlu2 %5360  ;;  %v9926_v40 = vmov 4   ;;  %v5274_v50 = vmul.f32 0.0, %v9495_v44  ;;  %v9927_v44 = vmov 24  }
0x2b6d   : > { %v5379_v16 = vadd.f32 %v5361_v17, %v5331_v9 }
0x2b72   : > { %v5359_v41 = vpop.permute.xlu1 %5358 }
0x2b73   : > { %v5367_v35 = vsel %vm594_vm2, %v5357_v25, %v5359_v41 }
0x2b74   : > { %v5378_v58 = vadd.f32 %v5367_v35, %v5330_v33  ;;  %v5384_v48 = vpop.permute.xlu2 %5383 }
0x2b75   : > { %v5390_v62 = vmul.f32 %v5384_v48, %v8983_v43  ;;  %v5391_v61 = vmul.f32 %v5384_v48, %v8985_v36  ;;  %v5392_v11 = vmul.f32 0.0, %v5384_v48 }
0x2b77   : > { %5404 = vrot.lane.b32.xlu2 %v5391_v61, %s6295_s20  ;;  %5402 = vrot.lane.b32.xlu1 %v5390_v62, %s6295_s20 }
0x2b7f   : > { %5406 = vrot.lane.b32.xlu1 %v5392_v11, %s6295_s20 }
0x2b83   : > { %v5365_v27 = vpop.permute.xlu1 %5364  ;;  %v5363_v38 = vpop.permute.xlu0 %5362 }
0x2b84   : > { %v5368_v55 = vsel %vm594_vm2, %v5361_v17, %v5363_v38  ;;  %v5369_v23 = vsel %vm594_vm2, %v5363_v38, %v5365_v27 }
0x2b85   : > { %v5380_v30 = vadd.f32 %v5368_v55, %v5332_v32  ;;  %v5381_v49 = vadd.f32 %v5369_v23, %v5333_v7 }
0x2b8b   : > { %v5388_v26 = vpop.permute.xlu0 %5387 }
0x2b8c   : > { %v5393_v37 = vmul.f32 %v5388_v26, %v9051_v13  ;;  %v5394_v47 = vmul.f32 %v5388_v26, %v9053_v12  ;;  %v5395_v31 = vmul.f32 0.0, %v5388_v26 }
0x2b8e   : > { %5410 = vrot.lane.b32.xlu0 %v5394_v47, %s6295_s20  ;;  %5408 = vrot.lane.b32.xlu2 %v5393_v37, %s6295_s20 }
0x2b8f   : > { %5412 = vrot.lane.b32.xlu1 %v5395_v31, %s6295_s20 }
0x2b96   : > { %5435 = vperm.xlu0 %6194, %v9378_v18   ;;  %5431 = vperm.xlu2 %6193, %v9372_v52  }
0x2b9e   : > { %6196 = vset.pattern.permute.xlu2 %v9921_v60  ;;  %6197 = vset.pattern.permute.xlu0 %v9924_v24 }
0x2bd1   : > { %v5405_v1 = vpop.permute.xlu2 %5404 }
0x2be8   : > { %v5409_v45 = vpop.permute.xlu2 %5408 }
0x2be9   : > { %v9547_v4 = vadd.f32 %v5409_v45, %v5379_v16  ;;  %v5403_v8 = vpop.permute.xlu1 %5402 }
0x2bea   : > { %v5414_v22 = vsel %vm649_vm3, %v5403_v8, %v5405_v1 }
0x2beb   : > { %v5425_v39 = vadd.f32 %v5414_v22, %v5377_v63  ;;  %v5328_v63 = vadd.f32 %v9498_v3, %v5274_v50 }
0x2bed   : > { %v5376_v17 = vadd.f32 %v9522_v53, %v5328_v63 }
0x2bef   : > { %v5424_v16 = vadd.f32 %v5403_v8, %v5376_v17 }
0x2bf0   : > { %v5432_v57 = vpop.permute.xlu2 %5431 }
0x2bf1   : > { %v5438_v34 = vmul.f32 %v5432_v57, %v8983_v43  ;;  %v5439_v29 = vmul.f32 %v5432_v57, %v8985_v36  ;;  %v5407_v2 = vpop.permute.xlu1 %5406  ;;  %v5440_v60 = vmul.f32 0.0, %v5432_v57 }
0x2bf2   : > { %v5415_v46 = vsel %vm649_vm3, %v5405_v1, %v5407_v2 }
0x2bf3   : > { %v5426_v21 = vadd.f32 %v5415_v46, %v5378_v58  ;;  %5452 = vrot.lane.b32.xlu2 %v5439_v29, %s6296_s23  ;;  %5450 = vrot.lane.b32.xlu1 %v5438_v34, %s6296_s23 }
0x2bfb   : > { %5454 = vrot.lane.b32.xlu1 %v5440_v60, %s6296_s23 }
0x2c00   : > { %v5411_v54 = vpop.permute.xlu0 %5410 }
0x2c01   : > { %v5416_v9 = vsel %vm649_vm3, %v5409_v45, %v5411_v54  ;;  %v5413_v32 = vpop.permute.xlu1 %5412 }
0x2c02   : > { %v9557_v42 = vadd.f32 %v5416_v9, %v5380_v30  ;;  %v5417_v56 = vsel %vm649_vm3, %v5411_v54, %v5413_v32 }
0x2c03   : > { %v5429_v19 = vadd.f32 %v5417_v56, %v5381_v49 }
0x2c08   : > { %v5436_v20 = vpop.permute.xlu0 %5435 }
0x2c09   : > { %v5441_v0 = vmul.f32 %v5436_v20, %v9051_v13  ;;  %v5442_v25 = vmul.f32 %v5436_v20, %v9053_v12  ;;  %v5443_v15 = vmul.f32 0.0, %v5436_v20 }
0x2c0b   : > { %5458 = vrot.lane.b32.xlu0 %v5442_v25, %s6296_s23  ;;  %5456 = vrot.lane.b32.xlu2 %v5441_v0, %s6296_s23 }
0x2c0c   : > { %5460 = vrot.lane.b32.xlu1 %v5443_v15, %s6296_s23 }
0x2c14   : > { %5539 = vperm.xlu1 %6195, %v9372_v52  }
0x2c1c   : > { %6198 = vset.pattern.permute.xlu1 %v9924_v24 }
0x2c1d   : > { %5591 = vperm.xlu1 %6198, %v9378_v18  }
0x2c25   : > { %6200 = vset.pattern.permute.xlu1 %v9925_v51 }
0x2c26   : > { %5639 = vperm.xlu1 %6200, %v9378_v18  }
0x2c2e   : > { %6203 = vset.pattern.permute.xlu1 %v9926_v40 }
0x2c2f   : > { %5519 = vperm.xlu1 %6203, %v9372_v52  }
0x2c4d   : > { %v5453_v14 = vpop.permute.xlu2 %5452 }
0x2c65   : > { %v5451_v33 = vpop.permute.xlu1 %5450  ;;  %v5457_v23 = vpop.permute.xlu2 %5456 }
0x2c66   : > { %v5462_v41 = vsel %vm324_vm0, %v5451_v33, %v5453_v14  ;;  %v5472_v35 = vadd.f32 %v5451_v33, %v5424_v16 }
0x2c67   : > { %v5473_v58 = vadd.f32 %v5462_v41, %v5425_v39 }
0x2c68   : > { %5490 = vrot.lane.b32.xlu2 %v5472_v35, %s6314_s8 }
0x2c69   : > { %5492 = vrot.lane.b32.xlu0 %v5473_v58, %s6314_s8 }
0x2c6d   : > { %v5455_v48 = vpop.permute.xlu1 %5454 }
0x2c6e   : > { %v5463_v62 = vsel %vm324_vm0, %v5453_v14, %v5455_v48  ;;  %v5475_v14 = vadd.f32 %v5457_v23, %v9547_v4 }
0x2c6f   : > { %v9579_v61 = vadd.f32 %v5463_v62, %v5426_v21 }
0x2c70   : > { %5543 = vperm.xlu2 %6196, %v9378_v18  }
0x2c71   : > { %5587 = vperm.xlu0 %6197, %v9372_v52  }
0x2c78   : > { %6199 = vset.pattern.permute.xlu2 %v9925_v51 }
0x2c79   : > { %5635 = vperm.xlu2 %6199, %v9372_v52   ;;  %6202 = vset.pattern.permute.xlu0 %v9927_v44 }
0x2c7a   : > { %5687 = vperm.xlu0 %6202, %v9378_v18  }
0x2c7d   : > { %v9587_v3 = vpop.permute.xlu0 %5458 }
0x2c7e   : > { %v5461_v53 = vpop.permute.xlu1 %5460  ;;  %v5464_v17 = vsel %vm324_vm0, %v5457_v23, %v9587_v3 }
0x2c7f   : > { %v5465_v11 = vsel %vm324_vm0, %v9587_v3, %v5461_v53  ;;  %v5476_v16 = vadd.f32 %v5464_v17, %v9557_v42 }
0x2c80   : > { %v9591_v10 = vadd.f32 %v5465_v11, %v5429_v19 }
0x2c81   : > { %6201 = vset.pattern.permute.xlu2 %v9927_v44 }
0x2c82   : > { %5683 = vperm.xlu2 %6201, %v9372_v52  }
0x2c86   : > { %v5540_v7 = vpop.permute.xlu1 %5539 }
0x2c87   : > { %v5546_v27 = vmul.f32 0.0, %v5540_v7  ;;  %v5548_v38 = vmul.f32 %v5540_v7, %v8985_v36  ;;  %v5547_v55 = vmul.f32 %v5540_v7, %v8983_v43 }
0x2c89   : > { %5558 = vrot.lane.b32.xlu1 %v5546_v27, %s6293_s18  ;;  %5562 = vrot.lane.b32.xlu0 %v5548_v38, %s6293_s18 }
0x2c8a   : > { %6204 = vset.pattern.permute.xlu2 %v9926_v40 }
0x2c8b   : > { %5523 = vperm.xlu2 %6204, %v9378_v18   ;;  %v9610_v18 = vld [vmem:[%s9718_s5 + $0x3] ss:$8 sm:$0x3] }
0x2c8c   : > { %v5480_v47 = vperm.slane %v9610_v18, 0 }
0x2c8f   : > { %v5592_v34 = vpop.permute.xlu1 %5591 }
0x2c90   : > { %v5599_v29 = vmul.f32 0.0, %v5592_v34  ;;  %v5597_v2 = vmul.f32 %v5592_v34, %v9051_v13  ;;  %v5598_v46 = vmul.f32 %v5592_v34, %v9053_v12 }
0x2c93   : > { %5560 = vrot.lane.b32.xlu2 %v5547_v55, %s6293_s18 }
0x2c98   : > { %v5640_v9 = vpop.permute.xlu1 %5639 }
0x2c99   : > { %v5647_v32 = vmul.f32 0.0, %v5640_v9  ;;  %v5645_v56 = vmul.f32 %v5640_v9, %v9051_v13  ;;  %v5646_v19 = vmul.f32 %v5640_v9, %v9053_v12 }
0x2ca1   : > { %v5520_v35 = vpop.permute.xlu1 %5519 }
0x2cc2   : > { %v5491_v30 = vpop.permute.xlu2 %5490 }
0x2cca   : > { %v5544_v49 = vpop.permute.xlu2 %5543 }
0x2ccb   : > { %v5549_v52 = vmul.f32 0.0, %v5544_v49  ;;  %v5550_v26 = vmul.f32 %v5544_v49, %v9051_v13  ;;  %v5551_v37 = vmul.f32 %v5544_v49, %v9053_v12 }
0x2ccd   : > { %5564 = vrot.lane.b32.xlu1 %v5549_v52, %s6293_s18  ;;  %5568 = vrot.lane.b32.xlu0 %v5551_v37, %s6293_s18  ;;  %v5527_v37 = vmul.f32 %v5520_v35, %v8983_v43 }
0x2cce   : > { %5566 = vrot.lane.b32.xlu2 %v5550_v26, %s6293_s18 }
0x2cdb   : > { %v9613_v31 = vpop.permute.xlu0 %5492 }
0x2cdc   : > { %v5502_v24 = vsel %vm1479_vm6, %v5491_v30, %v9613_v31  ;;  %v5526_v30 = vmul.f32 0.0, %v5520_v35 }
0x2cdd   : > { %v5510_v1 = vmul.f32 %v5502_v24, %v5480_v47  ;;  %v5528_v24 = vmul.f32 %v5520_v35, %v8985_v36 }
0x2cdf   : > { %v9620_v45 = vadd.f32 %v5510_v1, %v9471_v6  ;;  %v5636_v6 = vpop.permute.xlu2 %5635 }
0x2ce0   : > { %v5644_v21 = vmul.f32 0.0, %v5636_v6  ;;  %v5642_v60 = vmul.f32 %v5636_v6, %v8983_v43  ;;  %v5643_v54 = vmul.f32 %v5636_v6, %v8985_v36 }
0x2ce3   : > { %v5588_v8 = vpop.permute.xlu0 %5587 }
0x2ce4   : > { %v5594_v22 = vmul.f32 %v5588_v8, %v8983_v43  ;;  %v5595_v39 = vmul.f32 %v5588_v8, %v8985_v36  ;;  %v5596_v57 = vmul.f32 0.0, %v5588_v8 }
0x2ce6   : > { %5606 = vrot.lane.b32.xlu1 %v5594_v22, %s6294_s19  ;;  %5610 = vrot.lane.b32.xlu0 %v5596_v57, %s6294_s19 }
0x2ce7   : > { %5608 = vrot.lane.b32.xlu2 %v5595_v39, %s6294_s19  ;;  %v5684_v20 = vpop.permute.xlu2 %5683 }
0x2ce8   : > { %v5692_v0 = vmul.f32 0.0, %v5684_v20  ;;  %v5690_v25 = vmul.f32 %v5684_v20, %v8983_v43  ;;  %v5691_v15 = vmul.f32 %v5684_v20, %v8985_v36 }
0x2cec   : > { %v5688_v51 = vpop.permute.xlu0 %5687 }
0x2ced   : > { %v5695_v40 = vmul.f32 0.0, %v5688_v51  ;;  %v5693_v50 = vmul.f32 %v5688_v51, %v9051_v13  ;;  %v5694_v63 = vmul.f32 %v5688_v51, %v9053_v12 }
0x2cee   : > { %5616 = vrot.lane.b32.xlu0 %v5599_v29, %s6294_s19  ;;  %5612 = vrot.lane.b32.xlu1 %v5597_v2, %s6294_s19 }
0x2cef   : > { %5614 = vrot.lane.b32.xlu2 %v5598_v46, %s6294_s19  ;;  %v5524_v33 = vpop.permute.xlu2 %5523 }
0x2cf0   : > { %v5531_v51 = vmul.f32 %v5524_v33, %v9053_v12 }
0x2cf6   : > { %5658 = vrot.lane.b32.xlu0 %v5644_v21, %s6295_s20  ;;  %5654 = vrot.lane.b32.xlu1 %v5642_v60, %s6295_s20  ;;  %v5529_v60 = vmul.f32 0.0, %v5524_v33 }
0x2cf7   : > { %5656 = vrot.lane.b32.xlu2 %v5643_v54, %s6295_s20  ;;  %v5561_v41 = vpop.permute.xlu2 %5560 }
0x2cfb   : > { %v5563_v48 = vpop.permute.xlu0 %5562  ;;  %v5559_v62 = vpop.permute.xlu1 %5558 }
0x2cfc   : > { %v5571_v26 = vsel %vm545_vm1, %v5561_v41, %v5563_v48  ;;  %v5582_v57 = vadd.f32 %v5563_v48, %v5528_v24 }
0x2cfd   : > { %v5581_v39 = vadd.f32 %v5571_v26, %v5527_v37 }
0x2cfe   : > { %5664 = vrot.lane.b32.xlu0 %v5647_v32, %s6295_s20  ;;  %5660 = vrot.lane.b32.xlu1 %v5645_v56, %s6295_s20 }
0x2cff   : > { %5662 = vrot.lane.b32.xlu2 %v5646_v19, %s6295_s20 }
0x2d06   : > { %5706 = vrot.lane.b32.xlu0 %v5692_v0, %s6296_s23  ;;  %5702 = vrot.lane.b32.xlu1 %v5690_v25, %s6296_s23 }
0x2d07   : > { %5704 = vrot.lane.b32.xlu2 %v5691_v15, %s6296_s23  ;;  %v5530_v15 = vmul.f32 %v5524_v33, %v9051_v13 }
0x2d0e   : > { %5712 = vrot.lane.b32.xlu0 %v5695_v40, %s6296_s23  ;;  %5708 = vrot.lane.b32.xlu1 %v5693_v50, %s6296_s23 }
0x2d0f   : > { %5710 = vrot.lane.b32.xlu2 %v5694_v63, %s6296_s23 }
0x2d16   : > { %5498 = vrot.lane.b32.xlu0 %v5476_v16, %s6314_s8  ;;  %5494 = vrot.lane.b32.xlu1 %v9579_v61, %s6314_s8 }
0x2d17   : > { %5496 = vrot.lane.b32.xlu2 %v5475_v14, %s6314_s8 }
0x2d1e   : > { %5500 = vrot.lane.b32.xlu1 %v9591_v10, %s6314_s8  ;;  %v5570_v10 = vsel %vm545_vm1, %v5559_v62, %v5561_v41 }
0x2d1f   : > { %v5580_v1 = vadd.f32 %v5570_v10, %v5526_v30  ;;  %v5481_v10 = vperm.slane %v9610_v18, 1 }
0x2d28   : > { %v5567_v58 = vpop.permute.xlu2 %5566 }
0x2d3f   : > { %v5569_v42 = vpop.permute.xlu0 %5568  ;;  %v5565_v3 = vpop.permute.xlu1 %5564 }
0x2d40   : > { %v5572_v43 = vsel %vm545_vm1, %v5565_v3, %v5567_v58  ;;  %v5573_v19 = vsel %vm545_vm1, %v5567_v58, %v5569_v42  ;;  %v5585_v41 = vadd.f32 %v5569_v42, %v5531_v51 }
0x2d41   : > { %v5609_v44 = vpop.permute.xlu2 %5608  ;;  %v5583_v63 = vadd.f32 %v5572_v43, %v5529_v60  ;;  %v5584_v14 = vadd.f32 %v5573_v19, %v5530_v15 }
0x2d49   : > { %v5615_v4 = vpop.permute.xlu2 %5614 }
0x2d51   : > { %v5657_v61 = vpop.permute.xlu2 %5656 }
0x2d58   : > { %v5611_v53 = vpop.permute.xlu0 %5610  ;;  %v5607_v11 = vpop.permute.xlu1 %5606 }
0x2d59   : > { %v5663_v23 = vpop.permute.xlu2 %5662  ;;  %v5619_v8 = vsel %vm594_vm2, %v5609_v44, %v5611_v53  ;;  %v5618_v22 = vsel %vm594_vm2, %v5607_v11, %v5609_v44  ;;  %v5628_v34 = vadd.f32 %v5607_v11, %v5580_v1 }
0x2d5a   : > { %v5630_v6 = vadd.f32 %v5619_v8, %v5582_v57  ;;  %v5629_v21 = vadd.f32 %v5618_v22, %v5581_v39 }
0x2d60   : > { %v5617_v7 = vpop.permute.xlu0 %5616  ;;  %v5613_v27 = vpop.permute.xlu1 %5612 }
0x2d61   : > { %v5705_v29 = vpop.permute.xlu2 %5704  ;;  %v5621_v17 = vsel %vm594_vm2, %v5615_v4, %v5617_v7  ;;  %v5620_v16 = vsel %vm594_vm2, %v5613_v27, %v5615_v4  ;;  %v5631_v35 = vadd.f32 %v5613_v27, %v5583_v63 }
0x2d62   : > { %v5633_v33 = vadd.f32 %v5621_v17, %v5585_v41  ;;  %v5632_v58 = vadd.f32 %v5620_v16, %v5584_v14 }
0x2d68   : > { %v5659_v38 = vpop.permute.xlu0 %5658  ;;  %v5655_v55 = vpop.permute.xlu1 %5654 }
0x2d69   : > { %v5667_v2 = vsel %vm649_vm3, %v5657_v61, %v5659_v38  ;;  %v5666_v46 = vsel %vm649_vm3, %v5655_v55, %v5657_v61  ;;  %v5676_v54 = vadd.f32 %v5655_v55, %v5628_v34  ;;  %v5711_v48 = vpop.permute.xlu2 %5710 }
0x2d6a   : > { %v5678_v36 = vadd.f32 %v5667_v2, %v5630_v6  ;;  %v5677_v9 = vadd.f32 %v5666_v46, %v5629_v21 }
0x2d70   : > { %v5665_v49 = vpop.permute.xlu0 %5664  ;;  %v5661_v52 = vpop.permute.xlu1 %5660 }
0x2d71   : > { %v5669_v13 = vsel %vm649_vm3, %v5663_v23, %v5665_v49  ;;  %v5668_v12 = vsel %vm649_vm3, %v5661_v52, %v5663_v23  ;;  %v5679_v62 = vadd.f32 %v5661_v52, %v5631_v35  ;;  %v5497_v55 = vpop.permute.xlu2 %5496  ;;  %v5941_v52 = vld [vmem:[%s9718_s5 + $0x4] ss:$8 sm:$0x3] }
0x2d72   : > { %v5681_v44 = vadd.f32 %v5669_v13, %v5633_v33  ;;  %v5680_v3 = vadd.f32 %v5668_v12, %v5632_v58  ;;  %v5732_v24 = vperm.slane %v5941_v52, 0  ;;  %v5733_v1 = vperm.slane %v5941_v52, 1 }
0x2d78   : > { %v5707_v32 = vpop.permute.xlu0 %5706  ;;  %v5703_v56 = vpop.permute.xlu1 %5702 }
0x2d79   : > { %v5715_v20 = vsel %vm324_vm0, %v5705_v29, %v5707_v32  ;;  %v5714_v0 = vsel %vm324_vm0, %v5703_v56, %v5705_v29  ;;  %v5724_v25 = vadd.f32 %v5703_v56, %v5676_v54 }
0x2d7a   : > { %v5726_v40 = vadd.f32 %v5715_v20, %v5678_v36  ;;  %v5725_v50 = vadd.f32 %v5714_v0, %v5677_v9 }
0x2d7b   : > { %5742 = vrot.lane.b32.xlu2 %v5724_v25, %s6318_s9 }
0x2d7c   : > { %5746 = vrot.lane.b32.xlu1 %v5726_v40, %s6318_s9  ;;  %5744 = vrot.lane.b32.xlu0 %v5725_v50, %s6318_s9 }
0x2d80   : > { %v5713_v4 = vpop.permute.xlu0 %5712  ;;  %v5709_v53 = vpop.permute.xlu1 %5708 }
0x2d81   : > { %v5717_v11 = vsel %vm324_vm0, %v5711_v48, %v5713_v4  ;;  %v5716_v42 = vsel %vm324_vm0, %v5709_v53, %v5711_v48  ;;  %v5727_v7 = vadd.f32 %v5709_v53, %v5679_v62  ;;  %vm9928_vm0 = vcmask 244736  }
0x2d82   : > { %v5729_v61 = vadd.f32 %v5717_v11, %v5681_v44  ;;  %v5728_v38 = vadd.f32 %v5716_v42, %v5680_v3  ;;  %vm9929_vm1 = vmmov %vm9928_vm0 }
0x2d83   : > { %5748 = vrot.lane.b32.xlu2 %v5727_v7, %s6318_s9  ;;  %vm9930_vm2 = vmmov %vm9928_vm0 }
0x2d84   : > { %5752 = vrot.lane.b32.xlu1 %v5729_v61, %s6318_s9  ;;  %5750 = vrot.lane.b32.xlu0 %v5728_v38, %s6318_s9  ;;  %vm9931_vm3 = vmmov %vm9928_vm0 }
0x2d88   : > { %v5495_v27 = vpop.permute.xlu1 %5494  ;;  %v5499_v23 = vpop.permute.xlu0 %5498 }
0x2d89   : > { %v5503_v49 = vsel %vm1479_vm6, %v9613_v31, %v5495_v27  ;;  %v5504_v34 = vsel %vm1479_vm6, %v5497_v55, %v5499_v23 }
0x2d8a   : > { %v5511_v37 = vmul.f32 %v5503_v49, %v5481_v10  ;;  %v5512_v60 = vmul.f32 %v5504_v34, %v5480_v47 }
0x2d8c   : > { %v5515_v29 = vadd.f32 %v5511_v37, %v9474_v28  ;;  %v5516_v28 = vadd.f32 %v5512_v60, %v9479_v59 }
0x2d90   : > { %v5501_v30 = vpop.permute.xlu1 %5500 }
0x2d91   : > { %v5505_v46 = vsel %vm1479_vm6, %v5499_v23, %v5501_v30 }
0x2d92   : > { %v5513_v54 = vmul.f32 %v5505_v46, %v5481_v10 }
0x2dd5   : > { %v5743_v26 = vpop.permute.xlu2 %5742 }
0x2ddd   : > { %v5749_v9 = vpop.permute.xlu2 %5748 }
0x2dee   : > { %v5745_v8 = vpop.permute.xlu0 %5744  ;;  %v5747_v22 = vpop.permute.xlu1 %5746 }
0x2def   : > { %v5754_v39 = vsel %vm9928_vm0, %v5743_v26, %v5745_v8  ;;  %v5755_v57 = vsel %vm9929_vm1, %v5745_v8, %v5747_v22 }
0x2df0   : > { %v5762_v2 = vmul.f32 %v5754_v39, %v5732_v24  ;;  %v5763_v31 = vmul.f32 %v5755_v57, %v5733_v1 }
0x2df2   : > { %v5766_v6 = vadd.f32 %v5762_v2, %v9620_v45  ;;  %v5767_v21 = vadd.f32 %v5763_v31, %v5515_v29  ;;  %v5517_v45 = vadd.f32 %v5513_v54, %v9482_v5 }
0x2df4   : > { %v5770_v43 = vsub.f32 0.0, %v5766_v6  ;;  %v5771_v36 = vsub.f32 0.0, %v5767_v21 }
0x2df6   : > { %v5774_v32 = vmul.f32 1.442695, %v5770_v43  ;;  %v5776_v56 = vmul.f32 1.442695, %v5771_v36  ;;  %v5751_v19 = vpop.permute.xlu0 %5750  ;;  %v5753_v20 = vpop.permute.xlu1 %5752 }
0x2df7   : > { %v5756_v0 = vsel %vm9930_vm2, %v5749_v9, %v5751_v19  ;;  %v5757_v25 = vsel %vm9931_vm3, %v5751_v19, %v5753_v20 }
0x2df8   : > { %6253 = vpow2.f32 %v5774_v32  ;;  %v5764_v15 = vmul.f32 %v5756_v0, %v5732_v24  ;;  %v5765_v18 = vmul.f32 %v5757_v25, %v5733_v1 }
0x2df9   : > { %6255 = vpow2.f32 %v5776_v56 }
0x2dfa   : > { %v5768_v47 = vadd.f32 %v5764_v15, %v5516_v28  ;;  %v5769_v51 = vadd.f32 %v5765_v18, %v5517_v45 }
0x2dfc   : > { %v5772_v40 = vsub.f32 0.0, %v5768_v47  ;;  %v5773_v50 = vsub.f32 0.0, %v5769_v51 }
0x2dfe   : > { %v6254_v63 = vpop.eup %6253  ;;  %v5778_v17 = vmul.f32 1.442695, %v5772_v40  ;;  %v5780_v41 = vmul.f32 1.442695, %v5773_v50 }
0x2dff   : > { %v6256_v16 = vpop.eup %6255  ;;  %v5782_v14 = vadd.f32 1.0, %v6254_v63 }
0x2e00   : > { %v5783_v59 = vadd.f32 1.0, %v6256_v16  ;;  %6257 = vpow2.f32 %v5778_v17 }
0x2e01   : > { %6259 = vrcp.f32 %v5782_v14  ;;  %v5795_v3 = vand.u32 2147483647, %v5782_v14  ;;  %v5797_v4 = vand.u32 2147483648, %v5782_v14  ;;  %vm5791_vm6 = vweird.f32 %v5782_v14 }
0x2e02   : > { %6261 = vrcp.f32 %v5783_v59  ;;  %v5812_v42 = vand.u32 2147483648, %v5783_v59  ;;  %v5810_v61 = vand.u32 2147483647, %v5783_v59  ;;  %vm5806_vm9 = vweird.f32 %v5783_v59 }
0x2e03   : > { %6263 = vpow2.f32 %v5780_v41  ;;  %v5798_v55 = vor.u32 1.1754944e-38, %v5797_v4  ;;  %vm5796_vm10 = vcmp.eq.f32.partialorder %v5795_v3, 8.507059e+37 }
0x2e04   : > { %v5813_v10 = vor.u32 1.1754944e-38, %v5812_v42  ;;  %vm5811_vm11 = vcmp.eq.f32.partialorder %v5810_v61, 8.507059e+37 }
0x2e06   : > { %v6258_v35 = vpop.eup %6257 }
0x2e07   : > { %v6260_v5 = vpop.eup %6259  ;;  %v5784_v13 = vadd.f32 1.0, %v6258_v35 }
0x2e08   : > { %v6262_v12 = vpop.eup %6261  ;;  %v5787_v33 = vmul.f32 %v6260_v5, %v5782_v14  ;;  %vm5792_vm4 = vweird.f32 %v6260_v5 }
0x2e09   : > { %v6264_v58 = vpop.eup %6263  ;;  %v5802_v48 = vmul.f32 %v6262_v12, %v5783_v59  ;;  %6265 = vrcp.f32 %v5784_v13  ;;  %vm5807_vm5 = vweird.f32 %v6262_v12  ;;  %vm5793_vm7 = vmor %vm5791_vm6, %vm5792_vm4  ;;  %v5827_v8 = vand.u32 2147483648, %v5784_v13 }
0x2e0a   : > { %v5788_v62 = vsub.f32 1.0, %v5787_v33  ;;  %v5785_v44 = vadd.f32 1.0, %v6264_v58  ;;  %vm5808_vm8 = vmor %vm5806_vm9, %vm5807_vm5  ;;  %v5825_v57 = vand.u32 2147483647, %v5784_v13  ;;  %vm5821_vm13 = vweird.f32 %v5784_v13 }
0x2e0b   : > { %v5803_v53 = vsub.f32 1.0, %v5802_v48  ;;  %v5828_v31 = vor.u32 1.1754944e-38, %v5827_v8 }
0x2e0c   : > { %v5789_v11 = vmul.f32 %v6260_v5, %v5788_v62  ;;  %6267 = vrcp.f32 %v5785_v44  ;;  %v5842_v2 = vand.u32 2147483648, %v5785_v44  ;;  %v5840_v6 = vand.u32 2147483647, %v5785_v44 }
0x2e0d   : > { %v5804_v7 = vmul.f32 %v6262_v12, %v5803_v53  ;;  %vm5826_vm0 = vcmp.eq.f32.partialorder %v5825_v57, 8.507059e+37  ;;  %vm5836_vm1 = vweird.f32 %v5785_v44 }
0x2e0e   : > { %v5790_v38 = vadd.f32 %v6260_v5, %v5789_v11  ;;  %v5843_v43 = vor.u32 1.1754944e-38, %v5842_v2  ;;  %vm5841_vm3 = vcmp.eq.f32.partialorder %v5840_v6, 8.507059e+37 }
0x2e0f   : > { %v6266_v27 = vpop.eup %6265  ;;  %v5805_v23 = vadd.f32 %v6262_v12, %v5804_v7 }
0x2e10   : > { %v5794_v30 = vsel %vm5793_vm7, %v6260_v5, %v5790_v38  ;;  %v5817_v49 = vmul.f32 %v6266_v27, %v5784_v13  ;;  %vm5822_vm12 = vweird.f32 %v6266_v27 }
0x2e11   : > { %v5799_v52 = vsel %vm5796_vm10, %v5798_v55, %v5794_v30  ;;  %v5809_v26 = vsel %vm5808_vm8, %v6262_v12, %v5805_v23  ;;  %vm5823_vm14 = vmor %vm5821_vm13, %vm5822_vm12 }
0x2e12   : > { %v6268_v37 = vpop.eup %6267  ;;  %5846 = vst [vmem:[%s7460_s30 + $0x60] sm:$0xff] %v5799_v52  ;;  %v5814_v24 = vsel %vm5811_vm11, %v5813_v10, %v5809_v26  ;;  %v5818_v1 = vsub.f32 1.0, %v5817_v49 }
0x2e13   : > { %5847 = vst [vmem:[%s7460_s30 + $0x68] sm:$0xff] %v5814_v24  ;;  %v5832_v22 = vmul.f32 %v6268_v37, %v5785_v44  ;;  %vm5837_vm15 = vweird.f32 %v6268_v37 }
0x2e14   : > { %v5819_v39 = vmul.f32 %v6266_v27, %v5818_v1  ;;  %vm5838_vm2 = vmor %vm5836_vm1, %vm5837_vm15 }
0x2e15   : > { %v5833_v34 = vsub.f32 1.0, %v5832_v22 }
0x2e16   : > { %v5820_v29 = vadd.f32 %v6266_v27, %v5819_v39 }
0x2e17   : > { %v5834_v46 = vmul.f32 %v6268_v37, %v5833_v34 }
0x2e18   : > { %v5824_v21 = vsel %vm5823_vm14, %v6266_v27, %v5820_v29 }
0x2e19   : > { %v5829_v60 = vsel %vm5826_vm0, %v5828_v31, %v5824_v21  ;;  %v5835_v54 = vadd.f32 %v6268_v37, %v5834_v46 }
0x2e1a   : > { %5848 = vst [vmem:[%s7460_s30 + $0x70] sm:$0xff] %v5829_v60 }
0x2e1b   : > { %v5839_v36 = vsel %vm5838_vm2, %v6268_v37, %v5835_v54 }
0x2e1c   : > { %v5844_v9 = vsel %vm5841_vm3, %v5843_v43, %v5839_v36 }
0x2e1d   : > { %5849 = vst [vmem:[%s7460_s30 + $0x78] sm:$0xff] %v5844_v9 }
0x2e1e PF: > { %s16_s21 = sadd.s32 1, %s6283_s21  }
0x2e1f   : > { %p13_p4 = scmp.ge.s32.totalorder %s16_s21, 4  }
0x2e21   :  { %15 = sbr.rel (!%p13_p4) target bundleno = 1 (0x1), region = 77 }

</bundles_post_ra>
